<compile_context>
chip_gen: v6e
topology: v6e:2x2x1
jax: 0.10.0
libtpu: 0.0.40
codegen_flags: <defaults>
</compile_context>

<pallas_src>
import functools
import math

import jax
import jax.numpy as jnp
from jax.experimental import pallas as pl
from jax.experimental.pallas import tpu as pltpu

EPS = 1e-5
EXPANSION = 4
_PAD_W = 8  # interior W offset inside the conv3x3 padded f32 scratch (8-row aligned)


def _pick_vmem_limit():
    """Scoped-VMEM limit: generous on v5e/v6e (128 MiB physical), safe on v7x."""
    try:
        cap = int(pltpu.get_tpu_info().vmem_capacity_bytes)
    except Exception:
        cap = 64 * 1024 * 1024
    return int(min(cap // 2 + 16 * 1024 * 1024, 96 * 1024 * 1024))


_VMEM_LIMIT = _pick_vmem_limit()


# ----------------------------- small helpers -----------------------------

def _round_up(x, m):
    return ((x + m - 1) // m) * m


def _row_tile(m):
    """Pixel (sublane) tile: 512 rows when possible, else 8-aligned."""
    return 512 if m >= 512 else _round_up(max(m, 1), 8)


def _col_tile(c):
    """Channel (lane) tile: full if small, else 256/128-aligned."""
    if c <= 256:
        return c
    if c % 256 == 0:
        return 256
    if c % 128 == 0:
        return 128
    return c


def _conv_row_chunk(ho, wo, tn):
    """Output-row chunk for the 3x3 conv: keep the f32 accumulator ~<=128 KiB
    and prefer chunk boundaries whose flattened row offset stays 16-aligned
    (so the bf16 output store starts on a packed sublane-tile boundary)."""
    rc = max(1, min(ho, 32768 // max(tn * wo, 1)))
    while rc > 1 and (rc * wo) % 16 != 0:
        rc -= 1
    return rc


def _compiler_params(semantics):
    return pltpu.CompilerParams(dimension_semantics=semantics,
                                vmem_limit_bytes=_VMEM_LIMIT)


def _bn_scale_shift(col_sum, col_ssq, count, gamma, beta):
    """Fold (per-shard) batch-stat sums into a per-channel affine y*scale+shift."""
    c = col_sum.shape[-1]
    s = jnp.sum(col_sum.reshape(-1, c), axis=0)
    ss = jnp.sum(col_ssq.reshape(-1, c), axis=0)
    mean = s / count
    # TODO(synk): one-pass E[y^2]-E[y]^2 can lose precision for very large M;
    # switch to shifted / Welford-combined sums if tighter parity is required.
    var = jnp.maximum(ss / count - mean * mean, 0.0)
    inv = jax.lax.rsqrt(var + EPS)
    scale = gamma.astype(jnp.float32) * inv
    shift = beta.astype(jnp.float32) - mean * scale
    return scale.reshape(1, -1), shift.reshape(1, -1)


# ----------------------------- Pallas kernels -----------------------------

def _matmul_stats_kernel(*refs, in_affine, relu_in, m_true, tm, ni):
    """1x1 conv as a tiled matmul, emitting pre-BN bf16 output plus
    per-shard per-channel sum / sum-of-squares (f32), accumulated across the
    innermost ("arbitrary") M-tile grid axis.

    Optionally fuses the previous layer's BatchNorm (+ReLU) into the input
    tile before the MXU dot (used for conv3's bn2+relu)."""
    if in_affine:
        x_ref, w_ref, si_ref, sh_ref, y_ref, sum_ref, ssq_ref = refs
    else:
        x_ref, w_ref, y_ref, sum_ref, ssq_ref = refs

    i = pl.program_id(2)  # M-tile index inside this shard (stats reduction axis)

    @pl.when(i == 0)
    def _init():
        sum_ref[...] = jnp.zeros_like(sum_ref)
        ssq_ref[...] = jnp.zeros_like(ssq_ref)

    x = x_ref[...]
    if in_affine:
        x = x.astype(jnp.float32) * si_ref[...] + sh_ref[...]
        if relu_in:
            x = jnp.maximum(x, 0.0)
        if m_true % tm != 0:
            # Only compiled in when the wrapper actually padded M.  Padded rows
            # would otherwise contribute relu(shift) != 0 to the batch stats.
            s = pl.program_id(0)
            row = (s * ni + i) * tm + jax.lax.broadcasted_iota(jnp.int32, x.shape, 0)
            x = jnp.where(row < m_true, x, 0.0)
        x = x.astype(w_ref.dtype)
    # (when not in_affine, wrapper-side zero padding keeps the stats exact)

    y = jnp.dot(x, w_ref[...], preferred_element_type=jnp.float32)
    y_ref[...] = y.astype(y_ref.dtype)
    sum_ref[...] += jnp.sum(y, axis=0, keepdims=True)[None]
    ssq_ref[...] += jnp.sum(y * y, axis=0, keepdims=True)[None]


def _conv3x3_stats_kernel(x_ref, w_ref, si_ref, sh_ref, y_ref, sum_ref, ssq_ref,
                          xp_ref, *, stride, h, w, ho, wo, row_chunk):
    """3x3 conv (padding=1) for one image per grid step.

    Fuses bn1+ReLU and the zero padding: the raw conv1 output tile is
    normalized in f32 and written into a zero-filled padded f32 VMEM scratch
    whose interior starts at (1, _PAD_W) -- a sublane-aligned store.  The 9
    taps are then sliced from the scratch and accumulated on the MXU in f32,
    chunked over output rows so the accumulator stays small.  Per-shard
    per-channel sum / sum-of-squares are accumulated across the image axis.
    """
    b = pl.program_id(2)

    @pl.when(b == 0)
    def _init():
        sum_ref[...] = jnp.zeros_like(sum_ref)
        ssq_ref[...] = jnp.zeros_like(ssq_ref)

    cin = x_ref.shape[3]
    tn = y_ref.shape[2]

    # bn1 + relu fused; VMEM-only zero fill replaces the HBM-side jnp.pad.
    xp_ref[...] = jnp.zeros_like(xp_ref)
    xact = jnp.maximum(x_ref[0].astype(jnp.float32) * si_ref[...] + sh_ref[...], 0.0)
    xp_ref[pl.ds(1, h), pl.ds(_PAD_W, w), :] = xact

    csum = jnp.zeros((1, tn), jnp.float32)
    cssq = jnp.zeros((1, tn), jnp.float32)
    for r0 in range(0, ho, row_chunk):           # static unroll over row chunks
        rh = min(row_chunk, ho - r0)
        acc = jnp.zeros((rh * wo, tn), jnp.float32)
        for kh in range(3):                      # static unroll over the 9 taps
            for kw in range(3):
                rs = r0 * stride + kh            # rows: free axis, any offset ok
                cs = _PAD_W - 1 + kw             # cols: sublane axis
                if stride == 1:
                    tap = xp_ref[pl.ds(rs, rh), pl.ds(cs, wo), :]
                else:
                    # TODO(synk): strided sublane reads (downsample blocks) take
                    # Mosaic's slow path; special-case if stride=2 blocks matter.
                    tap = xp_ref[pl.ds(rs, rh, stride=stride),
                                 pl.ds(cs, wo, stride=stride), :]
                tap = tap.reshape(rh * wo, cin).astype(w_ref.dtype)
                acc = acc + jnp.dot(tap, w_ref[kh * 3 + kw],
                                    preferred_element_type=jnp.float32)
        y_ref[0, pl.ds(r0 * wo, rh * wo), :] = acc.astype(y_ref.dtype)
        csum = csum + jnp.sum(acc, axis=0, keepdims=True)
        cssq = cssq + jnp.sum(acc * acc, axis=0, keepdims=True)

    sum_ref[...] += csum[None]
    ssq_ref[...] += cssq[None]


def _final_kernel(*refs, bn_shortcut):
    """out = relu(bn3(y3) + shortcut), shortcut = bn_s(ys) or identity x."""
    if bn_shortcut:
        y_ref, ys_ref, sc_ref, sh_ref, scs_ref, shs_ref, o_ref = refs
        short = ys_ref[...].astype(jnp.float32) * scs_ref[...] + shs_ref[...]
    else:
        y_ref, xs_ref, sc_ref, sh_ref, o_ref = refs
        short = xs_ref[...].astype(jnp.float32)
    main = y_ref[...].astype(jnp.float32) * sc_ref[...] + sh_ref[...]
    o_ref[...] = jnp.maximum(main + short, 0.0).astype(o_ref.dtype)


# ----------------------------- pallas_call wrappers -----------------------------

def _conv1x1_stats(x2d, w, *, in_scale=None, in_shift=None, relu_in=False,
                   out_dtype=jnp.bfloat16):
    """x2d: (M, K), w: (K, Cout).  Returns pre-BN y (M, Cout) in `out_dtype`
    plus per-shard (ns, 1, Cout) f32 sum / sum-of-squares over the M rows."""
    m, k = x2d.shape
    cout = w.shape[1]
    tm = _row_tile(m)
    m_pad = _round_up(m, tm)
    if m_pad != m:
        # TODO(synk): mask the ragged tail tile in-kernel instead of padding HBM.
        x2d = jnp.pad(x2d, ((0, m_pad - m), (0, 0)))
    tn = _col_tile(cout)
    nj = cout // tn
    tiles = m_pad // tm
    # Megacore (v7x): shard M across 2 cores with per-shard partial stats when
    # the Cout-tile axis alone cannot feed both cores.
    ns = 2 if (nj == 1 and tiles >= 2 and tiles % 2 == 0) else 1
    ni = tiles // ns
    in_affine = in_scale is not None

    kernel = functools.partial(_matmul_stats_kernel, in_affine=in_affine,
                               relu_in=relu_in, m_true=m, tm=tm, ni=ni)

    in_specs = [pl.BlockSpec((tm, k), lambda s, j, i: (s * ni + i, 0)),
                pl.BlockSpec((k, tn), lambda s, j, i: (0, j))]
    inputs = [x2d, w]
    if in_affine:
        in_specs += [pl.BlockSpec((1, k), lambda s, j, i: (0, 0)),
                     pl.BlockSpec((1, k), lambda s, j, i: (0, 0))]
        inputs += [in_scale, in_shift]

    y, ssum, sssq = pl.pallas_call(
        kernel,
        grid=(ns, nj, ni),
        in_specs=in_specs,
        out_specs=[pl.BlockSpec((tm, tn), lambda s, j, i: (s * ni + i, j)),
                   pl.BlockSpec((1, 1, tn), lambda s, j, i: (s, 0, j)),
                   pl.BlockSpec((1, 1, tn), lambda s, j, i: (s, 0, j))],
        out_shape=[jax.ShapeDtypeStruct((m_pad, cout), out_dtype),
                   jax.ShapeDtypeStruct((ns, 1, cout), jnp.float32),
                   jax.ShapeDtypeStruct((ns, 1, cout), jnp.float32)],
        compiler_params=_compiler_params(("parallel", "parallel", "arbitrary")),
    )(*inputs)
    return y[:m], ssum, sssq


def _conv3x3_stats(x_nhwc, w33, scale_in, shift_in, *, stride,
                   out_dtype=jnp.bfloat16):
    """x_nhwc: (N, H, W, Cin) raw (pre-BN) conv1 output.  bn1+relu and zero
    padding are applied inside the kernel.  Returns pre-BN y (N*Ho*Wo, Cout)
    in `out_dtype` plus per-shard stats, and (Ho, Wo)."""
    n, h, w, cin = x_nhwc.shape
    cout = w33.shape[-1]
    ho = (h + 2 - 3) // stride + 1
    wo = (w + 2 - 3) // stride + 1
    w_flat = w33.reshape(9, cin, cout)
    tn = _col_tile(cout)
    nj = cout // tn
    ns = 2 if (nj == 1 and n >= 2 and n % 2 == 0) else 1
    nb = n // ns
    rc = _conv_row_chunk(ho, wo, tn)

    kernel = functools.partial(_conv3x3_stats_kernel, stride=stride, h=h, w=w,
                               ho=ho, wo=wo, row_chunk=rc)
    y3d, ssum, sssq = pl.pallas_call(
        kernel,
        grid=(ns, nj, nb),
        in_specs=[pl.BlockSpec((1, h, w, cin), lambda s, j, b: (s * nb + b, 0, 0, 0)),
                  pl.BlockSpec((9, cin, tn), lambda s, j, b: (0, 0, j)),
                  pl.BlockSpec((1, cin), lambda s, j, b: (0, 0)),
                  pl.BlockSpec((1, cin), lambda s, j, b: (0, 0))],
        out_specs=[pl.BlockSpec((1, ho * wo, tn), lambda s, j, b: (s * nb + b, 0, j)),
                   pl.BlockSpec((1, 1, tn), lambda s, j, b: (s, 0, j)),
                   pl.BlockSpec((1, 1, tn), lambda s, j, b: (s, 0, j))],
        out_shape=[jax.ShapeDtypeStruct((n, ho * wo, cout), out_dtype),
                   jax.ShapeDtypeStruct((ns, 1, cout), jnp.float32),
                   jax.ShapeDtypeStruct((ns, 1, cout), jnp.float32)],
        scratch_shapes=[pltpu.VMEM((h + 2, w + 2 * _PAD_W, cin), jnp.float32)],
        compiler_params=_compiler_params(("parallel", "parallel", "arbitrary")),
    )(x_nhwc, w_flat, scale_in, shift_in)
    return y3d.reshape(n * ho * wo, cout), ssum, sssq, ho, wo


def _bn_add_relu(y3, scale3, shift3, shortcut, scale_s=None, shift_s=None):
    m, c = y3.shape
    tm = _row_tile(m)
    m_pad = _round_up(m, tm)
    bn_shortcut = scale_s is not None
    if m_pad != m:
        y3 = jnp.pad(y3, ((0, m_pad - m), (0, 0)))
        shortcut = jnp.pad(shortcut, ((0, m_pad - m), (0, 0)))

    inputs = [y3, shortcut, scale3, shift3]
    in_specs = [pl.BlockSpec((tm, c), lambda i: (i, 0)),
                pl.BlockSpec((tm, c), lambda i: (i, 0)),
                pl.BlockSpec((1, c), lambda i: (0, 0)),
                pl.BlockSpec((1, c), lambda i: (0, 0))]
    if bn_shortcut:
        inputs += [scale_s, shift_s]
        in_specs += [pl.BlockSpec((1, c), lambda i: (0, 0)),
                     pl.BlockSpec((1, c), lambda i: (0, 0))]

    kernel = functools.partial(_final_kernel, bn_shortcut=bn_shortcut)
    out = pl.pallas_call(
        kernel,
        grid=(m_pad // tm,),
        in_specs=in_specs,
        out_specs=pl.BlockSpec((tm, c), lambda i: (i, 0)),
        out_shape=jax.ShapeDtypeStruct((m_pad, c), jnp.float32),
        compiler_params=_compiler_params(("parallel",)),
    )(*inputs)
    return out[:m]


# ----------------------------- parameters -----------------------------

def init_params(key, in_planes, planes):
    cout3 = EXPANSION * planes
    ks = jax.random.split(key, 9)

    def kaiming(k, shape, fan_in):
        return jax.random.normal(k, shape, jnp.float32) * math.sqrt(2.0 / fan_in)

    return {
        # conv weights stored channels-last-friendly: (Cin, Cout) / (kh,kw,Cin,Cout)
        "w1": kaiming(ks[0], (in_planes, planes), in_planes),
        "g1": 1.0 + 0.1 * jax.random.normal(ks[1], (planes,), jnp.float32),
        "b1": 0.1 * jax.random.normal(ks[2], (planes,), jnp.float32),
        "w2": kaiming(ks[3], (3, 3, planes, planes), 9 * planes),
        "g2": 1.0 + 0.1 * jax.random.normal(ks[4], (planes,), jnp.float32),
        "b2": 0.1 * jax.random.normal(ks[5], (planes,), jnp.float32),
        "w3": kaiming(ks[6], (planes, cout3), planes),
        "g3": 1.0 + 0.1 * jax.random.normal(ks[7], (cout3,), jnp.float32),
        "b3": 0.1 * jax.random.normal(ks[8], (cout3,), jnp.float32),
    }


def init_shortcut_params(key, in_planes, planes):
    cout3 = EXPANSION * planes
    k1, k2, k3 = jax.random.split(key, 3)
    return {
        "ws": jax.random.normal(k1, (in_planes, cout3), jnp.float32)
              * math.sqrt(2.0 / in_planes),
        "gs": 1.0 + 0.1 * jax.random.normal(k2, (cout3,), jnp.float32),
        "bs": 0.1 * jax.random.normal(k3, (cout3,), jnp.float32),
    }


# ----------------------------- Bottleneck forward -----------------------------

def bottleneck_forward(x_nchw, params, *, in_planes, planes, stride=1,
                       compute_dtype=jnp.bfloat16):
    """Pallas implementation of Bottleneck.forward. Input/output are NCHW."""
    n, c, h, w = x_nchw.shape
    assert c == in_planes
    cout3 = EXPANSION * planes
    has_shortcut = (stride != 1) or (in_planes != cout3)

    x_nhwc = jnp.transpose(x_nchw, (0, 2, 3, 1))
    x_lp = x_nhwc.astype(compute_dtype)
    x2d = x_lp.reshape(n * h * w, in_planes)
    m0 = n * h * w

    w1 = params["w1"].astype(compute_dtype)
    w2 = params["w2"].astype(compute_dtype)
    w3 = params["w3"].astype(compute_dtype)

    # conv1 (1x1): pre-BN output stored bf16, per-shard f32 stats for BN1
    y1, s1, ss1 = _conv1x1_stats(x2d, w1, out_dtype=compute_dtype)
    scale1, shift1 = _bn_scale_shift(s1, ss1, m0, params["g1"], params["b1"])

    # conv2 (3x3, stride, pad=1) with bn1+relu + zero padding fused in-kernel
    y2, s2, ss2, ho, wo = _conv3x3_stats(y1.reshape(n, h, w, planes), w2,
                                         scale1, shift1, stride=stride,
                                         out_dtype=compute_dtype)
    m1 = n * ho * wo
    scale2, shift2 = _bn_scale_shift(s2, ss2, m1, params["g2"], params["b2"])

    # conv3 (1x1) with bn2+relu fused onto its input
    y3, s3, ss3 = _conv1x1_stats(y2, w3, in_scale=scale2, in_shift=shift2,
                                 relu_in=True, out_dtype=compute_dtype)
    scale3, shift3 = _bn_scale_shift(s3, ss3, m1, params["g3"], params["b3"])

    # shortcut branch + final bn3 + residual add + relu
    if has_shortcut:
        ws = params["ws"].astype(compute_dtype)
        # TODO(synk): for stride=2, fold the subsampling into the shortcut
        # conv's index_map instead of materializing the strided slice.
        xs2d = x_lp[:, ::stride, ::stride, :].reshape(m1, in_planes)
        ys, s_s, ss_s = _conv1x1_stats(xs2d, ws, out_dtype=compute_dtype)
        scale_s, shift_s = _bn_scale_shift(s_s, ss_s, m1,
                                           params["gs"], params["bs"])
        out = _bn_add_relu(y3, scale3, shift3, ys, scale_s, shift_s)
    else:
        x_id = x_nhwc.astype(jnp.float32).reshape(m0, in_planes)
        out = _bn_add_relu(y3, scale3, shift3, x_id)

    out = out.reshape(n, ho, wo, cout3)
    return jnp.transpose(out, (0, 3, 1, 2)).astype(jnp.float32)


# ----------------------------- pure-JAX reference -----------------------------

def bottleneck_reference(x, params, *, in_planes, planes, stride=1,
                         conv_dtype=jnp.bfloat16):
    """Reference with the same conv compute dtype (bf16 in, f32 accumulate)."""
    cout3 = EXPANSION * planes
    has_shortcut = (stride != 1) or (in_planes != cout3)

    def bn(y, gamma, beta):
        mean = jnp.mean(y, axis=(0, 2, 3), keepdims=True)
        var = jnp.mean((y - mean) ** 2, axis=(0, 2, 3), keepdims=True)
        return ((y - mean) * jax.lax.rsqrt(var + EPS)
                * gamma[None, :, None, None] + beta[None, :, None, None])

    def conv(y, w_oihw, s, padding):
        return jax.lax.conv_general_dilated(
            y.astype(conv_dtype), w_oihw.astype(conv_dtype), (s, s), padding,
            dimension_numbers=("NCHW", "OIHW", "NCHW"),
            preferred_element_type=jnp.float32)

    w1 = jnp.transpose(params["w1"])[:, :, None, None]
    w2 = jnp.transpose(params["w2"], (3, 2, 0, 1))
    w3 = jnp.transpose(params["w3"])[:, :, None, None]

    out = jax.nn.relu(bn(conv(x, w1, 1, "VALID"), params["g1"], params["b1"]))
    out = jax.nn.relu(bn(conv(out, w2, stride, ((1, 1), (1, 1))),
                         params["g2"], params["b2"]))
    out = bn(conv(out, w3, 1, "VALID"), params["g3"], params["b3"])
    if has_shortcut:
        ws = jnp.transpose(params["ws"])[:, :, None, None]
        sc = bn(conv(x, ws, stride, "VALID"), params["gs"], params["bs"])
    else:
        sc = x
    return jax.nn.relu(out + sc)


# ----------------------------- demo -----------------------------

if __name__ == "__main__":
    key = jax.random.PRNGKey(0)
    kx, kp, ks = jax.random.split(key, 3)

    N, IN_PLANES, PLANES, H, W = 2, 4, 4, 16, 16
    STRIDE = 1  # shortcut conv branch still active (in_planes != 4*planes)

    x = jax.random.normal(kx, (N, IN_PLANES, H, W), jnp.float32)
    params = init_params(kp, IN_PLANES, PLANES)
    params.update(init_shortcut_params(ks, IN_PLANES, PLANES))

    fwd = jax.jit(functools.partial(bottleneck_forward, in_planes=IN_PLANES,
                                    planes=PLANES, stride=STRIDE))
    out = jax.block_until_ready(fwd(x, params))

    ref = bottleneck_reference(x, params, in_planes=IN_PLANES, planes=PLANES,
                               stride=STRIDE)
    assert out.shape == (N, EXPANSION * PLANES, H, W), out.shape
    max_err = float(jnp.max(jnp.abs(out - ref)))
    assert jnp.allclose(out, ref, atol=5e-2, rtol=5e-2), max_err

    print("KERNEL_OK")
</pallas_src>

<mosaic_0001>
module attributes {stable_mosaic.version = 11 : i64} {
  func.func @_matmul_stats_kernel(%arg0: i32, %arg1: i32, %arg2: i32, %arg3: memref<512x4xbf16, #tpu.memory_space<vmem>>, %arg4: memref<4x4xbf16, #tpu.memory_space<vmem>>, %arg5: memref<512x4xbf16, #tpu.memory_space<vmem>>, %arg6: memref<1x1x4xf32, #tpu.memory_space<vmem>>, %arg7: memref<1x1x4xf32, #tpu.memory_space<vmem>>) attributes {dimension_semantics = [#tpu.dimension_semantics<parallel>, #tpu.dimension_semantics<parallel>, #tpu.dimension_semantics<arbitrary>], iteration_bounds = array<i64: 1, 1, 1>, scalar_prefetch = 0 : i64, scratch_operands = 0 : i64, tpu.core_type = #tpu.core_type<tc>, window_params = [{transform_indices = @transform_0, window_bounds = array<i64: 512, 4>}, {transform_indices = @transform_1, window_bounds = array<i64: 4, 4>}, {transform_indices = @transform_2, window_bounds = array<i64: 512, 4>}, {transform_indices = @transform_3, window_bounds = array<i64: 1, 1, 4>}, {transform_indices = @transform_4, window_bounds = array<i64: 1, 1, 4>}]} {
    %c0_i32 = arith.constant 0 : i32
    %0 = arith.cmpi eq, %arg2, %c0_i32 : i32
    %1 = arith.extui %0 : i1 to i32
    %c0_i32_0 = arith.constant 0 : i32
    %2 = arith.cmpi ne, %1, %c0_i32_0 : i32
    scf.if %2 {
      %cst_20 = arith.constant 0.000000e+00 : f32
      %21 = vector.broadcast %cst_20 : f32 to vector<1x1x4xf32>
      %c0_21 = arith.constant 0 : index
      %c0_22 = arith.constant 0 : index
      %c0_23 = arith.constant 0 : index
      %22 = vector.load %arg6[%c0_21, %c0_22, %c0_23] : memref<1x1x4xf32, #tpu.memory_space<vmem>>, vector<1x1x4xf32>
      tpu.vector_store %arg6[%c0_21, %c0_22, %c0_23], %21 {strides = array<i32>} : memref<1x1x4xf32, #tpu.memory_space<vmem>>, vector<1x1x4xf32>,
      %cst_24 = arith.constant 0.000000e+00 : f32
      %23 = vector.broadcast %cst_24 : f32 to vector<1x1x4xf32>
      %c0_25 = arith.constant 0 : index
      %c0_26 = arith.constant 0 : index
      %c0_27 = arith.constant 0 : index
      %24 = vector.load %arg7[%c0_25, %c0_26, %c0_27] : memref<1x1x4xf32, #tpu.memory_space<vmem>>, vector<1x1x4xf32>
      tpu.vector_store %arg7[%c0_25, %c0_26, %c0_27], %23 {strides = array<i32>} : memref<1x1x4xf32, #tpu.memory_space<vmem>>, vector<1x1x4xf32>,
    } else {
    }
    %c0 = arith.constant 0 : index
    %c0_1 = arith.constant 0 : index
    %3 = vector.load %arg3[%c0, %c0_1] : memref<512x4xbf16, #tpu.memory_space<vmem>>, vector<512x4xbf16>
    %c0_2 = arith.constant 0 : index
    %c0_3 = arith.constant 0 : index
    %4 = vector.load %arg4[%c0_2, %c0_3] : memref<4x4xbf16, #tpu.memory_space<vmem>>, vector<4x4xbf16>
    %cst = arith.constant dense<0.000000e+00> : vector<512x4xf32>
    %5 = tpu.matmul %3, %4, %cst {dimension_numbers = #tpu.dot_dimension_numbers<[1], [0], [0], [1], [0, 0, 1, 1], [], []>} : vector<512x4xbf16>, vector<4x4xbf16>, vector<512x4xf32> -> vector<512x4xf32>
    %6 = arith.truncf %5 : vector<512x4xf32> to vector<512x4xbf16>
    %c0_4 = arith.constant 0 : index
    %c0_5 = arith.constant 0 : index
    %7 = vector.load %arg5[%c0_4, %c0_5] : memref<512x4xbf16, #tpu.memory_space<vmem>>, vector<512x4xbf16>
    tpu.vector_store %arg5[%c0_4, %c0_5], %6 {strides = array<i32>} : memref<512x4xbf16, #tpu.memory_space<vmem>>, vector<512x4xbf16>,
    %c0_6 = arith.constant 0 : index
    %c0_7 = arith.constant 0 : index
    %c0_8 = arith.constant 0 : index
    %8 = vector.load %arg6[%c0_6, %c0_7, %c0_8] : memref<1x1x4xf32, #tpu.memory_space<vmem>>, vector<1x1x4xf32>
    %cst_9 = arith.constant dense<0.000000e+00> : vector<4xf32>
    %9 = vector.multi_reduction <add>, %5, %cst_9 [0] : vector<512x4xf32> to vector<4xf32>
    %10 = vector.shape_cast %9 : vector<4xf32> to vector<1x4xf32>
    %11 = vector.shape_cast %10 : vector<1x4xf32> to vector<1x1x4xf32>
    %12 = arith.addf %8, %11 : vector<1x1x4xf32>
    %c0_10 = arith.constant 0 : index
    %c0_11 = arith.constant 0 : index
    %c0_12 = arith.constant 0 : index
    %13 = vector.load %arg6[%c0_10, %c0_11, %c0_12] : memref<1x1x4xf32, #tpu.memory_space<vmem>>, vector<1x1x4xf32>
    tpu.vector_store %arg6[%c0_10, %c0_11, %c0_12], %12 {strides = array<i32>} : memref<1x1x4xf32, #tpu.memory_space<vmem>>, vector<1x1x4xf32>,
    %c0_13 = arith.constant 0 : index
    %c0_14 = arith.constant 0 : index
    %c0_15 = arith.constant 0 : index
    %14 = vector.load %arg7[%c0_13, %c0_14, %c0_15] : memref<1x1x4xf32, #tpu.memory_space<vmem>>, vector<1x1x4xf32>
    %15 = arith.mulf %5, %5 : vector<512x4xf32>
    %cst_16 = arith.constant dense<0.000000e+00> : vector<4xf32>
    %16 = vector.multi_reduction <add>, %15, %cst_16 [0] : vector<512x4xf32> to vector<4xf32>
    %17 = vector.shape_cast %16 : vector<4xf32> to vector<1x4xf32>
    %18 = vector.shape_cast %17 : vector<1x4xf32> to vector<1x1x4xf32>
    %19 = arith.addf %14, %18 : vector<1x1x4xf32>
    %c0_17 = arith.constant 0 : index
    %c0_18 = arith.constant 0 : index
    %c0_19 = arith.constant 0 : index
    %20 = vector.load %arg7[%c0_17, %c0_18, %c0_19] : memref<1x1x4xf32, #tpu.memory_space<vmem>>, vector<1x1x4xf32>
    tpu.vector_store %arg7[%c0_17, %c0_18, %c0_19], %19 {strides = array<i32>} : memref<1x1x4xf32, #tpu.memory_space<vmem>>, vector<1x1x4xf32>,
    return
  }
  func.func @transform_0(%arg0: i32, %arg1: i32, %arg2: i32) -> (i32, i32) {
    %c1_i32 = arith.constant 1 : i32
    %0 = arith.muli %arg0, %c1_i32 : i32
    %1 = arith.addi %0, %arg2 : i32
    %c0_i32 = arith.constant 0 : i32
    %c0_i32_0 = arith.constant 0 : i32
    return %1, %c0_i32 : i32, i32
  }
  func.func @transform_1(%arg0: i32, %arg1: i32, %arg2: i32) -> (i32, i32) {
    %c0_i32 = arith.constant 0 : i32
    %c0_i32_0 = arith.constant 0 : i32
    return %c0_i32, %arg1 : i32, i32
  }
  func.func @transform_2(%arg0: i32, %arg1: i32, %arg2: i32) -> (i32, i32) {
    %c1_i32 = arith.constant 1 : i32
    %0 = arith.muli %arg0, %c1_i32 : i32
    %1 = arith.addi %0, %arg2 : i32
    %c0_i32 = arith.constant 0 : i32
    return %1, %arg1 : i32, i32
  }
  func.func @transform_3(%arg0: i32, %arg1: i32, %arg2: i32) -> (i32, i32, i32) {
    %c0_i32 = arith.constant 0 : i32
    %c0_i32_0 = arith.constant 0 : i32
    return %arg0, %c0_i32, %arg1 : i32, i32, i32
  }
  func.func @transform_4(%arg0: i32, %arg1: i32, %arg2: i32) -> (i32, i32, i32) {
    %c0_i32 = arith.constant 0 : i32
    %c0_i32_0 = arith.constant 0 : i32
    return %arg0, %c0_i32, %arg1 : i32, i32, i32
  }
}

module attributes {stable_mosaic.version = 11 : i64} {
  func.func @_matmul_stats_kernel(%arg0: i32, %arg1: i32, %arg2: i32, %arg3: memref<512x4xbf16, #tpu.memory_space<vmem>>, %arg4: memref<4x16xbf16, #tpu.memory_space<vmem>>, %arg5: memref<512x16xbf16, #tpu.memory_space<vmem>>, %arg6: memref<1x1x16xf32, #tpu.memory_space<vmem>>, %arg7: memref<1x1x16xf32, #tpu.memory_space<vmem>>) attributes {dimension_semantics = [#tpu.dimension_semantics<parallel>, #tpu.dimension_semantics<parallel>, #tpu.dimension_semantics<arbitrary>], iteration_bounds = array<i64: 1, 1, 1>, scalar_prefetch = 0 : i64, scratch_operands = 0 : i64, tpu.core_type = #tpu.core_type<tc>, window_params = [{transform_indices = @transform_0, window_bounds = array<i64: 512, 4>}, {transform_indices = @transform_1, window_bounds = array<i64: 4, 16>}, {transform_indices = @transform_2, window_bounds = array<i64: 512, 16>}, {transform_indices = @transform_3, window_bounds = array<i64: 1, 1, 16>}, {transform_indices = @transform_4, window_bounds = array<i64: 1, 1, 16>}]} {
    %c0_i32 = arith.constant 0 : i32
    %0 = arith.cmpi eq, %arg2, %c0_i32 : i32
    %1 = arith.extui %0 : i1 to i32
    %c0_i32_0 = arith.constant 0 : i32
    %2 = arith.cmpi ne, %1, %c0_i32_0 : i32
    scf.if %2 {
      %cst_20 = arith.constant 0.000000e+00 : f32
      %21 = vector.broadcast %cst_20 : f32 to vector<1x1x16xf32>
      %c0_21 = arith.constant 0 : index
      %c0_22 = arith.constant 0 : index
      %c0_23 = arith.constant 0 : index
      %22 = vector.load %arg6[%c0_21, %c0_22, %c0_23] : memref<1x1x16xf32, #tpu.memory_space<vmem>>, vector<1x1x16xf32>
      tpu.vector_store %arg6[%c0_21, %c0_22, %c0_23], %21 {strides = array<i32>} : memref<1x1x16xf32, #tpu.memory_space<vmem>>, vector<1x1x16xf32>,
      %cst_24 = arith.constant 0.000000e+00 : f32
      %23 = vector.broadcast %cst_24 : f32 to vector<1x1x16xf32>
      %c0_25 = arith.constant 0 : index
      %c0_26 = arith.constant 0 : index
      %c0_27 = arith.constant 0 : index
      %24 = vector.load %arg7[%c0_25, %c0_26, %c0_27] : memref<1x1x16xf32, #tpu.memory_space<vmem>>, vector<1x1x16xf32>
      tpu.vector_store %arg7[%c0_25, %c0_26, %c0_27], %23 {strides = array<i32>} : memref<1x1x16xf32, #tpu.memory_space<vmem>>, vector<1x1x16xf32>,
    } else {
    }
    %c0 = arith.constant 0 : index
    %c0_1 = arith.constant 0 : index
    %3 = vector.load %arg3[%c0, %c0_1] : memref<512x4xbf16, #tpu.memory_space<vmem>>, vector<512x4xbf16>
    %c0_2 = arith.constant 0 : index
    %c0_3 = arith.constant 0 : index
    %4 = vector.load %arg4[%c0_2, %c0_3] : memref<4x16xbf16, #tpu.memory_space<vmem>>, vector<4x16xbf16>
    %cst = arith.constant dense<0.000000e+00> : vector<512x16xf32>
    %5 = tpu.matmul %3, %4, %cst {dimension_numbers = #tpu.dot_dimension_numbers<[1], [0], [0], [1], [0, 0, 1, 1], [], []>} : vector<512x4xbf16>, vector<4x16xbf16>, vector<512x16xf32> -> vector<512x16xf32>
    %6 = arith.truncf %5 : vector<512x16xf32> to vector<512x16xbf16>
    %c0_4 = arith.constant 0 : index
    %c0_5 = arith.constant 0 : index
    %7 = vector.load %arg5[%c0_4, %c0_5] : memref<512x16xbf16, #tpu.memory_space<vmem>>, vector<512x16xbf16>
    tpu.vector_store %arg5[%c0_4, %c0_5], %6 {strides = array<i32>} : memref<512x16xbf16, #tpu.memory_space<vmem>>, vector<512x16xbf16>,
    %c0_6 = arith.constant 0 : index
    %c0_7 = arith.constant 0 : index
    %c0_8 = arith.constant 0 : index
    %8 = vector.load %arg6[%c0_6, %c0_7, %c0_8] : memref<1x1x16xf32, #tpu.memory_space<vmem>>, vector<1x1x16xf32>
    %cst_9 = arith.constant dense<0.000000e+00> : vector<16xf32>
    %9 = vector.multi_reduction <add>, %5, %cst_9 [0] : vector<512x16xf32> to vector<16xf32>
    %10 = vector.shape_cast %9 : vector<16xf32> to vector<1x16xf32>
    %11 = vector.shape_cast %10 : vector<1x16xf32> to vector<1x1x16xf32>
    %12 = arith.addf %8, %11 : vector<1x1x16xf32>
    %c0_10 = arith.constant 0 : index
    %c0_11 = arith.constant 0 : index
    %c0_12 = arith.constant 0 : index
    %13 = vector.load %arg6[%c0_10, %c0_11, %c0_12] : memref<1x1x16xf32, #tpu.memory_space<vmem>>, vector<1x1x16xf32>
    tpu.vector_store %arg6[%c0_10, %c0_11, %c0_12], %12 {strides = array<i32>} : memref<1x1x16xf32, #tpu.memory_space<vmem>>, vector<1x1x16xf32>,
    %c0_13 = arith.constant 0 : index
    %c0_14 = arith.constant 0 : index
    %c0_15 = arith.constant 0 : index
    %14 = vector.load %arg7[%c0_13, %c0_14, %c0_15] : memref<1x1x16xf32, #tpu.memory_space<vmem>>, vector<1x1x16xf32>
    %15 = arith.mulf %5, %5 : vector<512x16xf32>
    %cst_16 = arith.constant dense<0.000000e+00> : vector<16xf32>
    %16 = vector.multi_reduction <add>, %15, %cst_16 [0] : vector<512x16xf32> to vector<16xf32>
    %17 = vector.shape_cast %16 : vector<16xf32> to vector<1x16xf32>
    %18 = vector.shape_cast %17 : vector<1x16xf32> to vector<1x1x16xf32>
    %19 = arith.addf %14, %18 : vector<1x1x16xf32>
    %c0_17 = arith.constant 0 : index
    %c0_18 = arith.constant 0 : index
    %c0_19 = arith.constant 0 : index
    %20 = vector.load %arg7[%c0_17, %c0_18, %c0_19] : memref<1x1x16xf32, #tpu.memory_space<vmem>>, vector<1x1x16xf32>
    tpu.vector_store %arg7[%c0_17, %c0_18, %c0_19], %19 {strides = array<i32>} : memref<1x1x16xf32, #tpu.memory_space<vmem>>, vector<1x1x16xf32>,
    return
  }
  func.func @transform_0(%arg0: i32, %arg1: i32, %arg2: i32) -> (i32, i32) {
    %c1_i32 = arith.constant 1 : i32
    %0 = arith.muli %arg0, %c1_i32 : i32
    %1 = arith.addi %0, %arg2 : i32
    %c0_i32 = arith.constant 0 : i32
    %c0_i32_0 = arith.constant 0 : i32
    return %1, %c0_i32 : i32, i32
  }
  func.func @transform_1(%arg0: i32, %arg1: i32, %arg2: i32) -> (i32, i32) {
    %c0_i32 = arith.constant 0 : i32
    %c0_i32_0 = arith.constant 0 : i32
    return %c0_i32, %arg1 : i32, i32
  }
  func.func @transform_2(%arg0: i32, %arg1: i32, %arg2: i32) -> (i32, i32) {
    %c1_i32 = arith.constant 1 : i32
    %0 = arith.muli %arg0, %c1_i32 : i32
    %1 = arith.addi %0, %arg2 : i32
    %c0_i32 = arith.constant 0 : i32
    return %1, %arg1 : i32, i32
  }
  func.func @transform_3(%arg0: i32, %arg1: i32, %arg2: i32) -> (i32, i32, i32) {
    %c0_i32 = arith.constant 0 : i32
    %c0_i32_0 = arith.constant 0 : i32
    return %arg0, %c0_i32, %arg1 : i32, i32, i32
  }
  func.func @transform_4(%arg0: i32, %arg1: i32, %arg2: i32) -> (i32, i32, i32) {
    %c0_i32 = arith.constant 0 : i32
    %c0_i32_0 = arith.constant 0 : i32
    return %arg0, %c0_i32, %arg1 : i32, i32, i32
  }
}

module attributes {stable_mosaic.version = 11 : i64} {
  func.func @_conv3x3_stats_kernel(%arg0: i32, %arg1: i32, %arg2: i32, %arg3: memref<1x16x16x4xbf16, #tpu.memory_space<vmem>>, %arg4: memref<9x4x4xbf16, #tpu.memory_space<vmem>>, %arg5: memref<1x4xf32, #tpu.memory_space<vmem>>, %arg6: memref<1x4xf32, #tpu.memory_space<vmem>>, %arg7: memref<1x256x4xbf16, #tpu.memory_space<vmem>>, %arg8: memref<1x1x4xf32, #tpu.memory_space<vmem>>, %arg9: memref<1x1x4xf32, #tpu.memory_space<vmem>>, %arg10: memref<18x32x4xf32, #tpu.memory_space<vmem>>) attributes {dimension_semantics = [#tpu.dimension_semantics<parallel>, #tpu.dimension_semantics<parallel>, #tpu.dimension_semantics<arbitrary>], iteration_bounds = array<i64: 2, 1, 1>, scalar_prefetch = 0 : i64, scratch_operands = 1 : i64, tpu.core_type = #tpu.core_type<tc>, window_params = [{transform_indices = @transform_0, window_bounds = array<i64: 1, 16, 16, 4>}, {transform_indices = @transform_1, window_bounds = array<i64: 9, 4, 4>}, {pipeline_mode = #tpu.pipeline_mode<synchronous>, transform_indices = @transform_2, window_bounds = array<i64: 1, 4>}, {pipeline_mode = #tpu.pipeline_mode<synchronous>, transform_indices = @transform_3, window_bounds = array<i64: 1, 4>}, {transform_indices = @transform_4, window_bounds = array<i64: 1, 256, 4>}, {transform_indices = @transform_5, window_bounds = array<i64: 1, 1, 4>}, {transform_indices = @transform_6, window_bounds = array<i64: 1, 1, 4>}]} {
    %c0_i32 = arith.constant 0 : i32
    %0 = arith.cmpi eq, %arg2, %c0_i32 : i32
    %1 = arith.extui %0 : i1 to i32
    %c0_i32_0 = arith.constant 0 : i32
    %2 = arith.cmpi ne, %1, %c0_i32_0 : i32
    scf.if %2 {
      %cst_89 = arith.constant 0.000000e+00 : f32
      %104 = vector.broadcast %cst_89 : f32 to vector<1x1x4xf32>
      %c0_90 = arith.constant 0 : index
      %c0_91 = arith.constant 0 : index
      %c0_92 = arith.constant 0 : index
      %105 = vector.load %arg8[%c0_90, %c0_91, %c0_92] : memref<1x1x4xf32, #tpu.memory_space<vmem>>, vector<1x1x4xf32>
      tpu.vector_store %arg8[%c0_90, %c0_91, %c0_92], %104 {strides = array<i32>} : memref<1x1x4xf32, #tpu.memory_space<vmem>>, vector<1x1x4xf32>,
      %cst_93 = arith.constant 0.000000e+00 : f32
      %106 = vector.broadcast %cst_93 : f32 to vector<1x1x4xf32>
      %c0_94 = arith.constant 0 : index
      %c0_95 = arith.constant 0 : index
      %c0_96 = arith.constant 0 : index
      %107 = vector.load %arg9[%c0_94, %c0_95, %c0_96] : memref<1x1x4xf32, #tpu.memory_space<vmem>>, vector<1x1x4xf32>
      tpu.vector_store %arg9[%c0_94, %c0_95, %c0_96], %106 {strides = array<i32>} : memref<1x1x4xf32, #tpu.memory_space<vmem>>, vector<1x1x4xf32>,
    } else {
    }
    %cst = arith.constant 0.000000e+00 : f32
    %3 = vector.broadcast %cst : f32 to vector<18x32x4xf32>
    %c0 = arith.constant 0 : index
    %c0_1 = arith.constant 0 : index
    %c0_2 = arith.constant 0 : index
    %4 = vector.load %arg10[%c0, %c0_1, %c0_2] : memref<18x32x4xf32, #tpu.memory_space<vmem>>, vector<18x32x4xf32>
    tpu.vector_store %arg10[%c0, %c0_1, %c0_2], %3 {strides = array<i32>} : memref<18x32x4xf32, #tpu.memory_space<vmem>>, vector<18x32x4xf32>,
    %c0_3 = arith.constant 0 : index
    %c0_4 = arith.constant 0 : index
    %c0_5 = arith.constant 0 : index
    %c0_6 = arith.constant 0 : index
    %5 = vector.load %arg3[%c0_3, %c0_4, %c0_5, %c0_6] : memref<1x16x16x4xbf16, #tpu.memory_space<vmem>>, vector<1x16x16x4xbf16>
    %6 = vector.shape_cast %5 : vector<1x16x16x4xbf16> to vector<16x16x4xbf16>
    %7 = arith.extf %6 : vector<16x16x4xbf16> to vector<16x16x4xf32>
    %c0_7 = arith.constant 0 : index
    %c0_8 = arith.constant 0 : index
    %8 = vector.load %arg5[%c0_7, %c0_8] : memref<1x4xf32, #tpu.memory_space<vmem>>, vector<1x4xf32>
    %9 = vector.shape_cast %8 : vector<1x4xf32> to vector<1x1x4xf32>
    %10 = vector.broadcast %9 : vector<1x1x4xf32> to vector<16x16x4xf32>
    %11 = arith.mulf %7, %10 : vector<16x16x4xf32>
    %c0_9 = arith.constant 0 : index
    %c0_10 = arith.constant 0 : index
    %12 = vector.load %arg6[%c0_9, %c0_10] : memref<1x4xf32, #tpu.memory_space<vmem>>, vector<1x4xf32>
    %13 = vector.shape_cast %12 : vector<1x4xf32> to vector<1x1x4xf32>
    %14 = vector.broadcast %13 : vector<1x1x4xf32> to vector<16x16x4xf32>
    %15 = arith.addf %11, %14 : vector<16x16x4xf32>
    %cst_11 = arith.constant 0.000000e+00 : f32
    %16 = vector.broadcast %cst_11 : f32 to vector<16x16x4xf32>
    %17 = arith.maximumf %15, %16 : vector<16x16x4xf32>
    %c1 = arith.constant 1 : index
    %c8 = arith.constant 8 : index
    %c0_12 = arith.constant 0 : index
    %18 = vector.load %arg10[%c1, %c8, %c0_12] : memref<18x32x4xf32, #tpu.memory_space<vmem>>, vector<16x16x4xf32>
    tpu.vector_store %arg10[%c1, %c8, %c0_12], %17 {strides = array<i32>} : memref<18x32x4xf32, #tpu.memory_space<vmem>>, vector<16x16x4xf32>,
    %cst_13 = arith.constant 0.000000e+00 : f32
    %19 = vector.broadcast %cst_13 : f32 to vector<1x4xf32>
    %cst_14 = arith.constant 0.000000e+00 : f32
    %20 = vector.broadcast %cst_14 : f32 to vector<1x4xf32>
    %cst_15 = arith.constant 0.000000e+00 : f32
    %21 = vector.broadcast %cst_15 : f32 to vector<256x4xf32>
    %c0_16 = arith.constant 0 : index
    %c7 = arith.constant 7 : index
    %c0_17 = arith.constant 0 : index
    %22 = vector.load %arg10[%c0_16, %c7, %c0_17] : memref<18x32x4xf32, #tpu.memory_space<vmem>>, vector<16x16x4xf32>
    %23 = vector.shape_cast %22 : vector<16x16x4xf32> to vector<256x4xf32>
    %24 = arith.truncf %23 : vector<256x4xf32> to vector<256x4xbf16>
    %c0_18 = arith.constant 0 : index
    %c0_19 = arith.constant 0 : index
    %c0_20 = arith.constant 0 : index
    %25 = vector.load %arg4[%c0_18, %c0_19, %c0_20] : memref<9x4x4xbf16, #tpu.memory_space<vmem>>, vector<1x4x4xbf16>
    %26 = vector.shape_cast %25 : vector<1x4x4xbf16> to vector<4x4xbf16>
    %cst_21 = arith.constant dense<0.000000e+00> : vector<256x4xf32>
    %27 = tpu.matmul %24, %26, %cst_21 {dimension_numbers = #tpu.dot_dimension_numbers<[1], [0], [0], [1], [0, 0, 1, 1], [], []>} : vector<256x4xbf16>, vector<4x4xbf16>, vector<256x4xf32> -> vector<256x4xf32>
    %28 = arith.addf %21, %27 : vector<256x4xf32>
    %c0_22 = arith.constant 0 : index
    %c8_23 = arith.constant 8 : index
    %c0_24 = arith.constant 0 : index
    %29 = vector.load %arg10[%c0_22, %c8_23, %c0_24] : memref<18x32x4xf32, #tpu.memory_space<vmem>>, vector<16x16x4xf32>
    %30 = vector.shape_cast %29 : vector<16x16x4xf32> to vector<256x4xf32>
    %31 = arith.truncf %30 : vector<256x4xf32> to vector<256x4xbf16>
    %c1_25 = arith.constant 1 : index
    %c0_26 = arith.constant 0 : index
    %c0_27 = arith.constant 0 : index
    %32 = vector.load %arg4[%c1_25, %c0_26, %c0_27] : memref<9x4x4xbf16, #tpu.memory_space<vmem>>, vector<1x4x4xbf16>
    %33 = vector.shape_cast %32 : vector<1x4x4xbf16> to vector<4x4xbf16>
    %cst_28 = arith.constant dense<0.000000e+00> : vector<256x4xf32>
    %34 = tpu.matmul %31, %33, %cst_28 {dimension_numbers = #tpu.dot_dimension_numbers<[1], [0], [0], [1], [0, 0, 1, 1], [], []>} : vector<256x4xbf16>, vector<4x4xbf16>, vector<256x4xf32> -> vector<256x4xf32>
    %35 = arith.addf %28, %34 : vector<256x4xf32>
    %c0_29 = arith.constant 0 : index
    %c9 = arith.constant 9 : index
    %c0_30 = arith.constant 0 : index
    %36 = vector.load %arg10[%c0_29, %c9, %c0_30] : memref<18x32x4xf32, #tpu.memory_space<vmem>>, vector<16x16x4xf32>
    %37 = vector.shape_cast %36 : vector<16x16x4xf32> to vector<256x4xf32>
    %38 = arith.truncf %37 : vector<256x4xf32> to vector<256x4xbf16>
    %c2 = arith.constant 2 : index
    %c0_31 = arith.constant 0 : index
    %c0_32 = arith.constant 0 : index
    %39 = vector.load %arg4[%c2, %c0_31, %c0_32] : memref<9x4x4xbf16, #tpu.memory_space<vmem>>, vector<1x4x4xbf16>
    %40 = vector.shape_cast %39 : vector<1x4x4xbf16> to vector<4x4xbf16>
    %cst_33 = arith.constant dense<0.000000e+00> : vector<256x4xf32>
    %41 = tpu.matmul %38, %40, %cst_33 {dimension_numbers = #tpu.dot_dimension_numbers<[1], [0], [0], [1], [0, 0, 1, 1], [], []>} : vector<256x4xbf16>, vector<4x4xbf16>, vector<256x4xf32> -> vector<256x4xf32>
    %42 = arith.addf %35, %41 : vector<256x4xf32>
    %c1_34 = arith.constant 1 : index
    %c7_35 = arith.constant 7 : index
    %c0_36 = arith.constant 0 : index
    %43 = vector.load %arg10[%c1_34, %c7_35, %c0_36] : memref<18x32x4xf32, #tpu.memory_space<vmem>>, vector<16x16x4xf32>
    %44 = vector.shape_cast %43 : vector<16x16x4xf32> to vector<256x4xf32>
    %45 = arith.truncf %44 : vector<256x4xf32> to vector<256x4xbf16>
    %c3 = arith.constant 3 : index
    %c0_37 = arith.constant 0 : index
    %c0_38 = arith.constant 0 : index
    %46 = vector.load %arg4[%c3, %c0_37, %c0_38] : memref<9x4x4xbf16, #tpu.memory_space<vmem>>, vector<1x4x4xbf16>
    %47 = vector.shape_cast %46 : vector<1x4x4xbf16> to vector<4x4xbf16>
    %cst_39 = arith.constant dense<0.000000e+00> : vector<256x4xf32>
    %48 = tpu.matmul %45, %47, %cst_39 {dimension_numbers = #tpu.dot_dimension_numbers<[1], [0], [0], [1], [0, 0, 1, 1], [], []>} : vector<256x4xbf16>, vector<4x4xbf16>, vector<256x4xf32> -> vector<256x4xf32>
    %49 = arith.addf %42, %48 : vector<256x4xf32>
    %c1_40 = arith.constant 1 : index
    %c8_41 = arith.constant 8 : index
    %c0_42 = arith.constant 0 : index
    %50 = vector.load %arg10[%c1_40, %c8_41, %c0_42] : memref<18x32x4xf32, #tpu.memory_space<vmem>>, vector<16x16x4xf32>
    %51 = vector.shape_cast %50 : vector<16x16x4xf32> to vector<256x4xf32>
    %52 = arith.truncf %51 : vector<256x4xf32> to vector<256x4xbf16>
    %c4 = arith.constant 4 : index
    %c0_43 = arith.constant 0 : index
    %c0_44 = arith.constant 0 : index
    %53 = vector.load %arg4[%c4, %c0_43, %c0_44] : memref<9x4x4xbf16, #tpu.memory_space<vmem>>, vector<1x4x4xbf16>
    %54 = vector.shape_cast %53 : vector<1x4x4xbf16> to vector<4x4xbf16>
    %cst_45 = arith.constant dense<0.000000e+00> : vector<256x4xf32>
    %55 = tpu.matmul %52, %54, %cst_45 {dimension_numbers = #tpu.dot_dimension_numbers<[1], [0], [0], [1], [0, 0, 1, 1], [], []>} : vector<256x4xbf16>, vector<4x4xbf16>, vector<256x4xf32> -> vector<256x4xf32>
    %56 = arith.addf %49, %55 : vector<256x4xf32>
    %c1_46 = arith.constant 1 : index
    %c9_47 = arith.constant 9 : index
    %c0_48 = arith.constant 0 : index
    %57 = vector.load %arg10[%c1_46, %c9_47, %c0_48] : memref<18x32x4xf32, #tpu.memory_space<vmem>>, vector<16x16x4xf32>
    %58 = vector.shape_cast %57 : vector<16x16x4xf32> to vector<256x4xf32>
    %59 = arith.truncf %58 : vector<256x4xf32> to vector<256x4xbf16>
    %c5 = arith.constant 5 : index
    %c0_49 = arith.constant 0 : index
    %c0_50 = arith.constant 0 : index
    %60 = vector.load %arg4[%c5, %c0_49, %c0_50] : memref<9x4x4xbf16, #tpu.memory_space<vmem>>, vector<1x4x4xbf16>
    %61 = vector.shape_cast %60 : vector<1x4x4xbf16> to vector<4x4xbf16>
    %cst_51 = arith.constant dense<0.000000e+00> : vector<256x4xf32>
    %62 = tpu.matmul %59, %61, %cst_51 {dimension_numbers = #tpu.dot_dimension_numbers<[1], [0], [0], [1], [0, 0, 1, 1], [], []>} : vector<256x4xbf16>, vector<4x4xbf16>, vector<256x4xf32> -> vector<256x4xf32>
    %63 = arith.addf %56, %62 : vector<256x4xf32>
    %c2_52 = arith.constant 2 : index
    %c7_53 = arith.constant 7 : index
    %c0_54 = arith.constant 0 : index
    %64 = vector.load %arg10[%c2_52, %c7_53, %c0_54] : memref<18x32x4xf32, #tpu.memory_space<vmem>>, vector<16x16x4xf32>
    %65 = vector.shape_cast %64 : vector<16x16x4xf32> to vector<256x4xf32>
    %66 = arith.truncf %65 : vector<256x4xf32> to vector<256x4xbf16>
    %c6 = arith.constant 6 : index
    %c0_55 = arith.constant 0 : index
    %c0_56 = arith.constant 0 : index
    %67 = vector.load %arg4[%c6, %c0_55, %c0_56] : memref<9x4x4xbf16, #tpu.memory_space<vmem>>, vector<1x4x4xbf16>
    %68 = vector.shape_cast %67 : vector<1x4x4xbf16> to vector<4x4xbf16>
    %cst_57 = arith.constant dense<0.000000e+00> : vector<256x4xf32>
    %69 = tpu.matmul %66, %68, %cst_57 {dimension_numbers = #tpu.dot_dimension_numbers<[1], [0], [0], [1], [0, 0, 1, 1], [], []>} : vector<256x4xbf16>, vector<4x4xbf16>, vector<256x4xf32> -> vector<256x4xf32>
    %70 = arith.addf %63, %69 : vector<256x4xf32>
    %c2_58 = arith.constant 2 : index
    %c8_59 = arith.constant 8 : index
    %c0_60 = arith.constant 0 : index
    %71 = vector.load %arg10[%c2_58, %c8_59, %c0_60] : memref<18x32x4xf32, #tpu.memory_space<vmem>>, vector<16x16x4xf32>
    %72 = vector.shape_cast %71 : vector<16x16x4xf32> to vector<256x4xf32>
    %73 = arith.truncf %72 : vector<256x4xf32> to vector<256x4xbf16>
    %c7_61 = arith.constant 7 : index
    %c0_62 = arith.constant 0 : index
    %c0_63 = arith.constant 0 : index
    %74 = vector.load %arg4[%c7_61, %c0_62, %c0_63] : memref<9x4x4xbf16, #tpu.memory_space<vmem>>, vector<1x4x4xbf16>
    %75 = vector.shape_cast %74 : vector<1x4x4xbf16> to vector<4x4xbf16>
    %cst_64 = arith.constant dense<0.000000e+00> : vector<256x4xf32>
    %76 = tpu.matmul %73, %75, %cst_64 {dimension_numbers = #tpu.dot_dimension_numbers<[1], [0], [0], [1], [0, 0, 1, 1], [], []>} : vector<256x4xbf16>, vector<4x4xbf16>, vector<256x4xf32> -> vector<256x4xf32>
    %77 = arith.addf %70, %76 : vector<256x4xf32>
    %c2_65 = arith.constant 2 : index
    %c9_66 = arith.constant 9 : index
    %c0_67 = arith.constant 0 : index
    %78 = vector.load %arg10[%c2_65, %c9_66, %c0_67] : memref<18x32x4xf32, #tpu.memory_space<vmem>>, vector<16x16x4xf32>
    %79 = vector.shape_cast %78 : vector<16x16x4xf32> to vector<256x4xf32>
    %80 = arith.truncf %79 : vector<256x4xf32> to vector<256x4xbf16>
    %c8_68 = arith.constant 8 : index
    %c0_69 = arith.constant 0 : index
    %c0_70 = arith.constant 0 : index
    %81 = vector.load %arg4[%c8_68, %c0_69, %c0_70] : memref<9x4x4xbf16, #tpu.memory_space<vmem>>, vector<1x4x4xbf16>
    %82 = vector.shape_cast %81 : vector<1x4x4xbf16> to vector<4x4xbf16>
    %cst_71 = arith.constant dense<0.000000e+00> : vector<256x4xf32>
    %83 = tpu.matmul %80, %82, %cst_71 {dimension_numbers = #tpu.dot_dimension_numbers<[1], [0], [0], [1], [0, 0, 1, 1], [], []>} : vector<256x4xbf16>, vector<4x4xbf16>, vector<256x4xf32> -> vector<256x4xf32>
    %84 = arith.addf %77, %83 : vector<256x4xf32>
    %85 = arith.truncf %84 : vector<256x4xf32> to vector<256x4xbf16>
    %c0_72 = arith.constant 0 : index
    %c0_73 = arith.constant 0 : index
    %c0_74 = arith.constant 0 : index
    %86 = vector.load %arg7[%c0_72, %c0_73, %c0_74] : memref<1x256x4xbf16, #tpu.memory_space<vmem>>, vector<1x256x4xbf16>
    %87 = vector.shape_cast %86 : vector<1x256x4xbf16> to vector<256x4xbf16>
    %88 = vector.shape_cast %85 : vector<256x4xbf16> to vector<1x256x4xbf16>
    tpu.vector_store %arg7[%c0_72, %c0_73, %c0_74], %88 {strides = array<i32>} : memref<1x256x4xbf16, #tpu.memory_space<vmem>>, vector<1x256x4xbf16>,
    %cst_75 = arith.constant dense<0.000000e+00> : vector<4xf32>
    %89 = vector.multi_reduction <add>, %84, %cst_75 [0] : vector<256x4xf32> to vector<4xf32>
    %90 = vector.shape_cast %89 : vector<4xf32> to vector<1x4xf32>
    %91 = arith.addf %19, %90 : vector<1x4xf32>
    %92 = arith.mulf %84, %84 : vector<256x4xf32>
    %cst_76 = arith.constant dense<0.000000e+00> : vector<4xf32>
    %93 = vector.multi_reduction <add>, %92, %cst_76 [0] : vector<256x4xf32> to vector<4xf32>
    %94 = vector.shape_cast %93 : vector<4xf32> to vector<1x4xf32>
    %95 = arith.addf %20, %94 : vector<1x4xf32>
    %c0_77 = arith.constant 0 : index
    %c0_78 = arith.constant 0 : index
    %c0_79 = arith.constant 0 : index
    %96 = vector.load %arg8[%c0_77, %c0_78, %c0_79] : memref<1x1x4xf32, #tpu.memory_space<vmem>>, vector<1x1x4xf32>
    %97 = vector.shape_cast %91 : vector<1x4xf32> to vector<1x1x4xf32>
    %98 = arith.addf %96, %97 : vector<1x1x4xf32>
    %c0_80 = arith.constant 0 : index
    %c0_81 = arith.constant 0 : index
    %c0_82 = arith.constant 0 : index
    %99 = vector.load %arg8[%c0_80, %c0_81, %c0_82] : memref<1x1x4xf32, #tpu.memory_space<vmem>>, vector<1x1x4xf32>
    tpu.vector_store %arg8[%c0_80, %c0_81, %c0_82], %98 {strides = array<i32>} : memref<1x1x4xf32, #tpu.memory_space<vmem>>, vector<1x1x4xf32>,
    %c0_83 = arith.constant 0 : index
    %c0_84 = arith.constant 0 : index
    %c0_85 = arith.constant 0 : index
    %100 = vector.load %arg9[%c0_83, %c0_84, %c0_85] : memref<1x1x4xf32, #tpu.memory_space<vmem>>, vector<1x1x4xf32>
    %101 = vector.shape_cast %95 : vector<1x4xf32> to vector<1x1x4xf32>
    %102 = arith.addf %100, %101 : vector<1x1x4xf32>
    %c0_86 = arith.constant 0 : index
    %c0_87 = arith.constant 0 : index
    %c0_88 = arith.constant 0 : index
    %103 = vector.load %arg9[%c0_86, %c0_87, %c0_88] : memref<1x1x4xf32, #tpu.memory_space<vmem>>, vector<1x1x4xf32>
    tpu.vector_store %arg9[%c0_86, %c0_87, %c0_88], %102 {strides = array<i32>} : memref<1x1x4xf32, #tpu.memory_space<vmem>>, vector<1x1x4xf32>,
    return
  }
  func.func @transform_0(%arg0: i32, %arg1: i32, %arg2: i32) -> (i32, i32, i32, i32) {
    %c1_i32 = arith.constant 1 : i32
    %0 = arith.muli %arg0, %c1_i32 : i32
    %1 = arith.addi %0, %arg2 : i32
    %c0_i32 = arith.constant 0 : i32
    %c0_i32_0 = arith.constant 0 : i32
    %c0_i32_1 = arith.constant 0 : i32
    %c0_i32_2 = arith.constant 0 : i32
    return %1, %c0_i32, %c0_i32_0, %c0_i32_1 : i32, i32, i32, i32
  }
  func.func @transform_1(%arg0: i32, %arg1: i32, %arg2: i32) -> (i32, i32, i32) {
    %c0_i32 = arith.constant 0 : i32
    %c0_i32_0 = arith.constant 0 : i32
    %c0_i32_1 = arith.constant 0 : i32
    return %c0_i32, %c0_i32_0, %arg1 : i32, i32, i32
  }
  func.func @transform_2(%arg0: i32, %arg1: i32, %arg2: i32) -> (i32, i32) {
    %c0_i32 = arith.constant 0 : i32
    %c0_i32_0 = arith.constant 0 : i32
    %c0_i32_1 = arith.constant 0 : i32
    return %c0_i32, %c0_i32_0 : i32, i32
  }
  func.func @transform_3(%arg0: i32, %arg1: i32, %arg2: i32) -> (i32, i32) {
    %c0_i32 = arith.constant 0 : i32
    %c0_i32_0 = arith.constant 0 : i32
    %c0_i32_1 = arith.constant 0 : i32
    return %c0_i32, %c0_i32_0 : i32, i32
  }
  func.func @transform_4(%arg0: i32, %arg1: i32, %arg2: i32) -> (i32, i32, i32) {
    %c1_i32 = arith.constant 1 : i32
    %0 = arith.muli %arg0, %c1_i32 : i32
    %1 = arith.addi %0, %arg2 : i32
    %c0_i32 = arith.constant 0 : i32
    %c0_i32_0 = arith.constant 0 : i32
    return %1, %c0_i32, %arg1 : i32, i32, i32
  }
  func.func @transform_5(%arg0: i32, %arg1: i32, %arg2: i32) -> (i32, i32, i32) {
    %c0_i32 = arith.constant 0 : i32
    %c0_i32_0 = arith.constant 0 : i32
    return %arg0, %c0_i32, %arg1 : i32, i32, i32
  }
  func.func @transform_6(%arg0: i32, %arg1: i32, %arg2: i32) -> (i32, i32, i32) {
    %c0_i32 = arith.constant 0 : i32
    %c0_i32_0 = arith.constant 0 : i32
    return %arg0, %c0_i32, %arg1 : i32, i32, i32
  }
}

module attributes {stable_mosaic.version = 11 : i64} {
  func.func @_matmul_stats_kernel(%arg0: i32, %arg1: i32, %arg2: i32, %arg3: memref<512x4xbf16, #tpu.memory_space<vmem>>, %arg4: memref<4x16xbf16, #tpu.memory_space<vmem>>, %arg5: memref<1x4xf32, #tpu.memory_space<vmem>>, %arg6: memref<1x4xf32, #tpu.memory_space<vmem>>, %arg7: memref<512x16xbf16, #tpu.memory_space<vmem>>, %arg8: memref<1x1x16xf32, #tpu.memory_space<vmem>>, %arg9: memref<1x1x16xf32, #tpu.memory_space<vmem>>) attributes {dimension_semantics = [#tpu.dimension_semantics<parallel>, #tpu.dimension_semantics<parallel>, #tpu.dimension_semantics<arbitrary>], iteration_bounds = array<i64: 1, 1, 1>, scalar_prefetch = 0 : i64, scratch_operands = 0 : i64, tpu.core_type = #tpu.core_type<tc>, window_params = [{transform_indices = @transform_0, window_bounds = array<i64: 512, 4>}, {transform_indices = @transform_1, window_bounds = array<i64: 4, 16>}, {pipeline_mode = #tpu.pipeline_mode<synchronous>, transform_indices = @transform_2, window_bounds = array<i64: 1, 4>}, {pipeline_mode = #tpu.pipeline_mode<synchronous>, transform_indices = @transform_3, window_bounds = array<i64: 1, 4>}, {transform_indices = @transform_4, window_bounds = array<i64: 512, 16>}, {transform_indices = @transform_5, window_bounds = array<i64: 1, 1, 16>}, {transform_indices = @transform_6, window_bounds = array<i64: 1, 1, 16>}]} {
    %c0_i32 = arith.constant 0 : i32
    %0 = arith.cmpi eq, %arg2, %c0_i32 : i32
    %1 = arith.extui %0 : i1 to i32
    %c0_i32_0 = arith.constant 0 : i32
    %2 = arith.cmpi ne, %1, %c0_i32_0 : i32
    scf.if %2 {
      %cst_25 = arith.constant 0.000000e+00 : f32
      %31 = vector.broadcast %cst_25 : f32 to vector<1x1x16xf32>
      %c0_26 = arith.constant 0 : index
      %c0_27 = arith.constant 0 : index
      %c0_28 = arith.constant 0 : index
      %32 = vector.load %arg8[%c0_26, %c0_27, %c0_28] : memref<1x1x16xf32, #tpu.memory_space<vmem>>, vector<1x1x16xf32>
      tpu.vector_store %arg8[%c0_26, %c0_27, %c0_28], %31 {strides = array<i32>} : memref<1x1x16xf32, #tpu.memory_space<vmem>>, vector<1x1x16xf32>,
      %cst_29 = arith.constant 0.000000e+00 : f32
      %33 = vector.broadcast %cst_29 : f32 to vector<1x1x16xf32>
      %c0_30 = arith.constant 0 : index
      %c0_31 = arith.constant 0 : index
      %c0_32 = arith.constant 0 : index
      %34 = vector.load %arg9[%c0_30, %c0_31, %c0_32] : memref<1x1x16xf32, #tpu.memory_space<vmem>>, vector<1x1x16xf32>
      tpu.vector_store %arg9[%c0_30, %c0_31, %c0_32], %33 {strides = array<i32>} : memref<1x1x16xf32, #tpu.memory_space<vmem>>, vector<1x1x16xf32>,
    } else {
    }
    %c0 = arith.constant 0 : index
    %c0_1 = arith.constant 0 : index
    %3 = vector.load %arg3[%c0, %c0_1] : memref<512x4xbf16, #tpu.memory_space<vmem>>, vector<512x4xbf16>
    %4 = arith.extf %3 : vector<512x4xbf16> to vector<512x4xf32>
    %c0_2 = arith.constant 0 : index
    %c0_3 = arith.constant 0 : index
    %5 = vector.load %arg5[%c0_2, %c0_3] : memref<1x4xf32, #tpu.memory_space<vmem>>, vector<1x4xf32>
    %6 = vector.broadcast %5 : vector<1x4xf32> to vector<512x4xf32>
    %7 = arith.mulf %4, %6 : vector<512x4xf32>
    %c0_4 = arith.constant 0 : index
    %c0_5 = arith.constant 0 : index
    %8 = vector.load %arg6[%c0_4, %c0_5] : memref<1x4xf32, #tpu.memory_space<vmem>>, vector<1x4xf32>
    %9 = vector.broadcast %8 : vector<1x4xf32> to vector<512x4xf32>
    %10 = arith.addf %7, %9 : vector<512x4xf32>
    %cst = arith.constant 0.000000e+00 : f32
    %11 = vector.broadcast %cst : f32 to vector<512x4xf32>
    %12 = arith.maximumf %10, %11 : vector<512x4xf32>
    %13 = arith.truncf %12 : vector<512x4xf32> to vector<512x4xbf16>
    %c0_6 = arith.constant 0 : index
    %c0_7 = arith.constant 0 : index
    %14 = vector.load %arg4[%c0_6, %c0_7] : memref<4x16xbf16, #tpu.memory_space<vmem>>, vector<4x16xbf16>
    %cst_8 = arith.constant dense<0.000000e+00> : vector<512x16xf32>
    %15 = tpu.matmul %13, %14, %cst_8 {dimension_numbers = #tpu.dot_dimension_numbers<[1], [0], [0], [1], [0, 0, 1, 1], [], []>} : vector<512x4xbf16>, vector<4x16xbf16>, vector<512x16xf32> -> vector<512x16xf32>
    %16 = arith.truncf %15 : vector<512x16xf32> to vector<512x16xbf16>
    %c0_9 = arith.constant 0 : index
    %c0_10 = arith.constant 0 : index
    %17 = vector.load %arg7[%c0_9, %c0_10] : memref<512x16xbf16, #tpu.memory_space<vmem>>, vector<512x16xbf16>
    tpu.vector_store %arg7[%c0_9, %c0_10], %16 {strides = array<i32>} : memref<512x16xbf16, #tpu.memory_space<vmem>>, vector<512x16xbf16>,
    %c0_11 = arith.constant 0 : index
    %c0_12 = arith.constant 0 : index
    %c0_13 = arith.constant 0 : index
    %18 = vector.load %arg8[%c0_11, %c0_12, %c0_13] : memref<1x1x16xf32, #tpu.memory_space<vmem>>, vector<1x1x16xf32>
    %cst_14 = arith.constant dense<0.000000e+00> : vector<16xf32>
    %19 = vector.multi_reduction <add>, %15, %cst_14 [0] : vector<512x16xf32> to vector<16xf32>
    %20 = vector.shape_cast %19 : vector<16xf32> to vector<1x16xf32>
    %21 = vector.shape_cast %20 : vector<1x16xf32> to vector<1x1x16xf32>
    %22 = arith.addf %18, %21 : vector<1x1x16xf32>
    %c0_15 = arith.constant 0 : index
    %c0_16 = arith.constant 0 : index
    %c0_17 = arith.constant 0 : index
    %23 = vector.load %arg8[%c0_15, %c0_16, %c0_17] : memref<1x1x16xf32, #tpu.memory_space<vmem>>, vector<1x1x16xf32>
    tpu.vector_store %arg8[%c0_15, %c0_16, %c0_17], %22 {strides = array<i32>} : memref<1x1x16xf32, #tpu.memory_space<vmem>>, vector<1x1x16xf32>,
    %c0_18 = arith.constant 0 : index
    %c0_19 = arith.constant 0 : index
    %c0_20 = arith.constant 0 : index
    %24 = vector.load %arg9[%c0_18, %c0_19, %c0_20] : memref<1x1x16xf32, #tpu.memory_space<vmem>>, vector<1x1x16xf32>
    %25 = arith.mulf %15, %15 : vector<512x16xf32>
    %cst_21 = arith.constant dense<0.000000e+00> : vector<16xf32>
    %26 = vector.multi_reduction <add>, %25, %cst_21 [0] : vector<512x16xf32> to vector<16xf32>
    %27 = vector.shape_cast %26 : vector<16xf32> to vector<1x16xf32>
    %28 = vector.shape_cast %27 : vector<1x16xf32> to vector<1x1x16xf32>
    %29 = arith.addf %24, %28 : vector<1x1x16xf32>
    %c0_22 = arith.constant 0 : index
    %c0_23 = arith.constant 0 : index
    %c0_24 = arith.constant 0 : index
    %30 = vector.load %arg9[%c0_22, %c0_23, %c0_24] : memref<1x1x16xf32, #tpu.memory_space<vmem>>, vector<1x1x16xf32>
    tpu.vector_store %arg9[%c0_22, %c0_23, %c0_24], %29 {strides = array<i32>} : memref<1x1x16xf32, #tpu.memory_space<vmem>>, vector<1x1x16xf32>,
    return
  }
  func.func @transform_0(%arg0: i32, %arg1: i32, %arg2: i32) -> (i32, i32) {
    %c1_i32 = arith.constant 1 : i32
    %0 = arith.muli %arg0, %c1_i32 : i32
    %1 = arith.addi %0, %arg2 : i32
    %c0_i32 = arith.constant 0 : i32
    %c0_i32_0 = arith.constant 0 : i32
    return %1, %c0_i32 : i32, i32
  }
  func.func @transform_1(%arg0: i32, %arg1: i32, %arg2: i32) -> (i32, i32) {
    %c0_i32 = arith.constant 0 : i32
    %c0_i32_0 = arith.constant 0 : i32
    return %c0_i32, %arg1 : i32, i32
  }
  func.func @transform_2(%arg0: i32, %arg1: i32, %arg2: i32) -> (i32, i32) {
    %c0_i32 = arith.constant 0 : i32
    %c0_i32_0 = arith.constant 0 : i32
    %c0_i32_1 = arith.constant 0 : i32
    return %c0_i32, %c0_i32_0 : i32, i32
  }
  func.func @transform_3(%arg0: i32, %arg1: i32, %arg2: i32) -> (i32, i32) {
    %c0_i32 = arith.constant 0 : i32
    %c0_i32_0 = arith.constant 0 : i32
    %c0_i32_1 = arith.constant 0 : i32
    return %c0_i32, %c0_i32_0 : i32, i32
  }
  func.func @transform_4(%arg0: i32, %arg1: i32, %arg2: i32) -> (i32, i32) {
    %c1_i32 = arith.constant 1 : i32
    %0 = arith.muli %arg0, %c1_i32 : i32
    %1 = arith.addi %0, %arg2 : i32
    %c0_i32 = arith.constant 0 : i32
    return %1, %arg1 : i32, i32
  }
  func.func @transform_5(%arg0: i32, %arg1: i32, %arg2: i32) -> (i32, i32, i32) {
    %c0_i32 = arith.constant 0 : i32
    %c0_i32_0 = arith.constant 0 : i32
    return %arg0, %c0_i32, %arg1 : i32, i32, i32
  }
  func.func @transform_6(%arg0: i32, %arg1: i32, %arg2: i32) -> (i32, i32, i32) {
    %c0_i32 = arith.constant 0 : i32
    %c0_i32_0 = arith.constant 0 : i32
    return %arg0, %c0_i32, %arg1 : i32, i32, i32
  }
}

module attributes {stable_mosaic.version = 11 : i64} {
  func.func @_final_kernel(%arg0: i32, %arg1: memref<512x16xbf16, #tpu.memory_space<vmem>>, %arg2: memref<512x16xbf16, #tpu.memory_space<vmem>>, %arg3: memref<1x16xf32, #tpu.memory_space<vmem>>, %arg4: memref<1x16xf32, #tpu.memory_space<vmem>>, %arg5: memref<1x16xf32, #tpu.memory_space<vmem>>, %arg6: memref<1x16xf32, #tpu.memory_space<vmem>>, %arg7: memref<512x16xf32, #tpu.memory_space<vmem>>) attributes {dimension_semantics = [#tpu.dimension_semantics<parallel>], iteration_bounds = array<i64: 1>, scalar_prefetch = 0 : i64, scratch_operands = 0 : i64, tpu.core_type = #tpu.core_type<tc>, window_params = [{transform_indices = @transform_0, window_bounds = array<i64: 512, 16>}, {transform_indices = @transform_1, window_bounds = array<i64: 512, 16>}, {pipeline_mode = #tpu.pipeline_mode<synchronous>, transform_indices = @transform_2, window_bounds = array<i64: 1, 16>}, {pipeline_mode = #tpu.pipeline_mode<synchronous>, transform_indices = @transform_3, window_bounds = array<i64: 1, 16>}, {pipeline_mode = #tpu.pipeline_mode<synchronous>, transform_indices = @transform_4, window_bounds = array<i64: 1, 16>}, {pipeline_mode = #tpu.pipeline_mode<synchronous>, transform_indices = @transform_5, window_bounds = array<i64: 1, 16>}, {transform_indices = @transform_6, window_bounds = array<i64: 512, 16>}]} {
    %c0 = arith.constant 0 : index
    %c0_0 = arith.constant 0 : index
    %0 = vector.load %arg2[%c0, %c0_0] : memref<512x16xbf16, #tpu.memory_space<vmem>>, vector<512x16xbf16>
    %1 = arith.extf %0 : vector<512x16xbf16> to vector<512x16xf32>
    %c0_1 = arith.constant 0 : index
    %c0_2 = arith.constant 0 : index
    %2 = vector.load %arg5[%c0_1, %c0_2] : memref<1x16xf32, #tpu.memory_space<vmem>>, vector<1x16xf32>
    %3 = vector.broadcast %2 : vector<1x16xf32> to vector<512x16xf32>
    %4 = arith.mulf %1, %3 : vector<512x16xf32>
    %c0_3 = arith.constant 0 : index
    %c0_4 = arith.constant 0 : index
    %5 = vector.load %arg6[%c0_3, %c0_4] : memref<1x16xf32, #tpu.memory_space<vmem>>, vector<1x16xf32>
    %6 = vector.broadcast %5 : vector<1x16xf32> to vector<512x16xf32>
    %7 = arith.addf %4, %6 : vector<512x16xf32>
    %c0_5 = arith.constant 0 : index
    %c0_6 = arith.constant 0 : index
    %8 = vector.load %arg1[%c0_5, %c0_6] : memref<512x16xbf16, #tpu.memory_space<vmem>>, vector<512x16xbf16>
    %9 = arith.extf %8 : vector<512x16xbf16> to vector<512x16xf32>
    %c0_7 = arith.constant 0 : index
    %c0_8 = arith.constant 0 : index
    %10 = vector.load %arg3[%c0_7, %c0_8] : memref<1x16xf32, #tpu.memory_space<vmem>>, vector<1x16xf32>
    %11 = vector.broadcast %10 : vector<1x16xf32> to vector<512x16xf32>
    %12 = arith.mulf %9, %11 : vector<512x16xf32>
    %c0_9 = arith.constant 0 : index
    %c0_10 = arith.constant 0 : index
    %13 = vector.load %arg4[%c0_9, %c0_10] : memref<1x16xf32, #tpu.memory_space<vmem>>, vector<1x16xf32>
    %14 = vector.broadcast %13 : vector<1x16xf32> to vector<512x16xf32>
    %15 = arith.addf %12, %14 : vector<512x16xf32>
    %16 = arith.addf %15, %7 : vector<512x16xf32>
    %cst = arith.constant 0.000000e+00 : f32
    %17 = vector.broadcast %cst : f32 to vector<512x16xf32>
    %18 = arith.maximumf %16, %17 : vector<512x16xf32>
    %c0_11 = arith.constant 0 : index
    %c0_12 = arith.constant 0 : index
    %19 = vector.load %arg7[%c0_11, %c0_12] : memref<512x16xf32, #tpu.memory_space<vmem>>, vector<512x16xf32>
    tpu.vector_store %arg7[%c0_11, %c0_12], %18 {strides = array<i32>} : memref<512x16xf32, #tpu.memory_space<vmem>>, vector<512x16xf32>,
    return
  }
  func.func @transform_0(%arg0: i32) -> (i32, i32) {
    %c0_i32 = arith.constant 0 : i32
    %c0_i32_0 = arith.constant 0 : i32
    return %arg0, %c0_i32 : i32, i32
  }
  func.func @transform_1(%arg0: i32) -> (i32, i32) {
    %c0_i32 = arith.constant 0 : i32
    %c0_i32_0 = arith.constant 0 : i32
    return %arg0, %c0_i32 : i32, i32
  }
  func.func @transform_2(%arg0: i32) -> (i32, i32) {
    %c0_i32 = arith.constant 0 : i32
    %c0_i32_0 = arith.constant 0 : i32
    %c0_i32_1 = arith.constant 0 : i32
    return %c0_i32, %c0_i32_0 : i32, i32
  }
  func.func @transform_3(%arg0: i32) -> (i32, i32) {
    %c0_i32 = arith.constant 0 : i32
    %c0_i32_0 = arith.constant 0 : i32
    %c0_i32_1 = arith.constant 0 : i32
    return %c0_i32, %c0_i32_0 : i32, i32
  }
  func.func @transform_4(%arg0: i32) -> (i32, i32) {
    %c0_i32 = arith.constant 0 : i32
    %c0_i32_0 = arith.constant 0 : i32
    %c0_i32_1 = arith.constant 0 : i32
    return %c0_i32, %c0_i32_0 : i32, i32
  }
  func.func @transform_5(%arg0: i32) -> (i32, i32) {
    %c0_i32 = arith.constant 0 : i32
    %c0_i32_0 = arith.constant 0 : i32
    %c0_i32_1 = arith.constant 0 : i32
    return %c0_i32, %c0_i32_0 : i32, i32
  }
  func.func @transform_6(%arg0: i32) -> (i32, i32) {
    %c0_i32 = arith.constant 0 : i32
    %c0_i32_0 = arith.constant 0 : i32
    return %arg0, %c0_i32 : i32, i32
  }
}

</mosaic_0001>

<bundles_post_ra>
// kernel: bottleneck_forward.5
= control target key start
LH: loop header
LB: loop body
LE: loop exit
PB: predicated region body
PF: predicated region fallthrough
CT: control target
= control target key end

     0   :  { %vm380_vm0 = vcmask 1041408   ;;  %vm283_vm1 = vcmask 31744   ;;  %vm929_vm2 = vcmask 27648   ;;  %vm55_vm3 = vcmask 24576   ;;  %s2486_s1 = inlined_call_operand.vmem [shape: bf16[4,4], index: 1, kind: input, shape index: {}]   ;;  %s2487_s0 = inlined_call_operand.vmem [shape: bf16[512,4], index: 0, kind: input, shape index: {}]   ;;  %s2488_s2 = inlined_call_operand.vmem [shape: bf16[512,4], index: 2, kind: output, shape index: {0}]   ;;  %s2489_s3 = inlined_call_operand.vmem [shape: f32[1,1,4], index: 3, kind: output, shape index: {1}]   ;;  %s2490_s4 = inlined_call_operand.vmem [shape: f32[1,1,4], index: 4, kind: output, shape index: {2}]  }
   0x1   :  { %v122_v0 = vld [vmem:[%s2486_s1] sm:$0x3]  ;;  %v1668_v3 = vld [vmem:[%s2487_s0 + $0x8] sm:$0xff]   ;;  %v1669_v4 = vld [vmem:[%s2487_s0 + $0x10] sm:$0xff]   ;;  %v1699_v36 = vmov 0.0  }
   0x2   :  { %1664 = vmatprep.subr.msk.bf16.mxu0 %vm380_vm0, %v122_v0  ;;  %v382_v1 = vsel %vm380_vm0, %v122_v0, 0  ;;  %v1667_v2 = vld [vmem:[%s2487_s0] sm:$0xff]   ;;  %1665 = vmatprep.subr.msk.bf16.mxu1 %vm380_vm0, %v122_v0  ;;  %v1670_v5 = vld [vmem:[%s2487_s0 + $0x18] sm:$0xff]   ;;  %v1672_v7 = vld [vmem:[%s2487_s0 + $0x28] sm:$0xff]   ;;  %56 = vst.msk [vmem:[%s2489_s3] sm:$0x1] %vm55_vm3, %v1699_v36 }
   0x3   :  { %1597 = vmatpush3.bf16.msra.mxu0 %v382_v1  ;;  %1663 = vmatpush3.bf16.msra.mxu1 %v382_v1  ;;  %v1671_v6 = vld [vmem:[%s2487_s0 + $0x20] sm:$0xff]   ;;  %v1673_v8 = vld [vmem:[%s2487_s0 + $0x30] sm:$0xff]   ;;  %v1684_v10 = vld [vmem:[%s2487_s0 + $0x88] sm:$0xff]   ;;  %57 = vst.msk [vmem:[%s2490_s4] sm:$0x1] %vm55_vm3, %v1699_v36 }
   0x4   :  { %1598 = vmatprep.mubr.msk.bf16.mxu0 %vm283_vm1, %v1667_v2  ;;  %v1683_v9 = vld [vmem:[%s2487_s0 + $0x80] sm:$0xff]   ;;  %v1685_v11 = vld [vmem:[%s2487_s0 + $0x90] sm:$0xff]   ;;  %v1674_v12 = vld [vmem:[%s2487_s0 + $0x38] sm:$0xff]  }
   0x5   :  { %1630 = vmatprep.mubr.msk.bf16.mxu1 %vm283_vm1, %v1683_v9  ;;  %v1686_v13 = vld [vmem:[%s2487_s0 + $0x98] sm:$0xff]   ;;  %v1687_v14 = vld [vmem:[%s2487_s0 + $0xa0] sm:$0xff]   ;;  %v1688_v16 = vld [vmem:[%s2487_s0 + $0xa8] sm:$0xff]  }
   0x6   :  { %1599 = vmatmul.mubr.msk.bf16.vlgmr.msra.gmra.mxu0 %vm283_vm1, %v1668_v3  ;;  %1631 = vmatmul.mubr.msk.bf16.vlgmr.msra.gmra.mxu1 %vm283_vm1, %v1684_v10  ;;  %v1675_v15 = vld [vmem:[%s2487_s0 + $0x40] sm:$0xff]   ;;  %v1676_v17 = vld [vmem:[%s2487_s0 + $0x48] sm:$0xff]   ;;  %v1689_v18 = vld [vmem:[%s2487_s0 + $0xb0] sm:$0xff]  }
   0x7   :  { %1602 = vmatprep.mubr.msk.bf16.mxu0 %vm283_vm1, %v1669_v4  ;;  %1634 = vmatprep.mubr.msk.bf16.mxu1 %vm283_vm1, %v1685_v11  ;;  %v1677_v19 = vld [vmem:[%s2487_s0 + $0x50] sm:$0xff]   ;;  %v1690_v20 = vld [vmem:[%s2487_s0 + $0xb8] sm:$0xff]   ;;  %v1691_v22 = vld [vmem:[%s2487_s0 + $0xc0] sm:$0xff]  }
   0x8   :  { %v1678_v21 = vld [vmem:[%s2487_s0 + $0x58] sm:$0xff]   ;;  %v1679_v23 = vld [vmem:[%s2487_s0 + $0x60] sm:$0xff]   ;;  %v1692_v24 = vld [vmem:[%s2487_s0 + $0xc8] sm:$0xff]  }
   0x9   :  { %v1680_v25 = vld [vmem:[%s2487_s0 + $0x68] sm:$0xff]   ;;  %v1693_v26 = vld [vmem:[%s2487_s0 + $0xd0] sm:$0xff]   ;;  %v1694_v28 = vld [vmem:[%s2487_s0 + $0xd8] sm:$0xff]  }
   0xa   :  { %v1681_v27 = vld [vmem:[%s2487_s0 + $0x70] sm:$0xff]   ;;  %v1682_v29 = vld [vmem:[%s2487_s0 + $0x78] sm:$0xff]   ;;  %v1695_v30 = vld [vmem:[%s2487_s0 + $0xe0] sm:$0xff]  }
   0xb   :  { %v1696_v31 = vld [vmem:[%s2487_s0 + $0xe8] sm:$0xff]   ;;  %v1697_v32 = vld [vmem:[%s2487_s0 + $0xf0] sm:$0xff]   ;;  %v1698_v33 = vld [vmem:[%s2487_s0 + $0xf8] sm:$0xff]  }
   0xe   :  { %1603 = vmatmul.mubr.msk.bf16.gmra.mxu0 %vm283_vm1, %v1670_v5  ;;  %1635 = vmatmul.mubr.msk.bf16.gmra.mxu1 %vm283_vm1, %v1686_v13 }
   0xf   :  { %1606 = vmatprep.mubr.msk.bf16.mxu0 %vm283_vm1, %v1671_v6  ;;  %1638 = vmatprep.mubr.msk.bf16.mxu1 %vm283_vm1, %v1687_v14 }
  0x16   :  { %1607 = vmatmul.mubr.msk.bf16.gmra.mxu0 %vm283_vm1, %v1672_v7  ;;  %1639 = vmatmul.mubr.msk.bf16.gmra.mxu1 %vm283_vm1, %v1688_v16 }
  0x17   :  { %1610 = vmatprep.mubr.msk.bf16.mxu0 %vm283_vm1, %v1673_v8  ;;  %1642 = vmatprep.mubr.msk.bf16.mxu1 %vm283_vm1, %v1689_v18 }
  0x1e   :  { %1611 = vmatmul.mubr.msk.bf16.gmra.mxu0 %vm283_vm1, %v1674_v12  ;;  %1643 = vmatmul.mubr.msk.bf16.gmra.mxu1 %vm283_vm1, %v1690_v20 }
  0x1f   :  { %1614 = vmatprep.mubr.msk.bf16.mxu0 %vm283_vm1, %v1675_v15  ;;  %1646 = vmatprep.mubr.msk.bf16.mxu1 %vm283_vm1, %v1691_v22 }
  0x26   :  { %1615 = vmatmul.mubr.msk.bf16.gmra.mxu0 %vm283_vm1, %v1676_v17  ;;  %1647 = vmatmul.mubr.msk.bf16.gmra.mxu1 %vm283_vm1, %v1692_v24 }
  0x27   :  { %1618 = vmatprep.mubr.msk.bf16.mxu0 %vm283_vm1, %v1677_v19  ;;  %1650 = vmatprep.mubr.msk.bf16.mxu1 %vm283_vm1, %v1693_v26 }
  0x2e   :  { %1619 = vmatmul.mubr.msk.bf16.gmra.mxu0 %vm283_vm1, %v1678_v21  ;;  %1651 = vmatmul.mubr.msk.bf16.gmra.mxu1 %vm283_vm1, %v1694_v28 }
  0x2f   :  { %1622 = vmatprep.mubr.msk.bf16.mxu0 %vm283_vm1, %v1679_v23  ;;  %1654 = vmatprep.mubr.msk.bf16.mxu1 %vm283_vm1, %v1695_v30 }
  0x36   :  { %1623 = vmatmul.mubr.msk.bf16.gmra.mxu0 %vm283_vm1, %v1680_v25  ;;  %1655 = vmatmul.mubr.msk.bf16.gmra.mxu1 %vm283_vm1, %v1696_v31 }
  0x37   :  { %1626 = vmatprep.mubr.msk.bf16.mxu0 %vm283_vm1, %v1681_v27  ;;  %1658 = vmatprep.mubr.msk.bf16.mxu1 %vm283_vm1, %v1697_v32 }
  0x3e   :  { %1627 = vmatmul.mubr.msk.bf16.gmra.mxu0 %vm283_vm1, %v1682_v29  ;;  %1659 = vmatmul.mubr.msk.bf16.gmra.mxu1 %vm283_vm1, %v1698_v33 }
  0xc6   :  { %v1600_v34 = vpop.f32.mrf.mxu0  ;;  %v1903_v12 = vpop.f32.mrf.mxu1 }
  0xc7   :  { %v1501_v35 = vpack.c.bf16 %v1600_v34, %v1600_v34  ;;  %v1134_v42 = vmul.f32 %v1600_v34, %v1600_v34  ;;  %v998_v48 = vsel %vm283_vm1, %v1600_v34, 0.0  ;;  %v1533_v16 = vpack.c.bf16 %v1903_v12, %v1903_v12 }
  0xc8   :  { %v418_v37 = vpop.f32.mrf.mxu0  ;;  %v1913_v21 = vpop.f32.mrf.mxu1 }
  0xc9   :  { %932 = vst.msk [vmem:[%s2488_s2 + $0x8] sm:$0xf] %vm929_vm2, %v1501_v35  ;;  %v1499_v38 = vpack.c.bf16 %v418_v37, %v418_v37  ;;  %v1132_v40 = vmul.f32 %v418_v37, %v418_v37  ;;  %v995_v44 = vsel %vm283_vm1, %v418_v37, 0.0  ;;  %v1199_v58 = vsel %vm283_vm1, %v1134_v42, 0.0  ;;  %964 = vst.msk [vmem:[%s2488_s2 + $0x88] sm:$0xf] %vm929_vm2, %v1533_v16 }
  0xca   :  { %v1601_v39 = vpop.f32.mrf.mxu0  ;;  %v1531_v25 = vpack.c.bf16 %v1913_v21, %v1913_v21  ;;  %v1927_v30 = vpop.f32.mrf.mxu1 }
  0xcb   :  { %930 = vst.msk [vmem:[%s2488_s2] sm:$0xf] %vm929_vm2, %v1499_v38  ;;  %v1502_v41 = vpack.c.bf16 %v1601_v39, %v1601_v39  ;;  %v1196_v51 = vsel %vm283_vm1, %v1132_v40, 0.0  ;;  %v1135_v52 = vmul.f32 %v1601_v39, %v1601_v39  ;;  %v1000_v59 = vsel %vm283_vm1, %v1601_v39, 0.0 }
  0xcc   :  { %v421_v43 = vpop.f32.mrf.mxu0  ;;  %962 = vst.msk [vmem:[%s2488_s2 + $0x80] sm:$0xf] %vm929_vm2, %v1531_v25  ;;  %v1939_v37 = vpop.f32.mrf.mxu1  ;;  %v1534_v42 = vpack.c.bf16 %v1927_v30, %v1927_v30 }
  0xcd   :  { %933 = vst.msk [vmem:[%s2488_s2 + $0xc] sm:$0xf] %vm929_vm2, %v1502_v41  ;;  %v1500_v45 = vpack.c.bf16 %v421_v43, %v421_v43  ;;  %v996_v46 = vsel %vm283_vm1, %v421_v43, 0.0  ;;  %v1133_v47 = vmul.f32 %v421_v43, %v421_v43  ;;  %v1201_v1 = vsel %vm283_vm1, %v1135_v52, 0.0 }
  0xce   :  { %v997_v49 = vadd.f32 %v996_v46, %v995_v44  ;;  %v1604_v50 = vpop.f32.mrf.mxu0  ;;  %965 = vst.msk [vmem:[%s2488_s2 + $0x8c] sm:$0xf] %vm929_vm2, %v1534_v42 }
  0xcf   :  { %931 = vst.msk [vmem:[%s2488_s2 + $0x4] sm:$0xf] %vm929_vm2, %v1500_v45  ;;  %v1197_v53 = vsel %vm283_vm1, %v1133_v47, 0.0  ;;  %v1505_v54 = vpack.c.bf16 %v1604_v50, %v1604_v50  ;;  %v1138_v4 = vmul.f32 %v1604_v50, %v1604_v50  ;;  %v1006_v17 = vsel %vm283_vm1, %v1604_v50, 0.0  ;;  %v1949_v47 = vpop.f32.mrf.mxu1 }
  0xd0   :  { %v999_v55 = vadd.f32 %v998_v48, %v997_v49  ;;  %v1198_v56 = vadd.f32 %v1197_v53, %v1196_v51  ;;  %v434_v57 = vpop.f32.mrf.mxu0 }
  0xd1   :  { %936 = vst.msk [vmem:[%s2488_s2 + $0x18] sm:$0xf] %vm929_vm2, %v1505_v54  ;;  %v1503_v60 = vpack.c.bf16 %v434_v57, %v434_v57  ;;  %v1136_v61 = vmul.f32 %v434_v57, %v434_v57  ;;  %v1002_v2 = vsel %vm283_vm1, %v434_v57, 0.0  ;;  %v1207_v26 = vsel %vm283_vm1, %v1138_v4, 0.0 }
  0xd2   :  { %v1200_v62 = vadd.f32 %v1199_v58, %v1198_v56  ;;  %v1001_v63 = vadd.f32 %v1000_v59, %v999_v55  ;;  %v1605_v0 = vpop.f32.mrf.mxu0  ;;  %v1961_v55 = vpop.f32.mrf.mxu1  ;;  %v1532_v59 = vpack.c.bf16 %v1939_v37, %v1939_v37 }
  0xd3   :  { %934 = vst.msk [vmem:[%s2488_s2 + $0x10] sm:$0xf] %vm929_vm2, %v1503_v60  ;;  %v1506_v3 = vpack.c.bf16 %v1605_v0, %v1605_v0  ;;  %v1203_v8 = vsel %vm283_vm1, %v1136_v61, 0.0  ;;  %v1139_v18 = vmul.f32 %v1605_v0, %v1605_v0  ;;  %v1008_v27 = vsel %vm283_vm1, %v1605_v0, 0.0 }
  0xd4   :  { %v1003_v5 = vadd.f32 %v1002_v2, %v1001_v63  ;;  %v1202_v6 = vadd.f32 %v1201_v1, %v1200_v62  ;;  %v437_v7 = vpop.f32.mrf.mxu0  ;;  %v1971_v0 = vpop.f32.mrf.mxu1  ;;  %963 = vst.msk [vmem:[%s2488_s2 + $0x84] sm:$0xf] %vm929_vm2, %v1532_v59 }
  0xd5   :  { %937 = vst.msk [vmem:[%s2488_s2 + $0x1c] sm:$0xf] %vm929_vm2, %v1506_v3  ;;  %v1504_v9 = vpack.c.bf16 %v437_v7, %v437_v7  ;;  %v1004_v10 = vsel %vm283_vm1, %v437_v7, 0.0  ;;  %v1137_v11 = vmul.f32 %v437_v7, %v437_v7  ;;  %v1209_v34 = vsel %vm283_vm1, %v1139_v18, 0.0 }
  0xd6   :  { %v1204_v13 = vadd.f32 %v1203_v8, %v1202_v6  ;;  %v1005_v14 = vadd.f32 %v1004_v10, %v1003_v5  ;;  %v1608_v15 = vpop.f32.mrf.mxu0  ;;  %v1983_v7 = vpop.f32.mrf.mxu1 }
  0xd7   :  { %935 = vst.msk [vmem:[%s2488_s2 + $0x14] sm:$0xf] %vm929_vm2, %v1504_v9  ;;  %v1205_v19 = vsel %vm283_vm1, %v1137_v11, 0.0  ;;  %v1509_v20 = vpack.c.bf16 %v1608_v15, %v1608_v15  ;;  %v1142_v38 = vmul.f32 %v1608_v15, %v1608_v15  ;;  %v1014_v51 = vsel %vm283_vm1, %v1608_v15, 0.0 }
  0xd8   :  { %v1007_v22 = vadd.f32 %v1006_v17, %v1005_v14  ;;  %v1206_v23 = vadd.f32 %v1205_v19, %v1204_v13  ;;  %v450_v24 = vpop.f32.mrf.mxu0  ;;  %v1537_v13 = vpack.c.bf16 %v1949_v47, %v1949_v47  ;;  %v1993_v18 = vpop.f32.mrf.mxu1 }
  0xd9   :  { %940 = vst.msk [vmem:[%s2488_s2 + $0x28] sm:$0xf] %vm929_vm2, %v1509_v20  ;;  %v1507_v28 = vpack.c.bf16 %v450_v24, %v450_v24  ;;  %v1140_v29 = vmul.f32 %v450_v24, %v450_v24  ;;  %v1010_v35 = vsel %vm283_vm1, %v450_v24, 0.0  ;;  %v1215_v60 = vsel %vm283_vm1, %v1142_v38, 0.0 }
  0xda   :  { %v1208_v31 = vadd.f32 %v1207_v26, %v1206_v23  ;;  %v1009_v32 = vadd.f32 %v1008_v27, %v1007_v22  ;;  %v1609_v33 = vpop.f32.mrf.mxu0  ;;  %968 = vst.msk [vmem:[%s2488_s2 + $0x98] sm:$0xf] %vm929_vm2, %v1537_v13  ;;  %v2005_v27 = vpop.f32.mrf.mxu1 }
  0xdb   :  { %938 = vst.msk [vmem:[%s2488_s2 + $0x20] sm:$0xf] %vm929_vm2, %v1507_v28  ;;  %v1510_v36 = vpack.c.bf16 %v1609_v33, %v1609_v33  ;;  %v1211_v43 = vsel %vm283_vm1, %v1140_v29, 0.0  ;;  %v1143_v52 = vmul.f32 %v1609_v33, %v1609_v33  ;;  %v1016_v61 = vsel %vm283_vm1, %v1609_v33, 0.0 }
  0xdc   :  { %v1011_v39 = vadd.f32 %v1010_v35, %v1009_v32  ;;  %v1210_v40 = vadd.f32 %v1209_v34, %v1208_v31  ;;  %v453_v41 = vpop.f32.mrf.mxu0  ;;  %v1535_v32 = vpack.c.bf16 %v1961_v55, %v1961_v55  ;;  %v2015_v38 = vpop.f32.mrf.mxu1 }
  0xdd   :  { %941 = vst.msk [vmem:[%s2488_s2 + $0x2c] sm:$0xf] %vm929_vm2, %v1510_v36  ;;  %v1508_v44 = vpack.c.bf16 %v453_v41, %v453_v41  ;;  %v1012_v45 = vsel %vm283_vm1, %v453_v41, 0.0  ;;  %v1141_v46 = vmul.f32 %v453_v41, %v453_v41  ;;  %v1217_v4 = vsel %vm283_vm1, %v1143_v52, 0.0 }
  0xde   :  { %v1212_v48 = vadd.f32 %v1211_v43, %v1210_v40  ;;  %v1013_v49 = vadd.f32 %v1012_v45, %v1011_v39  ;;  %v1612_v50 = vpop.f32.mrf.mxu0  ;;  %966 = vst.msk [vmem:[%s2488_s2 + $0x90] sm:$0xf] %vm929_vm2, %v1535_v32  ;;  %v2027_v45 = vpop.f32.mrf.mxu1 }
  0xdf   :  { %939 = vst.msk [vmem:[%s2488_s2 + $0x24] sm:$0xf] %vm929_vm2, %v1508_v44  ;;  %v1213_v53 = vsel %vm283_vm1, %v1141_v46, 0.0  ;;  %v1513_v54 = vpack.c.bf16 %v1612_v50, %v1612_v50  ;;  %v1146_v8 = vmul.f32 %v1612_v50, %v1612_v50  ;;  %v1022_v23 = vsel %vm283_vm1, %v1612_v50, 0.0 }
  0xe0   :  { %v1015_v56 = vadd.f32 %v1014_v51, %v1013_v49  ;;  %v1214_v57 = vadd.f32 %v1213_v53, %v1212_v48  ;;  %v466_v58 = vpop.f32.mrf.mxu0  ;;  %v1538_v51 = vpack.c.bf16 %v1971_v0, %v1971_v0 }
  0xe1   :  { %944 = vst.msk [vmem:[%s2488_s2 + $0x38] sm:$0xf] %vm929_vm2, %v1513_v54  ;;  %v1511_v62 = vpack.c.bf16 %v466_v58, %v466_v58  ;;  %v1144_v63 = vmul.f32 %v466_v58, %v466_v58  ;;  %v1018_v5 = vsel %vm283_vm1, %v466_v58, 0.0  ;;  %v1223_v33 = vsel %vm283_vm1, %v1146_v8, 0.0 }
  0xe2   :  { %v1216_v1 = vadd.f32 %v1215_v60, %v1214_v57  ;;  %v1017_v2 = vadd.f32 %v1016_v61, %v1015_v56  ;;  %v1613_v3 = vpop.f32.mrf.mxu0  ;;  %v2037_v57 = vpop.f32.mrf.mxu1  ;;  %969 = vst.msk [vmem:[%s2488_s2 + $0x9c] sm:$0xf] %vm929_vm2, %v1538_v51 }
  0xe3   :  { %942 = vst.msk [vmem:[%s2488_s2 + $0x30] sm:$0xf] %vm929_vm2, %v1511_v62  ;;  %v1514_v6 = vpack.c.bf16 %v1613_v3, %v1613_v3  ;;  %v1219_v14 = vsel %vm283_vm1, %v1144_v63, 0.0  ;;  %v1147_v24 = vmul.f32 %v1613_v3, %v1613_v3  ;;  %v1024_v34 = vsel %vm283_vm1, %v1613_v3, 0.0 }
  0xe4   :  { %v1019_v9 = vadd.f32 %v1018_v5, %v1017_v2  ;;  %v1218_v10 = vadd.f32 %v1217_v4, %v1216_v1  ;;  %v469_v11 = vpop.f32.mrf.mxu0  ;;  %v2049_v2 = vpop.f32.mrf.mxu1 }
  0xe5   :  { %945 = vst.msk [vmem:[%s2488_s2 + $0x3c] sm:$0xf] %vm929_vm2, %v1514_v6  ;;  %v1512_v15 = vpack.c.bf16 %v469_v11, %v469_v11  ;;  %v1020_v16 = vsel %vm283_vm1, %v469_v11, 0.0  ;;  %v1145_v17 = vmul.f32 %v469_v11, %v469_v11  ;;  %v1225_v42 = vsel %vm283_vm1, %v1147_v24, 0.0 }
  0xe6   :  { %v1220_v19 = vadd.f32 %v1219_v14, %v1218_v10  ;;  %v1021_v20 = vadd.f32 %v1020_v16, %v1019_v9  ;;  %v1616_v22 = vpop.f32.mrf.mxu0  ;;  %v1536_v6 = vpack.c.bf16 %v1983_v7, %v1983_v7  ;;  %v2059_v13 = vpop.f32.mrf.mxu1 }
  0xe7   :  { %943 = vst.msk [vmem:[%s2488_s2 + $0x34] sm:$0xf] %vm929_vm2, %v1512_v15  ;;  %v1221_v25 = vsel %vm283_vm1, %v1145_v17, 0.0  ;;  %v1517_v26 = vpack.c.bf16 %v1616_v22, %v1616_v22  ;;  %v1150_v46 = vmul.f32 %v1616_v22, %v1616_v22  ;;  %v1030_v61 = vsel %vm283_vm1, %v1616_v22, 0.0 }
  0xe8   :  { %v1023_v28 = vadd.f32 %v1022_v23, %v1021_v20  ;;  %v1222_v29 = vadd.f32 %v1221_v25, %v1220_v19  ;;  %v482_v31 = vpop.f32.mrf.mxu0  ;;  %967 = vst.msk [vmem:[%s2488_s2 + $0x94] sm:$0xf] %vm929_vm2, %v1536_v6  ;;  %v2071_v22 = vpop.f32.mrf.mxu1 }
  0xe9   :  { %948 = vst.msk [vmem:[%s2488_s2 + $0x48] sm:$0xf] %vm929_vm2, %v1517_v26  ;;  %v1515_v35 = vpack.c.bf16 %v482_v31, %v482_v31  ;;  %v1148_v36 = vmul.f32 %v482_v31, %v482_v31  ;;  %v1026_v43 = vsel %vm283_vm1, %v482_v31, 0.0  ;;  %v1231_v8 = vsel %vm283_vm1, %v1150_v46, 0.0 }
  0xea   :  { %v1224_v39 = vadd.f32 %v1223_v33, %v1222_v29  ;;  %v1025_v40 = vadd.f32 %v1024_v34, %v1023_v28  ;;  %v1617_v41 = vpop.f32.mrf.mxu0  ;;  %v1541_v28 = vpack.c.bf16 %v1993_v18, %v1993_v18  ;;  %v2081_v34 = vpop.f32.mrf.mxu1 }
  0xeb   :  { %946 = vst.msk [vmem:[%s2488_s2 + $0x40] sm:$0xf] %vm929_vm2, %v1515_v35  ;;  %v1518_v44 = vpack.c.bf16 %v1617_v41, %v1617_v41  ;;  %v1227_v52 = vsel %vm283_vm1, %v1148_v36, 0.0  ;;  %v1151_v62 = vmul.f32 %v1617_v41, %v1617_v41  ;;  %v1032_v9 = vsel %vm283_vm1, %v1617_v41, 0.0 }
  0xec   :  { %v1027_v48 = vadd.f32 %v1026_v43, %v1025_v40  ;;  %v1226_v49 = vadd.f32 %v1225_v42, %v1224_v39  ;;  %v485_v50 = vpop.f32.mrf.mxu0  ;;  %972 = vst.msk [vmem:[%s2488_s2 + $0xa8] sm:$0xf] %vm929_vm2, %v1541_v28 }
  0xed   :  { %949 = vst.msk [vmem:[%s2488_s2 + $0x4c] sm:$0xf] %vm929_vm2, %v1518_v44  ;;  %v1516_v53 = vpack.c.bf16 %v485_v50, %v485_v50  ;;  %v1028_v54 = vsel %vm283_vm1, %v485_v50, 0.0  ;;  %v1149_v56 = vmul.f32 %v485_v50, %v485_v50  ;;  %v1233_v17 = vsel %vm283_vm1, %v1151_v62, 0.0  ;;  %v2093_v44 = vpop.f32.mrf.mxu1 }
  0xee   :  { %v1228_v58 = vadd.f32 %v1227_v52, %v1226_v49  ;;  %v1029_v59 = vadd.f32 %v1028_v54, %v1027_v48  ;;  %v1620_v60 = vpop.f32.mrf.mxu0  ;;  %v1539_v50 = vpack.c.bf16 %v2005_v27, %v2005_v27 }
  0xef   :  { %947 = vst.msk [vmem:[%s2488_s2 + $0x44] sm:$0xf] %vm929_vm2, %v1516_v53  ;;  %v1229_v63 = vsel %vm283_vm1, %v1149_v56, 0.0  ;;  %v1521_v1 = vpack.c.bf16 %v1620_v60, %v1620_v60  ;;  %v1154_v23 = vmul.f32 %v1620_v60, %v1620_v60  ;;  %v1038_v40 = vsel %vm283_vm1, %v1620_v60, 0.0  ;;  %v2103_v56 = vpop.f32.mrf.mxu1 }
  0xf0   :  { %v1031_v3 = vadd.f32 %v1030_v61, %v1029_v59  ;;  %v1230_v4 = vadd.f32 %v1229_v63, %v1228_v58  ;;  %v498_v5 = vpop.f32.mrf.mxu0  ;;  %970 = vst.msk [vmem:[%s2488_s2 + $0xa0] sm:$0xf] %vm929_vm2, %v1539_v50 }
  0xf1   :  { %952 = vst.msk [vmem:[%s2488_s2 + $0x58] sm:$0xf] %vm929_vm2, %v1521_v1  ;;  %v1519_v10 = vpack.c.bf16 %v498_v5, %v498_v5  ;;  %v1152_v11 = vmul.f32 %v498_v5, %v498_v5  ;;  %v1034_v19 = vsel %vm283_vm1, %v498_v5, 0.0  ;;  %v1239_v51 = vsel %vm283_vm1, %v1154_v23, 0.0  ;;  %v2115_v1 = vpop.f32.mrf.mxu1 }
  0xf2   :  { %v1232_v14 = vadd.f32 %v1231_v8, %v1230_v4  ;;  %v1033_v15 = vadd.f32 %v1032_v9, %v1031_v3  ;;  %v1621_v16 = vpop.f32.mrf.mxu0  ;;  %v1542_v8 = vpack.c.bf16 %v2015_v38, %v2015_v38 }
  0xf3   :  { %950 = vst.msk [vmem:[%s2488_s2 + $0x50] sm:$0xf] %vm929_vm2, %v1519_v10  ;;  %v1522_v20 = vpack.c.bf16 %v1621_v16, %v1621_v16  ;;  %v1235_v29 = vsel %vm283_vm1, %v1152_v11, 0.0  ;;  %v1155_v41 = vmul.f32 %v1621_v16, %v1621_v16  ;;  %v1040_v52 = vsel %vm283_vm1, %v1621_v16, 0.0 }
  0xf4   :  { %v1035_v24 = vadd.f32 %v1034_v19, %v1033_v15  ;;  %v1234_v25 = vadd.f32 %v1233_v17, %v1232_v14  ;;  %v501_v26 = vpop.f32.mrf.mxu0  ;;  %v2125_v15 = vpop.f32.mrf.mxu1  ;;  %973 = vst.msk [vmem:[%s2488_s2 + $0xac] sm:$0xf] %vm929_vm2, %v1542_v8 }
  0xf5   :  { %953 = vst.msk [vmem:[%s2488_s2 + $0x5c] sm:$0xf] %vm929_vm2, %v1522_v20  ;;  %v1520_v31 = vpack.c.bf16 %v501_v26, %v501_v26  ;;  %v1036_v32 = vsel %vm283_vm1, %v501_v26, 0.0  ;;  %v1153_v33 = vmul.f32 %v501_v26, %v501_v26  ;;  %v1241_v61 = vsel %vm283_vm1, %v1155_v41, 0.0 }
  0xf6   :  { %v1236_v35 = vadd.f32 %v1235_v29, %v1234_v25  ;;  %v1037_v36 = vadd.f32 %v1036_v32, %v1035_v24  ;;  %v1624_v39 = vpop.f32.mrf.mxu0  ;;  %v2137_v26 = vpop.f32.mrf.mxu1  ;;  %v1540_v32 = vpack.c.bf16 %v2027_v45, %v2027_v45 }
  0xf7   :  { %951 = vst.msk [vmem:[%s2488_s2 + $0x54] sm:$0xf] %vm929_vm2, %v1520_v31  ;;  %v1237_v42 = vsel %vm283_vm1, %v1153_v33, 0.0  ;;  %v1525_v43 = vpack.c.bf16 %v1624_v39, %v1624_v39  ;;  %v1158_v3 = vmul.f32 %v1624_v39, %v1624_v39  ;;  %v1046_v20 = vsel %vm283_vm1, %v1624_v39, 0.0 }
  0xf8   :  { %v1039_v46 = vadd.f32 %v1038_v40, %v1037_v36  ;;  %v1238_v48 = vadd.f32 %v1237_v42, %v1236_v35  ;;  %v514_v49 = vpop.f32.mrf.mxu0  ;;  %v2147_v40 = vpop.f32.mrf.mxu1  ;;  %971 = vst.msk [vmem:[%s2488_s2 + $0xa4] sm:$0xf] %vm929_vm2, %v1540_v32  ;;  %v1165_v32 = vmul.f32 %v1939_v37, %v1939_v37 }
  0xf9   :  { %956 = vst.msk [vmem:[%s2488_s2 + $0x68] sm:$0xf] %vm929_vm2, %v1525_v43  ;;  %v1523_v53 = vpack.c.bf16 %v514_v49, %v514_v49  ;;  %v1156_v54 = vmul.f32 %v514_v49, %v514_v49  ;;  %v1042_v62 = vsel %vm283_vm1, %v514_v49, 0.0  ;;  %v1247_v33 = vsel %vm283_vm1, %v1158_v3, 0.0 }
  0xfa   :  { %v1240_v58 = vadd.f32 %v1239_v51, %v1238_v48  ;;  %v1041_v59 = vadd.f32 %v1040_v52, %v1039_v46  ;;  %v1625_v60 = vpop.f32.mrf.mxu0  ;;  %v2159_v50 = vpop.f32.mrf.mxu1 }
  0xfb   :  { %954 = vst.msk [vmem:[%s2488_s2 + $0x60] sm:$0xf] %vm929_vm2, %v1523_v53  ;;  %v1526_v63 = vpack.c.bf16 %v1625_v60, %v1625_v60  ;;  %v1243_v9 = vsel %vm283_vm1, %v1156_v54, 0.0  ;;  %v1159_v23 = vmul.f32 %v1625_v60, %v1625_v60  ;;  %v1048_v35 = vsel %vm283_vm1, %v1625_v60, 0.0 }
  0xfc   :  { %v1043_v4 = vadd.f32 %v1042_v62, %v1041_v59  ;;  %v1242_v5 = vadd.f32 %v1241_v61, %v1240_v58  ;;  %v517_v6 = vpop.f32.mrf.mxu0  ;;  %v1545_v58 = vpack.c.bf16 %v2037_v57, %v2037_v57 }
  0xfd   :  { %957 = vst.msk [vmem:[%s2488_s2 + $0x6c] sm:$0xf] %vm929_vm2, %v1526_v63  ;;  %v1524_v10 = vpack.c.bf16 %v517_v6, %v517_v6  ;;  %v1044_v11 = vsel %vm283_vm1, %v517_v6, 0.0  ;;  %v1157_v14 = vmul.f32 %v517_v6, %v517_v6  ;;  %v1249_v46 = vsel %vm283_vm1, %v1159_v23, 0.0  ;;  %v2169_v63 = vpop.f32.mrf.mxu1 }
  0xfe   :  { %v1244_v16 = vadd.f32 %v1243_v9, %v1242_v5  ;;  %v1045_v17 = vadd.f32 %v1044_v11, %v1043_v4  ;;  %v1628_v19 = vpop.f32.mrf.mxu0  ;;  %976 = vst.msk [vmem:[%s2488_s2 + $0xb8] sm:$0xf] %vm929_vm2, %v1545_v58  ;;  %v1543_v9 = vpack.c.bf16 %v2049_v2, %v2049_v2  ;;  %v1544_v23 = vpack.c.bf16 %v2071_v22, %v2071_v22 }
  0xff   :  { %955 = vst.msk [vmem:[%s2488_s2 + $0x64] sm:$0xf] %vm929_vm2, %v1524_v10  ;;  %v1245_v24 = vsel %vm283_vm1, %v1157_v14, 0.0  ;;  %v1529_v25 = vpack.c.bf16 %v1628_v19, %v1628_v19  ;;  %v1162_v51 = vmul.f32 %v1628_v19, %v1628_v19  ;;  %v1054_v5 = vsel %vm283_vm1, %v1628_v19, 0.0  ;;  %v2183_v10 = vpop.f32.mrf.mxu1 }
 0x100   :  { %v1047_v28 = vadd.f32 %v1046_v20, %v1045_v17  ;;  %v1246_v29 = vadd.f32 %v1245_v24, %v1244_v16  ;;  %v530_v31 = vpop.f32.mrf.mxu0  ;;  %v1546_v16 = vpack.c.bf16 %v2059_v13, %v2059_v13  ;;  %v1164_v20 = vmul.f32 %v1913_v21, %v1913_v21  ;;  %974 = vst.msk [vmem:[%s2488_s2 + $0xb0] sm:$0xf] %vm929_vm2, %v1543_v9 }
 0x101   :  { %960 = vst.msk [vmem:[%s2488_s2 + $0x78] sm:$0xf] %vm929_vm2, %v1529_v25  ;;  %v1527_v36 = vpack.c.bf16 %v530_v31, %v530_v31  ;;  %v1160_v39 = vmul.f32 %v530_v31, %v530_v31  ;;  %v1050_v48 = vsel %vm283_vm1, %v530_v31, 0.0  ;;  %v1255_v17 = vsel %vm283_vm1, %v1162_v51, 0.0  ;;  %v2197_v24 = vpop.f32.mrf.mxu1  ;;  %975 = vst.msk [vmem:[%s2488_s2 + $0xb4] sm:$0xf] %vm929_vm2, %v1544_v23 }
 0x102   :  { %v1248_v41 = vadd.f32 %v1247_v33, %v1246_v29  ;;  %v1049_v42 = vadd.f32 %v1048_v35, %v1047_v28  ;;  %v1629_v43 = vpop.f32.mrf.mxu0  ;;  %977 = vst.msk [vmem:[%s2488_s2 + $0xbc] sm:$0xf] %vm929_vm2, %v1546_v16  ;;  %v1058_v31 = vsel %vm283_vm1, %v1913_v21, 0.0  ;;  %v1549_v33 = vpack.c.bf16 %v2081_v34, %v2081_v34 }
 0x103   :  { %958 = vst.msk [vmem:[%s2488_s2 + $0x70] sm:$0xf] %vm929_vm2, %v1527_v36  ;;  %v1530_v49 = vpack.c.bf16 %v1629_v43, %v1629_v43  ;;  %v1251_v59 = vsel %vm283_vm1, %v1160_v39, 0.0  ;;  %v1163_v6 = vmul.f32 %v1629_v43, %v1629_v43  ;;  %v1056_v19 = vsel %vm283_vm1, %v1629_v43, 0.0 }
 0x104   :  { %v1051_v52 = vadd.f32 %v1050_v48, %v1049_v42  ;;  %v1250_v53 = vadd.f32 %v1249_v46, %v1248_v41  ;;  %v533_v54 = vpop.f32.mrf.mxu0  ;;  %v1547_v39 = vpack.c.bf16 %v2093_v44, %v2093_v44  ;;  %v2216_v41 = vpop.f32.mrf.mxu1  ;;  %v1166_v21 = vmul.f32 %v1903_v12, %v1903_v12  ;;  %980 = vst.msk [vmem:[%s2488_s2 + $0xc8] sm:$0xf] %vm929_vm2, %v1549_v33 }
 0x105   :  { %961 = vst.msk [vmem:[%s2488_s2 + $0x7c] sm:$0xf] %vm929_vm2, %v1530_v49  ;;  %v1528_v60 = vpack.c.bf16 %v533_v54, %v533_v54  ;;  %v1052_v61 = vsel %vm283_vm1, %v533_v54, 0.0  ;;  %v1161_v62 = vmul.f32 %v533_v54, %v533_v54  ;;  %v1257_v29 = vsel %vm283_vm1, %v1163_v6, 0.0 }
 0x106   :  { %v1252_v3 = vadd.f32 %v1251_v59, %v1250_v53  ;;  %v1053_v4 = vadd.f32 %v1052_v61, %v1051_v52  ;;  %v1259_v42 = vsel %vm283_vm1, %v1164_v20, 0.0  ;;  %v1060_v43 = vsel %vm283_vm1, %v1939_v37, 0.0  ;;  %978 = vst.msk [vmem:[%s2488_s2 + $0xc0] sm:$0xf] %vm929_vm2, %v1547_v39 }
 0x107   :  { %959 = vst.msk [vmem:[%s2488_s2 + $0x74] sm:$0xf] %vm929_vm2, %v1528_v60  ;;  %v1253_v8 = vsel %vm283_vm1, %v1161_v62, 0.0  ;;  %v1550_v46 = vpack.c.bf16 %v2103_v56, %v2103_v56  ;;  %v1062_v51 = vsel %vm283_vm1, %v1903_v12, 0.0  ;;  %v1167_v37 = vmul.f32 %v1927_v30, %v1927_v30  ;;  %v2246_v60 = vpop.f32.mrf.mxu1 }
 0x108   :  { %v1055_v11 = vadd.f32 %v1054_v5, %v1053_v4  ;;  %v1254_v14 = vadd.f32 %v1253_v8, %v1252_v3  ;;  %v1261_v52 = vsel %vm283_vm1, %v1165_v32, 0.0  ;;  %v1548_v53 = vpack.c.bf16 %v2115_v1, %v2115_v1 }
 0x109   :  { %981 = vst.msk [vmem:[%s2488_s2 + $0xcc] sm:$0xf] %vm929_vm2, %v1550_v46  ;;  %v1553_v59 = vpack.c.bf16 %v2125_v15, %v2125_v15  ;;  %v1263_v12 = vsel %vm283_vm1, %v1166_v21, 0.0  ;;  %v1064_v61 = vsel %vm283_vm1, %v1927_v30, 0.0  ;;  %v1168_v62 = vmul.f32 %v1961_v55, %v1961_v55 }
 0x10a   :  { %v1057_v25 = vadd.f32 %v1056_v19, %v1055_v11  ;;  %v1256_v28 = vadd.f32 %v1255_v17, %v1254_v14  ;;  %979 = vst.msk [vmem:[%s2488_s2 + $0xc4] sm:$0xf] %vm929_vm2, %v1548_v53  ;;  %v1551_v3 = vpack.c.bf16 %v2137_v26, %v2137_v26  ;;  %v1265_v30 = vsel %vm283_vm1, %v1167_v37, 0.0  ;;  %v2276_v17 = vpop.f32.mrf.mxu1 }
 0x10b   :  { %984 = vst.msk [vmem:[%s2488_s2 + $0xd8] sm:$0xf] %vm929_vm2, %v1553_v59  ;;  %v1066_v6 = vsel %vm283_vm1, %v1961_v55, 0.0  ;;  %v1169_v8 = vmul.f32 %v1983_v7, %v1983_v7  ;;  %v1554_v9 = vpack.c.bf16 %v2147_v40, %v2147_v40  ;;  %v1552_v16 = vpack.c.bf16 %v2159_v50, %v2159_v50 }
 0x10c   :  { %v1258_v35 = vadd.f32 %v1257_v29, %v1256_v28  ;;  %v1059_v36 = vadd.f32 %v1058_v31, %v1057_v25  ;;  %982 = vst.msk [vmem:[%s2488_s2 + $0xd0] sm:$0xf] %vm929_vm2, %v1551_v3  ;;  %v1170_v55 = vmul.f32 %v1949_v47, %v1949_v47  ;;  %v1267_v19 = vsel %vm283_vm1, %v1168_v62, 0.0  ;;  %v2306_v39 = vpop.f32.mrf.mxu1 }
 0x10d   :  { %v1068_v20 = vsel %vm283_vm1, %v1983_v7, 0.0  ;;  %985 = vst.msk [vmem:[%s2488_s2 + $0xdc] sm:$0xf] %vm929_vm2, %v1554_v9  ;;  %v1557_v23 = vpack.c.bf16 %v2169_v63, %v2169_v63  ;;  %983 = vst.msk [vmem:[%s2488_s2 + $0xd4] sm:$0xf] %vm929_vm2, %v1552_v16  ;;  %v1070_v29 = vsel %vm283_vm1, %v1949_v47, 0.0  ;;  %v1171_v7 = vmul.f32 %v1971_v0, %v1971_v0 }
 0x10e   :  { %v1061_v48 = vadd.f32 %v1060_v43, %v1059_v36  ;;  %v1260_v49 = vadd.f32 %v1259_v42, %v1258_v35  ;;  %v1269_v31 = vsel %vm283_vm1, %v1169_v8, 0.0  ;;  %v1555_v32 = vpack.c.bf16 %v2183_v10, %v2183_v10 }
 0x10f   :  { %988 = vst.msk [vmem:[%s2488_s2 + $0xe8] sm:$0xf] %vm929_vm2, %v1557_v23  ;;  %v1558_v36 = vpack.c.bf16 %v2197_v24, %v2197_v24  ;;  %v1271_v47 = vsel %vm283_vm1, %v1170_v55, 0.0  ;;  %v1072_v21 = vsel %vm283_vm1, %v1971_v0, 0.0  ;;  %v1172_v42 = vmul.f32 %v2005_v27, %v2005_v27 }
 0x110   :  { %v1063_v54 = vadd.f32 %v1062_v51, %v1061_v48  ;;  %v1262_v58 = vadd.f32 %v1261_v52, %v1260_v49  ;;  %986 = vst.msk [vmem:[%s2488_s2 + $0xe0] sm:$0xf] %vm929_vm2, %v1555_v32  ;;  %v1556_v43 = vpack.c.bf16 %v2216_v41, %v2216_v41  ;;  %v1273_v0 = vsel %vm283_vm1, %v1171_v7, 0.0 }
 0x111   :  { %989 = vst.msk [vmem:[%s2488_s2 + $0xec] sm:$0xf] %vm929_vm2, %v1558_v36  ;;  %v1074_v49 = vsel %vm283_vm1, %v2005_v27, 0.0  ;;  %v1173_v51 = vmul.f32 %v2027_v45, %v2027_v45  ;;  %v1561_v37 = vpack.c.bf16 %v2246_v60, %v2246_v60  ;;  %v1174_v27 = vmul.f32 %v1993_v18, %v1993_v18 }
 0x112   :  { %v1264_v4 = vadd.f32 %v1263_v12, %v1262_v58  ;;  %v1065_v5 = vadd.f32 %v1064_v61, %v1063_v54  ;;  %987 = vst.msk [vmem:[%s2488_s2 + $0xe4] sm:$0xf] %vm929_vm2, %v1556_v43  ;;  %v1559_v54 = vpack.c.bf16 %v2276_v17, %v2276_v17  ;;  %v2336_v58 = vpop.f32.mrf.mxu1  ;;  %v1275_v59 = vsel %vm283_vm1, %v1172_v42, 0.0 }
 0x113   :  { %v1076_v12 = vsel %vm283_vm1, %v2027_v45, 0.0  ;;  %992 = vst.msk [vmem:[%s2488_s2 + $0xf8] sm:$0xf] %vm929_vm2, %v1561_v37  ;;  %v1562_v61 = vpack.c.bf16 %v2306_v39, %v2306_v39  ;;  %v1175_v45 = vmul.f32 %v2015_v38, %v2015_v38  ;;  %v1279_v9 = vsel %vm283_vm1, %v1174_v27, 0.0 }
 0x114   :  { %v1067_v11 = vadd.f32 %v1066_v6, %v1065_v5  ;;  %v1266_v14 = vadd.f32 %v1265_v30, %v1264_v4  ;;  %990 = vst.msk [vmem:[%s2488_s2 + $0xf0] sm:$0xf] %vm929_vm2, %v1559_v54  ;;  %v1078_v4 = vsel %vm283_vm1, %v1993_v18, 0.0  ;;  %v1277_v5 = vsel %vm283_vm1, %v1173_v51, 0.0 }
 0x115   :  { %993 = vst.msk [vmem:[%s2488_s2 + $0xfc] sm:$0xf] %vm929_vm2, %v1562_v61  ;;  %v1560_v30 = vpack.c.bf16 %v2336_v58, %v2336_v58  ;;  %v1080_v18 = vsel %vm283_vm1, %v2015_v38, 0.0  ;;  %v1281_v55 = vsel %vm283_vm1, %v1175_v45, 0.0  ;;  %v1086_v32 = vsel %vm283_vm1, %v2037_v57, 0.0 }
 0x116   :  { %v1268_v25 = vadd.f32 %v1267_v19, %v1266_v14  ;;  %v1069_v28 = vadd.f32 %v1068_v20, %v1067_v11  ;;  %v1176_v11 = vmul.f32 %v2049_v2, %v2049_v2  ;;  %v1082_v19 = vsel %vm283_vm1, %v2049_v2, 0.0 }
 0x117   :  { %991 = vst.msk [vmem:[%s2488_s2 + $0xf4] sm:$0xf] %vm929_vm2, %v1560_v30  ;;  %v1177_v20 = vmul.f32 %v2071_v22, %v2071_v22  ;;  %v1179_v2 = vmul.f32 %v2059_v13, %v2059_v13  ;;  %v1182_v51 = vmul.f32 %v2081_v34, %v2081_v34  ;;  %v1092_v37 = vsel %vm283_vm1, %v2115_v1, 0.0 }
 0x118   :  { %v1071_v33 = vadd.f32 %v1070_v29, %v1069_v28  ;;  %v1270_v35 = vadd.f32 %v1269_v31, %v1268_v25  ;;  %v1178_v25 = vmul.f32 %v2037_v57, %v2037_v57  ;;  %v1283_v28 = vsel %vm283_vm1, %v1176_v11, 0.0 }
 0x119   :  { %v1084_v29 = vsel %vm283_vm1, %v2071_v22, 0.0  ;;  %v1180_v22 = vmul.f32 %v2093_v44, %v2093_v44  ;;  %v1090_v57 = vsel %vm283_vm1, %v2093_v44, 0.0  ;;  %v1094_v54 = vsel %vm283_vm1, %v2081_v34, 0.0 }
 0x11a   :  { %v1272_v46 = vadd.f32 %v1271_v47, %v1270_v35  ;;  %v1073_v48 = vadd.f32 %v1072_v21, %v1071_v33  ;;  %v1285_v33 = vsel %vm283_vm1, %v1177_v20, 0.0  ;;  %v1287_v47 = vsel %vm283_vm1, %v1178_v25, 0.0 }
 0x11b   :  { %v1088_v21 = vsel %vm283_vm1, %v2059_v13, 0.0  ;;  %v1291_v13 = vsel %vm283_vm1, %v1180_v22, 0.0  ;;  %v1183_v44 = vmul.f32 %v2103_v56, %v2103_v56  ;;  %v1295_v61 = vsel %vm283_vm1, %v1182_v51, 0.0 }
 0x11c   :  { %v1075_v52 = vadd.f32 %v1074_v49, %v1073_v48  ;;  %v1274_v53 = vadd.f32 %v1273_v0, %v1272_v46  ;;  %v1289_v46 = vsel %vm283_vm1, %v1179_v2, 0.0  ;;  %v1181_v48 = vmul.f32 %v2115_v1, %v2115_v1 }
 0x11d   :  { %v1184_v1 = vmul.f32 %v2137_v26, %v2137_v26  ;;  %v1297_v45 = vsel %vm283_vm1, %v1183_v44, 0.0  ;;  %v1098_v34 = vsel %vm283_vm1, %v2137_v26, 0.0  ;;  %v1187_v26 = vmul.f32 %v2147_v40, %v2147_v40 }
 0x11e   :  { %v1276_v62 = vadd.f32 %v1275_v59, %v1274_v53  ;;  %v1077_v3 = vadd.f32 %v1076_v12, %v1075_v52  ;;  %v1293_v27 = vsel %vm283_vm1, %v1181_v48, 0.0  ;;  %v1108_v2 = vsel %vm283_vm1, %v2216_v41, 0.0 }
 0x120   :  { %v1079_v6 = vadd.f32 %v1078_v4, %v1077_v3  ;;  %v1278_v8 = vadd.f32 %v1277_v5, %v1276_v62  ;;  %v1096_v62 = vsel %vm283_vm1, %v2103_v56, 0.0  ;;  %v1185_v5 = vmul.f32 %v2159_v50, %v2159_v50 }
 0x121   :  { %v1299_v56 = vsel %vm283_vm1, %v1184_v1, 0.0 }
 0x122   :  { %v1280_v14 = vadd.f32 %v1279_v9, %v1278_v8  ;;  %v1081_v16 = vadd.f32 %v1080_v18, %v1079_v6  ;;  %v1186_v8 = vmul.f32 %v2125_v15, %v2125_v15  ;;  %v1100_v9 = vsel %vm283_vm1, %v2159_v50, 0.0 }
 0x123   :  { %v1188_v50 = vmul.f32 %v2183_v10, %v2183_v10 }
 0x124   :  { %v1083_v23 = vadd.f32 %v1082_v19, %v1081_v16  ;;  %v1282_v38 = vadd.f32 %v1281_v55, %v1280_v14  ;;  %v1102_v14 = vsel %vm283_vm1, %v2125_v15, 0.0  ;;  %v1301_v16 = vsel %vm283_vm1, %v1185_v5, 0.0 }
 0x125   :  { %v1303_v20 = vsel %vm283_vm1, %v1186_v8, 0.0  ;;  %v1106_v15 = vsel %vm283_vm1, %v2183_v10, 0.0  ;;  %v1191_v10 = vmul.f32 %v2197_v24, %v2197_v24 }
 0x126   :  { %v1284_v7 = vadd.f32 %v1283_v28, %v1282_v38  ;;  %v1085_v31 = vadd.f32 %v1084_v29, %v1083_v23  ;;  %v1104_v23 = vsel %vm283_vm1, %v2147_v40, 0.0  ;;  %v1305_v28 = vsel %vm283_vm1, %v1187_v26, 0.0 }
 0x127   :  { %v1189_v29 = vmul.f32 %v2216_v41, %v2216_v41  ;;  %v1307_v40 = vsel %vm283_vm1, %v1188_v50, 0.0  ;;  %v1192_v41 = vmul.f32 %v2276_v17, %v2276_v17  ;;  %v1313_v48 = vsel %vm283_vm1, %v1191_v10, 0.0 }
 0x128   :  { %v1087_v35 = vadd.f32 %v1086_v32, %v1085_v31  ;;  %v1286_v36 = vadd.f32 %v1285_v33, %v1284_v7  ;;  %v1190_v32 = vmul.f32 %v2169_v63, %v2169_v63 }
 0x12a   :  { %v1288_v42 = vadd.f32 %v1287_v47, %v1286_v36  ;;  %v1089_v43 = vadd.f32 %v1088_v21, %v1087_v35  ;;  %v1110_v36 = vsel %vm283_vm1, %v2169_v63, 0.0  ;;  %v1309_v47 = vsel %vm283_vm1, %v1189_v29, 0.0 }
 0x12b   :  { %v1114_v63 = vsel %vm283_vm1, %v2276_v17, 0.0  ;;  %v1195_v17 = vmul.f32 %v2306_v39, %v2306_v39 }
 0x12c   :  { %v1091_v0 = vadd.f32 %v1090_v57, %v1089_v43  ;;  %v1290_v49 = vadd.f32 %v1289_v46, %v1288_v42  ;;  %v1311_v42 = vsel %vm283_vm1, %v1190_v32, 0.0  ;;  %v1112_v43 = vsel %vm283_vm1, %v2197_v24, 0.0 }
 0x12d   :  { %v1315_v24 = vsel %vm283_vm1, %v1192_v41, 0.0 }
 0x12e   :  { %v1292_v52 = vadd.f32 %v1291_v13, %v1290_v49  ;;  %v1093_v53 = vadd.f32 %v1092_v37, %v1091_v0  ;;  %v1193_v0 = vmul.f32 %v2336_v58, %v2336_v58  ;;  %v1194_v13 = vmul.f32 %v2246_v60, %v2246_v60 }
 0x12f   :  { %v1116_v37 = vsel %vm283_vm1, %v2336_v58, 0.0  ;;  %v1321_v58 = vsel %vm283_vm1, %v1195_v17, 0.0 }
 0x130   :  { %v1095_v59 = vadd.f32 %v1094_v54, %v1093_v53  ;;  %v1294_v12 = vadd.f32 %v1293_v27, %v1292_v52  ;;  %v1118_v54 = vsel %vm283_vm1, %v2246_v60, 0.0  ;;  %v1317_v44 = vsel %vm283_vm1, %v1193_v0, 0.0 }
 0x132   :  { %v1296_v3 = vadd.f32 %v1295_v61, %v1294_v12  ;;  %v1097_v4 = vadd.f32 %v1096_v62, %v1095_v59  ;;  %v1319_v12 = vsel %vm283_vm1, %v1194_v13, 0.0  ;;  %v1120_v61 = vsel %vm283_vm1, %v2306_v39, 0.0 }
 0x134   :  { %v1099_v30 = vadd.f32 %v1098_v34, %v1097_v4  ;;  %v1298_v6 = vadd.f32 %v1297_v45, %v1296_v3 }
 0x136   :  { %v1300_v18 = vadd.f32 %v1299_v56, %v1298_v6  ;;  %v1101_v11 = vadd.f32 %v1100_v9, %v1099_v30  ;;  %v994_v9 = vld [vmem:[%s2489_s3] sm:$0x1] }
 0x138   :  { %v1103_v55 = vadd.f32 %v1102_v14, %v1101_v11  ;;  %v1302_v19 = vadd.f32 %v1301_v16, %v1300_v18  ;;  %v1131_v11 = vld [vmem:[%s2490_s4] sm:$0x1] }
 0x13a   :  { %v1304_v38 = vadd.f32 %v1303_v20, %v1302_v19  ;;  %v1105_v25 = vadd.f32 %v1104_v23, %v1103_v55 }
 0x13c   :  { %v1107_v7 = vadd.f32 %v1106_v15, %v1105_v25  ;;  %v1306_v31 = vadd.f32 %v1305_v28, %v1304_v38 }
 0x13e   :  { %v1308_v33 = vadd.f32 %v1307_v40, %v1306_v31  ;;  %v1109_v35 = vadd.f32 %v1108_v2, %v1107_v7 }
 0x140   :  { %v1111_v21 = vadd.f32 %v1110_v36, %v1109_v35  ;;  %v1310_v22 = vadd.f32 %v1309_v47, %v1308_v33 }
 0x142   :  { %v1312_v46 = vadd.f32 %v1311_v42, %v1310_v22  ;;  %v1113_v57 = vadd.f32 %v1112_v43, %v1111_v21 }
 0x144   :  { %v1115_v49 = vadd.f32 %v1114_v63, %v1113_v57  ;;  %v1314_v51 = vadd.f32 %v1313_v48, %v1312_v46 }
 0x146   :  { %v1316_v52 = vadd.f32 %v1315_v24, %v1314_v51  ;;  %v1117_v53 = vadd.f32 %v1116_v37, %v1115_v49 }
 0x148   :  { %v1119_v27 = vadd.f32 %v1118_v54, %v1117_v53  ;;  %v1318_v59 = vadd.f32 %v1317_v44, %v1316_v52 }
 0x14a   :  { %v1121_v62 = vadd.f32 %v1120_v61, %v1119_v27  ;;  %v1320_v1 = vadd.f32 %v1319_v12, %v1318_v59 }
 0x14c   :  { %v1122_v3 = vrot.slane %v1121_v62, 4  ;;  %v1322_v4 = vadd.f32 %v1321_v58, %v1320_v1 }
 0x14e   :  { %v1123_v45 = vadd.f32 %v1122_v3, %v1121_v62  ;;  %v1323_v60 = vrot.slane %v1322_v4, 4 }
 0x150   :  { %v1124_v34 = vrot.slane %v1123_v45, 2  ;;  %v1324_v5 = vadd.f32 %v1323_v60, %v1322_v4 }
 0x152   :  { %v1125_v30 = vadd.f32 %v1124_v34, %v1123_v45  ;;  %v1325_v6 = vrot.slane %v1324_v5, 2 }
 0x154   :  { %v1126_v8 = vrot.slane %v1125_v30, 1  ;;  %v1326_v56 = vadd.f32 %v1325_v6, %v1324_v5 }
 0x156   :  { %v1127_v18 = vadd.f32 %v1126_v8, %v1125_v30  ;;  %v1327_v39 = vrot.slane %v1326_v56, 1 }
 0x158   :  { %v1128_v14 = vadd.f32 %v1127_v18, %v994_v9  ;;  %v1328_v26 = vadd.f32 %v1327_v39, %v1326_v56 }
 0x15a   :  { %1130 = vst.msk [vmem:[%s2489_s3] sm:$0x1] %vm55_vm3, %v1128_v14  ;;  %v1329_v16 = vadd.f32 %v1328_v26, %v1131_v11 }
 0x15c   :  { %1330 = vst.msk [vmem:[%s2490_s4] sm:$0x1] %vm55_vm3, %v1329_v16 }

// kernel: bottleneck_forward.8
= control target key start
LH: loop header
LB: loop body
LE: loop exit
PB: predicated region body
PF: predicated region fallthrough
CT: control target
= control target key end

     0   :  { %vm380_vm0 = vcmask 1041408   ;;  %vm283_vm1 = vcmask 31744   ;;  %vm929_vm2 = vcmask 125952   ;;  %vm55_vm3 = vcmask 122880   ;;  %s2487_s1 = inlined_call_operand.vmem [shape: bf16[4,16], index: 1, kind: input, shape index: {}]   ;;  %s2488_s0 = inlined_call_operand.vmem [shape: bf16[512,4], index: 0, kind: input, shape index: {}]   ;;  %s2489_s2 = inlined_call_operand.vmem [shape: bf16[512,16], index: 2, kind: output, shape index: {0}]   ;;  %s2490_s3 = inlined_call_operand.vmem [shape: f32[1,1,16], index: 3, kind: output, shape index: {1}]   ;;  %s2491_s4 = inlined_call_operand.vmem [shape: f32[1,1,16], index: 4, kind: output, shape index: {2}]  }
   0x1   :  { %v122_v0 = vld [vmem:[%s2487_s1] sm:$0x3]  ;;  %v1669_v3 = vld [vmem:[%s2488_s0 + $0x8] sm:$0xff]   ;;  %v1670_v4 = vld [vmem:[%s2488_s0 + $0x10] sm:$0xff]   ;;  %v1700_v36 = vmov 0.0   ;;  %vm995_vm4 = vcmask 130048  }
   0x2   :  { %1665 = vmatprep.subr.msk.bf16.mxu0 %vm380_vm0, %v122_v0  ;;  %v382_v1 = vsel %vm380_vm0, %v122_v0, 0  ;;  %v1668_v2 = vld [vmem:[%s2488_s0] sm:$0xff]   ;;  %1666 = vmatprep.subr.msk.bf16.mxu1 %vm380_vm0, %v122_v0  ;;  %v1671_v5 = vld [vmem:[%s2488_s0 + $0x18] sm:$0xff]   ;;  %v1673_v7 = vld [vmem:[%s2488_s0 + $0x28] sm:$0xff]   ;;  %56 = vst.msk [vmem:[%s2490_s3] sm:$0x1] %vm55_vm3, %v1700_v36 }
   0x3   :  { %1598 = vmatpush3.bf16.msra.mxu0 %v382_v1  ;;  %1664 = vmatpush3.bf16.msra.mxu1 %v382_v1  ;;  %v1672_v6 = vld [vmem:[%s2488_s0 + $0x20] sm:$0xff]   ;;  %v1674_v8 = vld [vmem:[%s2488_s0 + $0x30] sm:$0xff]   ;;  %v1685_v10 = vld [vmem:[%s2488_s0 + $0x88] sm:$0xff]   ;;  %57 = vst.msk [vmem:[%s2491_s4] sm:$0x1] %vm55_vm3, %v1700_v36 }
   0x4   :  { %1599 = vmatprep.mubr.msk.bf16.mxu0 %vm283_vm1, %v1668_v2  ;;  %v1684_v9 = vld [vmem:[%s2488_s0 + $0x80] sm:$0xff]   ;;  %v1686_v11 = vld [vmem:[%s2488_s0 + $0x90] sm:$0xff]   ;;  %v1675_v12 = vld [vmem:[%s2488_s0 + $0x38] sm:$0xff]  }
   0x5   :  { %1631 = vmatprep.mubr.msk.bf16.mxu1 %vm283_vm1, %v1684_v9  ;;  %v1687_v13 = vld [vmem:[%s2488_s0 + $0x98] sm:$0xff]   ;;  %v1688_v14 = vld [vmem:[%s2488_s0 + $0xa0] sm:$0xff]   ;;  %v1689_v16 = vld [vmem:[%s2488_s0 + $0xa8] sm:$0xff]  }
   0x6   :  { %1600 = vmatmul.mubr.msk.bf16.vlgmr.msra.gmra.mxu0 %vm283_vm1, %v1669_v3  ;;  %1632 = vmatmul.mubr.msk.bf16.vlgmr.msra.gmra.mxu1 %vm283_vm1, %v1685_v10  ;;  %v1676_v15 = vld [vmem:[%s2488_s0 + $0x40] sm:$0xff]   ;;  %v1677_v17 = vld [vmem:[%s2488_s0 + $0x48] sm:$0xff]   ;;  %v1690_v18 = vld [vmem:[%s2488_s0 + $0xb0] sm:$0xff]  }
   0x7   :  { %1603 = vmatprep.mubr.msk.bf16.mxu0 %vm283_vm1, %v1670_v4  ;;  %1635 = vmatprep.mubr.msk.bf16.mxu1 %vm283_vm1, %v1686_v11  ;;  %v1678_v19 = vld [vmem:[%s2488_s0 + $0x50] sm:$0xff]   ;;  %v1691_v20 = vld [vmem:[%s2488_s0 + $0xb8] sm:$0xff]   ;;  %v1692_v22 = vld [vmem:[%s2488_s0 + $0xc0] sm:$0xff]  }
   0x8   :  { %v1679_v21 = vld [vmem:[%s2488_s0 + $0x58] sm:$0xff]   ;;  %v1680_v23 = vld [vmem:[%s2488_s0 + $0x60] sm:$0xff]   ;;  %v1693_v24 = vld [vmem:[%s2488_s0 + $0xc8] sm:$0xff]  }
   0x9   :  { %v1681_v25 = vld [vmem:[%s2488_s0 + $0x68] sm:$0xff]   ;;  %v1694_v26 = vld [vmem:[%s2488_s0 + $0xd0] sm:$0xff]   ;;  %v1695_v28 = vld [vmem:[%s2488_s0 + $0xd8] sm:$0xff]  }
   0xa   :  { %v1682_v27 = vld [vmem:[%s2488_s0 + $0x70] sm:$0xff]   ;;  %v1683_v29 = vld [vmem:[%s2488_s0 + $0x78] sm:$0xff]   ;;  %v1696_v30 = vld [vmem:[%s2488_s0 + $0xe0] sm:$0xff]  }
   0xb   :  { %v1697_v31 = vld [vmem:[%s2488_s0 + $0xe8] sm:$0xff]   ;;  %v1698_v32 = vld [vmem:[%s2488_s0 + $0xf0] sm:$0xff]   ;;  %v1699_v33 = vld [vmem:[%s2488_s0 + $0xf8] sm:$0xff]  }
   0xe   :  { %1604 = vmatmul.mubr.msk.bf16.gmra.mxu0 %vm283_vm1, %v1671_v5  ;;  %1636 = vmatmul.mubr.msk.bf16.gmra.mxu1 %vm283_vm1, %v1687_v13 }
   0xf   :  { %1607 = vmatprep.mubr.msk.bf16.mxu0 %vm283_vm1, %v1672_v6  ;;  %1639 = vmatprep.mubr.msk.bf16.mxu1 %vm283_vm1, %v1688_v14 }
  0x16   :  { %1608 = vmatmul.mubr.msk.bf16.gmra.mxu0 %vm283_vm1, %v1673_v7  ;;  %1640 = vmatmul.mubr.msk.bf16.gmra.mxu1 %vm283_vm1, %v1689_v16 }
  0x17   :  { %1611 = vmatprep.mubr.msk.bf16.mxu0 %vm283_vm1, %v1674_v8  ;;  %1643 = vmatprep.mubr.msk.bf16.mxu1 %vm283_vm1, %v1690_v18 }
  0x1e   :  { %1612 = vmatmul.mubr.msk.bf16.gmra.mxu0 %vm283_vm1, %v1675_v12  ;;  %1644 = vmatmul.mubr.msk.bf16.gmra.mxu1 %vm283_vm1, %v1691_v20 }
  0x1f   :  { %1615 = vmatprep.mubr.msk.bf16.mxu0 %vm283_vm1, %v1676_v15  ;;  %1647 = vmatprep.mubr.msk.bf16.mxu1 %vm283_vm1, %v1692_v22 }
  0x26   :  { %1616 = vmatmul.mubr.msk.bf16.gmra.mxu0 %vm283_vm1, %v1677_v17  ;;  %1648 = vmatmul.mubr.msk.bf16.gmra.mxu1 %vm283_vm1, %v1693_v24 }
  0x27   :  { %1619 = vmatprep.mubr.msk.bf16.mxu0 %vm283_vm1, %v1678_v19  ;;  %1651 = vmatprep.mubr.msk.bf16.mxu1 %vm283_vm1, %v1694_v26 }
  0x2e   :  { %1620 = vmatmul.mubr.msk.bf16.gmra.mxu0 %vm283_vm1, %v1679_v21  ;;  %1652 = vmatmul.mubr.msk.bf16.gmra.mxu1 %vm283_vm1, %v1695_v28 }
  0x2f   :  { %1623 = vmatprep.mubr.msk.bf16.mxu0 %vm283_vm1, %v1680_v23  ;;  %1655 = vmatprep.mubr.msk.bf16.mxu1 %vm283_vm1, %v1696_v30 }
  0x36   :  { %1624 = vmatmul.mubr.msk.bf16.gmra.mxu0 %vm283_vm1, %v1681_v25  ;;  %1656 = vmatmul.mubr.msk.bf16.gmra.mxu1 %vm283_vm1, %v1697_v31 }
  0x37   :  { %1627 = vmatprep.mubr.msk.bf16.mxu0 %vm283_vm1, %v1682_v27  ;;  %1659 = vmatprep.mubr.msk.bf16.mxu1 %vm283_vm1, %v1698_v32 }
  0x3e   :  { %1628 = vmatmul.mubr.msk.bf16.gmra.mxu0 %vm283_vm1, %v1683_v29  ;;  %1660 = vmatmul.mubr.msk.bf16.gmra.mxu1 %vm283_vm1, %v1699_v33 }
  0xc6   :  { %v1601_v34 = vpop.f32.mrf.mxu0  ;;  %v1904_v12 = vpop.f32.mrf.mxu1 }
  0xc7   :  { %v1502_v35 = vpack.c.bf16 %v1601_v34, %v1601_v34  ;;  %v1135_v42 = vmul.f32 %v1601_v34, %v1601_v34  ;;  %v999_v48 = vsel %vm995_vm4, %v1601_v34, 0.0  ;;  %v1534_v16 = vpack.c.bf16 %v1904_v12, %v1904_v12 }
  0xc8   :  { %v418_v37 = vpop.f32.mrf.mxu0  ;;  %v1914_v21 = vpop.f32.mrf.mxu1 }
  0xc9   :  { %932 = vst.msk [vmem:[%s2489_s2 + $0x8] sm:$0xf] %vm929_vm2, %v1502_v35  ;;  %v1500_v38 = vpack.c.bf16 %v418_v37, %v418_v37  ;;  %v1133_v40 = vmul.f32 %v418_v37, %v418_v37  ;;  %v996_v44 = vsel %vm995_vm4, %v418_v37, 0.0  ;;  %v1200_v58 = vsel %vm995_vm4, %v1135_v42, 0.0  ;;  %964 = vst.msk [vmem:[%s2489_s2 + $0x88] sm:$0xf] %vm929_vm2, %v1534_v16 }
  0xca   :  { %v1602_v39 = vpop.f32.mrf.mxu0  ;;  %v1532_v25 = vpack.c.bf16 %v1914_v21, %v1914_v21  ;;  %v1928_v30 = vpop.f32.mrf.mxu1 }
  0xcb   :  { %930 = vst.msk [vmem:[%s2489_s2] sm:$0xf] %vm929_vm2, %v1500_v38  ;;  %v1503_v41 = vpack.c.bf16 %v1602_v39, %v1602_v39  ;;  %v1197_v51 = vsel %vm995_vm4, %v1133_v40, 0.0  ;;  %v1136_v52 = vmul.f32 %v1602_v39, %v1602_v39  ;;  %v1001_v59 = vsel %vm995_vm4, %v1602_v39, 0.0 }
  0xcc   :  { %v421_v43 = vpop.f32.mrf.mxu0  ;;  %962 = vst.msk [vmem:[%s2489_s2 + $0x80] sm:$0xf] %vm929_vm2, %v1532_v25  ;;  %v1940_v37 = vpop.f32.mrf.mxu1  ;;  %v1535_v42 = vpack.c.bf16 %v1928_v30, %v1928_v30 }
  0xcd   :  { %933 = vst.msk [vmem:[%s2489_s2 + $0xc] sm:$0xf] %vm929_vm2, %v1503_v41  ;;  %v1501_v45 = vpack.c.bf16 %v421_v43, %v421_v43  ;;  %v997_v46 = vsel %vm995_vm4, %v421_v43, 0.0  ;;  %v1134_v47 = vmul.f32 %v421_v43, %v421_v43  ;;  %v1202_v1 = vsel %vm995_vm4, %v1136_v52, 0.0 }
  0xce   :  { %v998_v49 = vadd.f32 %v997_v46, %v996_v44  ;;  %v1605_v50 = vpop.f32.mrf.mxu0  ;;  %965 = vst.msk [vmem:[%s2489_s2 + $0x8c] sm:$0xf] %vm929_vm2, %v1535_v42 }
  0xcf   :  { %931 = vst.msk [vmem:[%s2489_s2 + $0x4] sm:$0xf] %vm929_vm2, %v1501_v45  ;;  %v1198_v53 = vsel %vm995_vm4, %v1134_v47, 0.0  ;;  %v1506_v54 = vpack.c.bf16 %v1605_v50, %v1605_v50  ;;  %v1139_v4 = vmul.f32 %v1605_v50, %v1605_v50  ;;  %v1007_v17 = vsel %vm995_vm4, %v1605_v50, 0.0  ;;  %v1950_v47 = vpop.f32.mrf.mxu1 }
  0xd0   :  { %v1000_v55 = vadd.f32 %v999_v48, %v998_v49  ;;  %v1199_v56 = vadd.f32 %v1198_v53, %v1197_v51  ;;  %v434_v57 = vpop.f32.mrf.mxu0 }
  0xd1   :  { %936 = vst.msk [vmem:[%s2489_s2 + $0x18] sm:$0xf] %vm929_vm2, %v1506_v54  ;;  %v1504_v60 = vpack.c.bf16 %v434_v57, %v434_v57  ;;  %v1137_v61 = vmul.f32 %v434_v57, %v434_v57  ;;  %v1003_v2 = vsel %vm995_vm4, %v434_v57, 0.0  ;;  %v1208_v26 = vsel %vm995_vm4, %v1139_v4, 0.0 }
  0xd2   :  { %v1201_v62 = vadd.f32 %v1200_v58, %v1199_v56  ;;  %v1002_v63 = vadd.f32 %v1001_v59, %v1000_v55  ;;  %v1606_v0 = vpop.f32.mrf.mxu0  ;;  %v1962_v55 = vpop.f32.mrf.mxu1  ;;  %v1533_v59 = vpack.c.bf16 %v1940_v37, %v1940_v37 }
  0xd3   :  { %934 = vst.msk [vmem:[%s2489_s2 + $0x10] sm:$0xf] %vm929_vm2, %v1504_v60  ;;  %v1507_v3 = vpack.c.bf16 %v1606_v0, %v1606_v0  ;;  %v1204_v8 = vsel %vm995_vm4, %v1137_v61, 0.0  ;;  %v1140_v18 = vmul.f32 %v1606_v0, %v1606_v0  ;;  %v1009_v27 = vsel %vm995_vm4, %v1606_v0, 0.0 }
  0xd4   :  { %v1004_v5 = vadd.f32 %v1003_v2, %v1002_v63  ;;  %v1203_v6 = vadd.f32 %v1202_v1, %v1201_v62  ;;  %v437_v7 = vpop.f32.mrf.mxu0  ;;  %v1972_v0 = vpop.f32.mrf.mxu1  ;;  %963 = vst.msk [vmem:[%s2489_s2 + $0x84] sm:$0xf] %vm929_vm2, %v1533_v59 }
  0xd5   :  { %937 = vst.msk [vmem:[%s2489_s2 + $0x1c] sm:$0xf] %vm929_vm2, %v1507_v3  ;;  %v1505_v9 = vpack.c.bf16 %v437_v7, %v437_v7  ;;  %v1005_v10 = vsel %vm995_vm4, %v437_v7, 0.0  ;;  %v1138_v11 = vmul.f32 %v437_v7, %v437_v7  ;;  %v1210_v34 = vsel %vm995_vm4, %v1140_v18, 0.0 }
  0xd6   :  { %v1205_v13 = vadd.f32 %v1204_v8, %v1203_v6  ;;  %v1006_v14 = vadd.f32 %v1005_v10, %v1004_v5  ;;  %v1609_v15 = vpop.f32.mrf.mxu0  ;;  %v1984_v7 = vpop.f32.mrf.mxu1 }
  0xd7   :  { %935 = vst.msk [vmem:[%s2489_s2 + $0x14] sm:$0xf] %vm929_vm2, %v1505_v9  ;;  %v1206_v19 = vsel %vm995_vm4, %v1138_v11, 0.0  ;;  %v1510_v20 = vpack.c.bf16 %v1609_v15, %v1609_v15  ;;  %v1143_v38 = vmul.f32 %v1609_v15, %v1609_v15  ;;  %v1015_v51 = vsel %vm995_vm4, %v1609_v15, 0.0 }
  0xd8   :  { %v1008_v22 = vadd.f32 %v1007_v17, %v1006_v14  ;;  %v1207_v23 = vadd.f32 %v1206_v19, %v1205_v13  ;;  %v450_v24 = vpop.f32.mrf.mxu0  ;;  %v1538_v13 = vpack.c.bf16 %v1950_v47, %v1950_v47  ;;  %v1994_v18 = vpop.f32.mrf.mxu1 }
  0xd9   :  { %940 = vst.msk [vmem:[%s2489_s2 + $0x28] sm:$0xf] %vm929_vm2, %v1510_v20  ;;  %v1508_v28 = vpack.c.bf16 %v450_v24, %v450_v24  ;;  %v1141_v29 = vmul.f32 %v450_v24, %v450_v24  ;;  %v1011_v35 = vsel %vm995_vm4, %v450_v24, 0.0  ;;  %v1216_v60 = vsel %vm995_vm4, %v1143_v38, 0.0 }
  0xda   :  { %v1209_v31 = vadd.f32 %v1208_v26, %v1207_v23  ;;  %v1010_v32 = vadd.f32 %v1009_v27, %v1008_v22  ;;  %v1610_v33 = vpop.f32.mrf.mxu0  ;;  %968 = vst.msk [vmem:[%s2489_s2 + $0x98] sm:$0xf] %vm929_vm2, %v1538_v13  ;;  %v2006_v27 = vpop.f32.mrf.mxu1 }
  0xdb   :  { %938 = vst.msk [vmem:[%s2489_s2 + $0x20] sm:$0xf] %vm929_vm2, %v1508_v28  ;;  %v1511_v36 = vpack.c.bf16 %v1610_v33, %v1610_v33  ;;  %v1212_v43 = vsel %vm995_vm4, %v1141_v29, 0.0  ;;  %v1144_v52 = vmul.f32 %v1610_v33, %v1610_v33  ;;  %v1017_v61 = vsel %vm995_vm4, %v1610_v33, 0.0 }
  0xdc   :  { %v1012_v39 = vadd.f32 %v1011_v35, %v1010_v32  ;;  %v1211_v40 = vadd.f32 %v1210_v34, %v1209_v31  ;;  %v453_v41 = vpop.f32.mrf.mxu0  ;;  %v1536_v32 = vpack.c.bf16 %v1962_v55, %v1962_v55  ;;  %v2016_v38 = vpop.f32.mrf.mxu1 }
  0xdd   :  { %941 = vst.msk [vmem:[%s2489_s2 + $0x2c] sm:$0xf] %vm929_vm2, %v1511_v36  ;;  %v1509_v44 = vpack.c.bf16 %v453_v41, %v453_v41  ;;  %v1013_v45 = vsel %vm995_vm4, %v453_v41, 0.0  ;;  %v1142_v46 = vmul.f32 %v453_v41, %v453_v41  ;;  %v1218_v4 = vsel %vm995_vm4, %v1144_v52, 0.0 }
  0xde   :  { %v1213_v48 = vadd.f32 %v1212_v43, %v1211_v40  ;;  %v1014_v49 = vadd.f32 %v1013_v45, %v1012_v39  ;;  %v1613_v50 = vpop.f32.mrf.mxu0  ;;  %966 = vst.msk [vmem:[%s2489_s2 + $0x90] sm:$0xf] %vm929_vm2, %v1536_v32  ;;  %v2028_v45 = vpop.f32.mrf.mxu1 }
  0xdf   :  { %939 = vst.msk [vmem:[%s2489_s2 + $0x24] sm:$0xf] %vm929_vm2, %v1509_v44  ;;  %v1214_v53 = vsel %vm995_vm4, %v1142_v46, 0.0  ;;  %v1514_v54 = vpack.c.bf16 %v1613_v50, %v1613_v50  ;;  %v1147_v8 = vmul.f32 %v1613_v50, %v1613_v50  ;;  %v1023_v23 = vsel %vm995_vm4, %v1613_v50, 0.0 }
  0xe0   :  { %v1016_v56 = vadd.f32 %v1015_v51, %v1014_v49  ;;  %v1215_v57 = vadd.f32 %v1214_v53, %v1213_v48  ;;  %v466_v58 = vpop.f32.mrf.mxu0  ;;  %v1539_v51 = vpack.c.bf16 %v1972_v0, %v1972_v0 }
  0xe1   :  { %944 = vst.msk [vmem:[%s2489_s2 + $0x38] sm:$0xf] %vm929_vm2, %v1514_v54  ;;  %v1512_v62 = vpack.c.bf16 %v466_v58, %v466_v58  ;;  %v1145_v63 = vmul.f32 %v466_v58, %v466_v58  ;;  %v1019_v5 = vsel %vm995_vm4, %v466_v58, 0.0  ;;  %v1224_v33 = vsel %vm995_vm4, %v1147_v8, 0.0 }
  0xe2   :  { %v1217_v1 = vadd.f32 %v1216_v60, %v1215_v57  ;;  %v1018_v2 = vadd.f32 %v1017_v61, %v1016_v56  ;;  %v1614_v3 = vpop.f32.mrf.mxu0  ;;  %v2038_v57 = vpop.f32.mrf.mxu1  ;;  %969 = vst.msk [vmem:[%s2489_s2 + $0x9c] sm:$0xf] %vm929_vm2, %v1539_v51 }
  0xe3   :  { %942 = vst.msk [vmem:[%s2489_s2 + $0x30] sm:$0xf] %vm929_vm2, %v1512_v62  ;;  %v1515_v6 = vpack.c.bf16 %v1614_v3, %v1614_v3  ;;  %v1220_v14 = vsel %vm995_vm4, %v1145_v63, 0.0  ;;  %v1148_v24 = vmul.f32 %v1614_v3, %v1614_v3  ;;  %v1025_v34 = vsel %vm995_vm4, %v1614_v3, 0.0 }
  0xe4   :  { %v1020_v9 = vadd.f32 %v1019_v5, %v1018_v2  ;;  %v1219_v10 = vadd.f32 %v1218_v4, %v1217_v1  ;;  %v469_v11 = vpop.f32.mrf.mxu0  ;;  %v2050_v2 = vpop.f32.mrf.mxu1 }
  0xe5   :  { %945 = vst.msk [vmem:[%s2489_s2 + $0x3c] sm:$0xf] %vm929_vm2, %v1515_v6  ;;  %v1513_v15 = vpack.c.bf16 %v469_v11, %v469_v11  ;;  %v1021_v16 = vsel %vm995_vm4, %v469_v11, 0.0  ;;  %v1146_v17 = vmul.f32 %v469_v11, %v469_v11  ;;  %v1226_v42 = vsel %vm995_vm4, %v1148_v24, 0.0 }
  0xe6   :  { %v1221_v19 = vadd.f32 %v1220_v14, %v1219_v10  ;;  %v1022_v20 = vadd.f32 %v1021_v16, %v1020_v9  ;;  %v1617_v22 = vpop.f32.mrf.mxu0  ;;  %v1537_v6 = vpack.c.bf16 %v1984_v7, %v1984_v7  ;;  %v2060_v13 = vpop.f32.mrf.mxu1 }
  0xe7   :  { %943 = vst.msk [vmem:[%s2489_s2 + $0x34] sm:$0xf] %vm929_vm2, %v1513_v15  ;;  %v1222_v25 = vsel %vm995_vm4, %v1146_v17, 0.0  ;;  %v1518_v26 = vpack.c.bf16 %v1617_v22, %v1617_v22  ;;  %v1151_v46 = vmul.f32 %v1617_v22, %v1617_v22  ;;  %v1031_v61 = vsel %vm995_vm4, %v1617_v22, 0.0 }
  0xe8   :  { %v1024_v28 = vadd.f32 %v1023_v23, %v1022_v20  ;;  %v1223_v29 = vadd.f32 %v1222_v25, %v1221_v19  ;;  %v482_v31 = vpop.f32.mrf.mxu0  ;;  %967 = vst.msk [vmem:[%s2489_s2 + $0x94] sm:$0xf] %vm929_vm2, %v1537_v6  ;;  %v2072_v22 = vpop.f32.mrf.mxu1 }
  0xe9   :  { %948 = vst.msk [vmem:[%s2489_s2 + $0x48] sm:$0xf] %vm929_vm2, %v1518_v26  ;;  %v1516_v35 = vpack.c.bf16 %v482_v31, %v482_v31  ;;  %v1149_v36 = vmul.f32 %v482_v31, %v482_v31  ;;  %v1027_v43 = vsel %vm995_vm4, %v482_v31, 0.0  ;;  %v1232_v8 = vsel %vm995_vm4, %v1151_v46, 0.0 }
  0xea   :  { %v1225_v39 = vadd.f32 %v1224_v33, %v1223_v29  ;;  %v1026_v40 = vadd.f32 %v1025_v34, %v1024_v28  ;;  %v1618_v41 = vpop.f32.mrf.mxu0  ;;  %v1542_v28 = vpack.c.bf16 %v1994_v18, %v1994_v18  ;;  %v2082_v34 = vpop.f32.mrf.mxu1 }
  0xeb   :  { %946 = vst.msk [vmem:[%s2489_s2 + $0x40] sm:$0xf] %vm929_vm2, %v1516_v35  ;;  %v1519_v44 = vpack.c.bf16 %v1618_v41, %v1618_v41  ;;  %v1228_v52 = vsel %vm995_vm4, %v1149_v36, 0.0  ;;  %v1152_v62 = vmul.f32 %v1618_v41, %v1618_v41  ;;  %v1033_v9 = vsel %vm995_vm4, %v1618_v41, 0.0 }
  0xec   :  { %v1028_v48 = vadd.f32 %v1027_v43, %v1026_v40  ;;  %v1227_v49 = vadd.f32 %v1226_v42, %v1225_v39  ;;  %v485_v50 = vpop.f32.mrf.mxu0  ;;  %972 = vst.msk [vmem:[%s2489_s2 + $0xa8] sm:$0xf] %vm929_vm2, %v1542_v28 }
  0xed   :  { %949 = vst.msk [vmem:[%s2489_s2 + $0x4c] sm:$0xf] %vm929_vm2, %v1519_v44  ;;  %v1517_v53 = vpack.c.bf16 %v485_v50, %v485_v50  ;;  %v1029_v54 = vsel %vm995_vm4, %v485_v50, 0.0  ;;  %v1150_v56 = vmul.f32 %v485_v50, %v485_v50  ;;  %v1234_v17 = vsel %vm995_vm4, %v1152_v62, 0.0  ;;  %v2094_v44 = vpop.f32.mrf.mxu1 }
  0xee   :  { %v1229_v58 = vadd.f32 %v1228_v52, %v1227_v49  ;;  %v1030_v59 = vadd.f32 %v1029_v54, %v1028_v48  ;;  %v1621_v60 = vpop.f32.mrf.mxu0  ;;  %v1540_v50 = vpack.c.bf16 %v2006_v27, %v2006_v27 }
  0xef   :  { %947 = vst.msk [vmem:[%s2489_s2 + $0x44] sm:$0xf] %vm929_vm2, %v1517_v53  ;;  %v1230_v63 = vsel %vm995_vm4, %v1150_v56, 0.0  ;;  %v1522_v1 = vpack.c.bf16 %v1621_v60, %v1621_v60  ;;  %v1155_v23 = vmul.f32 %v1621_v60, %v1621_v60  ;;  %v1039_v40 = vsel %vm995_vm4, %v1621_v60, 0.0  ;;  %v2104_v56 = vpop.f32.mrf.mxu1 }
  0xf0   :  { %v1032_v3 = vadd.f32 %v1031_v61, %v1030_v59  ;;  %v1231_v4 = vadd.f32 %v1230_v63, %v1229_v58  ;;  %v498_v5 = vpop.f32.mrf.mxu0  ;;  %970 = vst.msk [vmem:[%s2489_s2 + $0xa0] sm:$0xf] %vm929_vm2, %v1540_v50 }
  0xf1   :  { %952 = vst.msk [vmem:[%s2489_s2 + $0x58] sm:$0xf] %vm929_vm2, %v1522_v1  ;;  %v1520_v10 = vpack.c.bf16 %v498_v5, %v498_v5  ;;  %v1153_v11 = vmul.f32 %v498_v5, %v498_v5  ;;  %v1035_v19 = vsel %vm995_vm4, %v498_v5, 0.0  ;;  %v1240_v51 = vsel %vm995_vm4, %v1155_v23, 0.0  ;;  %v2116_v1 = vpop.f32.mrf.mxu1 }
  0xf2   :  { %v1233_v14 = vadd.f32 %v1232_v8, %v1231_v4  ;;  %v1034_v15 = vadd.f32 %v1033_v9, %v1032_v3  ;;  %v1622_v16 = vpop.f32.mrf.mxu0  ;;  %v1543_v8 = vpack.c.bf16 %v2016_v38, %v2016_v38 }
  0xf3   :  { %950 = vst.msk [vmem:[%s2489_s2 + $0x50] sm:$0xf] %vm929_vm2, %v1520_v10  ;;  %v1523_v20 = vpack.c.bf16 %v1622_v16, %v1622_v16  ;;  %v1236_v29 = vsel %vm995_vm4, %v1153_v11, 0.0  ;;  %v1156_v41 = vmul.f32 %v1622_v16, %v1622_v16  ;;  %v1041_v52 = vsel %vm995_vm4, %v1622_v16, 0.0 }
  0xf4   :  { %v1036_v24 = vadd.f32 %v1035_v19, %v1034_v15  ;;  %v1235_v25 = vadd.f32 %v1234_v17, %v1233_v14  ;;  %v501_v26 = vpop.f32.mrf.mxu0  ;;  %v2126_v15 = vpop.f32.mrf.mxu1  ;;  %973 = vst.msk [vmem:[%s2489_s2 + $0xac] sm:$0xf] %vm929_vm2, %v1543_v8 }
  0xf5   :  { %953 = vst.msk [vmem:[%s2489_s2 + $0x5c] sm:$0xf] %vm929_vm2, %v1523_v20  ;;  %v1521_v31 = vpack.c.bf16 %v501_v26, %v501_v26  ;;  %v1037_v32 = vsel %vm995_vm4, %v501_v26, 0.0  ;;  %v1154_v33 = vmul.f32 %v501_v26, %v501_v26  ;;  %v1242_v61 = vsel %vm995_vm4, %v1156_v41, 0.0 }
  0xf6   :  { %v1237_v35 = vadd.f32 %v1236_v29, %v1235_v25  ;;  %v1038_v36 = vadd.f32 %v1037_v32, %v1036_v24  ;;  %v1625_v39 = vpop.f32.mrf.mxu0  ;;  %v2138_v26 = vpop.f32.mrf.mxu1  ;;  %v1541_v32 = vpack.c.bf16 %v2028_v45, %v2028_v45 }
  0xf7   :  { %951 = vst.msk [vmem:[%s2489_s2 + $0x54] sm:$0xf] %vm929_vm2, %v1521_v31  ;;  %v1238_v42 = vsel %vm995_vm4, %v1154_v33, 0.0  ;;  %v1526_v43 = vpack.c.bf16 %v1625_v39, %v1625_v39  ;;  %v1159_v3 = vmul.f32 %v1625_v39, %v1625_v39  ;;  %v1047_v20 = vsel %vm995_vm4, %v1625_v39, 0.0 }
  0xf8   :  { %v1040_v46 = vadd.f32 %v1039_v40, %v1038_v36  ;;  %v1239_v48 = vadd.f32 %v1238_v42, %v1237_v35  ;;  %v514_v49 = vpop.f32.mrf.mxu0  ;;  %v2148_v40 = vpop.f32.mrf.mxu1  ;;  %971 = vst.msk [vmem:[%s2489_s2 + $0xa4] sm:$0xf] %vm929_vm2, %v1541_v32  ;;  %v1166_v32 = vmul.f32 %v1940_v37, %v1940_v37 }
  0xf9   :  { %956 = vst.msk [vmem:[%s2489_s2 + $0x68] sm:$0xf] %vm929_vm2, %v1526_v43  ;;  %v1524_v53 = vpack.c.bf16 %v514_v49, %v514_v49  ;;  %v1157_v54 = vmul.f32 %v514_v49, %v514_v49  ;;  %v1043_v62 = vsel %vm995_vm4, %v514_v49, 0.0  ;;  %v1248_v33 = vsel %vm995_vm4, %v1159_v3, 0.0 }
  0xfa   :  { %v1241_v58 = vadd.f32 %v1240_v51, %v1239_v48  ;;  %v1042_v59 = vadd.f32 %v1041_v52, %v1040_v46  ;;  %v1626_v60 = vpop.f32.mrf.mxu0  ;;  %v2160_v50 = vpop.f32.mrf.mxu1 }
  0xfb   :  { %954 = vst.msk [vmem:[%s2489_s2 + $0x60] sm:$0xf] %vm929_vm2, %v1524_v53  ;;  %v1527_v63 = vpack.c.bf16 %v1626_v60, %v1626_v60  ;;  %v1244_v9 = vsel %vm995_vm4, %v1157_v54, 0.0  ;;  %v1160_v23 = vmul.f32 %v1626_v60, %v1626_v60  ;;  %v1049_v35 = vsel %vm995_vm4, %v1626_v60, 0.0 }
  0xfc   :  { %v1044_v4 = vadd.f32 %v1043_v62, %v1042_v59  ;;  %v1243_v5 = vadd.f32 %v1242_v61, %v1241_v58  ;;  %v517_v6 = vpop.f32.mrf.mxu0  ;;  %v1546_v58 = vpack.c.bf16 %v2038_v57, %v2038_v57 }
  0xfd   :  { %957 = vst.msk [vmem:[%s2489_s2 + $0x6c] sm:$0xf] %vm929_vm2, %v1527_v63  ;;  %v1525_v10 = vpack.c.bf16 %v517_v6, %v517_v6  ;;  %v1045_v11 = vsel %vm995_vm4, %v517_v6, 0.0  ;;  %v1158_v14 = vmul.f32 %v517_v6, %v517_v6  ;;  %v1250_v46 = vsel %vm995_vm4, %v1160_v23, 0.0  ;;  %v2170_v63 = vpop.f32.mrf.mxu1 }
  0xfe   :  { %v1245_v16 = vadd.f32 %v1244_v9, %v1243_v5  ;;  %v1046_v17 = vadd.f32 %v1045_v11, %v1044_v4  ;;  %v1629_v19 = vpop.f32.mrf.mxu0  ;;  %976 = vst.msk [vmem:[%s2489_s2 + $0xb8] sm:$0xf] %vm929_vm2, %v1546_v58  ;;  %v1544_v9 = vpack.c.bf16 %v2050_v2, %v2050_v2  ;;  %v1545_v23 = vpack.c.bf16 %v2072_v22, %v2072_v22 }
  0xff   :  { %955 = vst.msk [vmem:[%s2489_s2 + $0x64] sm:$0xf] %vm929_vm2, %v1525_v10  ;;  %v1246_v24 = vsel %vm995_vm4, %v1158_v14, 0.0  ;;  %v1530_v25 = vpack.c.bf16 %v1629_v19, %v1629_v19  ;;  %v1163_v51 = vmul.f32 %v1629_v19, %v1629_v19  ;;  %v1055_v5 = vsel %vm995_vm4, %v1629_v19, 0.0  ;;  %v2184_v10 = vpop.f32.mrf.mxu1 }
 0x100   :  { %v1048_v28 = vadd.f32 %v1047_v20, %v1046_v17  ;;  %v1247_v29 = vadd.f32 %v1246_v24, %v1245_v16  ;;  %v530_v31 = vpop.f32.mrf.mxu0  ;;  %v1547_v16 = vpack.c.bf16 %v2060_v13, %v2060_v13  ;;  %v1165_v20 = vmul.f32 %v1914_v21, %v1914_v21  ;;  %974 = vst.msk [vmem:[%s2489_s2 + $0xb0] sm:$0xf] %vm929_vm2, %v1544_v9 }
 0x101   :  { %960 = vst.msk [vmem:[%s2489_s2 + $0x78] sm:$0xf] %vm929_vm2, %v1530_v25  ;;  %v1528_v36 = vpack.c.bf16 %v530_v31, %v530_v31  ;;  %v1161_v39 = vmul.f32 %v530_v31, %v530_v31  ;;  %v1051_v48 = vsel %vm995_vm4, %v530_v31, 0.0  ;;  %v1256_v17 = vsel %vm995_vm4, %v1163_v51, 0.0  ;;  %v2198_v24 = vpop.f32.mrf.mxu1  ;;  %975 = vst.msk [vmem:[%s2489_s2 + $0xb4] sm:$0xf] %vm929_vm2, %v1545_v23 }
 0x102   :  { %v1249_v41 = vadd.f32 %v1248_v33, %v1247_v29  ;;  %v1050_v42 = vadd.f32 %v1049_v35, %v1048_v28  ;;  %v1630_v43 = vpop.f32.mrf.mxu0  ;;  %977 = vst.msk [vmem:[%s2489_s2 + $0xbc] sm:$0xf] %vm929_vm2, %v1547_v16  ;;  %v1059_v31 = vsel %vm995_vm4, %v1914_v21, 0.0  ;;  %v1550_v33 = vpack.c.bf16 %v2082_v34, %v2082_v34 }
 0x103   :  { %958 = vst.msk [vmem:[%s2489_s2 + $0x70] sm:$0xf] %vm929_vm2, %v1528_v36  ;;  %v1531_v49 = vpack.c.bf16 %v1630_v43, %v1630_v43  ;;  %v1252_v59 = vsel %vm995_vm4, %v1161_v39, 0.0  ;;  %v1164_v6 = vmul.f32 %v1630_v43, %v1630_v43  ;;  %v1057_v19 = vsel %vm995_vm4, %v1630_v43, 0.0 }
 0x104   :  { %v1052_v52 = vadd.f32 %v1051_v48, %v1050_v42  ;;  %v1251_v53 = vadd.f32 %v1250_v46, %v1249_v41  ;;  %v533_v54 = vpop.f32.mrf.mxu0  ;;  %v1548_v39 = vpack.c.bf16 %v2094_v44, %v2094_v44  ;;  %v2217_v41 = vpop.f32.mrf.mxu1  ;;  %v1167_v21 = vmul.f32 %v1904_v12, %v1904_v12  ;;  %980 = vst.msk [vmem:[%s2489_s2 + $0xc8] sm:$0xf] %vm929_vm2, %v1550_v33 }
 0x105   :  { %961 = vst.msk [vmem:[%s2489_s2 + $0x7c] sm:$0xf] %vm929_vm2, %v1531_v49  ;;  %v1529_v60 = vpack.c.bf16 %v533_v54, %v533_v54  ;;  %v1053_v61 = vsel %vm995_vm4, %v533_v54, 0.0  ;;  %v1162_v62 = vmul.f32 %v533_v54, %v533_v54  ;;  %v1258_v29 = vsel %vm995_vm4, %v1164_v6, 0.0 }
 0x106   :  { %v1253_v3 = vadd.f32 %v1252_v59, %v1251_v53  ;;  %v1054_v4 = vadd.f32 %v1053_v61, %v1052_v52  ;;  %v1260_v42 = vsel %vm995_vm4, %v1165_v20, 0.0  ;;  %v1061_v43 = vsel %vm995_vm4, %v1940_v37, 0.0  ;;  %978 = vst.msk [vmem:[%s2489_s2 + $0xc0] sm:$0xf] %vm929_vm2, %v1548_v39 }
 0x107   :  { %959 = vst.msk [vmem:[%s2489_s2 + $0x74] sm:$0xf] %vm929_vm2, %v1529_v60  ;;  %v1254_v8 = vsel %vm995_vm4, %v1162_v62, 0.0  ;;  %v1551_v46 = vpack.c.bf16 %v2104_v56, %v2104_v56  ;;  %v1063_v51 = vsel %vm995_vm4, %v1904_v12, 0.0  ;;  %v1168_v37 = vmul.f32 %v1928_v30, %v1928_v30  ;;  %v2247_v60 = vpop.f32.mrf.mxu1 }
 0x108   :  { %v1056_v11 = vadd.f32 %v1055_v5, %v1054_v4  ;;  %v1255_v14 = vadd.f32 %v1254_v8, %v1253_v3  ;;  %v1262_v52 = vsel %vm995_vm4, %v1166_v32, 0.0  ;;  %v1549_v53 = vpack.c.bf16 %v2116_v1, %v2116_v1 }
 0x109   :  { %981 = vst.msk [vmem:[%s2489_s2 + $0xcc] sm:$0xf] %vm929_vm2, %v1551_v46  ;;  %v1554_v59 = vpack.c.bf16 %v2126_v15, %v2126_v15  ;;  %v1264_v12 = vsel %vm995_vm4, %v1167_v21, 0.0  ;;  %v1065_v61 = vsel %vm995_vm4, %v1928_v30, 0.0  ;;  %v1169_v62 = vmul.f32 %v1962_v55, %v1962_v55 }
 0x10a   :  { %v1058_v25 = vadd.f32 %v1057_v19, %v1056_v11  ;;  %v1257_v28 = vadd.f32 %v1256_v17, %v1255_v14  ;;  %979 = vst.msk [vmem:[%s2489_s2 + $0xc4] sm:$0xf] %vm929_vm2, %v1549_v53  ;;  %v1552_v3 = vpack.c.bf16 %v2138_v26, %v2138_v26  ;;  %v1266_v30 = vsel %vm995_vm4, %v1168_v37, 0.0  ;;  %v2277_v17 = vpop.f32.mrf.mxu1 }
 0x10b   :  { %984 = vst.msk [vmem:[%s2489_s2 + $0xd8] sm:$0xf] %vm929_vm2, %v1554_v59  ;;  %v1067_v6 = vsel %vm995_vm4, %v1962_v55, 0.0  ;;  %v1170_v8 = vmul.f32 %v1984_v7, %v1984_v7  ;;  %v1555_v9 = vpack.c.bf16 %v2148_v40, %v2148_v40  ;;  %v1553_v16 = vpack.c.bf16 %v2160_v50, %v2160_v50 }
 0x10c   :  { %v1259_v35 = vadd.f32 %v1258_v29, %v1257_v28  ;;  %v1060_v36 = vadd.f32 %v1059_v31, %v1058_v25  ;;  %982 = vst.msk [vmem:[%s2489_s2 + $0xd0] sm:$0xf] %vm929_vm2, %v1552_v3  ;;  %v1171_v55 = vmul.f32 %v1950_v47, %v1950_v47  ;;  %v1268_v19 = vsel %vm995_vm4, %v1169_v62, 0.0  ;;  %v2307_v39 = vpop.f32.mrf.mxu1 }
 0x10d   :  { %v1069_v20 = vsel %vm995_vm4, %v1984_v7, 0.0  ;;  %985 = vst.msk [vmem:[%s2489_s2 + $0xdc] sm:$0xf] %vm929_vm2, %v1555_v9  ;;  %v1558_v23 = vpack.c.bf16 %v2170_v63, %v2170_v63  ;;  %983 = vst.msk [vmem:[%s2489_s2 + $0xd4] sm:$0xf] %vm929_vm2, %v1553_v16  ;;  %v1071_v29 = vsel %vm995_vm4, %v1950_v47, 0.0  ;;  %v1172_v7 = vmul.f32 %v1972_v0, %v1972_v0 }
 0x10e   :  { %v1062_v48 = vadd.f32 %v1061_v43, %v1060_v36  ;;  %v1261_v49 = vadd.f32 %v1260_v42, %v1259_v35  ;;  %v1270_v31 = vsel %vm995_vm4, %v1170_v8, 0.0  ;;  %v1556_v32 = vpack.c.bf16 %v2184_v10, %v2184_v10 }
 0x10f   :  { %988 = vst.msk [vmem:[%s2489_s2 + $0xe8] sm:$0xf] %vm929_vm2, %v1558_v23  ;;  %v1559_v36 = vpack.c.bf16 %v2198_v24, %v2198_v24  ;;  %v1272_v47 = vsel %vm995_vm4, %v1171_v55, 0.0  ;;  %v1073_v21 = vsel %vm995_vm4, %v1972_v0, 0.0  ;;  %v1173_v42 = vmul.f32 %v2006_v27, %v2006_v27 }
 0x110   :  { %v1064_v54 = vadd.f32 %v1063_v51, %v1062_v48  ;;  %v1263_v58 = vadd.f32 %v1262_v52, %v1261_v49  ;;  %986 = vst.msk [vmem:[%s2489_s2 + $0xe0] sm:$0xf] %vm929_vm2, %v1556_v32  ;;  %v1557_v43 = vpack.c.bf16 %v2217_v41, %v2217_v41  ;;  %v1274_v0 = vsel %vm995_vm4, %v1172_v7, 0.0 }
 0x111   :  { %989 = vst.msk [vmem:[%s2489_s2 + $0xec] sm:$0xf] %vm929_vm2, %v1559_v36  ;;  %v1075_v49 = vsel %vm995_vm4, %v2006_v27, 0.0  ;;  %v1174_v51 = vmul.f32 %v2028_v45, %v2028_v45  ;;  %v1562_v37 = vpack.c.bf16 %v2247_v60, %v2247_v60  ;;  %v1175_v27 = vmul.f32 %v1994_v18, %v1994_v18 }
 0x112   :  { %v1265_v4 = vadd.f32 %v1264_v12, %v1263_v58  ;;  %v1066_v5 = vadd.f32 %v1065_v61, %v1064_v54  ;;  %987 = vst.msk [vmem:[%s2489_s2 + $0xe4] sm:$0xf] %vm929_vm2, %v1557_v43  ;;  %v1560_v54 = vpack.c.bf16 %v2277_v17, %v2277_v17  ;;  %v2337_v58 = vpop.f32.mrf.mxu1  ;;  %v1276_v59 = vsel %vm995_vm4, %v1173_v42, 0.0 }
 0x113   :  { %v1077_v12 = vsel %vm995_vm4, %v2028_v45, 0.0  ;;  %992 = vst.msk [vmem:[%s2489_s2 + $0xf8] sm:$0xf] %vm929_vm2, %v1562_v37  ;;  %v1563_v61 = vpack.c.bf16 %v2307_v39, %v2307_v39  ;;  %v1176_v45 = vmul.f32 %v2016_v38, %v2016_v38  ;;  %v1280_v9 = vsel %vm995_vm4, %v1175_v27, 0.0 }
 0x114   :  { %v1068_v11 = vadd.f32 %v1067_v6, %v1066_v5  ;;  %v1267_v14 = vadd.f32 %v1266_v30, %v1265_v4  ;;  %990 = vst.msk [vmem:[%s2489_s2 + $0xf0] sm:$0xf] %vm929_vm2, %v1560_v54  ;;  %v1079_v4 = vsel %vm995_vm4, %v1994_v18, 0.0  ;;  %v1278_v5 = vsel %vm995_vm4, %v1174_v51, 0.0 }
 0x115   :  { %993 = vst.msk [vmem:[%s2489_s2 + $0xfc] sm:$0xf] %vm929_vm2, %v1563_v61  ;;  %v1561_v30 = vpack.c.bf16 %v2337_v58, %v2337_v58  ;;  %v1081_v18 = vsel %vm995_vm4, %v2016_v38, 0.0  ;;  %v1282_v55 = vsel %vm995_vm4, %v1176_v45, 0.0  ;;  %v1087_v32 = vsel %vm995_vm4, %v2038_v57, 0.0 }
 0x116   :  { %v1269_v25 = vadd.f32 %v1268_v19, %v1267_v14  ;;  %v1070_v28 = vadd.f32 %v1069_v20, %v1068_v11  ;;  %v1177_v11 = vmul.f32 %v2050_v2, %v2050_v2  ;;  %v1083_v19 = vsel %vm995_vm4, %v2050_v2, 0.0 }
 0x117   :  { %991 = vst.msk [vmem:[%s2489_s2 + $0xf4] sm:$0xf] %vm929_vm2, %v1561_v30  ;;  %v1178_v20 = vmul.f32 %v2072_v22, %v2072_v22  ;;  %v1180_v2 = vmul.f32 %v2060_v13, %v2060_v13  ;;  %v1183_v51 = vmul.f32 %v2082_v34, %v2082_v34  ;;  %v1093_v37 = vsel %vm995_vm4, %v2116_v1, 0.0 }
 0x118   :  { %v1072_v33 = vadd.f32 %v1071_v29, %v1070_v28  ;;  %v1271_v35 = vadd.f32 %v1270_v31, %v1269_v25  ;;  %v1179_v25 = vmul.f32 %v2038_v57, %v2038_v57  ;;  %v1284_v28 = vsel %vm995_vm4, %v1177_v11, 0.0 }
 0x119   :  { %v1085_v29 = vsel %vm995_vm4, %v2072_v22, 0.0  ;;  %v1181_v22 = vmul.f32 %v2094_v44, %v2094_v44  ;;  %v1091_v57 = vsel %vm995_vm4, %v2094_v44, 0.0  ;;  %v1095_v54 = vsel %vm995_vm4, %v2082_v34, 0.0 }
 0x11a   :  { %v1273_v46 = vadd.f32 %v1272_v47, %v1271_v35  ;;  %v1074_v48 = vadd.f32 %v1073_v21, %v1072_v33  ;;  %v1286_v33 = vsel %vm995_vm4, %v1178_v20, 0.0  ;;  %v1288_v47 = vsel %vm995_vm4, %v1179_v25, 0.0 }
 0x11b   :  { %v1089_v21 = vsel %vm995_vm4, %v2060_v13, 0.0  ;;  %v1292_v13 = vsel %vm995_vm4, %v1181_v22, 0.0  ;;  %v1184_v44 = vmul.f32 %v2104_v56, %v2104_v56  ;;  %v1296_v61 = vsel %vm995_vm4, %v1183_v51, 0.0 }
 0x11c   :  { %v1076_v52 = vadd.f32 %v1075_v49, %v1074_v48  ;;  %v1275_v53 = vadd.f32 %v1274_v0, %v1273_v46  ;;  %v1290_v46 = vsel %vm995_vm4, %v1180_v2, 0.0  ;;  %v1182_v48 = vmul.f32 %v2116_v1, %v2116_v1 }
 0x11d   :  { %v1185_v1 = vmul.f32 %v2138_v26, %v2138_v26  ;;  %v1298_v45 = vsel %vm995_vm4, %v1184_v44, 0.0  ;;  %v1099_v34 = vsel %vm995_vm4, %v2138_v26, 0.0  ;;  %v1188_v26 = vmul.f32 %v2148_v40, %v2148_v40 }
 0x11e   :  { %v1277_v62 = vadd.f32 %v1276_v59, %v1275_v53  ;;  %v1078_v3 = vadd.f32 %v1077_v12, %v1076_v52  ;;  %v1294_v27 = vsel %vm995_vm4, %v1182_v48, 0.0  ;;  %v1109_v2 = vsel %vm995_vm4, %v2217_v41, 0.0 }
 0x120   :  { %v1080_v6 = vadd.f32 %v1079_v4, %v1078_v3  ;;  %v1279_v8 = vadd.f32 %v1278_v5, %v1277_v62  ;;  %v1097_v62 = vsel %vm995_vm4, %v2104_v56, 0.0  ;;  %v1186_v5 = vmul.f32 %v2160_v50, %v2160_v50 }
 0x121   :  { %v1300_v56 = vsel %vm995_vm4, %v1185_v1, 0.0 }
 0x122   :  { %v1281_v14 = vadd.f32 %v1280_v9, %v1279_v8  ;;  %v1082_v16 = vadd.f32 %v1081_v18, %v1080_v6  ;;  %v1187_v8 = vmul.f32 %v2126_v15, %v2126_v15  ;;  %v1101_v9 = vsel %vm995_vm4, %v2160_v50, 0.0 }
 0x123   :  { %v1189_v50 = vmul.f32 %v2184_v10, %v2184_v10 }
 0x124   :  { %v1084_v23 = vadd.f32 %v1083_v19, %v1082_v16  ;;  %v1283_v38 = vadd.f32 %v1282_v55, %v1281_v14  ;;  %v1103_v14 = vsel %vm995_vm4, %v2126_v15, 0.0  ;;  %v1302_v16 = vsel %vm995_vm4, %v1186_v5, 0.0 }
 0x125   :  { %v1304_v20 = vsel %vm995_vm4, %v1187_v8, 0.0  ;;  %v1107_v15 = vsel %vm995_vm4, %v2184_v10, 0.0  ;;  %v1192_v10 = vmul.f32 %v2198_v24, %v2198_v24 }
 0x126   :  { %v1285_v7 = vadd.f32 %v1284_v28, %v1283_v38  ;;  %v1086_v31 = vadd.f32 %v1085_v29, %v1084_v23  ;;  %v1105_v23 = vsel %vm995_vm4, %v2148_v40, 0.0  ;;  %v1306_v28 = vsel %vm995_vm4, %v1188_v26, 0.0 }
 0x127   :  { %v1190_v29 = vmul.f32 %v2217_v41, %v2217_v41  ;;  %v1308_v40 = vsel %vm995_vm4, %v1189_v50, 0.0  ;;  %v1193_v41 = vmul.f32 %v2277_v17, %v2277_v17  ;;  %v1314_v48 = vsel %vm995_vm4, %v1192_v10, 0.0 }
 0x128   :  { %v1088_v35 = vadd.f32 %v1087_v32, %v1086_v31  ;;  %v1287_v36 = vadd.f32 %v1286_v33, %v1285_v7  ;;  %v1191_v32 = vmul.f32 %v2170_v63, %v2170_v63 }
 0x12a   :  { %v1289_v42 = vadd.f32 %v1288_v47, %v1287_v36  ;;  %v1090_v43 = vadd.f32 %v1089_v21, %v1088_v35  ;;  %v1111_v36 = vsel %vm995_vm4, %v2170_v63, 0.0  ;;  %v1310_v47 = vsel %vm995_vm4, %v1190_v29, 0.0 }
 0x12b   :  { %v1115_v63 = vsel %vm995_vm4, %v2277_v17, 0.0  ;;  %v1196_v17 = vmul.f32 %v2307_v39, %v2307_v39 }
 0x12c   :  { %v1092_v0 = vadd.f32 %v1091_v57, %v1090_v43  ;;  %v1291_v49 = vadd.f32 %v1290_v46, %v1289_v42  ;;  %v1312_v42 = vsel %vm995_vm4, %v1191_v32, 0.0  ;;  %v1113_v43 = vsel %vm995_vm4, %v2198_v24, 0.0 }
 0x12d   :  { %v1316_v24 = vsel %vm995_vm4, %v1193_v41, 0.0 }
 0x12e   :  { %v1293_v52 = vadd.f32 %v1292_v13, %v1291_v49  ;;  %v1094_v53 = vadd.f32 %v1093_v37, %v1092_v0  ;;  %v1194_v0 = vmul.f32 %v2337_v58, %v2337_v58  ;;  %v1195_v13 = vmul.f32 %v2247_v60, %v2247_v60 }
 0x12f   :  { %v1117_v37 = vsel %vm995_vm4, %v2337_v58, 0.0  ;;  %v1322_v58 = vsel %vm995_vm4, %v1196_v17, 0.0 }
 0x130   :  { %v1096_v59 = vadd.f32 %v1095_v54, %v1094_v53  ;;  %v1295_v12 = vadd.f32 %v1294_v27, %v1293_v52  ;;  %v1119_v54 = vsel %vm995_vm4, %v2247_v60, 0.0  ;;  %v1318_v44 = vsel %vm995_vm4, %v1194_v0, 0.0 }
 0x132   :  { %v1297_v3 = vadd.f32 %v1296_v61, %v1295_v12  ;;  %v1098_v4 = vadd.f32 %v1097_v62, %v1096_v59  ;;  %v1320_v12 = vsel %vm995_vm4, %v1195_v13, 0.0  ;;  %v1121_v61 = vsel %vm995_vm4, %v2307_v39, 0.0 }
 0x134   :  { %v1100_v30 = vadd.f32 %v1099_v34, %v1098_v4  ;;  %v1299_v6 = vadd.f32 %v1298_v45, %v1297_v3 }
 0x136   :  { %v1301_v18 = vadd.f32 %v1300_v56, %v1299_v6  ;;  %v1102_v11 = vadd.f32 %v1101_v9, %v1100_v30  ;;  %v994_v9 = vld [vmem:[%s2490_s3] sm:$0x1] }
 0x138   :  { %v1104_v55 = vadd.f32 %v1103_v14, %v1102_v11  ;;  %v1303_v19 = vadd.f32 %v1302_v16, %v1301_v18  ;;  %v1132_v11 = vld [vmem:[%s2491_s4] sm:$0x1] }
 0x13a   :  { %v1305_v38 = vadd.f32 %v1304_v20, %v1303_v19  ;;  %v1106_v25 = vadd.f32 %v1105_v23, %v1104_v55 }
 0x13c   :  { %v1108_v7 = vadd.f32 %v1107_v15, %v1106_v25  ;;  %v1307_v31 = vadd.f32 %v1306_v28, %v1305_v38 }
 0x13e   :  { %v1309_v33 = vadd.f32 %v1308_v40, %v1307_v31  ;;  %v1110_v35 = vadd.f32 %v1109_v2, %v1108_v7 }
 0x140   :  { %v1112_v21 = vadd.f32 %v1111_v36, %v1110_v35  ;;  %v1311_v22 = vadd.f32 %v1310_v47, %v1309_v33 }
 0x142   :  { %v1313_v46 = vadd.f32 %v1312_v42, %v1311_v22  ;;  %v1114_v57 = vadd.f32 %v1113_v43, %v1112_v21 }
 0x144   :  { %v1116_v49 = vadd.f32 %v1115_v63, %v1114_v57  ;;  %v1315_v51 = vadd.f32 %v1314_v48, %v1313_v46 }
 0x146   :  { %v1317_v52 = vadd.f32 %v1316_v24, %v1315_v51  ;;  %v1118_v53 = vadd.f32 %v1117_v37, %v1116_v49 }
 0x148   :  { %v1120_v27 = vadd.f32 %v1119_v54, %v1118_v53  ;;  %v1319_v59 = vadd.f32 %v1318_v44, %v1317_v52 }
 0x14a   :  { %v1122_v62 = vadd.f32 %v1121_v61, %v1120_v27  ;;  %v1321_v1 = vadd.f32 %v1320_v12, %v1319_v59 }
 0x14c   :  { %v1123_v3 = vrot.slane %v1122_v62, 4  ;;  %v1323_v4 = vadd.f32 %v1322_v58, %v1321_v1 }
 0x14e   :  { %v1124_v45 = vadd.f32 %v1123_v3, %v1122_v62  ;;  %v1324_v60 = vrot.slane %v1323_v4, 4 }
 0x150   :  { %v1125_v34 = vrot.slane %v1124_v45, 2  ;;  %v1325_v5 = vadd.f32 %v1324_v60, %v1323_v4 }
 0x152   :  { %v1126_v30 = vadd.f32 %v1125_v34, %v1124_v45  ;;  %v1326_v6 = vrot.slane %v1325_v5, 2 }
 0x154   :  { %v1127_v8 = vrot.slane %v1126_v30, 1  ;;  %v1327_v56 = vadd.f32 %v1326_v6, %v1325_v5 }
 0x156   :  { %v1128_v18 = vadd.f32 %v1127_v8, %v1126_v30  ;;  %v1328_v39 = vrot.slane %v1327_v56, 1 }
 0x158   :  { %v1129_v14 = vadd.f32 %v1128_v18, %v994_v9  ;;  %v1329_v26 = vadd.f32 %v1328_v39, %v1327_v56 }
 0x15a   :  { %1131 = vst.msk [vmem:[%s2490_s3] sm:$0x1] %vm55_vm3, %v1129_v14  ;;  %v1330_v16 = vadd.f32 %v1329_v26, %v1132_v11 }
 0x15c   :  { %1331 = vst.msk [vmem:[%s2491_s4] sm:$0x1] %vm55_vm3, %v1330_v16 }

// kernel: bottleneck_forward.7
= control target key start
LH: loop header
LB: loop body
LE: loop exit
PB: predicated region body
PF: predicated region fallthrough
CT: control target
= control target key end

     0   :  { %vm528_vm0 = vcmask 1041408   ;;  %vm431_vm1 = vcmask 31744   ;;  %vm1077_vm2 = vcmask 125952   ;;  %vm61_vm3 = vcmask 122880   ;;  %s2914_s1 = inlined_call_operand.vmem [shape: bf16[4,16], index: 1, kind: input, shape index: {}]   ;;  %s2915_s0 = inlined_call_operand.vmem [shape: bf16[512,4], index: 0, kind: input, shape index: {}]   ;;  %s2916_s2 = inlined_call_operand.vmem [shape: f32[1,4], index: 2, kind: input, shape index: {}]   ;;  %s2917_s3 = inlined_call_operand.vmem [shape: f32[1,4], index: 3, kind: input, shape index: {}]   ;;  %s2918_s4 = inlined_call_operand.vmem [shape: bf16[512,16], index: 4, kind: output, shape index: {0}]   ;;  %s2919_s5 = inlined_call_operand.vmem [shape: f32[1,1,16], index: 5, kind: output, shape index: {1}]   ;;  %s2920_s6 = inlined_call_operand.vmem [shape: f32[1,1,16], index: 6, kind: output, shape index: {2}]  }
   0x1   :  { %v430_v0 = vld [vmem:[%s2914_s1] sm:$0x3]  ;;  %v1810_v6 = vld [vmem:[%s2915_s0 + $0x8] sm:$0xff]   ;;  %v1811_v7 = vld [vmem:[%s2915_s0 + $0x10] sm:$0xff]   ;;  %vm1143_vm4 = vcmask 130048  }
   0x2   :  { %v1683_v1 = vld [vmem:[%s2915_s0] sm:$0xff]   ;;  %1942 = vmatprep.subr.msk.bf16.mxu0 %vm528_vm0, %v430_v0  ;;  %v530_v3 = vsel %vm528_vm0, %v430_v0, 0  ;;  %1943 = vmatprep.subr.msk.bf16.mxu1 %vm528_vm0, %v430_v0  ;;  %v1688_v9 = vunpack.c.l.bf16 %v1810_v6  ;;  %v1689_v10 = vunpack.c.h.bf16 %v1810_v6  ;;  %v1692_v11 = vunpack.c.l.bf16 %v1811_v7  ;;  %v1812_v13 = vld [vmem:[%s2915_s0 + $0x18] sm:$0xff]   ;;  %v1814_v35 = vld [vmem:[%s2915_s0 + $0x28] sm:$0xff]  }
   0x3   :  { %v1990_v2 = vld [vmem:[%s2916_s2] ss:$0 sm:$0xff]  ;;  %v1684_v4 = vunpack.c.l.bf16 %v1683_v1  ;;  %v1685_v5 = vunpack.c.h.bf16 %v1683_v1  ;;  %1875 = vmatpush3.bf16.msra.mxu0 %v530_v3  ;;  %v1693_v12 = vunpack.c.h.bf16 %v1811_v7  ;;  %1941 = vmatpush3.bf16.msra.mxu1 %v530_v3  ;;  %v1696_v16 = vunpack.c.l.bf16 %v1812_v13  ;;  %v1815_v40 = vld [vmem:[%s2915_s0 + $0x30] sm:$0xff]   ;;  %v1816_v51 = vld [vmem:[%s2915_s0 + $0x38] sm:$0xff]  }
   0x4   :  { %v2001_v8 = vld [vmem:[%s2917_s3] ss:$0 sm:$0xff]  ;;  %v1697_v17 = vunpack.c.h.bf16 %v1812_v13  ;;  %v201_v18 = vmul.f32 %v1688_v9, %v1990_v2  ;;  %v202_v19 = vmul.f32 %v1689_v10, %v1990_v2  ;;  %v203_v20 = vmul.f32 %v1692_v11, %v1990_v2  ;;  %v1818_v9 = vld [vmem:[%s2915_s0 + $0x48] sm:$0xff]   ;;  %v1819_v11 = vld [vmem:[%s2915_s0 + $0x50] sm:$0xff]  }
   0x5   :  { %v199_v14 = vmul.f32 %v1684_v4, %v1990_v2  ;;  %v200_v15 = vmul.f32 %v1685_v5, %v1990_v2  ;;  %v204_v21 = vmul.f32 %v1693_v12, %v1990_v2  ;;  %v205_v24 = vmul.f32 %v1696_v16, %v1990_v2  ;;  %v1813_v30 = vld [vmem:[%s2915_s0 + $0x20] sm:$0xff]  }
   0x6   :  { %v206_v25 = vmul.f32 %v1697_v17, %v1990_v2  ;;  %v272_v26 = vadd.f32 %v2001_v8, %v201_v18  ;;  %v273_v27 = vadd.f32 %v2001_v8, %v202_v19  ;;  %v274_v28 = vadd.f32 %v2001_v8, %v203_v20  ;;  %v1817_v63 = vld [vmem:[%s2915_s0 + $0x40] sm:$0xff]   ;;  %v1820_v20 = vld [vmem:[%s2915_s0 + $0x58] sm:$0xff]  }
   0x7   :  { %v270_v22 = vadd.f32 %v2001_v8, %v199_v14  ;;  %v271_v23 = vadd.f32 %v2001_v8, %v200_v15  ;;  %v275_v29 = vadd.f32 %v2001_v8, %v204_v21  ;;  %v276_v33 = vadd.f32 %v2001_v8, %v205_v24 }
   0x8   :  { %v277_v34 = vadd.f32 %v2001_v8, %v206_v25  ;;  %v336_v36 = vmax.f32 %v272_v26, 0.0  ;;  %v337_v37 = vmax.f32 %v273_v27, 0.0  ;;  %v338_v38 = vmax.f32 %v274_v28, 0.0 }
   0x9   :  { %v334_v31 = vmax.f32 %v270_v22, 0.0  ;;  %v335_v32 = vmax.f32 %v271_v23, 0.0  ;;  %v339_v39 = vmax.f32 %v275_v29, 0.0  ;;  %v1700_v42 = vunpack.c.l.bf16 %v1813_v30 }
   0xa   :  { %v399_v43 = vpack.c.bf16 %v337_v37, %v336_v36  ;;  %v1701_v45 = vunpack.c.h.bf16 %v1813_v30  ;;  %v1704_v46 = vunpack.c.l.bf16 %v1814_v35  ;;  %v340_v47 = vmax.f32 %v276_v33, 0.0 }
   0xb   :  { %v398_v41 = vpack.c.bf16 %v335_v32, %v334_v31  ;;  %v400_v44 = vpack.c.bf16 %v339_v39, %v338_v38  ;;  %v207_v48 = vmul.f32 %v1700_v42, %v1990_v2  ;;  %v1705_v49 = vunpack.c.h.bf16 %v1814_v35  ;;  %v1821_v31 = vld [vmem:[%s2915_s0 + $0x60] sm:$0xff]  }
   0xc   :  { %v1708_v50 = vunpack.c.l.bf16 %v1815_v40  ;;  %v341_v52 = vmax.f32 %v277_v34, 0.0  ;;  %v208_v53 = vmul.f32 %v1701_v45, %v1990_v2  ;;  %v209_v54 = vmul.f32 %v1704_v46, %v1990_v2 }
   0xd   :  { %1876 = vmatprep.mubr.msk.bf16.mxu0 %vm431_vm1, %v398_v41  ;;  %v1709_v55 = vunpack.c.h.bf16 %v1815_v40  ;;  %v278_v56 = vadd.f32 %v2001_v8, %v207_v48  ;;  %v210_v57 = vmul.f32 %v1705_v49, %v1990_v2  ;;  %v1712_v61 = vunpack.c.l.bf16 %v1816_v51 }
   0xe   :  { %1877 = vmatmul.mubr.msk.bf16.vlgmr.msra.gmra.mxu0 %vm431_vm1, %v399_v43  ;;  %v211_v58 = vmul.f32 %v1708_v50, %v1990_v2  ;;  %v279_v59 = vadd.f32 %v2001_v8, %v208_v53  ;;  %v1713_v62 = vunpack.c.h.bf16 %v1816_v51  ;;  %v280_v1 = vadd.f32 %v2001_v8, %v209_v54 }
   0xf   :  { %1880 = vmatprep.mubr.msk.bf16.mxu0 %vm431_vm1, %v400_v44  ;;  %v212_v60 = vmul.f32 %v1709_v55, %v1990_v2  ;;  %v342_v0 = vmax.f32 %v278_v56, 0.0  ;;  %v281_v3 = vadd.f32 %v2001_v8, %v210_v57  ;;  %v401_v5 = vpack.c.bf16 %v341_v52, %v340_v47  ;;  %v1822_v44 = vld [vmem:[%s2915_s0 + $0x68] sm:$0xff]   ;;  %v1823_v56 = vld [vmem:[%s2915_s0 + $0x70] sm:$0xff]  }
  0x10   :  { %v282_v4 = vadd.f32 %v2001_v8, %v211_v58  ;;  %v343_v6 = vmax.f32 %v279_v59, 0.0  ;;  %v1716_v10 = vunpack.c.l.bf16 %v1817_v63  ;;  %v213_v13 = vmul.f32 %v1712_v61, %v1990_v2 }
  0x11   :  { %v283_v7 = vadd.f32 %v2001_v8, %v212_v60  ;;  %v214_v14 = vmul.f32 %v1713_v62, %v1990_v2  ;;  %v1717_v15 = vunpack.c.h.bf16 %v1817_v63  ;;  %v344_v16 = vmax.f32 %v280_v1, 0.0  ;;  %v2100_v1 = vld [vmem:[%s2915_s0 + $0x78] sm:$0xff]  }
  0x12   :  { %v402_v12 = vpack.c.bf16 %v343_v6, %v342_v0  ;;  %v345_v17 = vmax.f32 %v281_v3, 0.0  ;;  %v346_v18 = vmax.f32 %v282_v4, 0.0  ;;  %v1720_v19 = vunpack.c.l.bf16 %v1818_v9  ;;  %v1825_v3 = vld [vmem:[%s2915_s0 + $0x80] sm:$0xff]  }
  0x13   :  { %v347_v21 = vmax.f32 %v283_v7, 0.0  ;;  %v215_v22 = vmul.f32 %v1716_v10, %v1990_v2  ;;  %v1721_v23 = vunpack.c.h.bf16 %v1818_v9  ;;  %v1724_v24 = vunpack.c.l.bf16 %v1819_v11 }
  0x14   :  { %v216_v25 = vmul.f32 %v1717_v15, %v1990_v2  ;;  %v217_v26 = vmul.f32 %v1720_v19, %v1990_v2  ;;  %v1725_v27 = vunpack.c.h.bf16 %v1819_v11  ;;  %v1728_v30 = vunpack.c.l.bf16 %v1820_v20  ;;  %v1826_v19 = vld [vmem:[%s2915_s0 + $0x88] sm:$0xff]  }
  0x15   :  { %v218_v28 = vmul.f32 %v1721_v23, %v1990_v2  ;;  %v219_v29 = vmul.f32 %v1724_v24, %v1990_v2  ;;  %v284_v32 = vadd.f32 %v2001_v8, %v213_v13  ;;  %v285_v33 = vadd.f32 %v2001_v8, %v214_v14  ;;  %v1827_v24 = vld [vmem:[%s2915_s0 + $0x90] sm:$0xff]  }
  0x16   :  { %1881 = vmatmul.mubr.msk.bf16.gmra.mxu0 %vm431_vm1, %v401_v5  ;;  %v220_v34 = vmul.f32 %v1725_v27, %v1990_v2  ;;  %v1729_v35 = vunpack.c.h.bf16 %v1820_v20  ;;  %v403_v36 = vpack.c.bf16 %v345_v17, %v344_v16  ;;  %v404_v37 = vpack.c.bf16 %v347_v21, %v346_v18 }
  0x17   :  { %1884 = vmatprep.mubr.msk.bf16.mxu0 %vm431_vm1, %v402_v12  ;;  %v286_v38 = vadd.f32 %v2001_v8, %v215_v22  ;;  %v221_v39 = vmul.f32 %v1728_v30, %v1990_v2  ;;  %v287_v40 = vadd.f32 %v2001_v8, %v216_v25  ;;  %v288_v41 = vadd.f32 %v2001_v8, %v217_v26 }
  0x18   :  { %v222_v42 = vmul.f32 %v1729_v35, %v1990_v2  ;;  %v1732_v43 = vunpack.c.l.bf16 %v1821_v31  ;;  %v289_v45 = vadd.f32 %v2001_v8, %v218_v28  ;;  %v290_v46 = vadd.f32 %v2001_v8, %v219_v29 }
  0x19   :  { %v291_v47 = vadd.f32 %v2001_v8, %v220_v34  ;;  %v292_v48 = vadd.f32 %v2001_v8, %v221_v39  ;;  %v1733_v50 = vunpack.c.h.bf16 %v1821_v31  ;;  %v348_v52 = vmax.f32 %v284_v32, 0.0 }
  0x1a   :  { %v293_v49 = vadd.f32 %v2001_v8, %v222_v42  ;;  %v223_v51 = vmul.f32 %v1732_v43, %v1990_v2  ;;  %v349_v53 = vmax.f32 %v285_v33, 0.0  ;;  %v1736_v54 = vunpack.c.l.bf16 %v1822_v44  ;;  %v1828_v33 = vld [vmem:[%s2915_s0 + $0x98] sm:$0xff]  }
  0x1b   :  { %v1737_v55 = vunpack.c.h.bf16 %v1822_v44  ;;  %v350_v57 = vmax.f32 %v286_v38, 0.0  ;;  %v351_v58 = vmax.f32 %v287_v40, 0.0  ;;  %v352_v59 = vmax.f32 %v288_v41, 0.0 }
  0x1c   :  { %v224_v60 = vmul.f32 %v1733_v50, %v1990_v2  ;;  %v353_v61 = vmax.f32 %v289_v45, 0.0  ;;  %v354_v62 = vmax.f32 %v290_v46, 0.0  ;;  %v355_v63 = vmax.f32 %v291_v47, 0.0  ;;  %v1829_v46 = vld [vmem:[%s2915_s0 + $0xa0] sm:$0xff]  }
  0x1d   :  { %v225_v0 = vmul.f32 %v1736_v54, %v1990_v2  ;;  %v356_v4 = vmax.f32 %v292_v48, 0.0  ;;  %v357_v5 = vmax.f32 %v293_v49, 0.0  ;;  %v2106_v6 = vadd.f32 %v2001_v8, %v223_v51 }
  0x1e   :  { %1885 = vmatmul.mubr.msk.bf16.gmra.mxu0 %vm431_vm1, %v403_v36  ;;  %v1740_v7 = vunpack.c.l.bf16 %v1823_v56  ;;  %v405_v9 = vpack.c.bf16 %v349_v53, %v348_v52  ;;  %v2109_v10 = vadd.f32 %v2001_v8, %v224_v60  ;;  %v226_v11 = vmul.f32 %v1737_v55, %v1990_v2  ;;  %v1830_v55 = vld [vmem:[%s2915_s0 + $0xa8] sm:$0xff]  }
  0x1f   :  { %1888 = vmatprep.mubr.msk.bf16.mxu0 %vm431_vm1, %v404_v37  ;;  %v1741_v12 = vunpack.c.h.bf16 %v1823_v56  ;;  %v406_v13 = vpack.c.bf16 %v351_v58, %v350_v57  ;;  %v1744_v14 = vunpack.c.l.bf16 %v2100_v1  ;;  %v1748_v15 = vunpack.c.l.bf16 %v1825_v3 }
  0x20   :  { %v407_v16 = vpack.c.bf16 %v353_v61, %v352_v59  ;;  %v408_v17 = vpack.c.bf16 %v355_v63, %v354_v62  ;;  %v2114_v18 = vadd.f32 %v2001_v8, %v225_v0  ;;  %v2119_v20 = vpack.c.bf16 %v357_v5, %v356_v4 }
  0x21   :  { %v358_v21 = vmax.f32 %v2106_v6, 0.0  ;;  %v227_v22 = vmul.f32 %v1740_v7, %v1990_v2  ;;  %v1749_v23 = vunpack.c.h.bf16 %v1825_v3  ;;  %v359_v25 = vmax.f32 %v2109_v10, 0.0  ;;  %v1831_v7 = vld [vmem:[%s2915_s0 + $0xb0] sm:$0xff]   ;;  %v1833_v6 = vld [vmem:[%s2915_s0 + $0xc0] sm:$0xff]  }
  0x22   :  { %v2129_v26 = vadd.f32 %v2001_v8, %v226_v11  ;;  %v228_v27 = vmul.f32 %v1741_v12, %v1990_v2  ;;  %v231_v28 = vmul.f32 %v1748_v15, %v1990_v2  ;;  %v1745_v29 = vunpack.c.h.bf16 %v2100_v1 }
  0x23   :  { %v2136_v30 = vmul.f32 %v1744_v14, %v1990_v2  ;;  %v232_v31 = vmul.f32 %v1749_v23, %v1990_v2  ;;  %v1752_v32 = vunpack.c.l.bf16 %v1826_v19  ;;  %v360_v34 = vmax.f32 %v2114_v18, 0.0  ;;  %v1835_v18 = vld [vmem:[%s2915_s0 + $0xd0] sm:$0xff]  }
  0x24   :  { %v302_v35 = vadd.f32 %v2001_v8, %v231_v28  ;;  %v1753_v36 = vunpack.c.h.bf16 %v1826_v19  ;;  %v1756_v37 = vunpack.c.l.bf16 %v1827_v24  ;;  %v2145_v38 = vadd.f32 %v2001_v8, %v227_v22 }
  0x25   :  { %v303_v39 = vadd.f32 %v2001_v8, %v232_v31  ;;  %v233_v40 = vmul.f32 %v1752_v32, %v1990_v2  ;;  %v1757_v41 = vunpack.c.h.bf16 %v1827_v24  ;;  %v1760_v45 = vunpack.c.l.bf16 %v1828_v33  ;;  %v1832_v24 = vld [vmem:[%s2915_s0 + $0xb8] sm:$0xff]  }
  0x26   :  { %1889 = vmatmul.mubr.msk.bf16.gmra.mxu0 %vm431_vm1, %v405_v9  ;;  %v366_v42 = vmax.f32 %v302_v35, 0.0  ;;  %v234_v43 = vmul.f32 %v1753_v36, %v1990_v2  ;;  %v235_v44 = vmul.f32 %v1756_v37, %v1990_v2  ;;  %v2155_v47 = vadd.f32 %v2001_v8, %v228_v27 }
  0x27   :  { %1892 = vmatprep.mubr.msk.bf16.mxu0 %vm431_vm1, %v406_v13  ;;  %v367_v48 = vmax.f32 %v303_v39, 0.0  ;;  %v304_v49 = vadd.f32 %v2001_v8, %v233_v40  ;;  %v236_v50 = vmul.f32 %v1757_v41, %v1990_v2  ;;  %v1761_v53 = vunpack.c.h.bf16 %v1828_v33 }
  0x28   :  { %v305_v51 = vadd.f32 %v2001_v8, %v234_v43  ;;  %v306_v52 = vadd.f32 %v2001_v8, %v235_v44  ;;  %v237_v54 = vmul.f32 %v1760_v45, %v1990_v2  ;;  %v1764_v59 = vunpack.c.l.bf16 %v1829_v46 }
  0x29   :  { %v414_v56 = vpack.c.bf16 %v367_v48, %v366_v42  ;;  %v368_v57 = vmax.f32 %v304_v49, 0.0  ;;  %v307_v58 = vadd.f32 %v2001_v8, %v236_v50  ;;  %v238_v62 = vmul.f32 %v1761_v53, %v1990_v2 }
  0x2a   :  { %v369_v60 = vmax.f32 %v305_v51, 0.0  ;;  %v370_v61 = vmax.f32 %v306_v52, 0.0  ;;  %v308_v63 = vadd.f32 %v2001_v8, %v237_v54  ;;  %v1765_v3 = vunpack.c.h.bf16 %v1829_v46  ;;  %v1834_v52 = vld [vmem:[%s2915_s0 + $0xc8] sm:$0xff]  }
  0x2b   :  { %1908 = vmatprep.mubr.msk.bf16.mxu1 %vm431_vm1, %v414_v56  ;;  %v371_v0 = vmax.f32 %v307_v58, 0.0  ;;  %v239_v4 = vmul.f32 %v1764_v59, %v1990_v2  ;;  %v1768_v5 = vunpack.c.l.bf16 %v1830_v55  ;;  %v309_v10 = vadd.f32 %v2001_v8, %v238_v62 }
  0x2c   :  { %v415_v9 = vpack.c.bf16 %v369_v60, %v368_v57  ;;  %v372_v11 = vmax.f32 %v308_v63, 0.0  ;;  %v1769_v12 = vunpack.c.h.bf16 %v1830_v55  ;;  %v240_v14 = vmul.f32 %v1765_v3, %v1990_v2 }
  0x2d   :  { %v416_v13 = vpack.c.bf16 %v371_v0, %v370_v61  ;;  %v310_v15 = vadd.f32 %v2001_v8, %v239_v4  ;;  %v1772_v22 = vunpack.c.l.bf16 %v1831_v7  ;;  %v1773_v23 = vunpack.c.h.bf16 %v1831_v7 }
  0x2e   :  { %1893 = vmatmul.mubr.msk.bf16.gmra.mxu0 %vm431_vm1, %v407_v16  ;;  %v241_v16 = vmul.f32 %v1768_v5, %v1990_v2  ;;  %1909 = vmatmul.mubr.msk.bf16.vlgmr.msra.gmra.mxu1 %vm431_vm1, %v415_v9  ;;  %v242_v19 = vmul.f32 %v1769_v12, %v1990_v2  ;;  %v410_v27 = vpack.c.bf16 %v359_v25, %v358_v21  ;;  %v361_v28 = vmax.f32 %v2129_v26, 0.0 }
  0x2f   :  { %1896 = vmatprep.mubr.msk.bf16.mxu0 %vm431_vm1, %v408_v17  ;;  %v373_v17 = vmax.f32 %v309_v10, 0.0  ;;  %1912 = vmatprep.mubr.msk.bf16.mxu1 %vm431_vm1, %v416_v13  ;;  %v311_v31 = vadd.f32 %v2001_v8, %v240_v14  ;;  %v374_v32 = vmax.f32 %v310_v15, 0.0  ;;  %v362_v33 = vmax.f32 %v2145_v38, 0.0  ;;  %v1836_v14 = vld [vmem:[%s2915_s0 + $0xd8] sm:$0xff]  }
  0x30   :  { %v230_v35 = vmul.f32 %v1745_v29, %v1990_v2  ;;  %v243_v36 = vmul.f32 %v1772_v22, %v1990_v2  ;;  %v244_v37 = vmul.f32 %v1773_v23, %v1990_v2  ;;  %v363_v21 = vmax.f32 %v2155_v47, 0.0 }
  0x31   :  { %v375_v25 = vmax.f32 %v311_v31, 0.0  ;;  %v1776_v26 = vunpack.c.l.bf16 %v1832_v24  ;;  %v1777_v39 = vunpack.c.h.bf16 %v1832_v24  ;;  %v417_v38 = vpack.c.bf16 %v373_v17, %v372_v11  ;;  %v1837_v17 = vld [vmem:[%s2915_s0 + $0xe0] sm:$0xff]  }
  0x32   :  { %v312_v1 = vadd.f32 %v2001_v8, %v241_v16  ;;  %v313_v29 = vadd.f32 %v2001_v8, %v242_v19  ;;  %v314_v40 = vadd.f32 %v2001_v8, %v243_v36  ;;  %v315_v42 = vadd.f32 %v2001_v8, %v244_v37 }
  0x33   :  { %v418_v41 = vpack.c.bf16 %v375_v25, %v374_v32  ;;  %v1780_v43 = vunpack.c.l.bf16 %v1833_v6  ;;  %v1781_v44 = vunpack.c.h.bf16 %v1833_v6  ;;  %v300_v45 = vadd.f32 %v2001_v8, %v2136_v30 }
  0x34   :  { %v301_v46 = vadd.f32 %v2001_v8, %v230_v35  ;;  %v246_v47 = vmul.f32 %v1777_v39, %v1990_v2  ;;  %v411_v48 = vpack.c.bf16 %v361_v28, %v360_v34  ;;  %v412_v49 = vpack.c.bf16 %v363_v21, %v362_v33  ;;  %v1838_v39 = vld [vmem:[%s2915_s0 + $0xe8] sm:$0xff]  }
  0x35   :  { %v376_v50 = vmax.f32 %v312_v1, 0.0  ;;  %v377_v51 = vmax.f32 %v313_v29, 0.0  ;;  %v378_v30 = vmax.f32 %v314_v40, 0.0  ;;  %v379_v53 = vmax.f32 %v315_v42, 0.0  ;;  %v1839_v29 = vld [vmem:[%s2915_s0 + $0xf0] sm:$0xff]  }
  0x36   :  { %1897 = vmatmul.mubr.msk.bf16.gmra.mxu0 %vm431_vm1, %v2119_v20  ;;  %v245_v20 = vmul.f32 %v1776_v26, %v1990_v2  ;;  %1913 = vmatmul.mubr.msk.bf16.gmra.mxu1 %vm431_vm1, %v417_v38  ;;  %v247_v54 = vmul.f32 %v1780_v43, %v1990_v2  ;;  %v248_v55 = vmul.f32 %v1781_v44, %v1990_v2  ;;  %v364_v34 = vmax.f32 %v300_v45, 0.0 }
  0x37   :  { %1900 = vmatprep.mubr.msk.bf16.mxu0 %vm431_vm1, %v410_v27  ;;  %1916 = vmatprep.mubr.msk.bf16.mxu1 %vm431_vm1, %v418_v41  ;;  %v365_v56 = vmax.f32 %v301_v46, 0.0  ;;  %v317_v58 = vadd.f32 %v2001_v8, %v246_v47  ;;  %v1784_v59 = vunpack.c.l.bf16 %v1834_v52  ;;  %v419_v60 = vpack.c.bf16 %v377_v51, %v376_v50 }
  0x38   :  { %v316_v57 = vadd.f32 %v2001_v8, %v245_v20  ;;  %v1785_v61 = vunpack.c.h.bf16 %v1834_v52  ;;  %v1788_v62 = vunpack.c.l.bf16 %v1835_v18  ;;  %v1789_v63 = vunpack.c.h.bf16 %v1835_v18  ;;  %v1840_v18 = vld [vmem:[%s2915_s0 + $0xf8] sm:$0xff]  }
  0x39   :  { %v420_v0 = vpack.c.bf16 %v379_v53, %v378_v30  ;;  %v318_v3 = vadd.f32 %v2001_v8, %v247_v54  ;;  %v319_v4 = vadd.f32 %v2001_v8, %v248_v55  ;;  %v381_v7 = vmax.f32 %v317_v58, 0.0 }
  0x3a   :  { %v380_v5 = vmax.f32 %v316_v57, 0.0  ;;  %v249_v9 = vmul.f32 %v1784_v59, %v1990_v2  ;;  %v413_v10 = vpack.c.bf16 %v365_v56, %v364_v34  ;;  %v250_v11 = vmul.f32 %v1785_v61, %v1990_v2 }
  0x3b   :  { %v251_v12 = vmul.f32 %v1788_v62, %v1990_v2  ;;  %v252_v13 = vmul.f32 %v1789_v63, %v1990_v2  ;;  %v382_v15 = vmax.f32 %v318_v3, 0.0  ;;  %v383_v16 = vmax.f32 %v319_v4, 0.0 }
  0x3c   :  { %v421_v19 = vpack.c.bf16 %v381_v7, %v380_v5  ;;  %v320_v22 = vadd.f32 %v2001_v8, %v249_v9  ;;  %v1792_v23 = vunpack.c.l.bf16 %v1836_v14  ;;  %v321_v24 = vadd.f32 %v2001_v8, %v250_v11 }
  0x3d   :  { %v322_v27 = vadd.f32 %v2001_v8, %v251_v12  ;;  %v323_v28 = vadd.f32 %v2001_v8, %v252_v13  ;;  %v1793_v31 = vunpack.c.h.bf16 %v1836_v14  ;;  %v422_v32 = vpack.c.bf16 %v383_v16, %v382_v15 }
  0x3e   :  { %1901 = vmatmul.mubr.msk.bf16.gmra.mxu0 %vm431_vm1, %v411_v48  ;;  %1917 = vmatmul.mubr.msk.bf16.gmra.mxu1 %vm431_vm1, %v419_v60  ;;  %v1796_v33 = vunpack.c.l.bf16 %v1837_v17  ;;  %v1797_v35 = vunpack.c.h.bf16 %v1837_v17  ;;  %v384_v36 = vmax.f32 %v320_v22, 0.0  ;;  %v253_v37 = vmul.f32 %v1792_v23, %v1990_v2 }
  0x3f   :  { %1904 = vmatprep.mubr.msk.bf16.mxu0 %vm431_vm1, %v412_v49  ;;  %1920 = vmatprep.mubr.msk.bf16.mxu1 %vm431_vm1, %v420_v0  ;;  %v385_v6 = vmax.f32 %v321_v24, 0.0  ;;  %v386_v21 = vmax.f32 %v322_v27, 0.0  ;;  %v387_v25 = vmax.f32 %v323_v28, 0.0  ;;  %v254_v26 = vmul.f32 %v1793_v31, %v1990_v2 }
  0x40   :  { %v255_v38 = vmul.f32 %v1796_v33, %v1990_v2  ;;  %v256_v1 = vmul.f32 %v1797_v35, %v1990_v2  ;;  %v324_v40 = vadd.f32 %v2001_v8, %v253_v37  ;;  %v1800_v41 = vunpack.c.l.bf16 %v1838_v39 }
  0x41   :  { %v423_v42 = vpack.c.bf16 %v385_v6, %v384_v36  ;;  %v424_v43 = vpack.c.bf16 %v387_v25, %v386_v21  ;;  %v325_v44 = vadd.f32 %v2001_v8, %v254_v26  ;;  %v1801_v45 = vunpack.c.h.bf16 %v1838_v39 }
  0x42   :  { %v326_v46 = vadd.f32 %v2001_v8, %v255_v38  ;;  %v327_v20 = vadd.f32 %v2001_v8, %v256_v1  ;;  %v1804_v47 = vunpack.c.l.bf16 %v1839_v29  ;;  %v1805_v48 = vunpack.c.h.bf16 %v1839_v29 }
  0x43   :  { %v257_v49 = vmul.f32 %v1800_v41, %v1990_v2  ;;  %v388_v50 = vmax.f32 %v324_v40, 0.0  ;;  %v389_v51 = vmax.f32 %v325_v44, 0.0  ;;  %v258_v52 = vmul.f32 %v1801_v45, %v1990_v2 }
  0x44   :  { %v390_v30 = vmax.f32 %v326_v46, 0.0  ;;  %v391_v53 = vmax.f32 %v327_v20, 0.0  ;;  %v259_v54 = vmul.f32 %v1804_v47, %v1990_v2  ;;  %v260_v55 = vmul.f32 %v1805_v48, %v1990_v2 }
  0x45   :  { %v328_v34 = vadd.f32 %v2001_v8, %v257_v49  ;;  %v425_v56 = vpack.c.bf16 %v389_v51, %v388_v50  ;;  %v329_v57 = vadd.f32 %v2001_v8, %v258_v52  ;;  %v1808_v58 = vunpack.c.l.bf16 %v1840_v18 }
  0x46   :  { %1905 = vmatmul.mubr.msk.bf16.gmra.mxu0 %vm431_vm1, %v413_v10  ;;  %1921 = vmatmul.mubr.msk.bf16.gmra.mxu1 %vm431_vm1, %v421_v19  ;;  %v1809_v59 = vunpack.c.h.bf16 %v1840_v18  ;;  %v426_v60 = vpack.c.bf16 %v391_v53, %v390_v30  ;;  %v330_v61 = vadd.f32 %v2001_v8, %v259_v54  ;;  %v331_v62 = vadd.f32 %v2001_v8, %v260_v55 }
  0x47   :  { %1924 = vmatprep.mubr.msk.bf16.mxu1 %vm431_vm1, %v422_v32  ;;  %v392_v63 = vmax.f32 %v328_v34, 0.0  ;;  %v393_v0 = vmax.f32 %v329_v57, 0.0  ;;  %v261_v3 = vmul.f32 %v1808_v58, %v1990_v2  ;;  %v1945_v17 = vmov 0.0  }
  0x48   :  { %v262_v4 = vmul.f32 %v1809_v59, %v1990_v2  ;;  %v394_v5 = vmax.f32 %v330_v61, 0.0  ;;  %v395_v7 = vmax.f32 %v331_v62, 0.0  ;;  %62 = vst.msk [vmem:[%s2919_s5] sm:$0x1] %vm61_vm3, %v1945_v17  ;;  %63 = vst.msk [vmem:[%s2920_s6] sm:$0x1] %vm61_vm3, %v1945_v17 }
  0x49   :  { %v427_v9 = vpack.c.bf16 %v393_v0, %v392_v63  ;;  %v332_v10 = vadd.f32 %v2001_v8, %v261_v3 }
  0x4a   :  { %v333_v11 = vadd.f32 %v2001_v8, %v262_v4  ;;  %v428_v12 = vpack.c.bf16 %v395_v7, %v394_v5 }
  0x4b   :  { %v396_v13 = vmax.f32 %v332_v10, 0.0 }
  0x4c   :  { %v397_v14 = vmax.f32 %v333_v11, 0.0 }
  0x4e   :  { %1925 = vmatmul.mubr.msk.bf16.gmra.mxu1 %vm431_vm1, %v423_v42  ;;  %v429_v15 = vpack.c.bf16 %v397_v14, %v396_v13 }
  0x4f   :  { %1928 = vmatprep.mubr.msk.bf16.mxu1 %vm431_vm1, %v424_v43 }
  0x56   :  { %1929 = vmatmul.mubr.msk.bf16.gmra.mxu1 %vm431_vm1, %v425_v56 }
  0x57   :  { %1932 = vmatprep.mubr.msk.bf16.mxu1 %vm431_vm1, %v426_v60 }
  0x5e   :  { %1933 = vmatmul.mubr.msk.bf16.gmra.mxu1 %vm431_vm1, %v427_v9 }
  0x5f   :  { %1936 = vmatprep.mubr.msk.bf16.mxu1 %vm431_vm1, %v428_v12 }
  0x66   :  { %1937 = vmatmul.mubr.msk.bf16.gmra.mxu1 %vm431_vm1, %v429_v15 }
  0xce   :  { %v1878_v2 = vpop.f32.mrf.mxu0 }
  0xcf   :  { %v1620_v16 = vpack.c.bf16 %v1878_v2, %v1878_v2  ;;  %v1283_v27 = vmul.f32 %v1878_v2, %v1878_v2  ;;  %v1147_v36 = vsel %vm1143_vm4, %v1878_v2, 0.0 }
  0xd0   :  { %v566_v8 = vpop.f32.mrf.mxu0 }
  0xd1   :  { %1080 = vst.msk [vmem:[%s2918_s4 + $0x8] sm:$0xf] %vm1077_vm2, %v1620_v16  ;;  %v1618_v19 = vpack.c.bf16 %v566_v8, %v566_v8  ;;  %v1281_v23 = vmul.f32 %v566_v8, %v566_v8  ;;  %v1144_v31 = vsel %vm1143_vm4, %v566_v8, 0.0  ;;  %v1348_v40 = vsel %vm1143_vm4, %v1283_v27, 0.0 }
  0xd2   :  { %v1879_v22 = vpop.f32.mrf.mxu0 }
  0xd3   :  { %1078 = vst.msk [vmem:[%s2918_s4] sm:$0xf] %vm1077_vm2, %v1618_v19  ;;  %v1621_v24 = vpack.c.bf16 %v1879_v22, %v1879_v22  ;;  %v1345_v21 = vsel %vm1143_vm4, %v1281_v23, 0.0  ;;  %v1284_v25 = vmul.f32 %v1879_v22, %v1879_v22  ;;  %v1149_v41 = vsel %vm1143_vm4, %v1879_v22, 0.0 }
  0xd4   :  { %v569_v28 = vpop.f32.mrf.mxu0 }
  0xd5   :  { %1081 = vst.msk [vmem:[%s2918_s4 + $0xc] sm:$0xf] %vm1077_vm2, %v1621_v24  ;;  %v1619_v32 = vpack.c.bf16 %v569_v28, %v569_v28  ;;  %v1145_v33 = vsel %vm1143_vm4, %v569_v28, 0.0  ;;  %v1282_v35 = vmul.f32 %v569_v28, %v569_v28  ;;  %v1350_v20 = vsel %vm1143_vm4, %v1284_v25, 0.0 }
  0xd6   :  { %v1146_v37 = vadd.f32 %v1145_v33, %v1144_v31  ;;  %v1882_v6 = vpop.f32.mrf.mxu0 }
  0xd7   :  { %1079 = vst.msk [vmem:[%s2918_s4 + $0x4] sm:$0xf] %vm1077_vm2, %v1619_v32  ;;  %v1346_v26 = vsel %vm1143_vm4, %v1282_v35, 0.0  ;;  %v1624_v39 = vpack.c.bf16 %v1882_v6, %v1882_v6  ;;  %v1287_v49 = vmul.f32 %v1882_v6, %v1882_v6  ;;  %v1155_v57 = vsel %vm1143_vm4, %v1882_v6, 0.0 }
  0xd8   :  { %v1148_v38 = vadd.f32 %v1147_v36, %v1146_v37  ;;  %v1347_v1 = vadd.f32 %v1346_v26, %v1345_v21  ;;  %v582_v29 = vpop.f32.mrf.mxu0 }
  0xd9   :  { %1084 = vst.msk [vmem:[%s2918_s4 + $0x18] sm:$0xf] %vm1077_vm2, %v1624_v39  ;;  %v1622_v42 = vpack.c.bf16 %v582_v29, %v582_v29  ;;  %v1285_v43 = vmul.f32 %v582_v29, %v582_v29  ;;  %v1151_v47 = vsel %vm1143_vm4, %v582_v29, 0.0  ;;  %v1356_v0 = vsel %vm1143_vm4, %v1287_v49, 0.0 }
  0xda   :  { %v1349_v44 = vadd.f32 %v1348_v40, %v1347_v1  ;;  %v1150_v45 = vadd.f32 %v1149_v41, %v1148_v38  ;;  %v1883_v46 = vpop.f32.mrf.mxu0 }
  0xdb   :  { %1082 = vst.msk [vmem:[%s2918_s4 + $0x10] sm:$0xf] %vm1077_vm2, %v1622_v42  ;;  %v1625_v48 = vpack.c.bf16 %v1883_v46, %v1883_v46  ;;  %v1352_v30 = vsel %vm1143_vm4, %v1285_v43, 0.0  ;;  %v1288_v58 = vmul.f32 %v1883_v46, %v1883_v46  ;;  %v1157_v3 = vsel %vm1143_vm4, %v1883_v46, 0.0 }
  0xdc   :  { %v1152_v50 = vadd.f32 %v1151_v47, %v1150_v45  ;;  %v1351_v51 = vadd.f32 %v1350_v20, %v1349_v44  ;;  %v585_v52 = vpop.f32.mrf.mxu0 }
  0xdd   :  { %1085 = vst.msk [vmem:[%s2918_s4 + $0x1c] sm:$0xf] %vm1077_vm2, %v1625_v48  ;;  %v1623_v53 = vpack.c.bf16 %v585_v52, %v585_v52  ;;  %v1153_v54 = vsel %vm1143_vm4, %v585_v52, 0.0  ;;  %v1286_v55 = vmul.f32 %v585_v52, %v585_v52  ;;  %v1358_v11 = vsel %vm1143_vm4, %v1288_v58, 0.0 }
  0xde   :  { %v1353_v18 = vadd.f32 %v1352_v30, %v1351_v51  ;;  %v1154_v34 = vadd.f32 %v1153_v54, %v1152_v50  ;;  %v1886_v56 = vpop.f32.mrf.mxu0 }
  0xdf   :  { %1083 = vst.msk [vmem:[%s2918_s4 + $0x14] sm:$0xf] %vm1077_vm2, %v1623_v53  ;;  %v1354_v59 = vsel %vm1143_vm4, %v1286_v55, 0.0  ;;  %v1628_v60 = vpack.c.bf16 %v1886_v56, %v1886_v56  ;;  %v1291_v14 = vmul.f32 %v1886_v56, %v1886_v56  ;;  %v1163_v28 = vsel %vm1143_vm4, %v1886_v56, 0.0 }
  0xe0   :  { %v1156_v61 = vadd.f32 %v1155_v57, %v1154_v34  ;;  %v1355_v62 = vadd.f32 %v1354_v59, %v1353_v18  ;;  %v598_v63 = vpop.f32.mrf.mxu0 }
  0xe1   :  { %1088 = vst.msk [vmem:[%s2918_s4 + $0x28] sm:$0xf] %vm1077_vm2, %v1628_v60  ;;  %v1626_v4 = vpack.c.bf16 %v598_v63, %v598_v63  ;;  %v1289_v5 = vmul.f32 %v598_v63, %v598_v63  ;;  %v1159_v12 = vsel %vm1143_vm4, %v598_v63, 0.0  ;;  %v1364_v6 = vsel %vm1143_vm4, %v1291_v14, 0.0 }
  0xe2   :  { %v1357_v7 = vadd.f32 %v1356_v0, %v1355_v62  ;;  %v1158_v9 = vadd.f32 %v1157_v3, %v1156_v61  ;;  %v1887_v10 = vpop.f32.mrf.mxu0 }
  0xe3   :  { %1086 = vst.msk [vmem:[%s2918_s4 + $0x20] sm:$0xf] %vm1077_vm2, %v1626_v4  ;;  %v1629_v13 = vpack.c.bf16 %v1887_v10, %v1887_v10  ;;  %v1360_v17 = vsel %vm1143_vm4, %v1289_v5, 0.0  ;;  %v1292_v31 = vmul.f32 %v1887_v10, %v1887_v10  ;;  %v1165_v21 = vsel %vm1143_vm4, %v1887_v10, 0.0 }
  0xe4   :  { %v1160_v15 = vadd.f32 %v1159_v12, %v1158_v9  ;;  %v1359_v2 = vadd.f32 %v1358_v11, %v1357_v7  ;;  %v601_v16 = vpop.f32.mrf.mxu0 }
  0xe5   :  { %1089 = vst.msk [vmem:[%s2918_s4 + $0x2c] sm:$0xf] %vm1077_vm2, %v1629_v13  ;;  %v1627_v8 = vpack.c.bf16 %v601_v16, %v601_v16  ;;  %v1161_v19 = vsel %vm1143_vm4, %v601_v16, 0.0  ;;  %v1290_v22 = vmul.f32 %v601_v16, %v601_v16  ;;  %v1366_v29 = vsel %vm1143_vm4, %v1292_v31, 0.0 }
  0xe6   :  { %v1361_v23 = vadd.f32 %v1360_v17, %v1359_v2  ;;  %v1162_v24 = vadd.f32 %v1161_v19, %v1160_v15  ;;  %v1890_v27 = vpop.f32.mrf.mxu0 }
  0xe7   :  { %1087 = vst.msk [vmem:[%s2918_s4 + $0x24] sm:$0xf] %vm1077_vm2, %v1627_v8  ;;  %v1362_v32 = vsel %vm1143_vm4, %v1290_v22, 0.0  ;;  %v1632_v33 = vpack.c.bf16 %v1890_v27, %v1890_v27  ;;  %v1295_v42 = vmul.f32 %v1890_v27, %v1890_v27  ;;  %v1171_v52 = vsel %vm1143_vm4, %v1890_v27, 0.0 }
  0xe8   :  { %v1164_v35 = vadd.f32 %v1163_v28, %v1162_v24  ;;  %v1363_v36 = vadd.f32 %v1362_v32, %v1361_v23  ;;  %v614_v37 = vpop.f32.mrf.mxu0 }
  0xe9   :  { %1092 = vst.msk [vmem:[%s2918_s4 + $0x38] sm:$0xf] %vm1077_vm2, %v1632_v33  ;;  %v1630_v25 = vpack.c.bf16 %v614_v37, %v614_v37  ;;  %v1293_v26 = vmul.f32 %v614_v37, %v614_v37  ;;  %v1167_v40 = vsel %vm1143_vm4, %v614_v37, 0.0  ;;  %v1372_v56 = vsel %vm1143_vm4, %v1295_v42, 0.0 }
  0xea   :  { %v1365_v39 = vadd.f32 %v1364_v6, %v1363_v36  ;;  %v1166_v38 = vadd.f32 %v1165_v21, %v1164_v35  ;;  %v1891_v1 = vpop.f32.mrf.mxu0 }
  0xeb   :  { %1090 = vst.msk [vmem:[%s2918_s4 + $0x30] sm:$0xf] %vm1077_vm2, %v1630_v25  ;;  %v1633_v41 = vpack.c.bf16 %v1891_v1, %v1891_v1  ;;  %v1368_v46 = vsel %vm1143_vm4, %v1293_v26, 0.0  ;;  %v1296_v30 = vmul.f32 %v1891_v1, %v1891_v1  ;;  %v1173_v57 = vsel %vm1143_vm4, %v1891_v1, 0.0 }
  0xec   :  { %v1168_v43 = vadd.f32 %v1167_v40, %v1166_v38  ;;  %v1367_v44 = vadd.f32 %v1366_v29, %v1365_v39  ;;  %v617_v45 = vpop.f32.mrf.mxu0 }
  0xed   :  { %1093 = vst.msk [vmem:[%s2918_s4 + $0x3c] sm:$0xf] %vm1077_vm2, %v1633_v41  ;;  %v1631_v20 = vpack.c.bf16 %v617_v45, %v617_v45  ;;  %v1169_v47 = vsel %vm1143_vm4, %v617_v45, 0.0  ;;  %v1294_v48 = vmul.f32 %v617_v45, %v617_v45  ;;  %v1374_v0 = vsel %vm1143_vm4, %v1296_v30, 0.0 }
  0xee   :  { %v1369_v49 = vadd.f32 %v1368_v46, %v1367_v44  ;;  %v1170_v50 = vadd.f32 %v1169_v47, %v1168_v43  ;;  %v1894_v51 = vpop.f32.mrf.mxu0  ;;  %v2391_v63 = vpop.f32.mrf.mxu1 }
  0xef   :  { %1091 = vst.msk [vmem:[%s2918_s4 + $0x34] sm:$0xf] %vm1077_vm2, %v1631_v20  ;;  %v1370_v53 = vsel %vm1143_vm4, %v1294_v48, 0.0  ;;  %v1636_v54 = vpack.c.bf16 %v1894_v51, %v1894_v51  ;;  %v1299_v5 = vmul.f32 %v1894_v51, %v1894_v51  ;;  %v1652_v11 = vpack.c.bf16 %v2391_v63, %v2391_v63 }
  0xf0   :  { %v1172_v55 = vadd.f32 %v1171_v52, %v1170_v50  ;;  %v1371_v18 = vadd.f32 %v1370_v53, %v1369_v49  ;;  %v630_v34 = vpop.f32.mrf.mxu0  ;;  %v2401_v12 = vpop.f32.mrf.mxu1  ;;  %v1179_v23 = vsel %vm1143_vm4, %v1894_v51, 0.0 }
  0xf1   :  { %1096 = vst.msk [vmem:[%s2918_s4 + $0x48] sm:$0xf] %vm1077_vm2, %v1636_v54  ;;  %v1634_v58 = vpack.c.bf16 %v630_v34, %v630_v34  ;;  %v1297_v59 = vmul.f32 %v630_v34, %v630_v34  ;;  %v1175_v3 = vsel %vm1143_vm4, %v630_v34, 0.0  ;;  %1112 = vst.msk [vmem:[%s2918_s4 + $0x88] sm:$0xf] %vm1077_vm2, %v1652_v11  ;;  %v1650_v19 = vpack.c.bf16 %v2401_v12, %v2401_v12 }
  0xf2   :  { %v1373_v60 = vadd.f32 %v1372_v56, %v1371_v18  ;;  %v1174_v61 = vadd.f32 %v1173_v57, %v1172_v55  ;;  %v1895_v62 = vpop.f32.mrf.mxu0  ;;  %v2415_v22 = vpop.f32.mrf.mxu1  ;;  %v1380_v36 = vsel %vm1143_vm4, %v1299_v5, 0.0 }
  0xf3   :  { %1094 = vst.msk [vmem:[%s2918_s4 + $0x40] sm:$0xf] %vm1077_vm2, %v1634_v58  ;;  %v1637_v4 = vpack.c.bf16 %v1895_v62, %v1895_v62  ;;  %v1376_v13 = vsel %vm1143_vm4, %v1297_v59, 0.0  ;;  %v1300_v24 = vmul.f32 %v1895_v62, %v1895_v62  ;;  %1110 = vst.msk [vmem:[%s2918_s4 + $0x80] sm:$0xf] %vm1077_vm2, %v1650_v19  ;;  %v1181_v37 = vsel %vm1143_vm4, %v1895_v62, 0.0 }
  0xf4   :  { %v1176_v7 = vadd.f32 %v1175_v3, %v1174_v61  ;;  %v1375_v9 = vadd.f32 %v1374_v0, %v1373_v60  ;;  %v633_v10 = vpop.f32.mrf.mxu0  ;;  %v2427_v35 = vpop.f32.mrf.mxu1  ;;  %v1653_v38 = vpack.c.bf16 %v2415_v22, %v2415_v22 }
  0xf5   :  { %1097 = vst.msk [vmem:[%s2918_s4 + $0x4c] sm:$0xf] %vm1077_vm2, %v1637_v4  ;;  %v1635_v14 = vpack.c.bf16 %v633_v10, %v633_v10  ;;  %v1177_v15 = vsel %vm1143_vm4, %v633_v10, 0.0  ;;  %v1298_v2 = vmul.f32 %v633_v10, %v633_v10  ;;  %v1382_v29 = vsel %vm1143_vm4, %v1300_v24, 0.0 }
  0xf6   :  { %v1377_v16 = vadd.f32 %v1376_v13, %v1375_v9  ;;  %v1178_v17 = vadd.f32 %v1177_v15, %v1176_v7  ;;  %v1898_v8 = vpop.f32.mrf.mxu0  ;;  %v2437_v1 = vpop.f32.mrf.mxu1  ;;  %1113 = vst.msk [vmem:[%s2918_s4 + $0x8c] sm:$0xf] %vm1077_vm2, %v1653_v38  ;;  %v1651_v30 = vpack.c.bf16 %v2427_v35, %v2427_v35 }
  0xf7   :  { %1095 = vst.msk [vmem:[%s2918_s4 + $0x44] sm:$0xf] %vm1077_vm2, %v1635_v14  ;;  %v1378_v27 = vsel %vm1143_vm4, %v1298_v2, 0.0  ;;  %v1640_v28 = vpack.c.bf16 %v1898_v8, %v1898_v8  ;;  %v1303_v42 = vmul.f32 %v1898_v8, %v1898_v8  ;;  %v1187_v54 = vsel %vm1143_vm4, %v1898_v8, 0.0 }
  0xf8   :  { %v1180_v31 = vadd.f32 %v1179_v23, %v1178_v17  ;;  %v1379_v32 = vadd.f32 %v1378_v27, %v1377_v16  ;;  %v646_v33 = vpop.f32.mrf.mxu0  ;;  %v2449_v46 = vpop.f32.mrf.mxu1  ;;  %1111 = vst.msk [vmem:[%s2918_s4 + $0x84] sm:$0xf] %vm1077_vm2, %v1651_v30  ;;  %v1656_v7 = vpack.c.bf16 %v2437_v1, %v2437_v1 }
  0xf9   :  { %1100 = vst.msk [vmem:[%s2918_s4 + $0x58] sm:$0xf] %vm1077_vm2, %v1640_v28  ;;  %v1638_v6 = vpack.c.bf16 %v646_v33, %v646_v33  ;;  %v1301_v21 = vmul.f32 %v646_v33, %v646_v33  ;;  %v1183_v40 = vsel %vm1143_vm4, %v646_v33, 0.0  ;;  %v1388_v60 = vsel %vm1143_vm4, %v1303_v42, 0.0 }
  0xfa   :  { %v1381_v25 = vadd.f32 %v1380_v36, %v1379_v32  ;;  %v1182_v26 = vadd.f32 %v1181_v37, %v1180_v31  ;;  %v1899_v39 = vpop.f32.mrf.mxu0  ;;  %v2459_v53 = vpop.f32.mrf.mxu1  ;;  %1116 = vst.msk [vmem:[%s2918_s4 + $0x98] sm:$0xf] %vm1077_vm2, %v1656_v7  ;;  %v1654_v32 = vpack.c.bf16 %v2449_v46, %v2449_v46 }
  0xfb   :  { %1098 = vst.msk [vmem:[%s2918_s4 + $0x50] sm:$0xf] %vm1077_vm2, %v1638_v6  ;;  %v1641_v41 = vpack.c.bf16 %v1899_v39, %v1899_v39  ;;  %v1384_v20 = vsel %vm1143_vm4, %v1301_v21, 0.0  ;;  %v1304_v55 = vmul.f32 %v1899_v39, %v1899_v39  ;;  %v1189_v61 = vsel %vm1143_vm4, %v1899_v39, 0.0 }
  0xfc   :  { %v1184_v43 = vadd.f32 %v1183_v40, %v1182_v26  ;;  %v1383_v44 = vadd.f32 %v1382_v29, %v1381_v25  ;;  %v649_v45 = vpop.f32.mrf.mxu0  ;;  %v2471_v59 = vpop.f32.mrf.mxu1  ;;  %1114 = vst.msk [vmem:[%s2918_s4 + $0x90] sm:$0xf] %vm1077_vm2, %v1654_v32 }
  0xfd   :  { %1101 = vst.msk [vmem:[%s2918_s4 + $0x5c] sm:$0xf] %vm1077_vm2, %v1641_v41  ;;  %v1639_v47 = vpack.c.bf16 %v649_v45, %v649_v45  ;;  %v1185_v48 = vsel %vm1143_vm4, %v649_v45, 0.0  ;;  %v1302_v49 = vmul.f32 %v649_v45, %v649_v45  ;;  %v1390_v10 = vsel %vm1143_vm4, %v1304_v55, 0.0 }
  0xfe   :  { %v1385_v50 = vadd.f32 %v1384_v20, %v1383_v44  ;;  %v1186_v51 = vadd.f32 %v1185_v48, %v1184_v43  ;;  %v1902_v52 = vpop.f32.mrf.mxu0  ;;  %v2481_v9 = vpop.f32.mrf.mxu1  ;;  %v1657_v20 = vpack.c.bf16 %v2459_v53, %v2459_v53 }
  0xff   :  { %1099 = vst.msk [vmem:[%s2918_s4 + $0x54] sm:$0xf] %vm1077_vm2, %v1639_v47  ;;  %v1386_v18 = vsel %vm1143_vm4, %v1302_v49, 0.0  ;;  %v1644_v34 = vpack.c.bf16 %v1902_v52, %v1902_v52  ;;  %v1307_v14 = vmul.f32 %v1902_v52, %v1902_v52  ;;  %v1195_v36 = vsel %vm1143_vm4, %v1902_v52, 0.0 }
 0x100   :  { %v1188_v56 = vadd.f32 %v1187_v54, %v1186_v51  ;;  %v1387_v57 = vadd.f32 %v1386_v18, %v1385_v50  ;;  %v662_v58 = vpop.f32.mrf.mxu0  ;;  %v2493_v17 = vpop.f32.mrf.mxu1  ;;  %1117 = vst.msk [vmem:[%s2918_s4 + $0x9c] sm:$0xf] %vm1077_vm2, %v1657_v20 }
 0x101   :  { %1104 = vst.msk [vmem:[%s2918_s4 + $0x68] sm:$0xf] %vm1077_vm2, %v1644_v34  ;;  %v1642_v62 = vpack.c.bf16 %v662_v58, %v662_v58  ;;  %v1305_v0 = vmul.f32 %v662_v58, %v662_v58  ;;  %v1191_v11 = vsel %vm1143_vm4, %v662_v58, 0.0  ;;  %v1396_v29 = vsel %vm1143_vm4, %v1307_v14, 0.0 }
 0x102   :  { %v1389_v3 = vadd.f32 %v1388_v60, %v1387_v57  ;;  %v1190_v4 = vadd.f32 %v1189_v61, %v1188_v56  ;;  %v1903_v5 = vpop.f32.mrf.mxu0  ;;  %v2503_v33 = vpop.f32.mrf.mxu1  ;;  %v1655_v61 = vpack.c.bf16 %v2471_v59, %v2471_v59 }
 0x103   :  { %1102 = vst.msk [vmem:[%s2918_s4 + $0x60] sm:$0xf] %vm1077_vm2, %v1642_v62  ;;  %v1645_v13 = vpack.c.bf16 %v1903_v5, %v1903_v5  ;;  %v1392_v8 = vsel %vm1143_vm4, %v1305_v0, 0.0  ;;  %v1308_v37 = vmul.f32 %v1903_v5, %v1903_v5  ;;  %v1197_v40 = vsel %vm1143_vm4, %v1903_v5, 0.0 }
 0x104   :  { %v1192_v15 = vadd.f32 %v1191_v11, %v1190_v4  ;;  %v1391_v2 = vadd.f32 %v1390_v10, %v1389_v3  ;;  %v665_v16 = vpop.f32.mrf.mxu0  ;;  %v2515_v38 = vpop.f32.mrf.mxu1  ;;  %v1660_v5 = vpack.c.bf16 %v2481_v9, %v2481_v9  ;;  %1115 = vst.msk [vmem:[%s2918_s4 + $0x94] sm:$0xf] %vm1077_vm2, %v1655_v61 }
 0x105   :  { %1105 = vst.msk [vmem:[%s2918_s4 + $0x6c] sm:$0xf] %vm1077_vm2, %v1645_v13  ;;  %v1643_v19 = vpack.c.bf16 %v665_v16, %v665_v16  ;;  %v1193_v23 = vsel %vm1143_vm4, %v665_v16, 0.0  ;;  %v1306_v24 = vmul.f32 %v665_v16, %v665_v16  ;;  %v1398_v48 = vsel %vm1143_vm4, %v1308_v37, 0.0 }
 0x106   :  { %v1393_v27 = vadd.f32 %v1392_v8, %v1391_v2  ;;  %v1194_v28 = vadd.f32 %v1193_v23, %v1192_v15  ;;  %v1906_v31 = vpop.f32.mrf.mxu0  ;;  %v2525_v47 = vpop.f32.mrf.mxu1  ;;  %v1313_v15 = vmul.f32 %v2401_v12, %v2401_v12  ;;  %1120 = vst.msk [vmem:[%s2918_s4 + $0xa8] sm:$0xf] %vm1077_vm2, %v1660_v5  ;;  %v1658_v2 = vpack.c.bf16 %v2493_v17, %v2493_v17 }
 0x107   :  { %1103 = vst.msk [vmem:[%s2918_s4 + $0x64] sm:$0xf] %vm1077_vm2, %v1643_v19  ;;  %v1394_v6 = vsel %vm1143_vm4, %v1306_v24, 0.0  ;;  %v1648_v21 = vpack.c.bf16 %v1906_v31, %v1906_v31  ;;  %v1311_v51 = vmul.f32 %v1906_v31, %v1906_v31  ;;  %v1203_v0 = vsel %vm1143_vm4, %v1906_v31, 0.0 }
 0x108   :  { %v1196_v25 = vadd.f32 %v1195_v36, %v1194_v28  ;;  %v1395_v26 = vadd.f32 %v1394_v6, %v1393_v27  ;;  %v678_v39 = vpop.f32.mrf.mxu0  ;;  %v2537_v55 = vpop.f32.mrf.mxu1  ;;  %v1661_v19 = vpack.c.bf16 %v2503_v33, %v2503_v33  ;;  %v1207_v27 = vsel %vm1143_vm4, %v2401_v12, 0.0  ;;  %1118 = vst.msk [vmem:[%s2918_s4 + $0xa0] sm:$0xf] %vm1077_vm2, %v1658_v2 }
 0x109   :  { %1108 = vst.msk [vmem:[%s2918_s4 + $0x78] sm:$0xf] %vm1077_vm2, %v1648_v21  ;;  %v1646_v41 = vpack.c.bf16 %v678_v39, %v678_v39  ;;  %v1309_v42 = vmul.f32 %v678_v39, %v678_v39  ;;  %v1199_v49 = vsel %vm1143_vm4, %v678_v39, 0.0  ;;  %v1404_v13 = vsel %vm1143_vm4, %v1311_v51, 0.0 }
 0x10a   :  { %v1397_v43 = vadd.f32 %v1396_v29, %v1395_v26  ;;  %v1198_v44 = vadd.f32 %v1197_v40, %v1196_v25  ;;  %v1907_v45 = vpop.f32.mrf.mxu0  ;;  %v2547_v62 = vpop.f32.mrf.mxu1  ;;  %v1314_v28 = vmul.f32 %v2427_v35, %v2427_v35  ;;  %v1659_v31 = vpack.c.bf16 %v2515_v38, %v2515_v38  ;;  %1121 = vst.msk [vmem:[%s2918_s4 + $0xac] sm:$0xf] %vm1077_vm2, %v1661_v19 }
 0x10b   :  { %1106 = vst.msk [vmem:[%s2918_s4 + $0x70] sm:$0xf] %vm1077_vm2, %v1646_v41  ;;  %v1649_v50 = vpack.c.bf16 %v1907_v45, %v1907_v45  ;;  %v1400_v18 = vsel %vm1143_vm4, %v1309_v42, 0.0  ;;  %v1312_v3 = vmul.f32 %v1907_v45, %v1907_v45  ;;  %v1205_v14 = vsel %vm1143_vm4, %v1907_v45, 0.0 }
 0x10c   :  { %v1200_v52 = vadd.f32 %v1199_v49, %v1198_v44  ;;  %v1399_v30 = vadd.f32 %v1398_v48, %v1397_v43  ;;  %v681_v54 = vpop.f32.mrf.mxu0  ;;  %v2561_v11 = vpop.f32.mrf.mxu1  ;;  %v1315_v12 = vmul.f32 %v2391_v63, %v2391_v63  ;;  %v1408_v6 = vsel %vm1143_vm4, %v1313_v15, 0.0  ;;  %1119 = vst.msk [vmem:[%s2918_s4 + $0xa4] sm:$0xf] %vm1077_vm2, %v1659_v31 }
 0x10d   :  { %1109 = vst.msk [vmem:[%s2918_s4 + $0x7c] sm:$0xf] %vm1077_vm2, %v1649_v50  ;;  %v1647_v34 = vpack.c.bf16 %v681_v54, %v681_v54  ;;  %v1201_v56 = vsel %vm1143_vm4, %v681_v54, 0.0  ;;  %v1310_v57 = vmul.f32 %v681_v54, %v681_v54  ;;  %v1406_v24 = vsel %vm1143_vm4, %v1312_v3, 0.0 }
 0x10e   :  { %v1401_v58 = vadd.f32 %v1400_v18, %v1399_v30  ;;  %v1202_v60 = vadd.f32 %v1201_v56, %v1200_v52  ;;  %v2575_v23 = vpop.f32.mrf.mxu1  ;;  %v1209_v21 = vsel %vm1143_vm4, %v2427_v35, 0.0  ;;  %v1664_v25 = vpack.c.bf16 %v2525_v47, %v2525_v47 }
 0x10f   :  { %1107 = vst.msk [vmem:[%s2918_s4 + $0x74] sm:$0xf] %vm1077_vm2, %v1647_v34  ;;  %v1402_v4 = vsel %vm1143_vm4, %v1310_v57, 0.0  ;;  %v1662_v29 = vpack.c.bf16 %v2537_v55, %v2537_v55  ;;  %v1211_v41 = vsel %vm1143_vm4, %v2391_v63, 0.0  ;;  %v1316_v35 = vmul.f32 %v2415_v22, %v2415_v22 }
 0x110   :  { %v1204_v7 = vadd.f32 %v1203_v0, %v1202_v60  ;;  %v1403_v10 = vadd.f32 %v1402_v4, %v1401_v58  ;;  %v2592_v37 = vpop.f32.mrf.mxu1  ;;  %v1410_v42 = vsel %vm1143_vm4, %v1314_v28, 0.0  ;;  %1124 = vst.msk [vmem:[%s2918_s4 + $0xb8] sm:$0xf] %vm1077_vm2, %v1664_v25  ;;  %v1665_v43 = vpack.c.bf16 %v2547_v62, %v2547_v62 }
 0x111   :  { %1122 = vst.msk [vmem:[%s2918_s4 + $0xb0] sm:$0xf] %vm1077_vm2, %v1662_v29  ;;  %v1412_v20 = vsel %vm1143_vm4, %v1315_v12, 0.0  ;;  %v1213_v48 = vsel %vm1143_vm4, %v2415_v22, 0.0  ;;  %v1317_v49 = vmul.f32 %v2449_v46, %v2449_v46  ;;  %v1663_v50 = vpack.c.bf16 %v2561_v11, %v2561_v11 }
 0x112   :  { %v1206_v16 = vadd.f32 %v1205_v14, %v1204_v7  ;;  %v1405_v8 = vadd.f32 %v1404_v13, %v1403_v10  ;;  %v2607_v40 = vpop.f32.mrf.mxu1  ;;  %1125 = vst.msk [vmem:[%s2918_s4 + $0xbc] sm:$0xf] %vm1077_vm2, %v1665_v43  ;;  %v1668_v30 = vpack.c.bf16 %v2575_v23, %v2575_v23  ;;  %v1414_v22 = vsel %vm1143_vm4, %v1316_v35, 0.0 }
 0x113   :  { %v1215_v18 = vsel %vm1143_vm4, %v2449_v46, 0.0  ;;  %v1318_v34 = vmul.f32 %v2471_v59, %v2471_v59  ;;  %1123 = vst.msk [vmem:[%s2918_s4 + $0xb4] sm:$0xf] %vm1077_vm2, %v1663_v50  ;;  %v1666_v56 = vpack.c.bf16 %v2592_v37, %v2592_v37  ;;  %v1319_v46 = vmul.f32 %v2437_v1, %v2437_v1 }
 0x114   :  { %v1407_v32 = vadd.f32 %v1406_v24, %v1405_v8  ;;  %v1208_v36 = vadd.f32 %v1207_v27, %v1206_v16  ;;  %v2624_v63 = vpop.f32.mrf.mxu1  ;;  %1128 = vst.msk [vmem:[%s2918_s4 + $0xc8] sm:$0xf] %vm1077_vm2, %v1668_v30  ;;  %v1416_v61 = vsel %vm1143_vm4, %v1317_v49, 0.0  ;;  %v1217_v0 = vsel %vm1143_vm4, %v2471_v59, 0.0 }
 0x115   :  { %1126 = vst.msk [vmem:[%s2918_s4 + $0xc0] sm:$0xf] %vm1077_vm2, %v1666_v56  ;;  %v1669_v3 = vpack.c.bf16 %v2607_v40, %v2607_v40  ;;  %v1667_v7 = vpack.c.bf16 %v2624_v63, %v2624_v63  ;;  %v1219_v13 = vsel %vm1143_vm4, %v2437_v1, 0.0  ;;  %v1320_v59 = vmul.f32 %v2459_v53, %v2459_v53 }
 0x116   :  { %v1210_v26 = vadd.f32 %v1209_v21, %v1208_v36  ;;  %v1409_v39 = vadd.f32 %v1408_v6, %v1407_v32  ;;  %v2639_v54 = vpop.f32.mrf.mxu1  ;;  %v1418_v14 = vsel %vm1143_vm4, %v1318_v34, 0.0  ;;  %v1420_v8 = vsel %vm1143_vm4, %v1319_v46, 0.0 }
 0x117   :  { %1129 = vst.msk [vmem:[%s2918_s4 + $0xcc] sm:$0xf] %vm1077_vm2, %v1669_v3  ;;  %v1672_v15 = vpack.c.bf16 %v2639_v54, %v2639_v54  ;;  %1127 = vst.msk [vmem:[%s2918_s4 + $0xc4] sm:$0xf] %vm1077_vm2, %v1667_v7  ;;  %v1221_v19 = vsel %vm1143_vm4, %v2459_v53, 0.0  ;;  %v1321_v24 = vmul.f32 %v2493_v17, %v2493_v17  ;;  %v1422_v53 = vsel %vm1143_vm4, %v1320_v59, 0.0 }
 0x118   :  { %v1212_v44 = vadd.f32 %v1211_v41, %v1210_v26  ;;  %v1411_v45 = vadd.f32 %v1410_v42, %v1409_v39  ;;  %v2656_v60 = vpop.f32.mrf.mxu1  ;;  %v1223_v12 = vsel %vm1143_vm4, %v2493_v17, 0.0  ;;  %v1322_v6 = vmul.f32 %v2515_v38, %v2515_v38 }
 0x119   :  { %1132 = vst.msk [vmem:[%s2918_s4 + $0xd8] sm:$0xf] %vm1077_vm2, %v1672_v15  ;;  %v1670_v27 = vpack.c.bf16 %v2656_v60, %v2656_v60  ;;  %v1323_v17 = vmul.f32 %v2481_v9, %v2481_v9  ;;  %v1424_v29 = vsel %vm1143_vm4, %v1321_v24, 0.0  ;;  %v1225_v41 = vsel %vm1143_vm4, %v2515_v38, 0.0 }
 0x11a   :  { %v1413_v51 = vadd.f32 %v1412_v20, %v1411_v45  ;;  %v1214_v52 = vadd.f32 %v1213_v48, %v1212_v44  ;;  %v2671_v10 = vpop.f32.mrf.mxu1  ;;  %v1227_v20 = vsel %vm1143_vm4, %v2481_v9, 0.0  ;;  %v1324_v38 = vmul.f32 %v2503_v33, %v2503_v33 }
 0x11b   :  { %v1673_v32 = vpack.c.bf16 %v2671_v10, %v2671_v10  ;;  %1130 = vst.msk [vmem:[%s2918_s4 + $0xd0] sm:$0xf] %vm1077_vm2, %v1670_v27  ;;  %v1426_v48 = vsel %vm1143_vm4, %v1322_v6, 0.0  ;;  %v1229_v30 = vsel %vm1143_vm4, %v2503_v33, 0.0  ;;  %v1231_v33 = vsel %vm1143_vm4, %v2537_v55, 0.0 }
 0x11c   :  { %v1216_v57 = vadd.f32 %v1215_v18, %v1214_v52  ;;  %v1415_v58 = vadd.f32 %v1414_v22, %v1413_v51  ;;  %v2688_v1 = vpop.f32.mrf.mxu1  ;;  %v1428_v52 = vsel %vm1143_vm4, %v1323_v17, 0.0  ;;  %v1325_v22 = vmul.f32 %v2537_v55, %v2537_v55 }
 0x11d   :  { %v1671_v21 = vpack.c.bf16 %v2688_v1, %v2688_v1  ;;  %1133 = vst.msk [vmem:[%s2918_s4 + $0xdc] sm:$0xf] %vm1077_vm2, %v1673_v32  ;;  %v1326_v46 = vmul.f32 %v2561_v11, %v2561_v11  ;;  %v1233_v7 = vsel %vm1143_vm4, %v2561_v11, 0.0  ;;  %v1331_v17 = vmul.f32 %v2575_v23, %v2575_v23 }
 0x11e   :  { %v1417_v4 = vadd.f32 %v1416_v61, %v1415_v58  ;;  %v1218_v5 = vadd.f32 %v1217_v0, %v1216_v57  ;;  %v2703_v36 = vpop.f32.mrf.mxu1  ;;  %v1430_v58 = vsel %vm1143_vm4, %v1324_v38, 0.0  ;;  %v1432_v55 = vsel %vm1143_vm4, %v1325_v22, 0.0 }
 0x11f   :  { %1131 = vst.msk [vmem:[%s2918_s4 + $0xd4] sm:$0xf] %vm1077_vm2, %v1671_v21  ;;  %v1676_v35 = vpack.c.bf16 %v2703_v36, %v2703_v36  ;;  %v1434_v11 = vsel %vm1143_vm4, %v1326_v46, 0.0  ;;  %v1239_v21 = vsel %vm1143_vm4, %v2592_v37, 0.0  ;;  %v1251_v46 = vsel %vm1143_vm4, %v2639_v54, 0.0 }
 0x120   :  { %v1220_v2 = vadd.f32 %v1219_v13, %v1218_v5  ;;  %v1419_v16 = vadd.f32 %v1418_v14, %v1417_v4  ;;  %v2720_v39 = vpop.f32.mrf.mxu1  ;;  %v1327_v5 = vmul.f32 %v2525_v47, %v2525_v47 }
 0x121   :  { %v1674_v44 = vpack.c.bf16 %v2720_v39, %v2720_v39  ;;  %1136 = vst.msk [vmem:[%s2918_s4 + $0xe8] sm:$0xf] %vm1077_vm2, %v1676_v35 }
 0x122   :  { %v1421_v28 = vadd.f32 %v1420_v8, %v1419_v16  ;;  %v1222_v31 = vadd.f32 %v1221_v19, %v1220_v2  ;;  %v2735_v45 = vpop.f32.mrf.mxu1  ;;  %v1235_v2 = vsel %vm1143_vm4, %v2525_v47, 0.0  ;;  %v1328_v16 = vmul.f32 %v2547_v62, %v2547_v62 }
 0x123   :  { %v1677_v49 = vpack.c.bf16 %v2735_v45, %v2735_v45  ;;  %1134 = vst.msk [vmem:[%s2918_s4 + $0xe0] sm:$0xf] %vm1077_vm2, %v1674_v44  ;;  %v1237_v47 = vsel %vm1143_vm4, %v2547_v62, 0.0  ;;  %v1330_v62 = vmul.f32 %v2624_v63, %v2624_v63 }
 0x124   :  { %v1224_v25 = vadd.f32 %v1223_v12, %v1222_v31  ;;  %v1423_v26 = vadd.f32 %v1422_v53, %v1421_v28  ;;  %v2752_v9 = vpop.f32.mrf.mxu1  ;;  %v1436_v28 = vsel %vm1143_vm4, %v1327_v5, 0.0  ;;  %v1329_v31 = vmul.f32 %v2592_v37, %v2592_v37 }
 0x125   :  { %1137 = vst.msk [vmem:[%s2918_s4 + $0xec] sm:$0xf] %vm1077_vm2, %v1677_v49  ;;  %v1675_v18 = vpack.c.bf16 %v2752_v9, %v2752_v9  ;;  %v1438_v6 = vsel %vm1143_vm4, %v1328_v16, 0.0  ;;  %v1442_v44 = vsel %vm1143_vm4, %v1330_v62, 0.0  ;;  %v1245_v49 = vsel %vm1143_vm4, %v2607_v40, 0.0 }
 0x126   :  { %v1425_v42 = vadd.f32 %v1424_v29, %v1423_v26  ;;  %v1226_v43 = vadd.f32 %v1225_v41, %v1224_v25  ;;  %v2765_v57 = vpop.f32.mrf.mxu1  ;;  %v1440_v29 = vsel %vm1143_vm4, %v1329_v31, 0.0  ;;  %v1241_v41 = vsel %vm1143_vm4, %v2624_v63, 0.0 }
 0x127   :  { %1135 = vst.msk [vmem:[%s2918_s4 + $0xe4] sm:$0xf] %vm1077_vm2, %v1675_v18  ;;  %v1680_v61 = vpack.c.bf16 %v2765_v57, %v2765_v57  ;;  %v1333_v63 = vmul.f32 %v2656_v60, %v2656_v60 }
 0x128   :  { %v1228_v50 = vadd.f32 %v1227_v20, %v1226_v43  ;;  %v1427_v51 = vadd.f32 %v1426_v48, %v1425_v42  ;;  %v2778_v4 = vpop.f32.mrf.mxu1  ;;  %v1243_v42 = vsel %vm1143_vm4, %v2575_v23, 0.0  ;;  %v1332_v43 = vmul.f32 %v2607_v40, %v2607_v40 }
 0x129   :  { %1140 = vst.msk [vmem:[%s2918_s4 + $0xf8] sm:$0xf] %vm1077_vm2, %v1680_v61  ;;  %v1678_v13 = vpack.c.bf16 %v2778_v4, %v2778_v4  ;;  %v1444_v48 = vsel %vm1143_vm4, %v1331_v17, 0.0  ;;  %v1247_v23 = vsel %vm1143_vm4, %v2656_v60, 0.0  ;;  %v1448_v40 = vsel %vm1143_vm4, %v1333_v63, 0.0 }
 0x12a   :  { %v1429_v34 = vadd.f32 %v1428_v52, %v1427_v51  ;;  %v1230_v56 = vadd.f32 %v1229_v30, %v1228_v50  ;;  %v2791_v15 = vpop.f32.mrf.mxu1  ;;  %v1446_v52 = vsel %vm1143_vm4, %v1332_v43, 0.0  ;;  %v1334_v30 = vmul.f32 %v2688_v1, %v2688_v1 }
 0x12b   :  { %1138 = vst.msk [vmem:[%s2918_s4 + $0xf0] sm:$0xf] %vm1077_vm2, %v1678_v13  ;;  %v1681_v8 = vpack.c.bf16 %v2791_v15, %v2791_v15  ;;  %v1336_v60 = vmul.f32 %v2671_v10, %v2671_v10 }
 0x12c   :  { %v1232_v0 = vadd.f32 %v1231_v33, %v1230_v56  ;;  %v1431_v3 = vadd.f32 %v1430_v58, %v1429_v34  ;;  %v2804_v27 = vpop.f32.mrf.mxu1  ;;  %v1335_v34 = vmul.f32 %v2639_v54, %v2639_v54  ;;  %v1249_v56 = vsel %vm1143_vm4, %v2688_v1, 0.0 }
 0x12d   :  { %1141 = vst.msk [vmem:[%s2918_s4 + $0xfc] sm:$0xf] %vm1077_vm2, %v1681_v8  ;;  %v1679_v32 = vpack.c.bf16 %v2804_v27, %v2804_v27  ;;  %v1450_v61 = vsel %vm1143_vm4, %v1334_v30, 0.0  ;;  %v1337_v1 = vmul.f32 %v2720_v39, %v2720_v39  ;;  %v1255_v54 = vsel %vm1143_vm4, %v2720_v39, 0.0 }
 0x12e   :  { %v1433_v59 = vadd.f32 %v1432_v55, %v1431_v3  ;;  %v1234_v14 = vadd.f32 %v1233_v7, %v1232_v0  ;;  %v1452_v5 = vsel %vm1143_vm4, %v1335_v34, 0.0  ;;  %v1253_v55 = vsel %vm1143_vm4, %v2671_v10, 0.0 }
 0x12f   :  { %1139 = vst.msk [vmem:[%s2918_s4 + $0xf4] sm:$0xf] %vm1077_vm2, %v1679_v32  ;;  %v1456_v10 = vsel %vm1143_vm4, %v1337_v1, 0.0  ;;  %v1257_v8 = vsel %vm1143_vm4, %v2752_v9, 0.0  ;;  %v1340_v39 = vmul.f32 %v2735_v45, %v2735_v45 }
 0x130   :  { %v1236_v19 = vadd.f32 %v1235_v2, %v1234_v14  ;;  %v1435_v24 = vadd.f32 %v1434_v11, %v1433_v59  ;;  %v1454_v59 = vsel %vm1143_vm4, %v1336_v60, 0.0  ;;  %v1338_v14 = vmul.f32 %v2752_v9, %v2752_v9 }
 0x131   :  { %v1339_v11 = vmul.f32 %v2703_v36, %v2703_v36  ;;  %v1341_v9 = vmul.f32 %v2778_v4, %v2778_v4  ;;  %v1462_v62 = vsel %vm1143_vm4, %v1340_v39, 0.0 }
 0x132   :  { %v1437_v53 = vadd.f32 %v1436_v28, %v1435_v24  ;;  %v1238_v12 = vadd.f32 %v1237_v47, %v1236_v19  ;;  %v1259_v28 = vsel %vm1143_vm4, %v2703_v36, 0.0  ;;  %v1458_v47 = vsel %vm1143_vm4, %v1338_v14, 0.0 }
 0x133   :  { %v1263_v36 = vsel %vm1143_vm4, %v2778_v4, 0.0  ;;  %v1344_v4 = vmul.f32 %v2791_v15, %v2791_v15 }
 0x134   :  { %v1240_v25 = vadd.f32 %v1239_v21, %v1238_v12  ;;  %v1439_v26 = vadd.f32 %v1438_v6, %v1437_v53  ;;  %v1460_v53 = vsel %vm1143_vm4, %v1339_v11, 0.0  ;;  %v1261_v12 = vsel %vm1143_vm4, %v2735_v45, 0.0 }
 0x135   :  { %v1464_v45 = vsel %vm1143_vm4, %v1341_v9, 0.0 }
 0x136   :  { %v1441_v35 = vadd.f32 %v1440_v29, %v1439_v26  ;;  %v1242_v37 = vadd.f32 %v1241_v41, %v1240_v25  ;;  %v1342_v25 = vmul.f32 %v2804_v27, %v2804_v27  ;;  %v1343_v29 = vmul.f32 %v2765_v57, %v2765_v57 }
 0x137   :  { %v1265_v41 = vsel %vm1143_vm4, %v2804_v27, 0.0  ;;  %v1470_v27 = vsel %vm1143_vm4, %v1344_v4, 0.0 }
 0x138   :  { %v1244_v20 = vadd.f32 %v1243_v42, %v1242_v37  ;;  %v1443_v38 = vadd.f32 %v1442_v44, %v1441_v35  ;;  %v1267_v42 = vsel %vm1143_vm4, %v2765_v57, 0.0  ;;  %v1466_v43 = vsel %vm1143_vm4, %v1342_v25, 0.0 }
 0x13a   :  { %v1445_v50 = vadd.f32 %v1444_v48, %v1443_v38  ;;  %v1246_v51 = vadd.f32 %v1245_v49, %v1244_v20  ;;  %v1468_v38 = vsel %vm1143_vm4, %v1343_v29, 0.0  ;;  %v1269_v48 = vsel %vm1143_vm4, %v2791_v15, 0.0 }
 0x13c   :  { %v1248_v22 = vadd.f32 %v1247_v23, %v1246_v51  ;;  %v1447_v18 = vadd.f32 %v1446_v52, %v1445_v50 }
 0x13e   :  { %v1449_v58 = vadd.f32 %v1448_v40, %v1447_v18  ;;  %v1250_v33 = vadd.f32 %v1249_v56, %v1248_v22  ;;  %v1142_v56 = vld [vmem:[%s2919_s5] sm:$0x1] }
 0x140   :  { %v1252_v0 = vadd.f32 %v1251_v46, %v1250_v33  ;;  %v1451_v3 = vadd.f32 %v1450_v61, %v1449_v58  ;;  %v1280_v33 = vld [vmem:[%s2920_s6] sm:$0x1] }
 0x142   :  { %v1453_v7 = vadd.f32 %v1452_v5, %v1451_v3  ;;  %v1254_v13 = vadd.f32 %v1253_v55, %v1252_v0 }
 0x144   :  { %v1256_v2 = vadd.f32 %v1255_v54, %v1254_v13  ;;  %v1455_v16 = vadd.f32 %v1454_v59, %v1453_v7 }
 0x146   :  { %v1457_v19 = vadd.f32 %v1456_v10, %v1455_v16  ;;  %v1258_v24 = vadd.f32 %v1257_v8, %v1256_v2 }
 0x148   :  { %v1260_v31 = vadd.f32 %v1259_v28, %v1258_v24  ;;  %v1459_v32 = vadd.f32 %v1458_v47, %v1457_v19 }
 0x14a   :  { %v1461_v6 = vadd.f32 %v1460_v53, %v1459_v32  ;;  %v1262_v21 = vadd.f32 %v1261_v12, %v1260_v31 }
 0x14c   :  { %v1264_v26 = vadd.f32 %v1263_v36, %v1262_v21  ;;  %v1463_v17 = vadd.f32 %v1462_v62, %v1461_v6 }
 0x14e   :  { %v1465_v35 = vadd.f32 %v1464_v45, %v1463_v17  ;;  %v1266_v37 = vadd.f32 %v1265_v41, %v1264_v26 }
 0x150   :  { %v1268_v44 = vadd.f32 %v1267_v42, %v1266_v37  ;;  %v1467_v20 = vadd.f32 %v1466_v43, %v1465_v35 }
 0x152   :  { %v1270_v49 = vadd.f32 %v1269_v48, %v1268_v44  ;;  %v1469_v63 = vadd.f32 %v1468_v38, %v1467_v20 }
 0x154   :  { %v1271_v50 = vrot.slane %v1270_v49, 4  ;;  %v1471_v51 = vadd.f32 %v1470_v27, %v1469_v63 }
 0x156   :  { %v1272_v52 = vadd.f32 %v1271_v50, %v1270_v49  ;;  %v1472_v57 = vrot.slane %v1471_v51, 4 }
 0x158   :  { %v1273_v23 = vrot.slane %v1272_v52, 2  ;;  %v1473_v30 = vadd.f32 %v1472_v57, %v1471_v51 }
 0x15a   :  { %v1274_v22 = vadd.f32 %v1273_v23, %v1272_v52  ;;  %v1474_v18 = vrot.slane %v1473_v30, 2 }
 0x15c   :  { %v1275_v34 = vrot.slane %v1274_v22, 1  ;;  %v1475_v40 = vadd.f32 %v1474_v18, %v1473_v30 }
 0x15e   :  { %v1276_v58 = vadd.f32 %v1275_v34, %v1274_v22  ;;  %v1476_v15 = vrot.slane %v1475_v40, 1 }
 0x160   :  { %v1277_v46 = vadd.f32 %v1276_v58, %v1142_v56  ;;  %v1477_v60 = vadd.f32 %v1476_v15, %v1475_v40 }
 0x162   :  { %1279 = vst.msk [vmem:[%s2919_s5] sm:$0x1] %vm61_vm3, %v1277_v46  ;;  %v1478_v61 = vadd.f32 %v1477_v60, %v1280_v33 }
 0x164   :  { %1479 = vst.msk [vmem:[%s2920_s6] sm:$0x1] %vm61_vm3, %v1478_v61 }

// kernel: bottleneck_forward.6
= control target key start
LH: loop header
LB: loop body
LE: loop exit
PB: predicated region body
PF: predicated region fallthrough
CT: control target
= control target key end

     0   :  { %s4588_s21 = smov 0   ;;  %s4590_s22 = smov 0   ;;  %s5998_s0 = inlined_call_operand.vmem [shape: bf16[2,16,16,4], index: 0, kind: input, shape index: {}]   ;;  %s5999_s1 = inlined_call_operand.vmem [shape: bf16[9,4,4], index: 1, kind: input, shape index: {}]   ;;  %s6000_s2 = inlined_call_operand.vmem [shape: f32[1,4], index: 2, kind: input, shape index: {}]   ;;  %s6001_s3 = inlined_call_operand.vmem [shape: f32[1,4], index: 3, kind: input, shape index: {}]   ;;  %s6002_s4 = inlined_call_operand.vmem [shape: bf16[2,256,4], index: 4, kind: output, shape index: {0}]   ;;  %s6003_s5 = inlined_call_operand.vmem [shape: f32[2,1,4], index: 5, kind: output, shape index: {1}]   ;;  %s6004_s6 = inlined_call_operand.vmem [shape: f32[2,1,4], index: 6, kind: output, shape index: {2}]  }
   0x1   :  { %s4592_s23 = smov 0  }
   0x2 LB: > { %s36_s24 = sadd.s32 1, %s4546_s22  ;;  %p3726_p0 = scmp.ge.s32.totalorder %s4550_s23, 1  ;;  %s4550_s23 = sphi %s4592_s23, %s17_s23   ;;  %s4546_s22 = sphi %s4590_s22, %s6077_s22   ;;  %s4542_s21 = sphi %s4588_s21, %s6076_s21  }
   0x3   : > { %p38_p1 = scmp.ge.s32.totalorder %s36_s24, 2  ;;  %p257_p2 = scmp.lt.s32.totalorder %s4550_s23, 3 }
   0x5   : > { %s6079_s24 = smov (%p38_p1, %s36_s24), 0  ;;  %p258_p3 = pnand %p3726_p0, %p257_p2 }
   0x7   : > { %261 = sbr.rel (%p258_p3) target bundleno = 569 (0x239), region = 36 }
   0xc   : > { %v3733_v0 = vld [vmem:[%s5999_s1 + $0x2] sm:$0x3]  ;;  %vm776_vm0 = vcmask 1041408   ;;  %vm349_vm1 = vcmask 31744   ;;  %p309_p4 = scmp.lt.s32.totalorder %s4542_s21, 1  ;;  %v6005_v2 = vmov 0.0  }
   0xd   : > { %4493 = vmatprep.subr.msk.bf16.mxu0 %vm776_vm0, %v3733_v0  ;;  %4494 = vmatprep.subr.msk.bf16.mxu1 %vm776_vm0, %v3733_v0  ;;  %v4615_v1 = vsel %vm776_vm0, %v3733_v0, 0  ;;  %351 = vst.msk [vmem:[#allocation2 + $0x8] sm:$0xff] %vm349_vm1, %v6005_v2  ;;  %352 = vst.msk [vmem:[#allocation2 + $0x10] sm:$0xff] %vm349_vm1, %v6005_v2  ;;  %v677_v3 = vld [vmem:[%s5999_s1] sm:$0x3]  ;;  %vm346_vm2 = vcmask 24576  }
   0xe   : > { %350 = vst.msk [vmem:[#allocation2] sm:$0xff] %vm349_vm1, %v6005_v2  ;;  %353 = vst.msk [vmem:[#allocation2 + $0x18] sm:$0xff] %vm349_vm1, %v6005_v2  ;;  %4186 = vmatpush3.bf16.msra.mxu0 %v4615_v1  ;;  %4492 = vmatpush3.bf16.msra.mxu1 %v4615_v1  ;;  %s6081_s21 = smov (!%p309_p4, %s4542_s21), 1  ;;  %v3766_v4 = vld [vmem:[%s5999_s1 + $0x4] sm:$0x3]  ;;  %v4793_v9 = vsel %vm776_vm0, %v677_v3, 0 }
   0xf   : > { %354 = vst.msk [vmem:[#allocation2 + $0x20] sm:$0xff] %vm349_vm1, %v6005_v2  ;;  %355 = vst.msk [vmem:[#allocation2 + $0x28] sm:$0xff] %vm349_vm1, %v6005_v2  ;;  %4495 = vmatprep.subr.msk.bf16.mxu1 %vm776_vm0, %v677_v3  ;;  %4496 = vmatprep.subr.msk.bf16.mxu0 %vm776_vm0, %v3766_v4  ;;  %s3919_s7 = sshll.u32 %s6081_s21, 7  ;;  %v4787_v5 = vld [vmem:[%s6000_s2] ss:$0 sm:$0xff]  ;;  %v4796_v10 = vsel %vm776_vm0, %v3766_v4, 0  ;;  %s5596_s13 = scalar_lea.vmem %s6004_s6, %s6081_s21 }
  0x10   : > { %356 = vst.msk [vmem:[#allocation2 + $0x30] sm:$0xff] %vm349_vm1, %v6005_v2  ;;  %357 = vst.msk [vmem:[#allocation2 + $0x38] sm:$0xff] %vm349_vm1, %v6005_v2  ;;  %s4782_s10 = scalar_lea.vmem %s5998_s0, %s3919_s7  ;;  %v4802_v18 = vld [vmem:[%s6001_s3] ss:$0 sm:$0xff]  ;;  %vm3340_vm3 = vcmask 27648   ;;  %s5759_s16 = scalar_lea.vmem %s6002_s4, %s3919_s7 }
  0x11   : > { %358 = vst.msk [vmem:[#allocation2 + $0x40] sm:$0xff] %vm349_vm1, %v6005_v2  ;;  %359 = vst.msk [vmem:[#allocation2 + $0x48] sm:$0xff] %vm349_vm1, %v6005_v2  ;;  %v3954_v6 = vld [vmem:[%s4782_s10] sm:$0xff]   ;;  %v4023_v7 = vld [vmem:[%s4782_s10 + $0x38] sm:$0xff]  }
  0x12   : > { %360 = vst.msk [vmem:[#allocation2 + $0x50] sm:$0xff] %vm349_vm1, %v6005_v2  ;;  %361 = vst.msk [vmem:[#allocation2 + $0x58] sm:$0xff] %vm349_vm1, %v6005_v2  ;;  %v4024_v8 = vld [vmem:[%s4782_s10 + $0x40] sm:$0xff]   ;;  %v3955_v11 = vunpack.c.l.bf16 %v3954_v6  ;;  %v3956_v12 = vunpack.c.h.bf16 %v3954_v6  ;;  %v3983_v13 = vunpack.c.l.bf16 %v4023_v7  ;;  %v3984_v14 = vunpack.c.h.bf16 %v4023_v7  ;;  %v4017_v15 = vld [vmem:[%s4782_s10 + $0x8] sm:$0xff]  }
  0x13   : > { %362 = vst.msk [vmem:[#allocation2 + $0x60] sm:$0xff] %vm349_vm1, %v6005_v2  ;;  %363 = vst.msk [vmem:[#allocation2 + $0x68] sm:$0xff] %vm349_vm1, %v6005_v2  ;;  %v3987_v19 = vunpack.c.l.bf16 %v4024_v8  ;;  %v3988_v20 = vunpack.c.h.bf16 %v4024_v8  ;;  %v3959_v21 = vunpack.c.l.bf16 %v4017_v15  ;;  %v3960_v22 = vunpack.c.h.bf16 %v4017_v15  ;;  %v4018_v39 = vld [vmem:[%s4782_s10 + $0x10] sm:$0xff]   ;;  %v4025_v40 = vld [vmem:[%s4782_s10 + $0x48] sm:$0xff]  }
  0x14   : > { %364 = vst.msk [vmem:[#allocation2 + $0x70] sm:$0xff] %vm349_vm1, %v6005_v2  ;;  %365 = vst.msk [vmem:[#allocation2 + $0x78] sm:$0xff] %vm349_vm1, %v6005_v2  ;;  %v678_v16 = vld [vmem:[#allocation2 + $0x8] sm:$0xff]  ;;  %v679_v17 = vld [vmem:[#allocation2 + $0x10] sm:$0xff]  ;;  %v493_v24 = vmul.f32 %v3955_v11, %v4787_v5  ;;  %v494_v25 = vmul.f32 %v3956_v12, %v4787_v5  ;;  %v507_v26 = vmul.f32 %v3983_v13, %v4787_v5  ;;  %v3963_v52 = vunpack.c.l.bf16 %v4018_v39 }
  0x15   : > { %366 = vst.msk [vmem:[#allocation2 + $0x80] sm:$0xff] %vm349_vm1, %v6005_v2  ;;  %367 = vst.msk [vmem:[#allocation2 + $0x88] sm:$0xff] %vm349_vm1, %v6005_v2  ;;  %v710_v23 = vpack.c.bf16 %v679_v17, %v678_v16  ;;  %v508_v27 = vmul.f32 %v3984_v14, %v4787_v5  ;;  %v509_v28 = vmul.f32 %v3987_v19, %v4787_v5  ;;  %v4026_v45 = vld [vmem:[%s4782_s10 + $0x50] sm:$0xff]   ;;  %v4019_v46 = vld [vmem:[%s4782_s10 + $0x18] sm:$0xff]   ;;  %v3964_v53 = vunpack.c.h.bf16 %v4018_v39 }
  0x16   : > { %368 = vst.msk [vmem:[#allocation2 + $0x90] sm:$0xff] %vm349_vm1, %v6005_v2  ;;  %369 = vst.msk [vmem:[#allocation2 + $0x98] sm:$0xff] %vm349_vm1, %v6005_v2  ;;  %v510_v29 = vmul.f32 %v3988_v20, %v4787_v5  ;;  %v495_v30 = vmul.f32 %v3959_v21, %v4787_v5  ;;  %v532_v31 = vadd.f32 %v4802_v18, %v493_v24  ;;  %v3991_v54 = vunpack.c.l.bf16 %v4025_v40  ;;  %v4020_v11 = vld [vmem:[%s4782_s10 + $0x20] sm:$0xff]   ;;  %v4027_v21 = vld [vmem:[%s4782_s10 + $0x58] sm:$0xff]  }
  0x17   : > { %370 = vst.msk [vmem:[#allocation2 + $0xa0] sm:$0xff] %vm349_vm1, %v6005_v2  ;;  %371 = vst.msk [vmem:[#allocation2 + $0xa8] sm:$0xff] %vm349_vm1, %v6005_v2  ;;  %4187 = vmatprep.mubr.msk.bf16.mxu0 %vm349_vm1, %v710_v23  ;;  %v533_v32 = vadd.f32 %v4802_v18, %v494_v25  ;;  %v546_v33 = vadd.f32 %v4802_v18, %v507_v26  ;;  %v496_v34 = vmul.f32 %v3960_v22, %v4787_v5  ;;  %v4028_v22 = vld [vmem:[%s4782_s10 + $0x60] sm:$0xff]   ;;  %v4021_v23 = vld [vmem:[%s4782_s10 + $0x28] sm:$0xff]  }
  0x18   : > { %372 = vst.msk [vmem:[#allocation2 + $0xb0] sm:$0xff] %vm349_vm1, %v6005_v2  ;;  %373 = vst.msk [vmem:[#allocation2 + $0xb8] sm:$0xff] %vm349_vm1, %v6005_v2  ;;  %v547_v35 = vadd.f32 %v4802_v18, %v508_v27  ;;  %v548_v36 = vadd.f32 %v4802_v18, %v509_v28  ;;  %v549_v37 = vadd.f32 %v4802_v18, %v510_v29  ;;  %v564_v41 = vmax.f32 %v532_v31, 0.0 }
  0x19   : > { %374 = vst.msk [vmem:[#allocation2 + $0xc0] sm:$0xff] %vm349_vm1, %v6005_v2  ;;  %375 = vst.msk [vmem:[#allocation2 + $0xc8] sm:$0xff] %vm349_vm1, %v6005_v2  ;;  %v534_v38 = vadd.f32 %v4802_v18, %v495_v30  ;;  %v565_v42 = vmax.f32 %v533_v32, 0.0  ;;  %v578_v43 = vmax.f32 %v546_v33, 0.0  ;;  %v535_v44 = vadd.f32 %v4802_v18, %v496_v34 }
  0x1a   : > { %376 = vst.msk [vmem:[#allocation2 + $0xd0] sm:$0xff] %vm349_vm1, %v6005_v2  ;;  %377 = vst.msk [vmem:[#allocation2 + $0xd8] sm:$0xff] %vm349_vm1, %v6005_v2  ;;  %v579_v47 = vmax.f32 %v547_v35, 0.0  ;;  %v580_v48 = vmax.f32 %v548_v36, 0.0  ;;  %v581_v49 = vmax.f32 %v549_v37, 0.0  ;;  %v3992_v55 = vunpack.c.h.bf16 %v4025_v40 }
  0x1b   : > { %378 = vst.msk [vmem:[#allocation2 + $0xe0] sm:$0xff] %vm349_vm1, %v6005_v2  ;;  %379 = vst.msk [vmem:[#allocation2 + $0xe8] sm:$0xff] %vm349_vm1, %v6005_v2  ;;  %v566_v50 = vmax.f32 %v534_v38, 0.0  ;;  %v567_v51 = vmax.f32 %v535_v44, 0.0  ;;  %v3995_v56 = vunpack.c.l.bf16 %v4026_v45  ;;  %v3996_v57 = vunpack.c.h.bf16 %v4026_v45 }
  0x1c   : > { %380 = vst.msk [vmem:[#allocation2 + $0xf0] sm:$0xff] %vm349_vm1, %v6005_v2  ;;  %381 = vst.msk [vmem:[#allocation2 + $0xf8] sm:$0xff] %vm349_vm1, %v6005_v2  ;;  %v3967_v58 = vunpack.c.l.bf16 %v4019_v46  ;;  %v497_v59 = vmul.f32 %v3963_v52, %v4787_v5  ;;  %v498_v60 = vmul.f32 %v3964_v53, %v4787_v5  ;;  %v511_v61 = vmul.f32 %v3991_v54, %v4787_v5  ;;  %v4886_v53 = vld [vmem:[%s5999_s1 + $0x6] sm:$0x3] }
  0x1d   : > { %382 = vst.msk [vmem:[#allocation2 + $0x100] sm:$0xff] %vm349_vm1, %v6005_v2  ;;  %383 = vst.msk [vmem:[#allocation2 + $0x108] sm:$0xff] %vm349_vm1, %v6005_v2  ;;  %v3968_v62 = vunpack.c.h.bf16 %v4019_v46  ;;  %v512_v63 = vmul.f32 %v3992_v55, %v4787_v5  ;;  %v513_v0 = vmul.f32 %v3995_v56, %v4787_v5  ;;  %v514_v1 = vmul.f32 %v3996_v57, %v4787_v5  ;;  %v4022_v57 = vld [vmem:[%s4782_s10 + $0x30] sm:$0xff]  }
  0x1e   : > { %384 = vst.msk [vmem:[#allocation2 + $0x110] sm:$0xff] %vm349_vm1, %v6005_v2  ;;  %385 = vst.msk [vmem:[#allocation2 + $0x118] sm:$0xff] %vm349_vm1, %v6005_v2  ;;  %v499_v3 = vmul.f32 %v3967_v58, %v4787_v5  ;;  %v536_v4 = vadd.f32 %v4802_v18, %v497_v59  ;;  %v537_v6 = vadd.f32 %v4802_v18, %v498_v60  ;;  %v3971_v30 = vunpack.c.l.bf16 %v4020_v11 }
  0x1f   : > { %386 = vst.msk [vmem:[#allocation2 + $0x120] sm:$0xff] %vm349_vm1, %v6005_v2  ;;  %387 = vst.msk [vmem:[#allocation2 + $0x128] sm:$0xff] %vm349_vm1, %v6005_v2  ;;  %v550_v7 = vadd.f32 %v4802_v18, %v511_v61  ;;  %v500_v8 = vmul.f32 %v3968_v62, %v4787_v5  ;;  %v551_v12 = vadd.f32 %v4802_v18, %v512_v63  ;;  %v3972_v37 = vunpack.c.h.bf16 %v4020_v11 }
  0x20   : > { %388 = vst.msk [vmem:[#allocation2 + $0x130] sm:$0xff] %vm349_vm1, %v6005_v2  ;;  %389 = vst.msk [vmem:[#allocation2 + $0x138] sm:$0xff] %vm349_vm1, %v6005_v2  ;;  %v552_v13 = vadd.f32 %v4802_v18, %v513_v0  ;;  %v553_v14 = vadd.f32 %v4802_v18, %v514_v1  ;;  %v538_v15 = vadd.f32 %v4802_v18, %v499_v3  ;;  %v568_v16 = vmax.f32 %v536_v4, 0.0  ;;  %v4029_v3 = vld [vmem:[%s4782_s10 + $0x68] sm:$0xff]   ;;  %v4030_v4 = vld [vmem:[%s4782_s10 + $0x70] sm:$0xff]  }
  0x21   : > { %390 = vst.msk [vmem:[#allocation2 + $0x140] sm:$0xff] %vm349_vm1, %v6005_v2  ;;  %391 = vst.msk [vmem:[#allocation2 + $0x148] sm:$0xff] %vm349_vm1, %v6005_v2  ;;  %v569_v17 = vmax.f32 %v537_v6, 0.0  ;;  %v582_v19 = vmax.f32 %v550_v7, 0.0  ;;  %v539_v20 = vadd.f32 %v4802_v18, %v500_v8  ;;  %v583_v27 = vmax.f32 %v551_v12, 0.0 }
  0x22   : > { %392 = vst.msk [vmem:[#allocation2 + $0x150] sm:$0xff] %vm349_vm1, %v6005_v2  ;;  %393 = vst.msk [vmem:[#allocation2 + $0x158] sm:$0xff] %vm349_vm1, %v6005_v2  ;;  %v584_v28 = vmax.f32 %v552_v13, 0.0  ;;  %v585_v29 = vmax.f32 %v553_v14, 0.0  ;;  %v570_v35 = vmax.f32 %v538_v15, 0.0  ;;  %v502_v45 = vmul.f32 %v3972_v37, %v4787_v5 }
  0x23   : > { %394 = vst.msk [vmem:[#allocation2 + $0x160] sm:$0xff] %vm349_vm1, %v6005_v2  ;;  %395 = vst.msk [vmem:[#allocation2 + $0x168] sm:$0xff] %vm349_vm1, %v6005_v2  ;;  %v571_v36 = vmax.f32 %v539_v20, 0.0  ;;  %v4000_v46 = vunpack.c.h.bf16 %v4027_v21  ;;  %v3975_v52 = vunpack.c.l.bf16 %v4021_v23  ;;  %v3976_v56 = vunpack.c.h.bf16 %v4021_v23 }
  0x24   : > { %396 = vst.msk [vmem:[#allocation2 + $0x170] sm:$0xff] %vm349_vm1, %v6005_v2  ;;  %397 = vst.msk [vmem:[#allocation2 + $0x178] sm:$0xff] %vm349_vm1, %v6005_v2  ;;  %v3979_v13 = vunpack.c.l.bf16 %v4022_v57 }
  0x25   : > { %398 = vst.msk [vmem:[#allocation2 + $0x180] sm:$0xff] %vm349_vm1, %v6005_v2  ;;  %399 = vst.msk [vmem:[#allocation2 + $0x188] sm:$0xff] %vm349_vm1, %v6005_v2  ;;  %v516_v54 = vmul.f32 %v4000_v46, %v4787_v5  ;;  %v503_v61 = vmul.f32 %v3975_v52, %v4787_v5  ;;  %v504_v1 = vmul.f32 %v3976_v56, %v4787_v5 }
  0x26   : > { %400 = vst.msk [vmem:[#allocation2 + $0x190] sm:$0xff] %vm349_vm1, %v6005_v2  ;;  %401 = vst.msk [vmem:[#allocation2 + $0x198] sm:$0xff] %vm349_vm1, %v6005_v2 }
  0x27   : > { %402 = vst.msk [vmem:[#allocation2 + $0x1a0] sm:$0xff] %vm349_vm1, %v6005_v2  ;;  %403 = vst.msk [vmem:[#allocation2 + $0x1a8] sm:$0xff] %vm349_vm1, %v6005_v2  ;;  %v555_v63 = vadd.f32 %v4802_v18, %v516_v54  ;;  %v542_v12 = vadd.f32 %v4802_v18, %v503_v61 }
  0x28   : > { %404 = vst.msk [vmem:[#allocation2 + $0x1b0] sm:$0xff] %vm349_vm1, %v6005_v2  ;;  %405 = vst.msk [vmem:[#allocation2 + $0x1b8] sm:$0xff] %vm349_vm1, %v6005_v2 }
  0x29   : > { %406 = vst.msk [vmem:[#allocation2 + $0x1c0] sm:$0xff] %vm349_vm1, %v6005_v2  ;;  %407 = vst.msk [vmem:[#allocation2 + $0x1c8] sm:$0xff] %vm349_vm1, %v6005_v2 }
  0x2a   : > { %408 = vst.msk [vmem:[#allocation2 + $0x1d0] sm:$0xff] %vm349_vm1, %v6005_v2  ;;  %409 = vst.msk [vmem:[#allocation2 + $0x1d8] sm:$0xff] %vm349_vm1, %v6005_v2 }
  0x2b   : > { %410 = vst.msk [vmem:[#allocation2 + $0x1e0] sm:$0xff] %vm349_vm1, %v6005_v2  ;;  %411 = vst.msk [vmem:[#allocation2 + $0x1e8] sm:$0xff] %vm349_vm1, %v6005_v2 }
  0x2c   : > { %412 = vst.msk [vmem:[#allocation2 + $0x1f0] sm:$0xff] %vm349_vm1, %v6005_v2  ;;  %413 = vst.msk [vmem:[#allocation2 + $0x1f8] sm:$0xff] %vm349_vm1, %v6005_v2 }
  0x2d   : > { %414 = vst.msk [vmem:[#allocation2 + $0x200] sm:$0xff] %vm349_vm1, %v6005_v2  ;;  %415 = vst.msk [vmem:[#allocation2 + $0x208] sm:$0xff] %vm349_vm1, %v6005_v2 }
  0x2e   : > { %416 = vst.msk [vmem:[#allocation2 + $0x210] sm:$0xff] %vm349_vm1, %v6005_v2  ;;  %417 = vst.msk [vmem:[#allocation2 + $0x218] sm:$0xff] %vm349_vm1, %v6005_v2 }
  0x2f   : > { %418 = vst.msk [vmem:[#allocation2 + $0x220] sm:$0xff] %vm349_vm1, %v6005_v2  ;;  %419 = vst.msk [vmem:[#allocation2 + $0x228] sm:$0xff] %vm349_vm1, %v6005_v2 }
  0x30   : > { %420 = vst.msk [vmem:[#allocation2 + $0x230] sm:$0xff] %vm349_vm1, %v6005_v2  ;;  %421 = vst.msk [vmem:[#allocation2 + $0x238] sm:$0xff] %vm349_vm1, %v6005_v2 }
  0x31   : > { %597 = vst.msk [vmem:[#allocation2 + $0x28] sm:$0xff] %vm349_vm1, %v564_v41  ;;  %598 = vst.msk [vmem:[#allocation2 + $0x30] sm:$0xff] %vm349_vm1, %v565_v42  ;;  %v501_v42 = vmul.f32 %v3971_v30, %v4787_v5  ;;  %v3980_v30 = vunpack.c.h.bf16 %v4022_v57 }
  0x32   : > { %611 = vst.msk [vmem:[#allocation2 + $0x108] sm:$0xff] %vm349_vm1, %v578_v43  ;;  %612 = vst.msk [vmem:[#allocation2 + $0x110] sm:$0xff] %vm349_vm1, %v579_v47  ;;  %v3999_v43 = vunpack.c.l.bf16 %v4027_v21  ;;  %v4003_v47 = vunpack.c.l.bf16 %v4028_v22  ;;  %v543_v21 = vadd.f32 %v4802_v18, %v504_v1 }
  0x33   : > { %613 = vst.msk [vmem:[#allocation2 + $0x128] sm:$0xff] %vm349_vm1, %v580_v48  ;;  %614 = vst.msk [vmem:[#allocation2 + $0x130] sm:$0xff] %vm349_vm1, %v581_v49  ;;  %v4876_v48 = vld [vmem:[%s5999_s1 + $0x8] sm:$0x3]  ;;  %v540_v49 = vadd.f32 %v4802_v18, %v501_v42  ;;  %v506_v37 = vmul.f32 %v3980_v30, %v4787_v5 }
  0x34   : > { %599 = vst.msk [vmem:[#allocation2 + $0x48] sm:$0xff] %vm349_vm1, %v566_v50  ;;  %600 = vst.msk [vmem:[#allocation2 + $0x50] sm:$0xff] %vm349_vm1, %v567_v51  ;;  %v515_v50 = vmul.f32 %v3999_v43, %v4787_v5  ;;  %v4004_v51 = vunpack.c.h.bf16 %v4028_v22  ;;  %v517_v55 = vmul.f32 %v4003_v47, %v4787_v5 }
  0x35   : > { %601 = vst.msk [vmem:[#allocation2 + $0x68] sm:$0xff] %vm349_vm1, %v568_v16  ;;  %602 = vst.msk [vmem:[#allocation2 + $0x70] sm:$0xff] %vm349_vm1, %v569_v17  ;;  %v572_v58 = vmax.f32 %v540_v49, 0.0  ;;  %v545_v47 = vadd.f32 %v4802_v18, %v506_v37 }
  0x36   : > { %615 = vst.msk [vmem:[#allocation2 + $0x148] sm:$0xff] %vm349_vm1, %v582_v19  ;;  %616 = vst.msk [vmem:[#allocation2 + $0x150] sm:$0xff] %vm349_vm1, %v583_v27  ;;  %v554_v59 = vadd.f32 %v4802_v18, %v515_v50  ;;  %v518_v60 = vmul.f32 %v4004_v51, %v4787_v5  ;;  %v556_v0 = vadd.f32 %v4802_v18, %v517_v55  ;;  %v587_v19 = vmax.f32 %v555_v63, 0.0 }
  0x37   : > { %617 = vst.msk [vmem:[#allocation2 + $0x168] sm:$0xff] %vm349_vm1, %v584_v28  ;;  %618 = vst.msk [vmem:[#allocation2 + $0x170] sm:$0xff] %vm349_vm1, %v585_v29  ;;  %v574_v27 = vmax.f32 %v542_v12, 0.0  ;;  %v575_v29 = vmax.f32 %v543_v21, 0.0  ;;  %v577_v57 = vmax.f32 %v545_v47, 0.0  ;;  %v629_v12 = vld [vmem:[#allocation2 + $0x7] sm:$0xff] }
  0x38   : > { %v680_v24 = vld [vmem:[#allocation2 + $0x28] sm:$0xff]  ;;  %v681_v25 = vld [vmem:[#allocation2 + $0x30] sm:$0xff]  ;;  %603 = vst.msk [vmem:[#allocation2 + $0x88] sm:$0xff] %vm349_vm1, %v570_v35  ;;  %604 = vst.msk [vmem:[#allocation2 + $0x90] sm:$0xff] %vm349_vm1, %v571_v36  ;;  %v586_v8 = vmax.f32 %v554_v59, 0.0  ;;  %v557_v11 = vadd.f32 %v4802_v18, %v518_v60  ;;  %v588_v20 = vmax.f32 %v556_v0, 0.0  ;;  %v4011_v35 = vunpack.c.l.bf16 %v4030_v4 }
  0x39   : > { %v694_v26 = vld [vmem:[#allocation2 + $0x108] sm:$0xff]  ;;  %v4853_v31 = vpack.c.bf16 %v681_v25, %v680_v24  ;;  %v695_v32 = vld [vmem:[#allocation2 + $0x110] sm:$0xff]  ;;  %605 = vst.msk [vmem:[#allocation2 + $0xa8] sm:$0xff] %vm349_vm1, %v572_v58  ;;  %620 = vst.msk [vmem:[#allocation2 + $0x190] sm:$0xff] %vm349_vm1, %v587_v19  ;;  %v4012_v36 = vunpack.c.h.bf16 %v4030_v4 }
  0x3a   : > { %v696_v33 = vld [vmem:[#allocation2 + $0x128] sm:$0xff]  ;;  %v697_v34 = vld [vmem:[#allocation2 + $0x130] sm:$0xff]  ;;  %v4858_v38 = vpack.c.bf16 %v695_v32, %v694_v26  ;;  %619 = vst.msk [vmem:[#allocation2 + $0x188] sm:$0xff] %vm349_vm1, %v586_v8  ;;  %v589_v26 = vmax.f32 %v557_v11, 0.0  ;;  %621 = vst.msk [vmem:[#allocation2 + $0x1a8] sm:$0xff] %vm349_vm1, %v588_v20  ;;  %v505_v32 = vmul.f32 %v3979_v13, %v4787_v5  ;;  %v521_v43 = vmul.f32 %v4011_v35, %v4787_v5 }
  0x3b   : > { %v4860_v39 = vpack.c.bf16 %v697_v34, %v696_v33  ;;  %v682_v40 = vld [vmem:[#allocation2 + $0x48] sm:$0xff]  ;;  %v683_v41 = vld [vmem:[#allocation2 + $0x50] sm:$0xff]  ;;  %4188 = vmatmul.mubr.msk.bf16.vlgmr.msra.gmra.mxu0 %vm349_vm1, %v4853_v31  ;;  %607 = vst.msk [vmem:[#allocation2 + $0xc8] sm:$0xff] %vm349_vm1, %v574_v27  ;;  %v4007_v33 = vunpack.c.l.bf16 %v4029_v3  ;;  %v4008_v34 = vunpack.c.h.bf16 %v4029_v3  ;;  %608 = vst.msk [vmem:[#allocation2 + $0xd0] sm:$0xff] %vm349_vm1, %v575_v29 }
  0x3c   : > { %v4868_v44 = vpack.c.bf16 %v683_v41, %v682_v40  ;;  %4203 = vmatprep.mubr.msk.bf16.mxu1 %vm349_vm1, %v4858_v38  ;;  %4254 = vmatpush3.bf16.msra.mxu0 %v4796_v10  ;;  %v541_v10 = vadd.f32 %v4802_v18, %v502_v45  ;;  %v685_v6 = vld [vmem:[#allocation2 + $0x70] sm:$0xff]  ;;  %622 = vst.msk [vmem:[#allocation2 + $0x1b0] sm:$0xff] %vm349_vm1, %v589_v26  ;;  %610 = vst.msk [vmem:[#allocation2 + $0xf0] sm:$0xff] %vm349_vm1, %v577_v57  ;;  %v633_v47 = vld [vmem:[#allocation2 + $0x47] sm:$0xff] }
  0x3d   : > { %4204 = vmatmul.mubr.msk.bf16.vlgmr.msra.gmra.mxu1 %vm349_vm1, %v4860_v39  ;;  %4498 = vmatprep.subr.msk.bf16.mxu0 %vm776_vm0, %v4876_v48  ;;  %v698_v7 = vld [vmem:[#allocation2 + $0x148] sm:$0xff]  ;;  %v699_v15 = vld [vmem:[#allocation2 + $0x150] sm:$0xff]  ;;  %v544_v40 = vadd.f32 %v4802_v18, %v505_v32  ;;  %v519_v41 = vmul.f32 %v4007_v33, %v4787_v5  ;;  %v520_v42 = vmul.f32 %v4008_v34, %v4787_v5 }
  0x3e   : > { %4191 = vmatprep.mubr.msk.bf16.mxu0 %vm349_vm1, %v4868_v44  ;;  %4220 = vmatpush3.bf16.msra.mxu1 %v4793_v9  ;;  %v573_v62 = vmax.f32 %v541_v10, 0.0  ;;  %v684_v9 = vld [vmem:[#allocation2 + $0x68] sm:$0xff]  ;;  %v701_v17 = vld [vmem:[#allocation2 + $0x170] sm:$0xff]  ;;  %v4916_v22 = vpack.c.bf16 %v699_v15, %v698_v7  ;;  %v522_v45 = vmul.f32 %v4012_v36, %v4787_v5  ;;  %v560_v10 = vadd.f32 %v4802_v18, %v521_v43  ;;  %v4031_v15 = vld [vmem:[%s4782_s10 + $0x78] sm:$0xff]   ;;  %s5590_s10 = scalar_lea.vmem %s6003_s5, %s6081_s21 }
  0x3f   : > { %4497 = vmatprep.subr.msk.bf16.mxu1 %vm776_vm0, %v4886_v53  ;;  %v4912_v14 = vpack.c.bf16 %v685_v6, %v684_v9  ;;  %v700_v16 = vld [vmem:[#allocation2 + $0x168] sm:$0xff]  ;;  %v687_v25 = vld [vmem:[#allocation2 + $0x90] sm:$0xff]  ;;  %v576_v49 = vmax.f32 %v544_v40, 0.0  ;;  %v558_v51 = vadd.f32 %v4802_v18, %v519_v41  ;;  %v559_v52 = vadd.f32 %v4802_v18, %v520_v42 }
  0x40   : > { %606 = vst.msk [vmem:[#allocation2 + $0xb0] sm:$0xff] %vm349_vm1, %v573_v62  ;;  %v4918_v23 = vpack.c.bf16 %v701_v17, %v700_v16  ;;  %v686_v24 = vld [vmem:[#allocation2 + $0x88] sm:$0xff]  ;;  %4207 = vmatprep.mubr.msk.bf16.mxu1 %vm349_vm1, %v4916_v22  ;;  %v561_v54 = vadd.f32 %v4802_v18, %v522_v45  ;;  %v703_v58 = vld [vmem:[#allocation2 + $0x190] sm:$0xff]  ;;  %v592_v62 = vmax.f32 %v560_v10, 0.0  ;;  %v4015_v19 = vunpack.c.l.bf16 %v4031_v15 }
  0x41   : > { %v4923_v28 = vpack.c.bf16 %v687_v25, %v686_v24  ;;  %v688_v46 = vld [vmem:[#allocation2 + $0xa8] sm:$0xff]  ;;  %609 = vst.msk [vmem:[#allocation2 + $0xe8] sm:$0xff] %vm349_vm1, %v576_v49  ;;  %v590_v60 = vmax.f32 %v558_v51, 0.0  ;;  %v591_v61 = vmax.f32 %v559_v52, 0.0  ;;  %v1154_v8 = vld [vmem:[#allocation2 + $0x11] sm:$0xff]  ;;  %v4016_v20 = vunpack.c.h.bf16 %v4031_v15 }
  0x42   : > { %v702_v56 = vld [vmem:[#allocation2 + $0x188] sm:$0xff]  ;;  %v593_v63 = vmax.f32 %v561_v54, 0.0  ;;  %v691_v9 = vld [vmem:[#allocation2 + $0xd0] sm:$0xff]  ;;  %625 = vst.msk [vmem:[#allocation2 + $0x1e8] sm:$0xff] %vm349_vm1, %v592_v62  ;;  %v523_v32 = vmul.f32 %v4015_v19, %v4787_v5  ;;  %v1840_v10 = vsel %vm776_vm0, %v4876_v48, 0 }
  0x43   : > { %4192 = vmatmul.mubr.msk.bf16.gmra.mxu0 %vm349_vm1, %v4912_v14  ;;  %v704_v59 = vld [vmem:[#allocation2 + $0x1a8] sm:$0xff]  ;;  %v4953_v0 = vpack.c.bf16 %v703_v58, %v702_v56  ;;  %v705_v1 = vld [vmem:[#allocation2 + $0x1b0] sm:$0xff]  ;;  %623 = vst.msk [vmem:[#allocation2 + $0x1c8] sm:$0xff] %vm349_vm1, %v590_v60  ;;  %624 = vst.msk [vmem:[#allocation2 + $0x1d0] sm:$0xff] %vm349_vm1, %v591_v61  ;;  %v524_v33 = vmul.f32 %v4016_v20, %v4787_v5  ;;  %v1546_v56 = vsel %vm776_vm0, %v4886_v53, 0 }
  0x44   : > { %4195 = vmatprep.mubr.msk.bf16.mxu0 %vm349_vm1, %v4923_v28  ;;  %v690_v3 = vld [vmem:[#allocation2 + $0xc8] sm:$0xff]  ;;  %v4956_v4 = vpack.c.bf16 %v705_v1, %v704_v59  ;;  %626 = vst.msk [vmem:[#allocation2 + $0x1f0] sm:$0xff] %vm349_vm1, %v593_v63  ;;  %v693_v16 = vld [vmem:[#allocation2 + $0xf0] sm:$0xff]  ;;  %v562_v37 = vadd.f32 %v4802_v18, %v523_v32 }
  0x45   : > { %4208 = vmatmul.mubr.msk.bf16.gmra.mxu1 %vm349_vm1, %v4918_v23  ;;  %v4964_v6 = vpack.c.bf16 %v691_v9, %v690_v3  ;;  %v1153_v7 = vld [vmem:[#allocation2 + $0x9] sm:$0xff]  ;;  %v1156_v36 = vld [vmem:[#allocation2 + $0x31] sm:$0xff]  ;;  %v563_v5 = vadd.f32 %v4802_v18, %v524_v33 }
  0x46   : > { %4211 = vmatprep.mubr.msk.bf16.mxu1 %vm349_vm1, %v4953_v0  ;;  %v630_v13 = vld [vmem:[#allocation2 + $0xf] sm:$0xff]  ;;  %v1185_v17 = vpack.c.bf16 %v1154_v8, %v1153_v7  ;;  %v631_v42 = vld [vmem:[#allocation2 + $0x27] sm:$0xff]  ;;  %v594_v45 = vmax.f32 %v562_v37, 0.0 }
  0x47   : > { %v689_v50 = vld [vmem:[#allocation2 + $0xb0] sm:$0xff]  ;;  %v661_v30 = vpack.c.bf16 %v630_v13, %v629_v12  ;;  %v5004_v54 = vld [vmem:[%s5999_s1 + $0xc] sm:$0x3]  ;;  %v5015_v58 = vld [vmem:[%s5999_s1 + $0xa] sm:$0x3] }
  0x48   : > { %v4948_v55 = vpack.c.bf16 %v689_v50, %v688_v46  ;;  %v692_v11 = vld [vmem:[#allocation2 + $0xe8] sm:$0xff]  ;;  %v1158_v41 = vld [vmem:[#allocation2 + $0x51] sm:$0xff]  ;;  %v595_v50 = vmax.f32 %v563_v5, 0.0  ;;  %627 = vst.msk [vmem:[#allocation2 + $0x208] sm:$0xff] %vm349_vm1, %v594_v45 }
  0x49   : > { %v4971_v21 = vpack.c.bf16 %v693_v16, %v692_v11  ;;  %v708_v26 = vld [vmem:[#allocation2 + $0x1e8] sm:$0xff]  ;;  %v1160_v57 = vld [vmem:[#allocation2 + $0x71] sm:$0xff] }
  0x4a   : > { %v706_v24 = vld [vmem:[#allocation2 + $0x1c8] sm:$0xff]  ;;  %v707_v25 = vld [vmem:[#allocation2 + $0x1d0] sm:$0xff]  ;;  %628 = vst.msk [vmem:[#allocation2 + $0x210] sm:$0xff] %vm349_vm1, %v595_v50 }
  0x4b   : > { %4196 = vmatmul.mubr.msk.bf16.gmra.mxu0 %vm349_vm1, %v4948_v55  ;;  %v4973_v27 = vpack.c.bf16 %v707_v25, %v706_v24  ;;  %v709_v29 = vld [vmem:[#allocation2 + $0x1f0] sm:$0xff]  ;;  %v635_v53 = vld [vmem:[#allocation2 + $0x67] sm:$0xff] }
  0x4c   : > { %4199 = vmatprep.mubr.msk.bf16.mxu0 %vm349_vm1, %v4964_v6  ;;  %v4979_v34 = vpack.c.bf16 %v709_v29, %v708_v26  ;;  %v1155_v35 = vld [vmem:[#allocation2 + $0x29] sm:$0xff]  ;;  %v1162_v60 = vld [vmem:[#allocation2 + $0x91] sm:$0xff] }
  0x4d   : > { %4212 = vmatmul.mubr.msk.bf16.gmra.mxu1 %vm349_vm1, %v4956_v4  ;;  %v1157_v40 = vld [vmem:[#allocation2 + $0x49] sm:$0xff]  ;;  %v4989_v46 = vpack.c.bf16 %v1156_v36, %v1155_v35  ;;  %v1164_v11 = vld [vmem:[#allocation2 + $0xb1] sm:$0xff] }
  0x4e   : > { %4215 = vmatprep.mubr.msk.bf16.mxu1 %vm349_vm1, %v4973_v27  ;;  %v632_v43 = vld [vmem:[#allocation2 + $0x2f] sm:$0xff]  ;;  %v4991_v51 = vpack.c.bf16 %v1158_v41, %v1157_v40  ;;  %v637_v63 = vld [vmem:[#allocation2 + $0x87] sm:$0xff] }
  0x4f   : > { %v634_v49 = vld [vmem:[#allocation2 + $0x4f] sm:$0xff]  ;;  %v4994_v52 = vpack.c.bf16 %v632_v43, %v631_v42  ;;  %v639_v15 = vld [vmem:[#allocation2 + $0xa7] sm:$0xff] }
  0x50   : > { %v4999_v18 = vpack.c.bf16 %v634_v49, %v633_v47  ;;  %v1159_v48 = vld [vmem:[#allocation2 + $0x69] sm:$0xff]  ;;  %v1166_v13 = vld [vmem:[#allocation2 + $0xd1] sm:$0xff] }
  0x51   : > { %v1161_v59 = vld [vmem:[#allocation2 + $0x89] sm:$0xff]  ;;  %v5023_v62 = vpack.c.bf16 %v1160_v57, %v1159_v48  ;;  %v1170_v33 = vld [vmem:[#allocation2 + $0x111] sm:$0xff] }
  0x52   : > { %v636_v61 = vld [vmem:[#allocation2 + $0x6f] sm:$0xff]  ;;  %v5027_v3 = vpack.c.bf16 %v1162_v60, %v1161_v59  ;;  %v641_v19 = vld [vmem:[#allocation2 + $0xc7] sm:$0xff] }
  0x53   : > { %4200 = vmatmul.mubr.msk.bf16.gmra.mxu0 %vm349_vm1, %v4971_v21  ;;  %v638_v1 = vld [vmem:[#allocation2 + $0x8f] sm:$0xff]  ;;  %v5029_v9 = vpack.c.bf16 %v636_v61, %v635_v53  ;;  %v643_v35 = vld [vmem:[#allocation2 + $0xe7] sm:$0xff] }
  0x54   : > { %4255 = vmatprep.mubr.msk.bf16.mxu0 %vm349_vm1, %v1185_v17  ;;  %v5031_v7 = vpack.c.bf16 %v638_v1, %v637_v63  ;;  %v1163_v8 = vld [vmem:[#allocation2 + $0xa9] sm:$0xff]  ;;  %v1172_v47 = vld [vmem:[#allocation2 + $0x131] sm:$0xff] }
  0x55   : > { %4216 = vmatmul.mubr.msk.bf16.gmra.mxu1 %vm349_vm1, %v4979_v34  ;;  %v1165_v12 = vld [vmem:[#allocation2 + $0xc9] sm:$0xff]  ;;  %v5041_v17 = vpack.c.bf16 %v1164_v11, %v1163_v8  ;;  %v1174_v50 = vld [vmem:[#allocation2 + $0x151] sm:$0xff] }
  0x56   : > { %4221 = vmatprep.mubr.msk.bf16.mxu1 %vm349_vm1, %v661_v30  ;;  %v640_v16 = vld [vmem:[#allocation2 + $0xaf] sm:$0xff]  ;;  %v5043_v24 = vpack.c.bf16 %v1166_v13, %v1165_v12  ;;  %v645_v40 = vld [vmem:[#allocation2 + $0x107] sm:$0xff] }
  0x57   : > { %v642_v20 = vld [vmem:[#allocation2 + $0xcf] sm:$0xff]  ;;  %v5045_v25 = vpack.c.bf16 %v640_v16, %v639_v15  ;;  %v649_v57 = vld [vmem:[#allocation2 + $0x147] sm:$0xff] }
  0x58   : > { %v5047_v26 = vpack.c.bf16 %v642_v20, %v641_v19  ;;  %v1167_v29 = vld [vmem:[#allocation2 + $0xe9] sm:$0xff]  ;;  %v1168_v30 = vld [vmem:[#allocation2 + $0xf1] sm:$0xff] }
  0x59   : > { %v1169_v32 = vld [vmem:[#allocation2 + $0x109] sm:$0xff]  ;;  %v5057_v37 = vpack.c.bf16 %v1168_v30, %v1167_v29  ;;  %v1176_v1 = vld [vmem:[#allocation2 + $0x171] sm:$0xff] }
  0x5a   : > { %v644_v36 = vld [vmem:[#allocation2 + $0xef] sm:$0xff]  ;;  %v5059_v5 = vpack.c.bf16 %v1170_v33, %v1169_v32  ;;  %v651_v12 = vld [vmem:[#allocation2 + $0x167] sm:$0xff] }
  0x5b   : > { %4256 = vmatmul.mubr.msk.bf16.vlgmr.msra.gmra.mxu0 %vm349_vm1, %v4989_v46  ;;  %v646_v41 = vld [vmem:[#allocation2 + $0x10f] sm:$0xff]  ;;  %v5061_v42 = vpack.c.bf16 %v644_v36, %v643_v35  ;;  %v653_v16 = vld [vmem:[#allocation2 + $0x187] sm:$0xff] }
  0x5c   : > { %4322 = vmatpush3.bf16.msra.mxu0 %v1840_v10  ;;  %4259 = vmatprep.mubr.msk.bf16.mxu0 %vm349_vm1, %v4991_v51  ;;  %v5063_v43 = vpack.c.bf16 %v646_v41, %v645_v40  ;;  %v1171_v45 = vld [vmem:[#allocation2 + $0x129] sm:$0xff]  ;;  %v1178_v11 = vld [vmem:[#allocation2 + $0x191] sm:$0xff] }
  0x5d   : > { %4222 = vmatmul.mubr.msk.bf16.vlgmr.msra.gmra.mxu1 %vm349_vm1, %v4994_v52  ;;  %4500 = vmatprep.subr.msk.bf16.mxu0 %vm776_vm0, %v5004_v54  ;;  %v1173_v49 = vld [vmem:[#allocation2 + $0x149] sm:$0xff]  ;;  %v5073_v48 = vpack.c.bf16 %v1172_v47, %v1171_v45  ;;  %v1180_v33 = vld [vmem:[#allocation2 + $0x1b1] sm:$0xff] }
  0x5e   : > { %4288 = vmatpush3.bf16.msra.mxu1 %v1546_v56  ;;  %4225 = vmatprep.mubr.msk.bf16.mxu1 %vm349_vm1, %v4999_v18  ;;  %v647_v10 = vld [vmem:[#allocation2 + $0x127] sm:$0xff]  ;;  %v648_v56 = vld [vmem:[#allocation2 + $0x12f] sm:$0xff]  ;;  %v5075_v60 = vpack.c.bf16 %v1174_v50, %v1173_v49 }
  0x5f   : > { %4499 = vmatprep.subr.msk.bf16.mxu1 %vm776_vm0, %v5015_v58  ;;  %v650_v59 = vld [vmem:[#allocation2 + $0x14f] sm:$0xff]  ;;  %v5077_v53 = vpack.c.bf16 %v648_v56, %v647_v10  ;;  %v655_v40 = vld [vmem:[#allocation2 + $0x1a7] sm:$0xff] }
  0x60   : > { %v5079_v61 = vpack.c.bf16 %v650_v59, %v649_v57  ;;  %v1175_v63 = vld [vmem:[#allocation2 + $0x169] sm:$0xff]  ;;  %v1182_v36 = vld [vmem:[#allocation2 + $0x1d1] sm:$0xff] }
  0x61   : > { %v1177_v8 = vld [vmem:[#allocation2 + $0x189] sm:$0xff]  ;;  %v5089_v15 = vpack.c.bf16 %v1176_v1, %v1175_v63  ;;  %v1184_v59 = vld [vmem:[#allocation2 + $0x1f1] sm:$0xff] }
  0x62   : > { %v652_v13 = vld [vmem:[#allocation2 + $0x16f] sm:$0xff]  ;;  %v5091_v20 = vpack.c.bf16 %v1178_v11, %v1177_v8  ;;  %v657_v47 = vld [vmem:[#allocation2 + $0x1c7] sm:$0xff] }
  0x63   : > { %4260 = vmatmul.mubr.msk.bf16.gmra.mxu0 %vm349_vm1, %v5023_v62  ;;  %v654_v19 = vld [vmem:[#allocation2 + $0x18f] sm:$0xff]  ;;  %v5093_v29 = vpack.c.bf16 %v652_v13, %v651_v12  ;;  %v659_v63 = vld [vmem:[#allocation2 + $0x1e7] sm:$0xff]  ;;  %v2429_v12 = vsel %vm776_vm0, %v5004_v54, 0 }
  0x64   : > { %4263 = vmatprep.mubr.msk.bf16.mxu0 %vm349_vm1, %v5027_v3  ;;  %v5095_v30 = vpack.c.bf16 %v654_v19, %v653_v16  ;;  %v1179_v32 = vld [vmem:[#allocation2 + $0x1a9] sm:$0xff]  ;;  %v2134_v16 = vsel %vm776_vm0, %v5015_v58, 0 }
  0x65   : > { %4226 = vmatmul.mubr.msk.bf16.gmra.mxu1 %vm349_vm1, %v5029_v9  ;;  %v1181_v35 = vld [vmem:[#allocation2 + $0x1c9] sm:$0xff]  ;;  %v5105_v45 = vpack.c.bf16 %v1180_v33, %v1179_v32 }
  0x66   : > { %4229 = vmatprep.mubr.msk.bf16.mxu1 %vm349_vm1, %v5031_v7  ;;  %v656_v41 = vld [vmem:[#allocation2 + $0x1af] sm:$0xff]  ;;  %v5107_v50 = vpack.c.bf16 %v1182_v36, %v1181_v35  ;;  %v2360_v19 = vld [vmem:[#allocation2 + $0x227] sm:$0xff] }
  0x67   : > { %v658_v49 = vld [vmem:[#allocation2 + $0x1cf] sm:$0xff]  ;;  %v5109_v10 = vpack.c.bf16 %v656_v41, %v655_v40 }
  0x68   : > { %v5111_v56 = vpack.c.bf16 %v658_v49, %v657_v47  ;;  %v1183_v57 = vld [vmem:[#allocation2 + $0x1e9] sm:$0xff]  ;;  %v2066_v35 = vld [vmem:[#allocation2 + $0x211] sm:$0xff] }
  0x69   : > { %v660_v1 = vld [vmem:[#allocation2 + $0x1ef] sm:$0xff]  ;;  %v5121_v8 = vpack.c.bf16 %v1184_v59, %v1183_v57 }
  0x6a   : > { %v5123_v11 = vpack.c.bf16 %v660_v1, %v659_v63  ;;  %v3868_v13 = vld [vmem:[%s5999_s1 + $0x10] sm:$0x3]  ;;  %v2624_v41 = vld [vmem:[#allocation2 + $0x48] sm:$0xff] }
  0x6b   : > { %4264 = vmatmul.mubr.msk.bf16.gmra.mxu0 %vm349_vm1, %v5041_v17  ;;  %v2065_v33 = vld [vmem:[#allocation2 + $0x209] sm:$0xff] }
  0x6c   : > { %4267 = vmatprep.mubr.msk.bf16.mxu0 %vm349_vm1, %v5043_v24  ;;  %v2625_v47 = vld [vmem:[#allocation2 + $0x50] sm:$0xff] }
  0x6d   : > { %4230 = vmatmul.mubr.msk.bf16.gmra.mxu1 %vm349_vm1, %v5045_v25  ;;  %v2656_v57 = vpack.c.bf16 %v2625_v47, %v2624_v41  ;;  %v2632_v47 = vld [vmem:[#allocation2 + $0xc8] sm:$0xff] }
  0x6e   : > { %4233 = vmatprep.mubr.msk.bf16.mxu1 %vm349_vm1, %v5047_v26 }
  0x73   : > { %4268 = vmatmul.mubr.msk.bf16.gmra.mxu0 %vm349_vm1, %v5057_v37 }
  0x74   : > { %4271 = vmatprep.mubr.msk.bf16.mxu0 %vm349_vm1, %v5059_v5 }
  0x75   : > { %4234 = vmatmul.mubr.msk.bf16.gmra.mxu1 %vm349_vm1, %v5061_v42 }
  0x76   : > { %4237 = vmatprep.mubr.msk.bf16.mxu1 %vm349_vm1, %v5063_v43 }
  0x7b   : > { %4272 = vmatmul.mubr.msk.bf16.gmra.mxu0 %vm349_vm1, %v5073_v48 }
  0x7c   : > { %4275 = vmatprep.mubr.msk.bf16.mxu0 %vm349_vm1, %v5075_v60 }
  0x7d   : > { %4238 = vmatmul.mubr.msk.bf16.gmra.mxu1 %vm349_vm1, %v5077_v53 }
  0x7e   : > { %4241 = vmatprep.mubr.msk.bf16.mxu1 %vm349_vm1, %v5079_v61 }
  0x83   : > { %4276 = vmatmul.mubr.msk.bf16.gmra.mxu0 %vm349_vm1, %v5089_v15 }
  0x84   : > { %4279 = vmatprep.mubr.msk.bf16.mxu0 %vm349_vm1, %v5091_v20 }
  0x85   : > { %4242 = vmatmul.mubr.msk.bf16.gmra.mxu1 %vm349_vm1, %v5093_v29 }
  0x86   : > { %4245 = vmatprep.mubr.msk.bf16.mxu1 %vm349_vm1, %v5095_v30 }
  0x8b   : > { %4280 = vmatmul.mubr.msk.bf16.gmra.mxu0 %vm349_vm1, %v5105_v45 }
  0x8c   : > { %4283 = vmatprep.mubr.msk.bf16.mxu0 %vm349_vm1, %v5107_v50 }
  0x8d   : > { %4246 = vmatmul.mubr.msk.bf16.gmra.mxu1 %vm349_vm1, %v5109_v10 }
  0x8e   : > { %4249 = vmatprep.mubr.msk.bf16.mxu1 %vm349_vm1, %v5111_v56 }
  0x93   : > { %4284 = vmatmul.mubr.msk.bf16.gmra.mxu0 %vm349_vm1, %v5121_v8 }
  0x94   : > { %4323 = vmatprep.mubr.msk.bf16.mxu0 %vm349_vm1, %v4853_v31  ;;  %v3851_v31 = vld [vmem:[%s5999_s1 + $0xe] sm:$0x3] }
  0x95   : > { %4250 = vmatmul.mubr.msk.bf16.gmra.mxu1 %vm349_vm1, %v5123_v11 }
  0x96   : > { %4289 = vmatprep.mubr.msk.bf16.mxu1 %vm349_vm1, %v4994_v52 }
  0x9b   : > { %4324 = vmatmul.mubr.msk.bf16.vlgmr.msra.gmra.mxu0 %vm349_vm1, %v4868_v44  ;;  %v1477_v44 = vld [vmem:[#allocation2 + $0x207] sm:$0xff] }
  0x9c   : > { %4390 = vmatpush3.bf16.msra.mxu0 %v2429_v12  ;;  %4327 = vmatprep.mubr.msk.bf16.mxu0 %vm349_vm1, %v4912_v14  ;;  %v1478_v14 = vld [vmem:[#allocation2 + $0x20f] sm:$0xff] }
  0x9d   : > { %4290 = vmatmul.mubr.msk.bf16.vlgmr.msra.gmra.mxu1 %vm349_vm1, %v4999_v18  ;;  %4502 = vmatprep.subr.msk.bf16.mxu0 %vm776_vm0, %v3868_v13  ;;  %v2627_v12 = vld [vmem:[#allocation2 + $0x70] sm:$0xff] }
  0x9e   : > { %4356 = vmatpush3.bf16.msra.mxu1 %v2134_v16  ;;  %4293 = vmatprep.mubr.msk.bf16.mxu1 %vm349_vm1, %v5029_v9 }
  0x9f   : > { %4501 = vmatprep.subr.msk.bf16.mxu1 %vm776_vm0, %v3851_v31 }
  0xa3   : > { %4328 = vmatmul.mubr.msk.bf16.gmra.mxu0 %vm349_vm1, %v4923_v28  ;;  %v3017_v28 = vsel %vm776_vm0, %v3868_v13, 0 }
  0xa4   : > { %4331 = vmatprep.mubr.msk.bf16.mxu0 %vm349_vm1, %v4948_v55  ;;  %v2723_v55 = vsel %vm776_vm0, %v3851_v31, 0  ;;  %v2628_v31 = vld [vmem:[#allocation2 + $0x88] sm:$0xff] }
  0xa5   : > { %4294 = vmatmul.mubr.msk.bf16.gmra.mxu1 %vm349_vm1, %v5031_v7 }
  0xa6   : > { %4297 = vmatprep.mubr.msk.bf16.mxu1 %vm349_vm1, %v5045_v25 }
  0xab   : > { %4332 = vmatmul.mubr.msk.bf16.gmra.mxu0 %vm349_vm1, %v4964_v6 }
  0xac   : > { %4335 = vmatprep.mubr.msk.bf16.mxu0 %vm349_vm1, %v4971_v21 }
  0xad   : > { %4298 = vmatmul.mubr.msk.bf16.gmra.mxu1 %vm349_vm1, %v5047_v26 }
  0xae   : > { %4301 = vmatprep.mubr.msk.bf16.mxu1 %vm349_vm1, %v5061_v42 }
  0xb3   : > { %4336 = vmatmul.mubr.msk.bf16.gmra.mxu0 %vm349_vm1, %v4858_v38  ;;  %v1771_v38 = vld [vmem:[#allocation2 + $0x208] sm:$0xff] }
  0xb4   : > { %4339 = vmatprep.mubr.msk.bf16.mxu0 %vm349_vm1, %v4860_v39  ;;  %v1772_v39 = vld [vmem:[#allocation2 + $0x210] sm:$0xff] }
  0xb5   : > { %4302 = vmatmul.mubr.msk.bf16.gmra.mxu1 %vm349_vm1, %v5063_v43 }
  0xb6   : > { %4305 = vmatprep.mubr.msk.bf16.mxu1 %vm349_vm1, %v5077_v53 }
  0xbb   : > { %4340 = vmatmul.mubr.msk.bf16.gmra.mxu0 %vm349_vm1, %v4916_v22  ;;  %v5201_v22 = vpack.c.bf16 %v1772_v39, %v1771_v38  ;;  %v2629_v38 = vld [vmem:[#allocation2 + $0x90] sm:$0xff] }
  0xbc   : > { %4343 = vmatprep.mubr.msk.bf16.mxu0 %vm349_vm1, %v4918_v23  ;;  %v1494_v23 = vpack.c.bf16 %v1478_v14, %v1477_v44  ;;  %v2658_v14 = vpack.c.bf16 %v2629_v38, %v2628_v31 }
  0xbd   : > { %4306 = vmatmul.mubr.msk.bf16.gmra.mxu1 %vm349_vm1, %v5079_v61 }
  0xbe   : > { %4309 = vmatprep.mubr.msk.bf16.mxu1 %vm349_vm1, %v5093_v29 }
  0xc3   : > { %4344 = vmatmul.mubr.msk.bf16.gmra.mxu0 %vm349_vm1, %v4953_v0 }
  0xc4   : > { %4347 = vmatprep.mubr.msk.bf16.mxu0 %vm349_vm1, %v4956_v4 }
  0xc5   : > { %4310 = vmatmul.mubr.msk.bf16.gmra.mxu1 %vm349_vm1, %v5095_v30 }
  0xc6   : > { %4313 = vmatprep.mubr.msk.bf16.mxu1 %vm349_vm1, %v5109_v10 }
  0xcb   : > { %4348 = vmatmul.mubr.msk.bf16.gmra.mxu0 %vm349_vm1, %v4973_v27 }
  0xcc   : > { %4351 = vmatprep.mubr.msk.bf16.mxu0 %vm349_vm1, %v4979_v34 }
  0xcd   : > { %4314 = vmatmul.mubr.msk.bf16.gmra.mxu1 %vm349_vm1, %v5111_v56 }
  0xce   : > { %4317 = vmatprep.mubr.msk.bf16.mxu1 %vm349_vm1, %v5123_v11 }
  0xd3   : > { %4352 = vmatmul.mubr.msk.bf16.gmra.mxu0 %vm349_vm1, %v5201_v22 }
  0xd4   : > { %4391 = vmatprep.mubr.msk.bf16.mxu0 %vm349_vm1, %v4999_v18 }
  0xd5   : > { %4318 = vmatmul.mubr.msk.bf16.gmra.mxu1 %vm349_vm1, %v1494_v23 }
  0xd6   : > { %4357 = vmatprep.mubr.msk.bf16.mxu1 %vm349_vm1, %v4989_v46 }
  0xdb   : > { %4392 = vmatmul.mubr.msk.bf16.vlgmr.msra.gmra.mxu0 %vm349_vm1, %v5029_v9 }
  0xdc   : > { %4458 = vmatpush3.bf16.msra.mxu0 %v3017_v28  ;;  %4395 = vmatprep.mubr.msk.bf16.mxu0 %vm349_vm1, %v5031_v7 }
  0xdd   : > { %4358 = vmatmul.mubr.msk.bf16.vlgmr.msra.gmra.mxu1 %vm349_vm1, %v4991_v51 }
  0xde   : > { %4424 = vmatpush3.bf16.msra.mxu1 %v2723_v55  ;;  %4361 = vmatprep.mubr.msk.bf16.mxu1 %vm349_vm1, %v5023_v62 }
  0xe3   : > { %4396 = vmatmul.mubr.msk.bf16.gmra.mxu0 %vm349_vm1, %v5045_v25 }
  0xe4   : > { %4399 = vmatprep.mubr.msk.bf16.mxu0 %vm349_vm1, %v5047_v26 }
  0xe5   : > { %4362 = vmatmul.mubr.msk.bf16.gmra.mxu1 %vm349_vm1, %v5027_v3 }
  0xe6   : > { %4365 = vmatprep.mubr.msk.bf16.mxu1 %vm349_vm1, %v5041_v17 }
  0xeb   : > { %4400 = vmatmul.mubr.msk.bf16.gmra.mxu0 %vm349_vm1, %v5061_v42 }
  0xec   : > { %4403 = vmatprep.mubr.msk.bf16.mxu0 %vm349_vm1, %v5063_v43 }
  0xed   : > { %4366 = vmatmul.mubr.msk.bf16.gmra.mxu1 %vm349_vm1, %v5043_v24 }
  0xee   : > { %4369 = vmatprep.mubr.msk.bf16.mxu1 %vm349_vm1, %v5057_v37 }
  0xf3   : > { %4404 = vmatmul.mubr.msk.bf16.gmra.mxu0 %vm349_vm1, %v5077_v53 }
  0xf4   : > { %4407 = vmatprep.mubr.msk.bf16.mxu0 %vm349_vm1, %v5079_v61 }
  0xf5   : > { %4370 = vmatmul.mubr.msk.bf16.gmra.mxu1 %vm349_vm1, %v5059_v5 }
  0xf6   : > { %4373 = vmatprep.mubr.msk.bf16.mxu1 %vm349_vm1, %v5073_v48 }
  0xfb   : > { %v5244_v0 = vpop.f32.mrf.mxu0  ;;  %4408 = vmatmul.mubr.msk.bf16.gmra.mxu0 %vm349_vm1, %v5093_v29  ;;  %v2361_v29 = vld [vmem:[#allocation2 + $0x22f] sm:$0xff] }
  0xfc   : > { %4411 = vmatprep.mubr.msk.bf16.mxu0 %vm349_vm1, %v5095_v30  ;;  %v2377_v40 = vpack.c.bf16 %v2361_v29, %v2360_v19 }
  0xfd   : > { %v5248_v4 = vpop.f32.mrf.mxu1  ;;  %v5250_v6 = vpop.f32.mrf.mxu0  ;;  %4374 = vmatmul.mubr.msk.bf16.gmra.mxu1 %vm349_vm1, %v5075_v60 }
  0xfe   : > { %4377 = vmatprep.mubr.msk.bf16.mxu1 %vm349_vm1, %v5089_v15 }
  0xff   : > { %v5256_v21 = vpop.f32.mrf.mxu1  ;;  %v5258_v27 = vpop.f32.mrf.mxu0 }
 0x101   : > { %v5262_v34 = vpop.f32.mrf.mxu1  ;;  %v5264_v46 = vpop.f32.mrf.mxu0 }
 0x103   : > { %v5266_v52 = vpop.f32.mrf.mxu1  ;;  %v5268_v18 = vpop.f32.mrf.mxu0  ;;  %4412 = vmatmul.mubr.msk.bf16.gmra.mxu0 %vm349_vm1, %v5109_v10  ;;  %v5313_v10 = vpack.c.bf16 %v2066_v35, %v2065_v33  ;;  %v2630_v33 = vld [vmem:[#allocation2 + $0xa8] sm:$0xff]  ;;  %v2631_v35 = vld [vmem:[#allocation2 + $0xb0] sm:$0xff] }
 0x104   : > { %4415 = vmatprep.mubr.msk.bf16.mxu0 %vm349_vm1, %v5111_v56  ;;  %v2659_v31 = vpack.c.bf16 %v2631_v35, %v2630_v33  ;;  %v2635_v33 = vld [vmem:[#allocation2 + $0xf0] sm:$0xff] }
 0x105   : > { %v5272_v54 = vpop.f32.mrf.mxu1  ;;  %v5274_v58 = vpop.f32.mrf.mxu0  ;;  %4378 = vmatmul.mubr.msk.bf16.gmra.mxu1 %vm349_vm1, %v5091_v20 }
 0x106   : > { %4381 = vmatprep.mubr.msk.bf16.mxu1 %vm349_vm1, %v5105_v45 }
 0x107   : > { %v5280_v9 = vpop.f32.mrf.mxu1  ;;  %v5282_v7 = vpop.f32.mrf.mxu0 }
 0x109   : > { %v5286_v25 = vpop.f32.mrf.mxu1  ;;  %v5288_v26 = vpop.f32.mrf.mxu0 }
 0x10b   : > { %v5290_v42 = vpop.f32.mrf.mxu1  ;;  %v5292_v43 = vpop.f32.mrf.mxu0  ;;  %4416 = vmatmul.mubr.msk.bf16.gmra.mxu0 %vm349_vm1, %v5123_v11  ;;  %v2626_v11 = vld [vmem:[#allocation2 + $0x68] sm:$0xff] }
 0x10c   : > { %4419 = vmatprep.mubr.msk.bf16.mxu0 %vm349_vm1, %v1494_v23  ;;  %v2657_v44 = vpack.c.bf16 %v2627_v12, %v2626_v11 }
 0x10d   : > { %v5296_v53 = vpop.f32.mrf.mxu0  ;;  %v5298_v61 = vpop.f32.mrf.mxu1  ;;  %4382 = vmatmul.mubr.msk.bf16.gmra.mxu1 %vm349_vm1, %v5107_v50 }
 0x10e   : > { %4385 = vmatprep.mubr.msk.bf16.mxu1 %vm349_vm1, %v5121_v8 }
 0x10f   : > { %v5303_v30 = vpop.f32.mrf.mxu0  ;;  %v5305_v32 = vpop.f32.mrf.mxu1 }
 0x111   : > { %v5309_v36 = vpop.f32.mrf.mxu0  ;;  %v5311_v49 = vpop.f32.mrf.mxu1 }
 0x113   : > { %v5315_v56 = vpop.f32.mrf.mxu1  ;;  %v5317_v59 = vpop.f32.mrf.mxu0  ;;  %4420 = vmatmul.mubr.msk.bf16.gmra.mxu0 %vm349_vm1, %v2377_v40 }
 0x114   : > { %4459 = vmatprep.mubr.msk.bf16.mxu0 %vm349_vm1, %v4991_v51 }
 0x115   : > { %v5322_v63 = vpop.f32.mrf.mxu1  ;;  %4386 = vmatmul.mubr.msk.bf16.gmra.mxu1 %vm349_vm1, %v5313_v10  ;;  %v5326_v1 = vpop.f32.mrf.mxu0 }
 0x116   : > { %4425 = vmatprep.mubr.msk.bf16.mxu1 %vm349_vm1, %v2656_v57  ;;  %v2633_v57 = vld [vmem:[#allocation2 + $0xd0] sm:$0xff] }
 0x117   : > { %v5329_v13 = vpop.f32.mrf.mxu1  ;;  %v5331_v16 = vpop.f32.mrf.mxu0 }
 0x119   : > { %v5333_v39 = vpop.f32.mrf.mxu1  ;;  %v5335_v51 = vpop.f32.mrf.mxu0 }
 0x11b   : > { %v5337_v23 = vpop.f32.mrf.mxu1  ;;  %v4257_v28 = vpop.f32.mrf.mxu0  ;;  %4460 = vmatmul.mubr.msk.bf16.vlgmr.msra.gmra.mxu0 %vm349_vm1, %v5023_v62 }
 0x11c   : > { %4463 = vmatprep.mubr.msk.bf16.mxu0 %vm349_vm1, %v5027_v3 }
 0x11d   : > { %v4223_v55 = vpop.f32.mrf.mxu1  ;;  %4426 = vmatmul.mubr.msk.bf16.vlgmr.msra.gmra.mxu1 %vm349_vm1, %v2657_v44  ;;  %v1288_v19 = vpop.f32.mrf.mxu0  ;;  %v2660_v44 = vpack.c.bf16 %v2633_v57, %v2632_v47  ;;  %v2637_v47 = vld [vmem:[#allocation2 + $0x110] sm:$0xff] }
 0x11e   : > { %v1035_v29 = vadd.f32 %v4223_v55, %v5244_v0  ;;  %4429 = vmatprep.mubr.msk.bf16.mxu1 %vm349_vm1, %v2658_v14 }
 0x11f   : > { %v1026_v40 = vpop.f32.mrf.mxu1  ;;  %v4258_v41 = vpop.f32.mrf.mxu0 }
 0x120   : > { %v1027_v11 = vadd.f32 %v1026_v40, %v5250_v6  ;;  %v5347_v62 = vadd.f32 %v4257_v28, %v1035_v29 }
 0x121   : > { %v4224_v12 = vpop.f32.mrf.mxu1  ;;  %v1291_v3 = vpop.f32.mrf.mxu0 }
 0x122   : > { %v1038_v38 = vadd.f32 %v4224_v12, %v5258_v27  ;;  %v5350_v2 = vadd.f32 %v1288_v19, %v1027_v11  ;;  %v2634_v19 = vld [vmem:[#allocation2 + $0xe8] sm:$0xff] }
 0x123   : > { %v1029_v0 = vpop.f32.mrf.mxu1  ;;  %v4261_v14 = vpop.f32.mrf.mxu0  ;;  %4464 = vmatmul.mubr.msk.bf16.gmra.mxu0 %vm349_vm1, %v5041_v17  ;;  %v2661_v12 = vpack.c.bf16 %v2635_v33, %v2634_v19  ;;  %v2641_v33 = vld [vmem:[#allocation2 + $0x150] sm:$0xff] }
 0x124   : > { %v1030_v55 = vadd.f32 %v1029_v0, %v5264_v46  ;;  %4467 = vmatprep.mubr.msk.bf16.mxu0 %vm349_vm1, %v5043_v24  ;;  %v5357_v6 = vadd.f32 %v4258_v41, %v1038_v38  ;;  %v2636_v46 = vld [vmem:[#allocation2 + $0x108] sm:$0xff] }
 0x125   : > { %v4227_v28 = vpop.f32.mrf.mxu1  ;;  %4430 = vmatmul.mubr.msk.bf16.gmra.mxu1 %vm349_vm1, %v2659_v31  ;;  %v1304_v29 = vpop.f32.mrf.mxu0 }
 0x126   : > { %v1051_v27 = vadd.f32 %v4227_v28, %v5268_v18  ;;  %4433 = vmatprep.mubr.msk.bf16.mxu1 %vm349_vm1, %v2660_v44  ;;  %v5362_v35 = vadd.f32 %v1291_v3, %v1030_v55  ;;  %v2662_v18 = vpack.c.bf16 %v2637_v47, %v2636_v46  ;;  %v2638_v28 = vld [vmem:[#allocation2 + $0x128] sm:$0xff] }
 0x127   : > { %v1042_v17 = vpop.f32.mrf.mxu1  ;;  %v4262_v40 = vpop.f32.mrf.mxu0 }
 0x128   : > { %v1043_v24 = vadd.f32 %v1042_v17, %v5274_v58  ;;  %v5365_v41 = vadd.f32 %v4261_v14, %v1051_v27 }
 0x129   : > { %v4228_v57 = vpop.f32.mrf.mxu1  ;;  %v1307_v11 = vpop.f32.mrf.mxu0 }
 0x12a   : > { %v1054_v31 = vadd.f32 %v4228_v57, %v5282_v7  ;;  %v5368_v38 = vadd.f32 %v1304_v29, %v1043_v24  ;;  %v2639_v29 = vld [vmem:[#allocation2 + $0x130] sm:$0xff] }
 0x12b   : > { %v1045_v44 = vpop.f32.mrf.mxu1  ;;  %v4265_v0 = vpop.f32.mrf.mxu0  ;;  %4468 = vmatmul.mubr.msk.bf16.gmra.mxu0 %vm349_vm1, %v5057_v37  ;;  %v2663_v47 = vpack.c.bf16 %v2639_v29, %v2638_v28 }
 0x12c   : > { %v1046_v3 = vadd.f32 %v1045_v44, %v5288_v26  ;;  %4471 = vmatprep.mubr.msk.bf16.mxu0 %vm349_vm1, %v5059_v5  ;;  %v5375_v58 = vadd.f32 %v4262_v40, %v1054_v31  ;;  %v2640_v26 = vld [vmem:[#allocation2 + $0x148] sm:$0xff] }
 0x12d   : > { %v4231_v14 = vpop.f32.mrf.mxu1  ;;  %4434 = vmatmul.mubr.msk.bf16.gmra.mxu1 %vm349_vm1, %v2661_v12  ;;  %v1320_v55 = vpop.f32.mrf.mxu0 }
 0x12e   : > { %v1067_v7 = vadd.f32 %v4231_v14, %v5292_v43  ;;  %4437 = vmatprep.mubr.msk.bf16.mxu1 %vm349_vm1, %v2662_v18  ;;  %v5380_v27 = vadd.f32 %v1307_v11, %v1046_v3  ;;  %v2664_v43 = vpack.c.bf16 %v2641_v33, %v2640_v26  ;;  %v2643_v3 = vld [vmem:[#allocation2 + $0x170] sm:$0xff] }
 0x12f   : > { %v1058_v37 = vpop.f32.mrf.mxu1  ;;  %v4266_v19 = vpop.f32.mrf.mxu0 }
 0x130   : > { %v1059_v5 = vadd.f32 %v1058_v37, %v5296_v53  ;;  %v5383_v17 = vadd.f32 %v4265_v0, %v1067_v7  ;;  %v2642_v0 = vld [vmem:[#allocation2 + $0x168] sm:$0xff]  ;;  %v2645_v7 = vld [vmem:[#allocation2 + $0x190] sm:$0xff] }
 0x131   : > { %v4232_v40 = vpop.f32.mrf.mxu1  ;;  %v1323_v46 = vpop.f32.mrf.mxu0 }
 0x132   : > { %v1070_v24 = vadd.f32 %v4232_v40, %v5303_v30  ;;  %v5386_v57 = vadd.f32 %v1320_v55, %v1059_v5 }
 0x133   : > { %v1061_v12 = vpop.f32.mrf.mxu1  ;;  %v4269_v31 = vpop.f32.mrf.mxu0  ;;  %4472 = vmatmul.mubr.msk.bf16.gmra.mxu0 %vm349_vm1, %v5073_v48 }
 0x134   : > { %v1062_v11 = vadd.f32 %v1061_v12, %v5309_v36  ;;  %4475 = vmatprep.mubr.msk.bf16.mxu0 %vm349_vm1, %v5075_v60  ;;  %v5393_v53 = vadd.f32 %v4266_v19, %v1070_v24  ;;  %v2644_v36 = vld [vmem:[#allocation2 + $0x188] sm:$0xff]  ;;  %v2665_v19 = vpack.c.bf16 %v2643_v3, %v2642_v0  ;;  %v2647_v12 = vld [vmem:[#allocation2 + $0x1b0] sm:$0xff] }
 0x135   : > { %v4235_v18 = vpop.f32.mrf.mxu1  ;;  %4438 = vmatmul.mubr.msk.bf16.gmra.mxu1 %vm349_vm1, %v2663_v47  ;;  %v1336_v44 = vpop.f32.mrf.mxu0 }
 0x136   : > { %v1083_v30 = vadd.f32 %v4235_v18, %v5317_v59  ;;  %4441 = vmatprep.mubr.msk.bf16.mxu1 %vm349_vm1, %v2664_v43  ;;  %v5398_v14 = vadd.f32 %v1323_v46, %v1062_v11  ;;  %v2666_v59 = vpack.c.bf16 %v2645_v7, %v2644_v36  ;;  %v2646_v43 = vld [vmem:[#allocation2 + $0x1a8] sm:$0xff]  ;;  %v2649_v18 = vld [vmem:[#allocation2 + $0x1d0] sm:$0xff] }
 0x137   : > { %v1074_v48 = vpop.f32.mrf.mxu1  ;;  %v4270_v55 = vpop.f32.mrf.mxu0  ;;  %v2667_v3 = vpack.c.bf16 %v2647_v12, %v2646_v43 }
 0x138   : > { %v1075_v60 = vadd.f32 %v1074_v48, %v5326_v1  ;;  %v5401_v28 = vadd.f32 %v4269_v31, %v1083_v30 }
 0x139   : > { %v4236_v29 = vpop.f32.mrf.mxu1  ;;  %v1339_v37 = vpop.f32.mrf.mxu0 }
 0x13a   : > { %v1086_v26 = vadd.f32 %v4236_v29, %v5331_v16  ;;  %v5404_v33 = vadd.f32 %v1336_v44, %v1075_v60 }
 0x13b   : > { %v1077_v5 = vpop.f32.mrf.mxu1  ;;  %v4273_v40 = vpop.f32.mrf.mxu0  ;;  %4476 = vmatmul.mubr.msk.bf16.gmra.mxu0 %vm349_vm1, %v5089_v15 }
 0x13c   : > { %v1078_v46 = vadd.f32 %v1077_v5, %v5335_v51  ;;  %4479 = vmatprep.mubr.msk.bf16.mxu0 %vm349_vm1, %v5091_v20  ;;  %v5411_v1 = vadd.f32 %v4270_v55, %v1086_v26  ;;  %v2648_v51 = vld [vmem:[#allocation2 + $0x1c8] sm:$0xff]  ;;  %v2651_v26 = vld [vmem:[#allocation2 + $0x1f0] sm:$0xff] }
 0x13d   : > { %v4239_v47 = vpop.f32.mrf.mxu1  ;;  %4442 = vmatmul.mubr.msk.bf16.gmra.mxu1 %vm349_vm1, %v2665_v19  ;;  %v1352_v24 = vpop.f32.mrf.mxu0  ;;  %v2650_v19 = vld [vmem:[#allocation2 + $0x1e8] sm:$0xff] }
 0x13e   : > { %v1099_v16 = vadd.f32 %v4239_v47, %v5248_v4  ;;  %4445 = vmatprep.mubr.msk.bf16.mxu1 %vm349_vm1, %v2666_v59  ;;  %v5416_v31 = vadd.f32 %v1339_v37, %v1078_v46  ;;  %v2668_v4 = vpack.c.bf16 %v2649_v18, %v2648_v51  ;;  %v2669_v47 = vpack.c.bf16 %v2651_v26, %v2650_v19 }
 0x13f   : > { %v1090_v15 = vpop.f32.mrf.mxu1  ;;  %v4274_v11 = vpop.f32.mrf.mxu0 }
 0x140   : > { %v1091_v20 = vadd.f32 %v1090_v15, %v5256_v21  ;;  %v5419_v44 = vadd.f32 %v4273_v40, %v1099_v16  ;;  %v2949_v15 = vld [vmem:[#allocation2 + $0x231] sm:$0xff] }
 0x141   : > { %v4240_v30 = vpop.f32.mrf.mxu1  ;;  %v1355_v0 = vpop.f32.mrf.mxu0 }
 0x142   : > { %v1102_v48 = vadd.f32 %v4240_v30, %v5262_v34  ;;  %v5422_v55 = vadd.f32 %v1352_v24, %v1091_v20  ;;  %v2654_v20 = vld [vmem:[#allocation2 + $0x228] sm:$0xff] }
 0x143   : > { %v1093_v36 = vpop.f32.mrf.mxu1  ;;  %v4277_v7 = vpop.f32.mrf.mxu0  ;;  %4480 = vmatmul.mubr.msk.bf16.gmra.mxu0 %vm349_vm1, %v5105_v45 }
 0x144   : > { %v1094_v60 = vadd.f32 %v1093_v36, %v5266_v52  ;;  %4483 = vmatprep.mubr.msk.bf16.mxu0 %vm349_vm1, %v5107_v50  ;;  %v5429_v21 = vadd.f32 %v4274_v11, %v1102_v48 }
 0x145   : > { %v4243_v29 = vpop.f32.mrf.mxu1  ;;  %4446 = vmatmul.mubr.msk.bf16.gmra.mxu1 %vm349_vm1, %v2667_v3  ;;  %v1368_v37 = vpop.f32.mrf.mxu0 }
 0x146   : > { %v1115_v34 = vadd.f32 %v4243_v29, %v5272_v54  ;;  %4449 = vmatprep.mubr.msk.bf16.mxu1 %vm349_vm1, %v2668_v4  ;;  %v5434_v59 = vadd.f32 %v1355_v0, %v1094_v60 }
 0x147   : > { %v1106_v45 = vpop.f32.mrf.mxu1  ;;  %v4278_v5 = vpop.f32.mrf.mxu0 }
 0x148   : > { %v1107_v52 = vadd.f32 %v1106_v45, %v5280_v9  ;;  %v5437_v40 = vadd.f32 %v4277_v7, %v1115_v34  ;;  %v2948_v9 = vld [vmem:[#allocation2 + $0x229] sm:$0xff] }
 0x149   : > { %v4244_v50 = vpop.f32.mrf.mxu1  ;;  %v1371_v46 = vpop.f32.mrf.mxu0 }
 0x14a   : > { %v1118_v24 = vadd.f32 %v4244_v50, %v5286_v25  ;;  %v5440_v16 = vadd.f32 %v1368_v37, %v1107_v52 }
 0x14b   : > { %v1109_v54 = vpop.f32.mrf.mxu1  ;;  %v4281_v43 = vpop.f32.mrf.mxu0  ;;  %4484 = vmatmul.mubr.msk.bf16.gmra.mxu0 %vm349_vm1, %v5121_v8  ;;  %v2655_v8 = vld [vmem:[#allocation2 + $0x230] sm:$0xff] }
 0x14c   : > { %v1110_v12 = vadd.f32 %v1109_v54, %v5290_v42  ;;  %4487 = vmatprep.mubr.msk.bf16.mxu0 %vm349_vm1, %v5313_v10  ;;  %v5447_v11 = vadd.f32 %v4278_v5, %v1118_v24  ;;  %v2965_v10 = vpack.c.bf16 %v2949_v15, %v2948_v9  ;;  %v2671_v7 = vpack.c.bf16 %v2655_v8, %v2654_v20 }
 0x14d   : > { %v4247_v51 = vpop.f32.mrf.mxu1  ;;  %4450 = vmatmul.mubr.msk.bf16.gmra.mxu1 %vm349_vm1, %v2669_v47  ;;  %v1384_v25 = vpop.f32.mrf.mxu0 }
 0x14e   : > { %v1131_v18 = vadd.f32 %v4247_v51, %v5298_v61  ;;  %4453 = vmatprep.mubr.msk.bf16.mxu1 %vm349_vm1, %v5201_v22  ;;  %v5453_v30 = vadd.f32 %v1371_v46, %v1110_v12 }
 0x14f   : > { %v1122_v42 = vpop.f32.mrf.mxu1  ;;  %v4282_v0 = vpop.f32.mrf.mxu0 }
 0x150   : > { %v1123_v3 = vadd.f32 %v1122_v42, %v5305_v32  ;;  %v5456_v48 = vadd.f32 %v4281_v43, %v1131_v18 }
 0x151   : > { %v4248_v4 = vpop.f32.mrf.mxu1  ;;  %v1387_v36 = vpop.f32.mrf.mxu0 }
 0x152   : > { %v1134_v60 = vadd.f32 %v4248_v4, %v5311_v49  ;;  %v5459_v61 = vadd.f32 %v1384_v25, %v1123_v3 }
 0x153   : > { %v1125_v29 = vpop.f32.mrf.mxu1  ;;  %v4285_v22 = vpop.f32.mrf.mxu0  ;;  %4488 = vmatmul.mubr.msk.bf16.gmra.mxu0 %vm349_vm1, %v2965_v10 }
 0x154   : > { %v1126_v37 = vadd.f32 %v1125_v29, %v5315_v56  ;;  %v5463_v34 = vadd.f32 %v4282_v0, %v1134_v60 }
 0x155   : > { %v4251_v19 = vpop.f32.mrf.mxu1  ;;  %4454 = vmatmul.mubr.msk.bf16.gmra.mxu1 %vm349_vm1, %v2671_v7  ;;  %v1400_v32 = vpop.f32.mrf.mxu0 }
 0x156   : > { %v1147_v26 = vadd.f32 %v4251_v19, %v5322_v63  ;;  %v5467_v45 = vadd.f32 %v1387_v36, %v1126_v37 }
 0x157   : > { %v1138_v5 = vpop.f32.mrf.mxu1  ;;  %v4286_v49 = vpop.f32.mrf.mxu0 }
 0x158   : > { %v1139_v52 = vadd.f32 %v1138_v5, %v5329_v13  ;;  %v5470_v50 = vadd.f32 %v4285_v22, %v1147_v26 }
 0x159   : > { %v4252_v46 = vpop.f32.mrf.mxu1  ;;  %v1403_v47 = vpop.f32.mrf.mxu0 }
 0x15a   : > { %v1150_v56 = vadd.f32 %v4252_v46, %v5333_v39  ;;  %v5473_v24 = vadd.f32 %v1400_v32, %v1139_v52 }
 0x15b   : > { %v1141_v54 = vpop.f32.mrf.mxu1  ;;  %v4325_v43 = vpop.f32.mrf.mxu0 }
 0x15c   : > { %v1142_v12 = vadd.f32 %v1141_v54, %v5337_v23  ;;  %v5476_v9 = vadd.f32 %v4286_v49, %v1150_v56 }
 0x15d   : > { %v4291_v63 = vpop.f32.mrf.mxu1  ;;  %v1876_v15 = vpop.f32.mrf.mxu0 }
 0x15e   : > { %v1711_v51 = vadd.f32 %v4291_v63, %v5347_v62  ;;  %v5479_v25 = vadd.f32 %v1403_v47, %v1142_v12 }
 0x15f   : > { %v1582_v13 = vpop.f32.mrf.mxu1  ;;  %v4326_v18 = vpop.f32.mrf.mxu0 }
 0x160   : > { %v1709_v20 = vadd.f32 %v1582_v13, %v5350_v2  ;;  %v5482_v8 = vadd.f32 %v4325_v43, %v1711_v51 }
 0x161   : > { %v4292_v39 = vpop.f32.mrf.mxu1  ;;  %v1879_v42 = vpop.f32.mrf.mxu0 }
 0x162   : > { %v1712_v0 = vadd.f32 %v4292_v39, %v5357_v6  ;;  %v5485_v10 = vadd.f32 %v1876_v15, %v1709_v20 }
 0x163   : > { %v1585_v23 = vpop.f32.mrf.mxu1  ;;  %v4329_v3 = vpop.f32.mrf.mxu0 }
 0x164   : > { %v1710_v4 = vadd.f32 %v1585_v23, %v5362_v35  ;;  %v5488_v36 = vadd.f32 %v4326_v18, %v1712_v0 }
 0x165   : > { %v4295_v62 = vpop.f32.mrf.mxu1  ;;  %v1892_v7 = vpop.f32.mrf.mxu0 }
 0x166   : > { %v1715_v60 = vadd.f32 %v4295_v62, %v5365_v41  ;;  %v5491_v29 = vadd.f32 %v1879_v42, %v1710_v4 }
 0x167   : > { %v1598_v2 = vpop.f32.mrf.mxu1  ;;  %v4330_v22 = vpop.f32.mrf.mxu0 }
 0x168   : > { %v1713_v37 = vadd.f32 %v1598_v2, %v5368_v38  ;;  %v5494_v19 = vadd.f32 %v4329_v3, %v1715_v60 }
 0x169   : > { %v4296_v6 = vpop.f32.mrf.mxu1  ;;  %v1895_v32 = vpop.f32.mrf.mxu0 }
 0x16a   : > { %v1716_v26 = vadd.f32 %v4296_v6, %v5375_v58  ;;  %v5497_v5 = vadd.f32 %v1892_v7, %v1713_v37 }
 0x16b   : > { %v1601_v35 = vpop.f32.mrf.mxu1  ;;  %v4333_v49 = vpop.f32.mrf.mxu0 }
 0x16c   : > { %v1714_v52 = vadd.f32 %v1601_v35, %v5380_v27  ;;  %v5500_v46 = vadd.f32 %v4330_v22, %v1716_v26 }
 0x16d   : > { %v4299_v41 = vpop.f32.mrf.mxu1  ;;  %v1908_v47 = vpop.f32.mrf.mxu0 }
 0x16e   : > { %v1719_v56 = vadd.f32 %v4299_v41, %v5383_v17  ;;  %v5503_v54 = vadd.f32 %v1895_v32, %v1714_v52 }
 0x16f   : > { %v1614_v38 = vpop.f32.mrf.mxu1  ;;  %v4334_v43 = vpop.f32.mrf.mxu0 }
 0x170   : > { %v1717_v12 = vadd.f32 %v1614_v38, %v5386_v57  ;;  %v5506_v63 = vadd.f32 %v4333_v49, %v1719_v56 }
 0x171   : > { %v4300_v58 = vpop.f32.mrf.mxu1  ;;  %v1911_v15 = vpop.f32.mrf.mxu0 }
 0x172   : > { %v1720_v51 = vadd.f32 %v4300_v58, %v5393_v53  ;;  %v5509_v13 = vadd.f32 %v1908_v47, %v1717_v12 }
 0x173   : > { %v1617_v27 = vpop.f32.mrf.mxu1  ;;  %v4337_v18 = vpop.f32.mrf.mxu0 }
 0x174   : > { %v1718_v20 = vadd.f32 %v1617_v27, %v5398_v14  ;;  %v5512_v39 = vadd.f32 %v4334_v43, %v1720_v51 }
 0x175   : > { %v4303_v17 = vpop.f32.mrf.mxu1  ;;  %v1924_v42 = vpop.f32.mrf.mxu0 }
 0x176   : > { %v1723_v0 = vadd.f32 %v4303_v17, %v5401_v28  ;;  %v5515_v23 = vadd.f32 %v1911_v15, %v1718_v20 }
 0x177   : > { %v1630_v57 = vpop.f32.mrf.mxu1  ;;  %v4338_v3 = vpop.f32.mrf.mxu0 }
 0x178   : > { %v1721_v4 = vadd.f32 %v1630_v57, %v5404_v33  ;;  %v5518_v62 = vadd.f32 %v4337_v18, %v1723_v0 }
 0x179   : > { %v4304_v53 = vpop.f32.mrf.mxu1  ;;  %v1927_v7 = vpop.f32.mrf.mxu0 }
 0x17a   : > { %v1724_v60 = vadd.f32 %v4304_v53, %v5411_v1  ;;  %v5521_v2 = vadd.f32 %v1924_v42, %v1721_v4 }
 0x17b   : > { %v1633_v14 = vpop.f32.mrf.mxu1  ;;  %v4341_v22 = vpop.f32.mrf.mxu0 }
 0x17c   : > { %v1722_v37 = vadd.f32 %v1633_v14, %v5416_v31  ;;  %v5524_v6 = vadd.f32 %v4338_v3, %v1724_v60 }
 0x17d   : > { %v4307_v28 = vpop.f32.mrf.mxu1  ;;  %v1940_v32 = vpop.f32.mrf.mxu0 }
 0x17e   : > { %v1727_v26 = vadd.f32 %v4307_v28, %v5419_v44  ;;  %v5527_v35 = vadd.f32 %v1927_v7, %v1722_v37 }
 0x17f   : > { %v1646_v33 = vpop.f32.mrf.mxu1  ;;  %v4342_v49 = vpop.f32.mrf.mxu0 }
 0x180   : > { %v1725_v52 = vadd.f32 %v1646_v33, %v5422_v55  ;;  %v5530_v41 = vadd.f32 %v4341_v22, %v1727_v26 }
 0x181   : > { %v4308_v1 = vpop.f32.mrf.mxu1  ;;  %v1943_v47 = vpop.f32.mrf.mxu0 }
 0x182   : > { %v1728_v56 = vadd.f32 %v4308_v1, %v5429_v21  ;;  %v5533_v38 = vadd.f32 %v1940_v32, %v1725_v52 }
 0x183   : > { %v1649_v31 = vpop.f32.mrf.mxu1  ;;  %v4345_v43 = vpop.f32.mrf.mxu0 }
 0x184   : > { %v1726_v12 = vadd.f32 %v1649_v31, %v5434_v59  ;;  %v5536_v58 = vadd.f32 %v4342_v49, %v1728_v56 }
 0x185   : > { %v4311_v44 = vpop.f32.mrf.mxu1  ;;  %v1956_v15 = vpop.f32.mrf.mxu0 }
 0x186   : > { %v1731_v51 = vadd.f32 %v4311_v44, %v5437_v40  ;;  %v5539_v27 = vadd.f32 %v1943_v47, %v1726_v12 }
 0x187   : > { %v1662_v55 = vpop.f32.mrf.mxu1  ;;  %v4346_v18 = vpop.f32.mrf.mxu0 }
 0x188   : > { %6007 = vst [vmem:[#allocation3_spill] sm:$0xff] %v5539_v27  ;;  %v1729_v20 = vadd.f32 %v1662_v55, %v5440_v16  ;;  %v5542_v17 = vadd.f32 %v4345_v43, %v1731_v51 }
 0x189   : > { %v4312_v21 = vpop.f32.mrf.mxu1  ;;  %v1959_v42 = vpop.f32.mrf.mxu0 }
 0x18a   : > { %6008 = vst [vmem:[#allocation4_spill] sm:$0xff] %v5542_v17  ;;  %v1732_v0 = vadd.f32 %v4312_v21, %v5447_v11  ;;  %v5545_v57 = vadd.f32 %v1956_v15, %v1729_v20 }
 0x18b   : > { %v1665_v59 = vpop.f32.mrf.mxu1  ;;  %v4349_v3 = vpop.f32.mrf.mxu0 }
 0x18c   : > { %6009 = vst [vmem:[#allocation5_spill] sm:$0xff] %v5545_v57  ;;  %v1730_v4 = vadd.f32 %v1665_v59, %v5453_v30  ;;  %v5548_v53 = vadd.f32 %v4346_v18, %v1732_v0 }
 0x18d   : > { %v4315_v40 = vpop.f32.mrf.mxu1  ;;  %v1972_v7 = vpop.f32.mrf.mxu0 }
 0x18e   : > { %6010 = vst [vmem:[#allocation6_spill] sm:$0xff] %v5548_v53  ;;  %v1735_v60 = vadd.f32 %v4315_v40, %v5456_v48  ;;  %v5551_v14 = vadd.f32 %v1959_v42, %v1730_v4 }
 0x18f   : > { %v1678_v16 = vpop.f32.mrf.mxu1  ;;  %v4350_v22 = vpop.f32.mrf.mxu0 }
 0x190   : > { %6011 = vst [vmem:[#allocation7_spill] sm:$0xff] %v5551_v14  ;;  %v1733_v37 = vadd.f32 %v1678_v16, %v5459_v61  ;;  %v5554_v28 = vadd.f32 %v4349_v3, %v1735_v60  ;;  %v6020_v60 = vmov 0.0  }
 0x191   : > { %v4316_v11 = vpop.f32.mrf.mxu1  ;;  %v1975_v32 = vpop.f32.mrf.mxu0  ;;  %347 = vst.msk [vmem:[%s5590_s10] sm:$0x1] %vm346_vm2, %v6020_v60  ;;  %348 = vst.msk [vmem:[%s5596_s13] sm:$0x1] %vm346_vm2, %v6020_v60 }
 0x192   : > { %6012 = vst [vmem:[#allocation8_spill] sm:$0xff] %v5554_v28  ;;  %v1736_v26 = vadd.f32 %v4316_v11, %v5463_v34  ;;  %v5557_v33 = vadd.f32 %v1972_v7, %v1733_v37 }
 0x193   : > { %v1681_v30 = vpop.f32.mrf.mxu1  ;;  %v4353_v49 = vpop.f32.mrf.mxu0 }
 0x194   : > { %6013 = vst [vmem:[#allocation9_spill] sm:$0xff] %v5557_v33  ;;  %v1734_v52 = vadd.f32 %v1681_v30, %v5467_v45  ;;  %v5560_v1 = vadd.f32 %v4350_v22, %v1736_v26 }
 0x195   : > { %v4319_v48 = vpop.f32.mrf.mxu1  ;;  %v1988_v47 = vpop.f32.mrf.mxu0 }
 0x196   : > { %6014 = vst [vmem:[#allocation10_spill] sm:$0xff] %v5560_v1  ;;  %v1739_v56 = vadd.f32 %v4319_v48, %v5470_v50  ;;  %v5563_v31 = vadd.f32 %v1975_v32, %v1734_v52 }
 0x197   : > { %v1694_v61 = vpop.f32.mrf.mxu1  ;;  %v4354_v43 = vpop.f32.mrf.mxu0 }
 0x198   : > { %6015 = vst [vmem:[#allocation11_spill] sm:$0xff] %v5563_v31  ;;  %v1737_v12 = vadd.f32 %v1694_v61, %v5473_v24  ;;  %v5566_v44 = vadd.f32 %v4353_v49, %v1739_v56 }
 0x199   : > { %v4320_v34 = vpop.f32.mrf.mxu1  ;;  %v1991_v15 = vpop.f32.mrf.mxu0 }
 0x19a   : > { %6016 = vst [vmem:[#allocation12_spill] sm:$0xff] %v5566_v44  ;;  %v1740_v51 = vadd.f32 %v4320_v34, %v5476_v9  ;;  %v5569_v45 = vadd.f32 %v1988_v47, %v1737_v12 }
 0x19b   : > { %v1697_v55 = vpop.f32.mrf.mxu1  ;;  %v5571_v18 = vpop.f32.mrf.mxu0 }
 0x19c   : > { %6017 = vst [vmem:[#allocation13_spill] sm:$0xff] %v5569_v45  ;;  %v1738_v50 = vadd.f32 %v1697_v55, %v5479_v25  ;;  %v5574_v20 = vadd.f32 %v4354_v43, %v1740_v51 }
 0x19d   : > { %v4359_v21 = vpop.f32.mrf.mxu1  ;;  %v5576_v42 = vpop.f32.mrf.mxu0 }
 0x19e   : > { %6018 = vst [vmem:[#allocation14_spill] sm:$0xff] %v5574_v20  ;;  %v5578_v24 = vadd.f32 %v1991_v15, %v1738_v50 }
 0x19f   : > { %v2170_v0 = vpop.f32.mrf.mxu1  ;;  %v5580_v59 = vpop.f32.mrf.mxu0 }
 0x1a0   : > { %6019 = vst [vmem:[#allocation15_spill] sm:$0xff] %v5578_v24 }
 0x1a1   : > { %v4360_v3 = vpop.f32.mrf.mxu1  ;;  %v5582_v9 = vpop.f32.mrf.mxu0 }
 0x1a3   : > { %v2173_v4 = vpop.f32.mrf.mxu1  ;;  %v5584_v40 = vpop.f32.mrf.mxu0 }
 0x1a5   : > { %v4363_v25 = vpop.f32.mrf.mxu1  ;;  %v5598_v7 = vpop.f32.mrf.mxu0 }
 0x1a7   : > { %v2186_v16 = vpop.f32.mrf.mxu1  ;;  %v5606_v22 = vpop.f32.mrf.mxu0 }
 0x1a9   : > { %v4364_v37 = vpop.f32.mrf.mxu1  ;;  %v5608_v11 = vpop.f32.mrf.mxu0 }
 0x1ab   : > { %v2189_v32 = vpop.f32.mrf.mxu1  ;;  %v5610_v26 = vpop.f32.mrf.mxu0 }
 0x1ad   : > { %v4367_v30 = vpop.f32.mrf.mxu1  ;;  %v5612_v49 = vpop.f32.mrf.mxu0 }
 0x1af   : > { %v2202_v52 = vpop.f32.mrf.mxu1  ;;  %v5614_v48 = vpop.f32.mrf.mxu0 }
 0x1b1   : > { %v4368_v47 = vpop.f32.mrf.mxu1  ;;  %v5616_v56 = vpop.f32.mrf.mxu0 }
 0x1b3   : > { %v2205_v61 = vpop.f32.mrf.mxu1  ;;  %v5618_v43 = vpop.f32.mrf.mxu0 }
 0x1b5   : > { %v4371_v12 = vpop.f32.mrf.mxu1  ;;  %v5620_v34 = vpop.f32.mrf.mxu0 }
 0x1b7   : > { %v2218_v15 = vpop.f32.mrf.mxu1  ;;  %v5622_v51 = vpop.f32.mrf.mxu0 }
 0x1b9   : > { %v4372_v55 = vpop.f32.mrf.mxu1  ;;  %v5624_v50 = vpop.f32.mrf.mxu0 }
 0x1ba   : > { %6021 = vst [vmem:[#allocation16_spill] sm:$0xff] %v5624_v50 }
 0x1bb   : > { %v2221_v60 = vpop.f32.mrf.mxu1  ;;  %v5626_v24 = vpop.f32.mrf.mxu0 }
 0x1bc   : > { %6022 = vst [vmem:[#allocation17_spill] sm:$0xff] %v5626_v24 }
 0x1bd   : > { %v4375_v20 = vpop.f32.mrf.mxu1  ;;  %v5628_v45 = vpop.f32.mrf.mxu0 }
 0x1be   : > { %6023 = vst [vmem:[#allocation18_spill] sm:$0xff] %v5628_v45 }
 0x1bf   : > { %v2234_v44 = vpop.f32.mrf.mxu1  ;;  %v5630_v31 = vpop.f32.mrf.mxu0 }
 0x1c0   : > { %6024 = vst [vmem:[#allocation19_spill] sm:$0xff] %v5630_v31 }
 0x1c1   : > { %v4376_v1 = vpop.f32.mrf.mxu1  ;;  %v5632_v33 = vpop.f32.mrf.mxu0 }
 0x1c2   : > { %6025 = vst [vmem:[#allocation20_spill] sm:$0xff] %v5632_v33 }
 0x1c3   : > { %v5634_v28 = vpop.f32.mrf.mxu1  ;;  %v5636_v14 = vpop.f32.mrf.mxu0 }
 0x1c4   : > { %6026 = vst [vmem:[#allocation21_spill] sm:$0xff] %v5634_v28  ;;  %6027 = vst [vmem:[#allocation22_spill] sm:$0xff] %v5636_v14 }
 0x1c5   : > { %v5638_v53 = vpop.f32.mrf.mxu1  ;;  %v5640_v57 = vpop.f32.mrf.mxu0 }
 0x1c6   : > { %6028 = vst [vmem:[#allocation23_spill] sm:$0xff] %v5638_v53  ;;  %6029 = vst [vmem:[#allocation24_spill] sm:$0xff] %v5640_v57 }
 0x1c7   : > { %v5642_v17 = vpop.f32.mrf.mxu1  ;;  %v5644_v24 = vpop.f32.mrf.mxu0 }
 0x1c8   : > { %6030 = vst [vmem:[#allocation25_spill] sm:$0xff] %v5642_v17  ;;  %6031 = vst [vmem:[#allocation26_spill] sm:$0xff] %v5644_v24  ;;  %v2299_v24 = vadd.f32 %v4359_v21, %v5482_v8  ;;  %v2304_v8 = vadd.f32 %v4364_v37, %v5500_v46 }
 0x1c9   : > { %v5646_v27 = vpop.f32.mrf.mxu1  ;;  %v5648_v45 = vpop.f32.mrf.mxu0 }
 0x1ca   : > { %6032 = vst [vmem:[#allocation27_spill] sm:$0xff] %v5646_v27  ;;  %6033 = vst [vmem:[#allocation28_spill] sm:$0xff] %v5648_v45 }
 0x1cb   : > { %v5650_v31 = vpop.f32.mrf.mxu1  ;;  %v5652_v50 = vpop.f32.mrf.mxu0 }
 0x1cc   : > { %6034 = vst [vmem:[#allocation29_spill] sm:$0xff] %v5650_v31  ;;  %6035 = vst [vmem:[#allocation30_spill] sm:$0xff] %v5652_v50  ;;  %v2297_v50 = vadd.f32 %v2170_v0, %v5485_v10  ;;  %v2594_v10 = vadd.f32 %v5571_v18, %v2299_v24  ;;  %v2307_v0 = vadd.f32 %v4367_v30, %v5506_v63  ;;  %v6047_v30 = vld [vmem:[#allocation5_spill] sm:$0xff] }
 0x1cd   : > { %v5654_v33 = vpop.f32.mrf.mxu1  ;;  %v5656_v28 = vpop.f32.mrf.mxu0  ;;  %v2312_v63 = vadd.f32 %v4372_v55, %v5524_v6 }
 0x1ce   : > { %6036 = vst [vmem:[#allocation31_spill] sm:$0xff] %v5654_v33  ;;  %6037 = vst [vmem:[#allocation32_spill] sm:$0xff] %v5656_v28  ;;  %v2300_v33 = vadd.f32 %v4360_v3, %v5488_v36  ;;  %v2302_v36 = vadd.f32 %v2189_v32, %v5503_v54  ;;  %v2305_v3 = vadd.f32 %v2202_v52, %v5509_v13  ;;  %v6046_v32 = vld [vmem:[#allocation23_spill] sm:$0xff] }
 0x1cf   : > { %v5658_v14 = vpop.f32.mrf.mxu1  ;;  %v5660_v53 = vpop.f32.mrf.mxu0  ;;  %v2309_v54 = vadd.f32 %v2218_v15, %v5521_v2  ;;  %v2310_v13 = vadd.f32 %v2221_v60, %v5527_v35  ;;  %v5716_v6 = vadd.f32 %v5610_v26, %v2307_v0  ;;  %v6052_v15 = vld [vmem:[#allocation7_spill] sm:$0xff]  ;;  %v6056_v0 = vld [vmem:[#allocation9_spill] sm:$0xff] }
 0x1d0   : > { %6038 = vst [vmem:[#allocation33_spill] sm:$0xff] %v5660_v53  ;;  %v2298_v53 = vadd.f32 %v2173_v4, %v5491_v29  ;;  %v2308_v29 = vadd.f32 %v4368_v47, %v5512_v39  ;;  %v2595_v18 = vadd.f32 %v5580_v59, %v2300_v33  ;;  %v5710_v33 = vadd.f32 %v5606_v22, %v2304_v8  ;;  %v6042_v22 = vld [vmem:[#allocation16_spill] sm:$0xff] }
 0x1d1   : > { %v5662_v57 = vpop.f32.mrf.mxu1  ;;  %v5664_v17 = vpop.f32.mrf.mxu0  ;;  %v5713_v2 = vadd.f32 %v5608_v11, %v2302_v36  ;;  %v5719_v35 = vadd.f32 %v5612_v49, %v2305_v3  ;;  %v6045_v11 = vld [vmem:[#allocation4_spill] sm:$0xff]  ;;  %v6048_v49 = vld [vmem:[#allocation25_spill] sm:$0xff]  ;;  %v2321_v3 = vadd.f32 %v5658_v14, %v6056_v0 }
 0x1d2   : > { %6039 = vst [vmem:[#allocation34_spill] sm:$0xff] %v5662_v57  ;;  %6040 = vst [vmem:[#allocation35_spill] sm:$0xff] %v5664_v17  ;;  %v2303_v57 = vadd.f32 %v4363_v25, %v5494_v19  ;;  %v2301_v17 = vadd.f32 %v2186_v16, %v5497_v5  ;;  %v2306_v19 = vadd.f32 %v2205_v61, %v5515_v23  ;;  %v6054_v8 = vld [vmem:[#allocation8_spill] sm:$0xff] }
 0x1d3   : > { %v5667_v27 = vpop.f32.mrf.mxu1  ;;  %v5669_v45 = vpop.f32.mrf.mxu0  ;;  %v2311_v5 = vadd.f32 %v4371_v12, %v5518_v62  ;;  %v2592_v25 = vadd.f32 %v5576_v42, %v2297_v50  ;;  %v2593_v39 = vadd.f32 %v5582_v9, %v2298_v53  ;;  %v2315_v23 = vadd.f32 %v4375_v20, %v5530_v41  ;;  %v6051_v12 = vld [vmem:[#allocation27_spill] sm:$0xff]  ;;  %v6069_v0 = vld [vmem:[#allocation30_spill] sm:$0xff] }
 0x1d4   : > { %6041 = vst [vmem:[#allocation36_spill] sm:$0xff] %v5667_v27  ;;  %v2598_v16 = vadd.f32 %v5584_v40, %v2303_v57  ;;  %v5707_v37 = vadd.f32 %v5598_v7, %v2301_v17  ;;  %v5722_v41 = vadd.f32 %v5614_v48, %v2308_v29  ;;  %v2313_v57 = vadd.f32 %v2234_v44, %v5533_v38 }
 0x1d5   : > { %v5673_v31 = vpop.f32.mrf.mxu1  ;;  %v5675_v28 = vpop.f32.mrf.mxu0  ;;  %v2316_v17 = vadd.f32 %v4376_v1, %v5536_v58  ;;  %v5727_v42 = vadd.f32 %v5616_v56, %v2306_v19  ;;  %v5730_v59 = vadd.f32 %v5618_v43, %v2311_v5  ;;  %v5733_v40 = vadd.f32 %v5620_v34, %v2309_v54  ;;  %v6043_v58 = vld [vmem:[#allocation3_spill] sm:$0xff]  ;;  %v6044_v1 = vld [vmem:[#allocation21_spill] sm:$0xff]  ;;  %v6050_v43 = vld [vmem:[#allocation6_spill] sm:$0xff] }
 0x1d6   : > { %v5736_v7 = vadd.f32 %v5622_v51, %v2312_v63  ;;  %v5739_v38 = vadd.f32 %v6042_v22, %v2310_v13  ;;  %v2314_v44 = vadd.f32 %v6044_v1, %v6043_v58  ;;  %v2319_v26 = vadd.f32 %v6046_v32, %v6045_v11  ;;  %v6049_v56 = vld [vmem:[#allocation17_spill] sm:$0xff]  ;;  %v6057_v5 = vld [vmem:[#allocation18_spill] sm:$0xff]  ;;  %v6058_v63 = vld [vmem:[#allocation19_spill] sm:$0xff] }
 0x1d7   : > { %v5681_v21 = vpop.f32.mrf.mxu1  ;;  %v5683_v27 = vpop.f32.mrf.mxu0  ;;  %v2317_v52 = vadd.f32 %v6048_v49, %v6047_v30  ;;  %v5748_v61 = vadd.f32 %v6049_v56, %v2315_v23  ;;  %v2320_v34 = vadd.f32 %v6051_v12, %v6050_v43  ;;  %v6053_v51 = vld [vmem:[#allocation29_spill] sm:$0xff]  ;;  %v5766_v54 = vadd.f32 %v6057_v5, %v2313_v57  ;;  %v6059_v13 = vld [vmem:[#allocation10_spill] sm:$0xff]  ;;  %v6063_v11 = vld [vmem:[#allocation12_spill] sm:$0xff] }
 0x1d8   : > { %v2318_v55 = vadd.f32 %v6053_v51, %v6052_v15  ;;  %v2327_v32 = vadd.f32 %v5673_v31, %v6063_v11  ;;  %v6064_v57 = vld [vmem:[#allocation20_spill] sm:$0xff]  ;;  %v6074_v11 = vld [vmem:[#allocation14_spill] sm:$0xff] }
 0x1d9   : > { %v5692_v4 = vpop.f32.mrf.mxu1  ;;  %v5694_v46 = vpop.f32.mrf.mxu0  ;;  %v6060_v23 = vld [vmem:[#allocation34_spill] sm:$0xff]  ;;  %v6066_v12 = vld [vmem:[#allocation24_spill] sm:$0xff] }
 0x1da   : > { %v5786_v15 = vadd.f32 %v6066_v12, %v2317_v52  ;;  %v6068_v31 = vld [vmem:[#allocation28_spill] sm:$0xff] }
 0x1db   : > { %v5703_v62 = vpop.f32.mrf.mxu1  ;;  %v4461_v24 = vpop.f32.mrf.mxu0 }
 0x1dd   : > { %v4427_v53 = vpop.f32.mrf.mxu1  ;;  %v3053_v20 = vpop.f32.mrf.mxu0 }
 0x1de   : > { %v2888_v9 = vadd.f32 %v4427_v53, %v2594_v10  ;;  %v6055_v10 = vld [vmem:[#allocation31_spill] sm:$0xff] }
 0x1df   : > { %v2759_v48 = vpop.f32.mrf.mxu1  ;;  %v4462_v47 = vpop.f32.mrf.mxu0  ;;  %v2323_v36 = vadd.f32 %v6055_v10, %v6054_v8  ;;  %v6061_v53 = vld [vmem:[#allocation11_spill] sm:$0xff] }
 0x1e0   : > { %v3182_v50 = vadd.f32 %v4461_v24, %v2888_v9  ;;  %v2886_v60 = vadd.f32 %v2759_v48, %v2592_v25  ;;  %v5769_v25 = vadd.f32 %v6058_v63, %v2316_v17  ;;  %v2324_v24 = vadd.f32 %v6060_v23, %v6059_v13  ;;  %v6062_v9 = vld [vmem:[#allocation36_spill] sm:$0xff]  ;;  %v6065_v17 = vld [vmem:[#allocation22_spill] sm:$0xff] }
 0x1e1   : > { %v4428_v29 = vpop.f32.mrf.mxu1  ;;  %v3056_v19 = vpop.f32.mrf.mxu0  ;;  %v2322_v22 = vadd.f32 %v6062_v9, %v6061_v53  ;;  %v5778_v48 = vadd.f32 %v6064_v57, %v2314_v44  ;;  %v5781_v56 = vadd.f32 %v6065_v17, %v2319_v26  ;;  %v6070_v26 = vld [vmem:[#allocation32_spill] sm:$0xff] }
 0x1e2   : > { %v3923_v58 = vpack.c.bf16 %v3182_v50, %v3182_v50  ;;  %v3180_v1 = vadd.f32 %v3053_v20, %v2886_v60  ;;  %v2889_v14 = vadd.f32 %v4428_v29, %v2595_v18  ;;  %v6067_v20 = vld [vmem:[#allocation26_spill] sm:$0xff]  ;;  %v5792_v18 = vadd.f32 %v6068_v31, %v2318_v55  ;;  %v6072_v55 = vld [vmem:[#allocation35_spill] sm:$0xff] }
 0x1e3   : > { %v2762_v30 = vpop.f32.mrf.mxu1  ;;  %v4465_v49 = vpop.f32.mrf.mxu0  ;;  %v5789_v51 = vadd.f32 %v6067_v20, %v2320_v34  ;;  %v5795_v29 = vadd.f32 %v6069_v0, %v2323_v36  ;;  %v5798_v5 = vadd.f32 %v6070_v26, %v2321_v3  ;;  %v6071_v34 = vld [vmem:[#allocation33_spill] sm:$0xff]  ;;  %v5806_v23 = vadd.f32 %v6072_v55, %v2322_v22 }
 0x1e4   : > { %3343 = vst.msk [vmem:[%s5759_s16 + $0x8] sm:$0xf] %vm3340_vm3, %v3923_v58  ;;  %v3921_v43 = vpack.c.bf16 %v3180_v1, %v3180_v1  ;;  %v3183_v60 = vadd.f32 %v4462_v47, %v2889_v14  ;;  %v2887_v8 = vadd.f32 %v2762_v30, %v2593_v39  ;;  %v3443_v52 = vmul.f32 %v3180_v1, %v3180_v1  ;;  %v6073_v39 = vld [vmem:[#allocation13_spill] sm:$0xff] }
 0x1e5   : > { %v4431_v10 = vpop.f32.mrf.mxu1  ;;  %v3069_v44 = vpop.f32.mrf.mxu0  ;;  %v5803_v13 = vadd.f32 %v6071_v34, %v2324_v24  ;;  %v5810_v47 = vadd.f32 %v5681_v21, %v6073_v39  ;;  %v5813_v58 = vadd.f32 %v5669_v45, %v2327_v32  ;;  %v3445_v24 = vmul.f32 %v3182_v50, %v3182_v50 }
 0x1e6   : > { %3341 = vst.msk [vmem:[%s5759_s16] sm:$0xf] %vm3340_vm3, %v3921_v43  ;;  %v2892_v63 = vadd.f32 %v4431_v10, %v2598_v16  ;;  %v3924_v36 = vpack.c.bf16 %v3183_v60, %v3183_v60  ;;  %v3181_v53 = vadd.f32 %v3056_v19, %v2887_v8  ;;  %v5817_v16 = vadd.f32 %v5692_v4, %v6074_v11 }
 0x1e7   : > { %v2775_v9 = vpop.f32.mrf.mxu1  ;;  %v4466_v3 = vpop.f32.mrf.mxu0  ;;  %v3373_v30 = vsel %vm349_vm1, %v3180_v1, 0.0  ;;  %v3376_v32 = vsel %vm349_vm1, %v3182_v50, 0.0  ;;  %v3475_v4 = vsel %vm349_vm1, %v3443_v52, 0.0  ;;  %v3478_v10 = vsel %vm349_vm1, %v3445_v24, 0.0 }
 0x1e8   : > { %v3186_v14 = vadd.f32 %v4465_v49, %v2892_v63  ;;  %v2890_v22 = vadd.f32 %v2775_v9, %v5707_v37  ;;  %3344 = vst.msk [vmem:[%s5759_s16 + $0xc] sm:$0xf] %vm3340_vm3, %v3924_v36  ;;  %v3922_v21 = vpack.c.bf16 %v3181_v53, %v3181_v53  ;;  %v3374_v19 = vsel %vm349_vm1, %v3181_v53, 0.0 }
 0x1e9   : > { %v3444_v57 = vmul.f32 %v3181_v53, %v3181_v53  ;;  %v4432_v17 = vpop.f32.mrf.mxu1  ;;  %v3072_v45 = vpop.f32.mrf.mxu0  ;;  %v3375_v43 = vadd.f32 %v3374_v19, %v3373_v30  ;;  %v3446_v49 = vmul.f32 %v3183_v60, %v3183_v60  ;;  %v3378_v52 = vsel %vm349_vm1, %v3183_v60, 0.0 }
 0x1ea   : > { %v3927_v12 = vpack.c.bf16 %v3186_v14, %v3186_v14  ;;  %3342 = vst.msk [vmem:[%s5759_s16 + $0x4] sm:$0xf] %vm3340_vm3, %v3922_v21  ;;  %v3184_v1 = vadd.f32 %v3069_v44, %v2890_v22  ;;  %v2893_v20 = vadd.f32 %v4432_v17, %v5710_v33  ;;  %v3449_v24 = vmul.f32 %v3186_v14, %v3186_v14 }
 0x1eb   : > { %v3476_v37 = vsel %vm349_vm1, %v3444_v57, 0.0  ;;  %v2778_v31 = vpop.f32.mrf.mxu1  ;;  %v4469_v8 = vpop.f32.mrf.mxu0  ;;  %v3377_v0 = vadd.f32 %v3376_v32, %v3375_v43  ;;  %v3480_v11 = vsel %vm349_vm1, %v3446_v49, 0.0 }
 0x1ec   : > { %v3477_v26 = vadd.f32 %v3476_v37, %v3475_v4  ;;  %3347 = vst.msk [vmem:[%s5759_s16 + $0x18] sm:$0xf] %vm3340_vm3, %v3927_v12  ;;  %v2891_v50 = vadd.f32 %v2778_v31, %v5713_v2  ;;  %v3925_v63 = vpack.c.bf16 %v3184_v1, %v3184_v1  ;;  %v3447_v34 = vmul.f32 %v3184_v1, %v3184_v1 }
 0x1ed   : > { %v3187_v55 = vadd.f32 %v4466_v3, %v2893_v20  ;;  %v4435_v39 = vpop.f32.mrf.mxu1  ;;  %v3085_v44 = vpop.f32.mrf.mxu0  ;;  %v3379_v33 = vadd.f32 %v3378_v52, %v3377_v0  ;;  %v3380_v2 = vsel %vm349_vm1, %v3184_v1, 0.0  ;;  %v5850_v1 = vadd.f32 %v5675_v28, %v5810_v47 }
 0x1ee   : > { %v3479_v36 = vadd.f32 %v3478_v10, %v3477_v26  ;;  %v3185_v53 = vadd.f32 %v3072_v45, %v2891_v50  ;;  %v2896_v9 = vadd.f32 %v4435_v39, %v5716_v6  ;;  %3345 = vst.msk [vmem:[%s5759_s16 + $0x10] sm:$0xf] %vm3340_vm3, %v3925_v63  ;;  %v3482_v17 = vsel %vm349_vm1, %v3447_v34, 0.0  ;;  %v6075_v34 = vld [vmem:[#allocation15_spill] sm:$0xff] }
 0x1ef   : > { %v3928_v60 = vpack.c.bf16 %v3187_v55, %v3187_v55  ;;  %v2791_v22 = vpop.f32.mrf.mxu1  ;;  %v4470_v30 = vpop.f32.mrf.mxu0  ;;  %v3381_v3 = vadd.f32 %v3380_v2, %v3379_v33  ;;  %v3384_v20 = vsel %vm349_vm1, %v3186_v14, 0.0  ;;  %v3450_v31 = vmul.f32 %v3187_v55, %v3187_v55 }
 0x1f0   : > { %v3481_v21 = vadd.f32 %v3480_v11, %v3479_v36  ;;  %v3926_v19 = vpack.c.bf16 %v3185_v53, %v3185_v53  ;;  %v3382_v57 = vsel %vm349_vm1, %v3185_v53, 0.0  ;;  %v3448_v6 = vmul.f32 %v3185_v53, %v3185_v53 }
 0x1f1   : > { %3348 = vst.msk [vmem:[%s5759_s16 + $0x1c] sm:$0xf] %vm3340_vm3, %v3928_v60  ;;  %v3190_v45 = vadd.f32 %v4469_v8, %v2896_v9  ;;  %v2894_v32 = vadd.f32 %v2791_v22, %v5719_v35  ;;  %v4436_v4 = vpop.f32.mrf.mxu1  ;;  %v3088_v43 = vpop.f32.mrf.mxu0  ;;  %v3383_v49 = vadd.f32 %v3382_v57, %v3381_v3  ;;  %v2326_v39 = vadd.f32 %v5703_v62, %v6075_v34 }
 0x1f2   : > { %v3483_v12 = vadd.f32 %v3482_v17, %v3481_v21  ;;  %3346 = vst.msk [vmem:[%s5759_s16 + $0x14] sm:$0xf] %vm3340_vm3, %v3926_v19  ;;  %v2897_v37 = vadd.f32 %v4436_v4, %v5722_v41  ;;  %v3484_v8 = vsel %vm349_vm1, %v3448_v6, 0.0  ;;  %v3486_v41 = vsel %vm349_vm1, %v3449_v24, 0.0 }
 0x1f3   : > { %v3931_v10 = vpack.c.bf16 %v3190_v45, %v3190_v45  ;;  %v2794_v35 = vpop.f32.mrf.mxu1  ;;  %v4473_v0 = vpop.f32.mrf.mxu0  ;;  %v3385_v26 = vadd.f32 %v3384_v20, %v3383_v49  ;;  %v3188_v52 = vadd.f32 %v3085_v44, %v2894_v32  ;;  %v3386_v28 = vsel %vm349_vm1, %v3187_v55, 0.0 }
 0x1f4   : > { %v3485_v50 = vadd.f32 %v3484_v8, %v3483_v12  ;;  %v3191_v63 = vadd.f32 %v4470_v30, %v2897_v37  ;;  %v2895_v47 = vadd.f32 %v2794_v35, %v5727_v42  ;;  %v5863_v44 = vadd.f32 %v5683_v27, %v5817_v16 }
 0x1f5   : > { %3351 = vst.msk [vmem:[%s5759_s16 + $0x28] sm:$0xf] %vm3340_vm3, %v3931_v10  ;;  %v4439_v14 = vpop.f32.mrf.mxu1  ;;  %v3101_v36 = vpop.f32.mrf.mxu0  ;;  %v3929_v53 = vpack.c.bf16 %v3188_v52, %v3188_v52  ;;  %v3387_v9 = vadd.f32 %v3386_v28, %v3385_v26  ;;  %v3488_v62 = vsel %vm349_vm1, %v3450_v31, 0.0  ;;  %v3388_v11 = vsel %vm349_vm1, %v3188_v52, 0.0 }
 0x1f6   : > { %v3487_v33 = vadd.f32 %v3486_v41, %v3485_v50  ;;  %v3451_v24 = vmul.f32 %v3188_v52, %v3188_v52  ;;  %v3932_v55 = vpack.c.bf16 %v3191_v63, %v3191_v63  ;;  %v3189_v30 = vadd.f32 %v3088_v43, %v2895_v47 }
 0x1f7   : > { %v2807_v2 = vpop.f32.mrf.mxu1  ;;  %v4474_v60 = vpop.f32.mrf.mxu0  ;;  %3349 = vst.msk [vmem:[%s5759_s16 + $0x20] sm:$0xf] %vm3340_vm3, %v3929_v53  ;;  %v3389_v42 = vadd.f32 %v3388_v11, %v3387_v9  ;;  %v2900_v3 = vadd.f32 %v4439_v14, %v5730_v59  ;;  %v3453_v21 = vmul.f32 %v3190_v45, %v3190_v45  ;;  %v3454_v27 = vmul.f32 %v3191_v63, %v3191_v63 }
 0x1f8   : > { %v3489_v22 = vadd.f32 %v3488_v62, %v3487_v33  ;;  %v3490_v19 = vsel %vm349_vm1, %v3451_v24, 0.0  ;;  %3352 = vst.msk [vmem:[%s5759_s16 + $0x2c] sm:$0xf] %vm3340_vm3, %v3932_v55  ;;  %v2898_v16 = vadd.f32 %v2807_v2, %v5733_v40  ;;  %v3930_v32 = vpack.c.bf16 %v3189_v30, %v3189_v30 }
 0x1f9   : > { %v4440_v57 = vpop.f32.mrf.mxu1  ;;  %v3104_v17 = vpop.f32.mrf.mxu0  ;;  %v3390_v4 = vsel %vm349_vm1, %v3189_v30, 0.0  ;;  %v3452_v12 = vmul.f32 %v3189_v30, %v3189_v30  ;;  %v3194_v43 = vadd.f32 %v4473_v0, %v2900_v3  ;;  %v3392_v8 = vsel %vm349_vm1, %v3190_v45, 0.0 }
 0x1fa   : > { %v3491_v6 = vadd.f32 %v3490_v19, %v3489_v22  ;;  %v3391_v49 = vadd.f32 %v3390_v4, %v3389_v42  ;;  %v3192_v37 = vadd.f32 %v3101_v36, %v2898_v16  ;;  %v2901_v59 = vadd.f32 %v4440_v57, %v5736_v7  ;;  %3350 = vst.msk [vmem:[%s5759_s16 + $0x24] sm:$0xf] %vm3340_vm3, %v3930_v32 }
 0x1fb   : > { %v2810_v20 = vpop.f32.mrf.mxu1  ;;  %v4477_v31 = vpop.f32.mrf.mxu0  ;;  %v3492_v40 = vsel %vm349_vm1, %v3452_v12, 0.0  ;;  %v5882_v35 = vadd.f32 %v5694_v46, %v2326_v39  ;;  %v3494_v26 = vsel %vm349_vm1, %v3453_v21, 0.0  ;;  %v3935_v7 = vpack.c.bf16 %v3194_v43, %v3194_v43 }
 0x1fc   : > { %v2899_v10 = vadd.f32 %v2810_v20, %v5739_v38  ;;  %v3393_v0 = vadd.f32 %v3392_v8, %v3391_v49  ;;  %v3493_v50 = vadd.f32 %v3492_v40, %v3491_v6  ;;  %v3394_v45 = vsel %vm349_vm1, %v3191_v63, 0.0 }
 0x1fd   : > { %v4443_v52 = vpop.f32.mrf.mxu1  ;;  %v3117_v34 = vpop.f32.mrf.mxu0  ;;  %v3496_v41 = vsel %vm349_vm1, %v3454_v27, 0.0  ;;  %v3933_v28 = vpack.c.bf16 %v3192_v37, %v3192_v37  ;;  %v3455_v47 = vmul.f32 %v3192_v37, %v3192_v37  ;;  %3355 = vst.msk [vmem:[%s5759_s16 + $0x38] sm:$0xf] %vm3340_vm3, %v3935_v7  ;;  %v3195_v46 = vadd.f32 %v4474_v60, %v2901_v59 }
 0x1fe   : > { %v3495_v14 = vadd.f32 %v3494_v26, %v3493_v50  ;;  %v3395_v38 = vadd.f32 %v3394_v45, %v3393_v0  ;;  %v3193_v39 = vadd.f32 %v3104_v17, %v2899_v10  ;;  %v3457_v53 = vmul.f32 %v3194_v43, %v3194_v43 }
 0x1ff   : > { %v2823_v36 = vpop.f32.mrf.mxu1  ;;  %v4478_v33 = vpop.f32.mrf.mxu0  ;;  %3353 = vst.msk [vmem:[%s5759_s16 + $0x30] sm:$0xf] %vm3340_vm3, %v3933_v28  ;;  %v3396_v9 = vsel %vm349_vm1, %v3192_v37, 0.0  ;;  %v2904_v63 = vadd.f32 %v4443_v52, %v5748_v61  ;;  %v3498_v55 = vsel %vm349_vm1, %v3455_v47, 0.0  ;;  %v3936_v2 = vpack.c.bf16 %v3195_v46, %v3195_v46 }
 0x200   : > { %v2902_v62 = vadd.f32 %v2823_v36, %v5766_v54  ;;  %v3397_v11 = vadd.f32 %v3396_v9, %v3395_v38  ;;  %v3497_v24 = vadd.f32 %v3496_v41, %v3495_v14  ;;  %v3458_v22 = vmul.f32 %v3195_v46, %v3195_v46 }
 0x201   : > { %v4444_v60 = vpop.f32.mrf.mxu1  ;;  %v3120_v42 = vpop.f32.mrf.mxu0  ;;  %v3934_v30 = vpack.c.bf16 %v3193_v39, %v3193_v39  ;;  %v3398_v3 = vsel %vm349_vm1, %v3193_v39, 0.0  ;;  %v3456_v21 = vmul.f32 %v3193_v39, %v3193_v39  ;;  %3356 = vst.msk [vmem:[%s5759_s16 + $0x3c] sm:$0xf] %vm3340_vm3, %v3936_v2  ;;  %v3198_v61 = vadd.f32 %v4477_v31, %v2904_v63 }
 0x202   : > { %v3499_v19 = vadd.f32 %v3498_v55, %v3497_v24  ;;  %v3399_v27 = vadd.f32 %v3398_v3, %v3397_v11  ;;  %v3196_v16 = vadd.f32 %v3117_v34, %v2902_v62  ;;  %v3400_v17 = vsel %vm349_vm1, %v3194_v43, 0.0 }
 0x203   : > { %v2826_v54 = vpop.f32.mrf.mxu1  ;;  %v4481_v57 = vpop.f32.mrf.mxu0  ;;  %3354 = vst.msk [vmem:[%s5759_s16 + $0x34] sm:$0xf] %vm3340_vm3, %v3934_v30  ;;  %v3500_v6 = vsel %vm349_vm1, %v3456_v21, 0.0  ;;  %v2905_v32 = vadd.f32 %v4444_v60, %v5769_v25  ;;  %v3502_v12 = vsel %vm349_vm1, %v3457_v53, 0.0  ;;  %v3939_v59 = vpack.c.bf16 %v3198_v61, %v3198_v61 }
 0x204   : > { %v2903_v4 = vadd.f32 %v2826_v54, %v5778_v48  ;;  %v3401_v49 = vadd.f32 %v3400_v17, %v3399_v27  ;;  %v3501_v37 = vadd.f32 %v3500_v6, %v3499_v19  ;;  %v3402_v8 = vsel %vm349_vm1, %v3195_v46, 0.0 }
 0x205   : > { %v4447_v20 = vpop.f32.mrf.mxu1  ;;  %v3133_v31 = vpop.f32.mrf.mxu0  ;;  %v3504_v43 = vsel %vm349_vm1, %v3458_v22, 0.0  ;;  %v3937_v40 = vpack.c.bf16 %v3196_v16, %v3196_v16  ;;  %v3459_v10 = vmul.f32 %v3196_v16, %v3196_v16  ;;  %3359 = vst.msk [vmem:[%s5759_s16 + $0x48] sm:$0xf] %vm3340_vm3, %v3939_v59  ;;  %v3199_v0 = vadd.f32 %v4478_v33, %v2905_v32 }
 0x206   : > { %v3503_v26 = vadd.f32 %v3502_v12, %v3501_v37  ;;  %v3403_v25 = vadd.f32 %v3402_v8, %v3401_v49  ;;  %v3197_v48 = vadd.f32 %v3120_v42, %v2903_v4  ;;  %v3461_v52 = vmul.f32 %v3198_v61, %v3198_v61 }
 0x207   : > { %v2839_v50 = vpop.f32.mrf.mxu1  ;;  %v4482_v7 = vpop.f32.mrf.mxu0  ;;  %3357 = vst.msk [vmem:[%s5759_s16 + $0x40] sm:$0xf] %vm3340_vm3, %v3937_v40  ;;  %v3404_v34 = vsel %vm349_vm1, %v3196_v16, 0.0  ;;  %v2908_v45 = vadd.f32 %v4447_v20, %v5781_v56  ;;  %v3506_v14 = vsel %vm349_vm1, %v3459_v10, 0.0  ;;  %v3940_v38 = vpack.c.bf16 %v3199_v0, %v3199_v0 }
 0x208   : > { %v2906_v41 = vadd.f32 %v2839_v50, %v5786_v15  ;;  %v3405_v28 = vadd.f32 %v3404_v34, %v3403_v25  ;;  %v3505_v47 = vadd.f32 %v3504_v43, %v3503_v26  ;;  %v3462_v36 = vmul.f32 %v3199_v0, %v3199_v0 }
 0x209   : > { %v4448_v46 = vpop.f32.mrf.mxu1  ;;  %v3136_v39 = vpop.f32.mrf.mxu0  ;;  %v3938_v33 = vpack.c.bf16 %v3197_v48, %v3197_v48  ;;  %v3406_v53 = vsel %vm349_vm1, %v3197_v48, 0.0  ;;  %v3460_v9 = vmul.f32 %v3197_v48, %v3197_v48  ;;  %3360 = vst.msk [vmem:[%s5759_s16 + $0x4c] sm:$0xf] %vm3340_vm3, %v3940_v38  ;;  %v3202_v56 = vadd.f32 %v4481_v57, %v2908_v45 }
 0x20a   : > { %v3507_v63 = vadd.f32 %v3506_v14, %v3505_v47  ;;  %v3407_v62 = vadd.f32 %v3406_v53, %v3405_v28  ;;  %v3200_v11 = vadd.f32 %v3133_v31, %v2906_v41  ;;  %v3408_v55 = vsel %vm349_vm1, %v3198_v61, 0.0 }
 0x20b   : > { %v2842_v15 = vpop.f32.mrf.mxu1  ;;  %v4485_v24 = vpop.f32.mrf.mxu0  ;;  %3358 = vst.msk [vmem:[%s5759_s16 + $0x44] sm:$0xf] %vm3340_vm3, %v3938_v33  ;;  %v3508_v2 = vsel %vm349_vm1, %v3460_v9, 0.0  ;;  %v2909_v60 = vadd.f32 %v4448_v46, %v5789_v51  ;;  %v3510_v22 = vsel %vm349_vm1, %v3461_v52, 0.0  ;;  %v3943_v21 = vpack.c.bf16 %v3202_v56, %v3202_v56 }
 0x20c   : > { %v2907_v42 = vadd.f32 %v2842_v15, %v5792_v18  ;;  %v3409_v30 = vadd.f32 %v3408_v55, %v3407_v62  ;;  %v3509_v3 = vadd.f32 %v3508_v2, %v3507_v63  ;;  %v3410_v16 = vsel %vm349_vm1, %v3199_v0, 0.0 }
 0x20d   : > { %v4451_v19 = vpop.f32.mrf.mxu1  ;;  %v3149_v27 = vpop.f32.mrf.mxu0  ;;  %v3512_v61 = vsel %vm349_vm1, %v3462_v36, 0.0  ;;  %v3941_v54 = vpack.c.bf16 %v3200_v11, %v3200_v11  ;;  %v3463_v57 = vmul.f32 %v3200_v11, %v3200_v11  ;;  %3363 = vst.msk [vmem:[%s5759_s16 + $0x58] sm:$0xf] %vm3340_vm3, %v3943_v21  ;;  %v3203_v6 = vadd.f32 %v4482_v7, %v2909_v60 }
 0x20e   : > { %v3511_v17 = vadd.f32 %v3510_v22, %v3509_v3  ;;  %v3411_v51 = vadd.f32 %v3410_v16, %v3409_v30  ;;  %v3201_v18 = vadd.f32 %v3136_v39, %v2907_v42  ;;  %v3465_v12 = vmul.f32 %v3202_v56, %v3202_v56 }
 0x20f   : > { %v2855_v32 = vpop.f32.mrf.mxu1  ;;  %v4486_v4 = vpop.f32.mrf.mxu0  ;;  %3361 = vst.msk [vmem:[%s5759_s16 + $0x50] sm:$0xf] %vm3340_vm3, %v3941_v54  ;;  %v3412_v49 = vsel %vm349_vm1, %v3200_v11, 0.0  ;;  %v2912_v37 = vadd.f32 %v4451_v19, %v5795_v29  ;;  %v3514_v8 = vsel %vm349_vm1, %v3463_v57, 0.0  ;;  %v3944_v43 = vpack.c.bf16 %v3203_v6, %v3203_v6 }
 0x210   : > { %v2910_v59 = vadd.f32 %v2855_v32, %v5798_v5  ;;  %v3413_v20 = vadd.f32 %v3412_v49, %v3411_v51  ;;  %v3513_v31 = vadd.f32 %v3512_v61, %v3511_v17  ;;  %v3466_v26 = vmul.f32 %v3203_v6, %v3203_v6 }
 0x211   : > { %v4452_v40 = vpop.f32.mrf.mxu1  ;;  %v3152_v10 = vpop.f32.mrf.mxu0  ;;  %v3942_v25 = vpack.c.bf16 %v3201_v18, %v3201_v18  ;;  %v3414_v0 = vsel %vm349_vm1, %v3201_v18, 0.0  ;;  %v3464_v48 = vmul.f32 %v3201_v18, %v3201_v18  ;;  %3364 = vst.msk [vmem:[%s5759_s16 + $0x5c] sm:$0xf] %vm3340_vm3, %v3944_v43  ;;  %v3206_v29 = vadd.f32 %v4485_v24, %v2912_v37 }
 0x212   : > { %v3515_v50 = vadd.f32 %v3514_v8, %v3513_v31  ;;  %v3415_v7 = vadd.f32 %v3414_v0, %v3413_v20  ;;  %v3204_v52 = vadd.f32 %v3149_v27, %v2910_v59  ;;  %v3416_v45 = vsel %vm349_vm1, %v3202_v56, 0.0 }
 0x213   : > { %v2858_v5 = vpop.f32.mrf.mxu1  ;;  %v4489_v34 = vpop.f32.mrf.mxu0  ;;  %3362 = vst.msk [vmem:[%s5759_s16 + $0x54] sm:$0xf] %vm3340_vm3, %v3942_v25  ;;  %v3516_v41 = vsel %vm349_vm1, %v3464_v48, 0.0  ;;  %v2913_v28 = vadd.f32 %v4452_v40, %v5803_v13  ;;  %v3518_v14 = vsel %vm349_vm1, %v3465_v12, 0.0  ;;  %v3947_v39 = vpack.c.bf16 %v3206_v29, %v3206_v29 }
 0x214   : > { %v2911_v47 = vadd.f32 %v2858_v5, %v5806_v23  ;;  %v3417_v38 = vadd.f32 %v3416_v45, %v3415_v7  ;;  %v3517_v46 = vadd.f32 %v3516_v41, %v3515_v50  ;;  %v3418_v33 = vsel %vm349_vm1, %v3203_v6, 0.0 }
 0x215   : > { %v4455_v36 = vpop.f32.mrf.mxu1  ;;  %v3520_v53 = vsel %vm349_vm1, %v3466_v26, 0.0  ;;  %v3945_v9 = vpack.c.bf16 %v3204_v52, %v3204_v52  ;;  %v3467_v63 = vmul.f32 %v3204_v52, %v3204_v52  ;;  %v3165_v62 = vpop.f32.mrf.mxu0  ;;  %3367 = vst.msk [vmem:[%s5759_s16 + $0x68] sm:$0xf] %vm3340_vm3, %v3947_v39  ;;  %v3207_v11 = vadd.f32 %v4486_v4, %v2913_v28 }
 0x216   : > { %v3519_v56 = vadd.f32 %v3518_v14, %v3517_v46  ;;  %v3419_v13 = vadd.f32 %v3418_v33, %v3417_v38  ;;  %v3205_v23 = vadd.f32 %v3152_v10, %v2911_v47  ;;  %v3424_v24 = vsel %vm349_vm1, %v3206_v29, 0.0 }
 0x217   : > { %v2871_v15 = vpop.f32.mrf.mxu1  ;;  %3365 = vst.msk [vmem:[%s5759_s16 + $0x60] sm:$0xf] %vm3340_vm3, %v3945_v9  ;;  %v3420_v55 = vsel %vm349_vm1, %v3204_v52, 0.0  ;;  %v2916_v2 = vadd.f32 %v4455_v36, %v5813_v58  ;;  %v3469_v42 = vmul.f32 %v3206_v29, %v3206_v29  ;;  %v3948_v3 = vpack.c.bf16 %v3207_v11, %v3207_v11  ;;  %v4490_v54 = vpop.f32.mrf.mxu0 }
 0x218   : > { %v2914_v60 = vadd.f32 %v2871_v15, %v5850_v1  ;;  %v3421_v22 = vadd.f32 %v3420_v55, %v3419_v13  ;;  %v3521_v30 = vadd.f32 %v3520_v53, %v3519_v56  ;;  %v3522_v19 = vsel %vm349_vm1, %v3467_v63, 0.0 }
 0x219   : > { %v4456_v21 = vpop.f32.mrf.mxu1  ;;  %v3946_v27 = vpack.c.bf16 %v3205_v23, %v3205_v23  ;;  %v3422_v16 = vsel %vm349_vm1, %v3205_v23, 0.0  ;;  %v3468_v61 = vmul.f32 %v3205_v23, %v3205_v23  ;;  %3368 = vst.msk [vmem:[%s5759_s16 + $0x6c] sm:$0xf] %vm3340_vm3, %v3948_v3  ;;  %v3210_v58 = vadd.f32 %v4489_v34, %v2916_v2  ;;  %v3168_v43 = vpop.f32.mrf.mxu0 }
 0x21a   : > { %v3523_v57 = vadd.f32 %v3522_v19, %v3521_v30  ;;  %v3423_v17 = vadd.f32 %v3422_v16, %v3421_v22  ;;  %v3208_v51 = vadd.f32 %v3165_v62, %v2914_v60  ;;  %v3470_v6 = vmul.f32 %v3207_v11, %v3207_v11  ;;  %v3545_v60 = vld [vmem:[%s5590_s10] sm:$0x1] }
 0x21b   : > { %v2874_v1 = vpop.f32.mrf.mxu1  ;;  %3366 = vst.msk [vmem:[%s5759_s16 + $0x64] sm:$0xf] %vm3340_vm3, %v3946_v27  ;;  %v3524_v18 = vsel %vm349_vm1, %v3468_v61, 0.0  ;;  %v2917_v32 = vadd.f32 %v4456_v21, %v5863_v44  ;;  %v3951_v37 = vpack.c.bf16 %v3210_v58, %v3210_v58  ;;  %v3526_v59 = vsel %vm349_vm1, %v3469_v42, 0.0  ;;  %v3549_v30 = vld [vmem:[%s5596_s13] sm:$0x1] }
 0x21c   : > { %v2915_v4 = vadd.f32 %v2874_v1, %v5882_v35  ;;  %v3425_v12 = vadd.f32 %v3424_v24, %v3423_v17  ;;  %v3525_v49 = vadd.f32 %v3524_v18, %v3523_v57  ;;  %v3426_v20 = vsel %vm349_vm1, %v3207_v11, 0.0 }
 0x21d   : > { %v3949_v31 = vpack.c.bf16 %v3208_v51, %v3208_v51  ;;  %v3471_v8 = vmul.f32 %v3208_v51, %v3208_v51  ;;  %3371 = vst.msk [vmem:[%s5759_s16 + $0x78] sm:$0xf] %vm3340_vm3, %v3951_v37  ;;  %v3211_v26 = vadd.f32 %v4490_v54, %v2917_v32  ;;  %v3528_v25 = vsel %vm349_vm1, %v3470_v6, 0.0 }
 0x21e   : > { %v3527_v40 = vadd.f32 %v3526_v59, %v3525_v49  ;;  %v3427_v10 = vadd.f32 %v3426_v20, %v3425_v12  ;;  %v3209_v44 = vadd.f32 %v3168_v43, %v2915_v4  ;;  %v3428_v35 = vsel %vm349_vm1, %v3208_v51, 0.0 }
 0x21f   : > { %3369 = vst.msk [vmem:[%s5759_s16 + $0x70] sm:$0xf] %vm3340_vm3, %v3949_v31  ;;  %v3473_v0 = vmul.f32 %v3210_v58, %v3210_v58  ;;  %v3952_v7 = vpack.c.bf16 %v3211_v26, %v3211_v26  ;;  %v3530_v29 = vsel %vm349_vm1, %v3471_v8, 0.0  ;;  %v3432_v28 = vsel %vm349_vm1, %v3210_v58, 0.0 }
 0x220   : > { %v3429_v48 = vadd.f32 %v3428_v35, %v3427_v10  ;;  %v3529_v50 = vadd.f32 %v3528_v25, %v3527_v40  ;;  %v3950_v52 = vpack.c.bf16 %v3209_v44, %v3209_v44  ;;  %v3430_v5 = vsel %vm349_vm1, %v3209_v44, 0.0 }
 0x221   : > { %v3472_v34 = vmul.f32 %v3209_v44, %v3209_v44  ;;  %3372 = vst.msk [vmem:[%s5759_s16 + $0x7c] sm:$0xf] %vm3340_vm3, %v3952_v7  ;;  %v3474_v47 = vmul.f32 %v3211_v26, %v3211_v26  ;;  %v3534_v39 = vsel %vm349_vm1, %v3473_v0, 0.0  ;;  %v3434_v36 = vsel %vm349_vm1, %v3211_v26, 0.0 }
 0x222   : > { %v3531_v45 = vadd.f32 %v3530_v29, %v3529_v50  ;;  %v3431_v41 = vadd.f32 %v3430_v5, %v3429_v48  ;;  %3370 = vst.msk [vmem:[%s5759_s16 + $0x74] sm:$0xf] %vm3340_vm3, %v3950_v52 }
 0x223   : > { %v3532_v14 = vsel %vm349_vm1, %v3472_v34, 0.0  ;;  %v3536_v9 = vsel %vm349_vm1, %v3474_v47, 0.0 }
 0x224   : > { %v3433_v38 = vadd.f32 %v3432_v28, %v3431_v41  ;;  %v3533_v46 = vadd.f32 %v3532_v14, %v3531_v45 }
 0x226   : > { %v3435_v33 = vadd.f32 %v3434_v36, %v3433_v38  ;;  %v3535_v53 = vadd.f32 %v3534_v39, %v3533_v46 }
 0x228   : > { %v3436_v63 = vrot.slane %v3435_v33, 4  ;;  %v3537_v62 = vadd.f32 %v3536_v9, %v3535_v53 }
 0x22a   : > { %v3437_v56 = vadd.f32 %v3436_v63, %v3435_v33  ;;  %v3538_v13 = vrot.slane %v3537_v62, 4 }
 0x22c   : > { %v3438_v11 = vrot.slane %v3437_v56, 2  ;;  %v3539_v23 = vadd.f32 %v3538_v13, %v3537_v62 }
 0x22e   : > { %v3439_v15 = vadd.f32 %v3438_v11, %v3437_v56  ;;  %v3540_v24 = vrot.slane %v3539_v23, 2 }
 0x230   : > { %v3440_v55 = vrot.slane %v3439_v15, 1  ;;  %v3541_v2 = vadd.f32 %v3540_v24, %v3539_v23 }
 0x232   : > { %v3441_v42 = vadd.f32 %v3440_v55, %v3439_v15  ;;  %v3542_v22 = vrot.slane %v3541_v2, 1 }
 0x234   : > { %v3543_v3 = vadd.f32 %v3542_v22, %v3541_v2  ;;  %v3546_v21 = vadd.f32 %v3545_v60, %v3441_v42 }
 0x236   : > { %3548 = vst.msk [vmem:[%s5590_s10] sm:$0x1] %vm346_vm2, %v3546_v21  ;;  %v3550_v19 = vadd.f32 %v3549_v30, %v3543_v3 }
 0x238   : > { %3551 = vst.msk [vmem:[%s5596_s13] sm:$0x1] %vm346_vm2, %v3550_v19 }
 0x239 PF: > { %s17_s23 = sadd.s32 1, %s4550_s23   ;;  %s6076_s21 = smov %s4546_s22 }
 0x23a   : > { %p14_p5 = scmp.ge.s32.totalorder %s17_s23, 4   ;;  %s6077_s22 = smov %s6079_s24 }
 0x23c   :  { %16 = sbr.rel (!%p14_p5) target bundleno = 2 (0x2), region = 107 }

// kernel: bottleneck_forward.9
= control target key start
LH: loop header
LB: loop body
LE: loop exit
PB: predicated region body
PF: predicated region fallthrough
CT: control target
= control target key end

     0   :  { %vm691_vm0 = vcmask 130048   ;;  %s1865_s0 = inlined_call_operand.vmem [shape: bf16[512,16], index: 0, kind: input, shape index: {}]   ;;  %s1866_s1 = inlined_call_operand.vmem [shape: bf16[512,16], index: 1, kind: input, shape index: {}]   ;;  %s1867_s2 = inlined_call_operand.vmem [shape: f32[1,16], index: 2, kind: input, shape index: {}]   ;;  %s1868_s4 = inlined_call_operand.vmem [shape: f32[1,16], index: 4, kind: input, shape index: {}]   ;;  %s1869_s5 = inlined_call_operand.vmem [shape: f32[1,16], index: 5, kind: input, shape index: {}]   ;;  %s1870_s3 = inlined_call_operand.vmem [shape: f32[1,16], index: 3, kind: input, shape index: {}]   ;;  %s1871_s6 = inlined_call_operand.vmem [shape: f32[512,16], index: 6, kind: output, shape index: {}]  }
   0x1   :  { %v765_v0 = vld [vmem:[%s1866_s1] sm:$0xff]   ;;  %v1020_v9 = vld [vmem:[%s1866_s1 + $0x8] sm:$0xff]   ;;  %v1021_v20 = vld [vmem:[%s1866_s1 + $0x10] sm:$0xff]  }
   0x2   :  { %v1127_v1 = vld [vmem:[%s1868_s4] ss:$0 sm:$0xff]  ;;  %v766_v2 = vunpack.c.l.bf16 %v765_v0  ;;  %v767_v5 = vunpack.c.h.bf16 %v765_v0  ;;  %v1051_v10 = vld [vmem:[%s1865_s0 + $0x8] sm:$0xff]   ;;  %v770_v14 = vunpack.c.l.bf16 %v1020_v9  ;;  %v771_v18 = vunpack.c.h.bf16 %v1020_v9  ;;  %v1052_v21 = vld [vmem:[%s1865_s0 + $0x10] sm:$0xff]  }
   0x3   :  { %v893_v3 = vld [vmem:[%s1865_s0] sm:$0xff]   ;;  %v898_v15 = vunpack.c.l.bf16 %v1051_v10  ;;  %v899_v19 = vunpack.c.h.bf16 %v1051_v10  ;;  %v774_v32 = vunpack.c.l.bf16 %v1021_v20  ;;  %v902_v33 = vunpack.c.l.bf16 %v1052_v21  ;;  %v1022_v42 = vld [vmem:[%s1866_s1 + $0x18] sm:$0xff]  }
   0x4   :  { %v1135_v4 = vld [vmem:[%s1867_s2] ss:$0 sm:$0xff]  ;;  %v894_v7 = vunpack.c.l.bf16 %v893_v3  ;;  %v895_v8 = vunpack.c.h.bf16 %v893_v3  ;;  %v158_v11 = vmul.f32 %v766_v2, %v1127_v1  ;;  %v159_v13 = vmul.f32 %v767_v5, %v1127_v1  ;;  %v1053_v43 = vld [vmem:[%s1865_s0 + $0x18] sm:$0xff]  }
   0x5   :  { %v1140_v6 = vld [vmem:[%s1869_s5] ss:$0 sm:$0xff]  ;;  %v160_v24 = vmul.f32 %v770_v14, %v1127_v1  ;;  %v430_v25 = vmul.f32 %v898_v15, %v1135_v4  ;;  %v161_v28 = vmul.f32 %v771_v18, %v1127_v1  ;;  %v431_v29 = vmul.f32 %v899_v19, %v1135_v4  ;;  %v1024_v14 = vld [vmem:[%s1866_s1 + $0x28] sm:$0xff]  }
   0x6   :  { %v1152_v12 = vld [vmem:[%s1870_s3] ss:$0 sm:$0xff]  ;;  %v428_v16 = vmul.f32 %v894_v7, %v1135_v4  ;;  %v429_v17 = vmul.f32 %v895_v8, %v1135_v4  ;;  %v229_v22 = vadd.f32 %v1140_v6, %v158_v11  ;;  %v230_v23 = vadd.f32 %v1140_v6, %v159_v13  ;;  %v1055_v19 = vld [vmem:[%s1865_s0 + $0x28] sm:$0xff]  }
   0x7   :  { %v231_v30 = vadd.f32 %v1140_v6, %v160_v24  ;;  %v501_v31 = vadd.f32 %v1152_v12, %v430_v25  ;;  %v232_v36 = vadd.f32 %v1140_v6, %v161_v28  ;;  %v502_v37 = vadd.f32 %v1152_v12, %v431_v29  ;;  %v1023_v52 = vld [vmem:[%s1866_s1 + $0x20] sm:$0xff]  }
   0x8   :  { %v499_v26 = vadd.f32 %v1152_v12, %v428_v16  ;;  %v500_v27 = vadd.f32 %v1152_v12, %v429_v17  ;;  %v162_v39 = vmul.f32 %v774_v32, %v1127_v1  ;;  %v432_v40 = vmul.f32 %v902_v33, %v1135_v4  ;;  %v1054_v57 = vld [vmem:[%s1865_s0 + $0x20] sm:$0xff]   ;;  %v1025_v32 = vld [vmem:[%s1866_s1 + $0x30] sm:$0xff]  }
   0x9   :  { %v565_v38 = vadd.f32 %v501_v31, %v231_v30  ;;  %v775_v41 = vunpack.c.h.bf16 %v1021_v20  ;;  %v566_v46 = vadd.f32 %v502_v37, %v232_v36  ;;  %v903_v47 = vunpack.c.h.bf16 %v1052_v21  ;;  %v1056_v33 = vld [vmem:[%s1865_s0 + $0x30] sm:$0xff]  }
   0xa   :  { %v563_v34 = vadd.f32 %v499_v26, %v229_v22  ;;  %v564_v35 = vadd.f32 %v500_v27, %v230_v23  ;;  %v233_v49 = vadd.f32 %v1140_v6, %v162_v39  ;;  %v503_v50 = vadd.f32 %v1152_v12, %v432_v40 }
   0xb   :  { %v629_v48 = vmax.f32 %v565_v38, 0.0  ;;  %v163_v51 = vmul.f32 %v775_v41, %v1127_v1  ;;  %v630_v53 = vmax.f32 %v566_v46, 0.0  ;;  %v433_v54 = vmul.f32 %v903_v47, %v1135_v4  ;;  %v1026_v46 = vld [vmem:[%s1866_s1 + $0x38] sm:$0xff]  }
   0xc   :  { %v627_v44 = vmax.f32 %v563_v34, 0.0  ;;  %v628_v45 = vmax.f32 %v564_v35, 0.0  ;;  %v778_v55 = vunpack.c.l.bf16 %v1022_v42  ;;  %v906_v56 = vunpack.c.l.bf16 %v1053_v43 }
   0xd   :  { %694 = vst.msk [vmem:[%s1871_s6 + $0x10] sm:$0xff] %vm691_vm0, %v629_v48  ;;  %v567_v58 = vadd.f32 %v503_v50, %v233_v49  ;;  %v234_v59 = vadd.f32 %v1140_v6, %v163_v51  ;;  %v779_v60 = vunpack.c.h.bf16 %v1022_v42  ;;  %v907_v61 = vunpack.c.h.bf16 %v1053_v43  ;;  %695 = vst.msk [vmem:[%s1871_s6 + $0x18] sm:$0xff] %vm691_vm0, %v630_v53 }
   0xe   :  { %692 = vst.msk [vmem:[%s1871_s6] sm:$0xff] %vm691_vm0, %v627_v44  ;;  %693 = vst.msk [vmem:[%s1871_s6 + $0x8] sm:$0xff] %vm691_vm0, %v628_v45  ;;  %v504_v62 = vadd.f32 %v1152_v12, %v433_v54  ;;  %v164_v63 = vmul.f32 %v778_v55, %v1127_v1  ;;  %v434_v0 = vmul.f32 %v906_v56, %v1135_v4  ;;  %v782_v2 = vunpack.c.l.bf16 %v1023_v52  ;;  %v1057_v55 = vld [vmem:[%s1865_s0 + $0x38] sm:$0xff]  }
   0xf   :  { %v631_v3 = vmax.f32 %v567_v58, 0.0  ;;  %v165_v5 = vmul.f32 %v779_v60, %v1127_v1  ;;  %v435_v7 = vmul.f32 %v907_v61, %v1135_v4  ;;  %v910_v8 = vunpack.c.l.bf16 %v1054_v57 }
  0x10   :  { %v568_v9 = vadd.f32 %v504_v62, %v234_v59  ;;  %v235_v10 = vadd.f32 %v1140_v6, %v164_v63  ;;  %v505_v11 = vadd.f32 %v1152_v12, %v434_v0  ;;  %v166_v13 = vmul.f32 %v782_v2, %v1127_v1 }
  0x11   :  { %696 = vst.msk [vmem:[%s1871_s6 + $0x20] sm:$0xff] %vm691_vm0, %v631_v3  ;;  %v236_v15 = vadd.f32 %v1140_v6, %v165_v5  ;;  %v506_v16 = vadd.f32 %v1152_v12, %v435_v7  ;;  %v436_v17 = vmul.f32 %v910_v8, %v1135_v4  ;;  %v783_v18 = vunpack.c.h.bf16 %v1023_v52  ;;  %v1027_v7 = vld [vmem:[%s1866_s1 + $0x40] sm:$0xff]  }
  0x12   :  { %v632_v20 = vmax.f32 %v568_v9, 0.0  ;;  %v569_v21 = vadd.f32 %v505_v11, %v235_v10  ;;  %v237_v22 = vadd.f32 %v1140_v6, %v166_v13  ;;  %v911_v23 = vunpack.c.h.bf16 %v1054_v57  ;;  %v1058_v13 = vld [vmem:[%s1865_s0 + $0x40] sm:$0xff]  }
  0x13   :  { %v570_v24 = vadd.f32 %v506_v16, %v236_v15  ;;  %v507_v25 = vadd.f32 %v1152_v12, %v436_v17  ;;  %v167_v26 = vmul.f32 %v783_v18, %v1127_v1  ;;  %v786_v27 = vunpack.c.l.bf16 %v1024_v14 }
  0x14   :  { %697 = vst.msk [vmem:[%s1871_s6 + $0x28] sm:$0xff] %vm691_vm0, %v632_v20  ;;  %v633_v28 = vmax.f32 %v569_v21, 0.0  ;;  %v437_v29 = vmul.f32 %v911_v23, %v1135_v4  ;;  %v914_v30 = vunpack.c.l.bf16 %v1055_v19  ;;  %v787_v31 = vunpack.c.h.bf16 %v1024_v14 }
  0x15   :  { %v634_v34 = vmax.f32 %v570_v24, 0.0  ;;  %v571_v35 = vadd.f32 %v507_v25, %v237_v22  ;;  %v238_v36 = vadd.f32 %v1140_v6, %v167_v26  ;;  %v168_v37 = vmul.f32 %v786_v27, %v1127_v1  ;;  %v1028_v26 = vld [vmem:[%s1866_s1 + $0x48] sm:$0xff]  }
  0x16   :  { %698 = vst.msk [vmem:[%s1871_s6 + $0x30] sm:$0xff] %vm691_vm0, %v633_v28  ;;  %v508_v38 = vadd.f32 %v1152_v12, %v437_v29  ;;  %v438_v39 = vmul.f32 %v914_v30, %v1135_v4  ;;  %v169_v40 = vmul.f32 %v787_v31, %v1127_v1  ;;  %v915_v41 = vunpack.c.h.bf16 %v1055_v19  ;;  %v1059_v27 = vld [vmem:[%s1865_s0 + $0x48] sm:$0xff]  }
  0x17   :  { %699 = vst.msk [vmem:[%s1871_s6 + $0x38] sm:$0xff] %vm691_vm0, %v634_v34  ;;  %v635_v42 = vmax.f32 %v571_v35, 0.0  ;;  %v239_v43 = vadd.f32 %v1140_v6, %v168_v37  ;;  %v790_v44 = vunpack.c.l.bf16 %v1025_v32  ;;  %v918_v45 = vunpack.c.l.bf16 %v1056_v33 }
  0x18   :  { %v572_v47 = vadd.f32 %v508_v38, %v238_v36  ;;  %v509_v48 = vadd.f32 %v1152_v12, %v438_v39  ;;  %v240_v49 = vadd.f32 %v1140_v6, %v169_v40  ;;  %v439_v50 = vmul.f32 %v915_v41, %v1135_v4  ;;  %v1029_v40 = vld [vmem:[%s1866_s1 + $0x50] sm:$0xff]  }
  0x19   :  { %700 = vst.msk [vmem:[%s1871_s6 + $0x40] sm:$0xff] %vm691_vm0, %v635_v42  ;;  %v170_v51 = vmul.f32 %v790_v44, %v1127_v1  ;;  %v440_v52 = vmul.f32 %v918_v45, %v1135_v4  ;;  %v791_v53 = vunpack.c.h.bf16 %v1025_v32  ;;  %v919_v54 = vunpack.c.h.bf16 %v1056_v33 }
  0x1a   :  { %v636_v56 = vmax.f32 %v572_v47, 0.0  ;;  %v573_v57 = vadd.f32 %v509_v48, %v239_v43  ;;  %v510_v58 = vadd.f32 %v1152_v12, %v439_v50  ;;  %v794_v59 = vunpack.c.l.bf16 %v1026_v46 }
  0x1b   :  { %v241_v60 = vadd.f32 %v1140_v6, %v170_v51  ;;  %v511_v61 = vadd.f32 %v1152_v12, %v440_v52  ;;  %v171_v62 = vmul.f32 %v791_v53, %v1127_v1  ;;  %v441_v63 = vmul.f32 %v919_v54, %v1135_v4 }
  0x1c   :  { %701 = vst.msk [vmem:[%s1871_s6 + $0x48] sm:$0xff] %vm691_vm0, %v636_v56  ;;  %v637_v0 = vmax.f32 %v573_v57, 0.0  ;;  %v574_v2 = vadd.f32 %v510_v58, %v240_v49  ;;  %v172_v3 = vmul.f32 %v794_v59, %v1127_v1  ;;  %v922_v5 = vunpack.c.l.bf16 %v1057_v55  ;;  %v1060_v49 = vld [vmem:[%s1865_s0 + $0x50] sm:$0xff]  }
  0x1d   :  { %v575_v8 = vadd.f32 %v511_v61, %v241_v60  ;;  %v242_v9 = vadd.f32 %v1140_v6, %v171_v62  ;;  %v512_v10 = vadd.f32 %v1152_v12, %v441_v63  ;;  %v795_v11 = vunpack.c.h.bf16 %v1026_v46  ;;  %v1030_v62 = vld [vmem:[%s1866_s1 + $0x58] sm:$0xff]  }
  0x1e   :  { %702 = vst.msk [vmem:[%s1871_s6 + $0x50] sm:$0xff] %vm691_vm0, %v637_v0  ;;  %v638_v14 = vmax.f32 %v574_v2, 0.0  ;;  %v243_v15 = vadd.f32 %v1140_v6, %v172_v3  ;;  %v442_v16 = vmul.f32 %v922_v5, %v1135_v4  ;;  %v923_v17 = vunpack.c.h.bf16 %v1057_v55  ;;  %v1061_v63 = vld [vmem:[%s1865_s0 + $0x58] sm:$0xff]  }
  0x1f   :  { %v639_v18 = vmax.f32 %v575_v8, 0.0  ;;  %v576_v19 = vadd.f32 %v512_v10, %v242_v9  ;;  %v173_v20 = vmul.f32 %v795_v11, %v1127_v1  ;;  %v798_v21 = vunpack.c.l.bf16 %v1027_v7 }
  0x20   :  { %703 = vst.msk [vmem:[%s1871_s6 + $0x58] sm:$0xff] %vm691_vm0, %v638_v14  ;;  %v513_v22 = vadd.f32 %v1152_v12, %v442_v16  ;;  %v443_v23 = vmul.f32 %v923_v17, %v1135_v4  ;;  %v926_v24 = vunpack.c.l.bf16 %v1058_v13  ;;  %v799_v25 = vunpack.c.h.bf16 %v1027_v7 }
  0x21   :  { %704 = vst.msk [vmem:[%s1871_s6 + $0x60] sm:$0xff] %vm691_vm0, %v639_v18  ;;  %v640_v28 = vmax.f32 %v576_v19, 0.0  ;;  %v244_v29 = vadd.f32 %v1140_v6, %v173_v20  ;;  %v174_v30 = vmul.f32 %v798_v21, %v1127_v1  ;;  %v927_v31 = vunpack.c.h.bf16 %v1058_v13  ;;  %v1031_v20 = vld [vmem:[%s1866_s1 + $0x60] sm:$0xff]  }
  0x22   :  { %v577_v32 = vadd.f32 %v513_v22, %v243_v15  ;;  %v514_v33 = vadd.f32 %v1152_v12, %v443_v23  ;;  %v444_v34 = vmul.f32 %v926_v24, %v1135_v4  ;;  %v175_v35 = vmul.f32 %v799_v25, %v1127_v1  ;;  %v1062_v25 = vld [vmem:[%s1865_s0 + $0x60] sm:$0xff]  }
  0x23   :  { %705 = vst.msk [vmem:[%s1871_s6 + $0x68] sm:$0xff] %vm691_vm0, %v640_v28  ;;  %v245_v36 = vadd.f32 %v1140_v6, %v174_v30  ;;  %v445_v37 = vmul.f32 %v927_v31, %v1135_v4  ;;  %v802_v38 = vunpack.c.l.bf16 %v1028_v26  ;;  %v930_v39 = vunpack.c.l.bf16 %v1059_v27 }
  0x24   :  { %v641_v41 = vmax.f32 %v577_v32, 0.0  ;;  %v578_v42 = vadd.f32 %v514_v33, %v244_v29  ;;  %v515_v43 = vadd.f32 %v1152_v12, %v444_v34  ;;  %v246_v44 = vadd.f32 %v1140_v6, %v175_v35  ;;  %v1032_v34 = vld [vmem:[%s1866_s1 + $0x68] sm:$0xff]  }
  0x25   :  { %v516_v45 = vadd.f32 %v1152_v12, %v445_v37  ;;  %v176_v46 = vmul.f32 %v802_v38, %v1127_v1  ;;  %v446_v47 = vmul.f32 %v930_v39, %v1135_v4  ;;  %v803_v48 = vunpack.c.h.bf16 %v1028_v26 }
  0x26   :  { %706 = vst.msk [vmem:[%s1871_s6 + $0x70] sm:$0xff] %vm691_vm0, %v641_v41  ;;  %v642_v50 = vmax.f32 %v578_v42, 0.0  ;;  %v579_v51 = vadd.f32 %v515_v43, %v245_v36  ;;  %v931_v52 = vunpack.c.h.bf16 %v1059_v27  ;;  %v806_v53 = vunpack.c.l.bf16 %v1029_v40  ;;  %v1063_v43 = vld [vmem:[%s1865_s0 + $0x68] sm:$0xff]  }
  0x27   :  { %v580_v54 = vadd.f32 %v516_v45, %v246_v44  ;;  %v247_v55 = vadd.f32 %v1140_v6, %v176_v46  ;;  %v517_v56 = vadd.f32 %v1152_v12, %v446_v47  ;;  %v177_v57 = vmul.f32 %v803_v48, %v1127_v1 }
  0x28   :  { %707 = vst.msk [vmem:[%s1871_s6 + $0x78] sm:$0xff] %vm691_vm0, %v642_v50  ;;  %v643_v58 = vmax.f32 %v579_v51, 0.0  ;;  %v447_v59 = vmul.f32 %v931_v52, %v1135_v4  ;;  %v178_v60 = vmul.f32 %v806_v53, %v1127_v1  ;;  %v934_v61 = vunpack.c.l.bf16 %v1060_v49 }
  0x29   :  { %v644_v0 = vmax.f32 %v580_v54, 0.0  ;;  %v581_v2 = vadd.f32 %v517_v56, %v247_v55  ;;  %v248_v3 = vadd.f32 %v1140_v6, %v177_v57  ;;  %v807_v5 = vunpack.c.h.bf16 %v1029_v40  ;;  %v1033_v56 = vld [vmem:[%s1866_s1 + $0x70] sm:$0xff]  }
  0x2a   :  { %708 = vst.msk [vmem:[%s1871_s6 + $0x80] sm:$0xff] %vm691_vm0, %v643_v58  ;;  %v518_v7 = vadd.f32 %v1152_v12, %v447_v59  ;;  %v249_v8 = vadd.f32 %v1140_v6, %v178_v60  ;;  %v448_v9 = vmul.f32 %v934_v61, %v1135_v4  ;;  %v935_v10 = vunpack.c.h.bf16 %v1060_v49  ;;  %v1064_v57 = vld [vmem:[%s1865_s0 + $0x70] sm:$0xff]  }
  0x2b   :  { %709 = vst.msk [vmem:[%s1871_s6 + $0x88] sm:$0xff] %vm691_vm0, %v644_v0  ;;  %v645_v11 = vmax.f32 %v581_v2, 0.0  ;;  %v179_v13 = vmul.f32 %v807_v5, %v1127_v1  ;;  %v810_v14 = vunpack.c.l.bf16 %v1030_v62  ;;  %v938_v15 = vunpack.c.l.bf16 %v1061_v63 }
  0x2c   :  { %v582_v16 = vadd.f32 %v518_v7, %v248_v3  ;;  %v519_v17 = vadd.f32 %v1152_v12, %v448_v9  ;;  %v449_v18 = vmul.f32 %v935_v10, %v1135_v4  ;;  %v811_v19 = vunpack.c.h.bf16 %v1030_v62 }
  0x2d   :  { %710 = vst.msk [vmem:[%s1871_s6 + $0x90] sm:$0xff] %vm691_vm0, %v645_v11  ;;  %v250_v21 = vadd.f32 %v1140_v6, %v179_v13  ;;  %v180_v22 = vmul.f32 %v810_v14, %v1127_v1  ;;  %v450_v23 = vmul.f32 %v938_v15, %v1135_v4  ;;  %v939_v24 = vunpack.c.h.bf16 %v1061_v63  ;;  %v1034_v14 = vld [vmem:[%s1866_s1 + $0x78] sm:$0xff]  }
  0x2e   :  { %v646_v26 = vmax.f32 %v582_v16, 0.0  ;;  %v583_v27 = vadd.f32 %v519_v17, %v249_v8  ;;  %v520_v28 = vadd.f32 %v1152_v12, %v449_v18  ;;  %v181_v29 = vmul.f32 %v811_v19, %v1127_v1  ;;  %v1065_v19 = vld [vmem:[%s1865_s0 + $0x78] sm:$0xff]  }
  0x2f   :  { %v251_v30 = vadd.f32 %v1140_v6, %v180_v22  ;;  %v521_v31 = vadd.f32 %v1152_v12, %v450_v23  ;;  %v451_v32 = vmul.f32 %v939_v24, %v1135_v4  ;;  %v814_v33 = vunpack.c.l.bf16 %v1031_v20 }
  0x30   :  { %711 = vst.msk [vmem:[%s1871_s6 + $0x98] sm:$0xff] %vm691_vm0, %v646_v26  ;;  %v647_v35 = vmax.f32 %v583_v27, 0.0  ;;  %v584_v36 = vadd.f32 %v520_v28, %v250_v21  ;;  %v252_v37 = vadd.f32 %v1140_v6, %v181_v29  ;;  %v942_v38 = vunpack.c.l.bf16 %v1062_v25  ;;  %v1035_v28 = vld [vmem:[%s1866_s1 + $0x80] sm:$0xff]  }
  0x31   :  { %v585_v39 = vadd.f32 %v521_v31, %v251_v30  ;;  %v522_v40 = vadd.f32 %v1152_v12, %v451_v32  ;;  %v182_v41 = vmul.f32 %v814_v33, %v1127_v1  ;;  %v815_v42 = vunpack.c.h.bf16 %v1031_v20  ;;  %v1066_v33 = vld [vmem:[%s1865_s0 + $0x80] sm:$0xff]  }
  0x32   :  { %712 = vst.msk [vmem:[%s1871_s6 + $0xa0] sm:$0xff] %vm691_vm0, %v647_v35  ;;  %v648_v44 = vmax.f32 %v584_v36, 0.0  ;;  %v452_v45 = vmul.f32 %v942_v38, %v1135_v4  ;;  %v943_v46 = vunpack.c.h.bf16 %v1062_v25  ;;  %v818_v47 = vunpack.c.l.bf16 %v1032_v34 }
  0x33   :  { %v649_v48 = vmax.f32 %v585_v39, 0.0  ;;  %v586_v49 = vadd.f32 %v522_v40, %v252_v37  ;;  %v253_v50 = vadd.f32 %v1140_v6, %v182_v41  ;;  %v183_v51 = vmul.f32 %v815_v42, %v1127_v1 }
  0x34   :  { %713 = vst.msk [vmem:[%s1871_s6 + $0xa8] sm:$0xff] %vm691_vm0, %v648_v44  ;;  %v523_v52 = vadd.f32 %v1152_v12, %v452_v45  ;;  %v453_v53 = vmul.f32 %v943_v46, %v1135_v4  ;;  %v184_v54 = vmul.f32 %v818_v47, %v1127_v1  ;;  %v946_v55 = vunpack.c.l.bf16 %v1063_v43 }
  0x35   :  { %714 = vst.msk [vmem:[%s1871_s6 + $0xb0] sm:$0xff] %vm691_vm0, %v649_v48  ;;  %v650_v58 = vmax.f32 %v586_v49, 0.0  ;;  %v254_v59 = vadd.f32 %v1140_v6, %v183_v51  ;;  %v819_v60 = vunpack.c.h.bf16 %v1032_v34  ;;  %v947_v61 = vunpack.c.h.bf16 %v1063_v43 }
  0x36   :  { %v587_v62 = vadd.f32 %v523_v52, %v253_v50  ;;  %v524_v63 = vadd.f32 %v1152_v12, %v453_v53  ;;  %v255_v0 = vadd.f32 %v1140_v6, %v184_v54  ;;  %v454_v2 = vmul.f32 %v946_v55, %v1135_v4  ;;  %v1036_v50 = vld [vmem:[%s1866_s1 + $0x88] sm:$0xff]  }
  0x37   :  { %715 = vst.msk [vmem:[%s1871_s6 + $0xb8] sm:$0xff] %vm691_vm0, %v650_v58  ;;  %v185_v3 = vmul.f32 %v819_v60, %v1127_v1  ;;  %v455_v5 = vmul.f32 %v947_v61, %v1135_v4  ;;  %v822_v7 = vunpack.c.l.bf16 %v1033_v56  ;;  %v950_v8 = vunpack.c.l.bf16 %v1064_v57  ;;  %v1067_v55 = vld [vmem:[%s1865_s0 + $0x88] sm:$0xff]  }
  0x38   :  { %v651_v9 = vmax.f32 %v587_v62, 0.0  ;;  %v588_v10 = vadd.f32 %v524_v63, %v254_v59  ;;  %v525_v11 = vadd.f32 %v1152_v12, %v454_v2  ;;  %v823_v13 = vunpack.c.h.bf16 %v1033_v56 }
  0x39   :  { %v256_v15 = vadd.f32 %v1140_v6, %v185_v3  ;;  %v526_v16 = vadd.f32 %v1152_v12, %v455_v5  ;;  %v186_v17 = vmul.f32 %v822_v7, %v1127_v1  ;;  %v456_v18 = vmul.f32 %v950_v8, %v1135_v4  ;;  %v1037_v7 = vld [vmem:[%s1866_s1 + $0x90] sm:$0xff]  }
  0x3a   :  { %716 = vst.msk [vmem:[%s1871_s6 + $0xc0] sm:$0xff] %vm691_vm0, %v651_v9  ;;  %v652_v20 = vmax.f32 %v588_v10, 0.0  ;;  %v589_v21 = vadd.f32 %v525_v11, %v255_v0  ;;  %v187_v22 = vmul.f32 %v823_v13, %v1127_v1  ;;  %v951_v23 = vunpack.c.h.bf16 %v1064_v57  ;;  %v1068_v13 = vld [vmem:[%s1865_s0 + $0x90] sm:$0xff]  }
  0x3b   :  { %v590_v24 = vadd.f32 %v526_v16, %v256_v15  ;;  %v257_v25 = vadd.f32 %v1140_v6, %v186_v17  ;;  %v527_v26 = vadd.f32 %v1152_v12, %v456_v18  ;;  %v826_v27 = vunpack.c.l.bf16 %v1034_v14 }
  0x3c   :  { %717 = vst.msk [vmem:[%s1871_s6 + $0xc8] sm:$0xff] %vm691_vm0, %v652_v20  ;;  %v653_v29 = vmax.f32 %v589_v21, 0.0  ;;  %v258_v30 = vadd.f32 %v1140_v6, %v187_v22  ;;  %v457_v31 = vmul.f32 %v951_v23, %v1135_v4  ;;  %v954_v32 = vunpack.c.l.bf16 %v1065_v19  ;;  %v1038_v22 = vld [vmem:[%s1866_s1 + $0x98] sm:$0xff]  }
  0x3d   :  { %v654_v34 = vmax.f32 %v590_v24, 0.0  ;;  %v591_v35 = vadd.f32 %v527_v26, %v257_v25  ;;  %v188_v36 = vmul.f32 %v826_v27, %v1127_v1  ;;  %v827_v37 = vunpack.c.h.bf16 %v1034_v14  ;;  %v1069_v27 = vld [vmem:[%s1865_s0 + $0x98] sm:$0xff]  }
  0x3e   :  { %718 = vst.msk [vmem:[%s1871_s6 + $0xd0] sm:$0xff] %vm691_vm0, %v653_v29  ;;  %v528_v38 = vadd.f32 %v1152_v12, %v457_v31  ;;  %v458_v39 = vmul.f32 %v954_v32, %v1135_v4  ;;  %v955_v40 = vunpack.c.h.bf16 %v1065_v19  ;;  %v830_v41 = vunpack.c.l.bf16 %v1035_v28 }
  0x3f   :  { %719 = vst.msk [vmem:[%s1871_s6 + $0xd8] sm:$0xff] %vm691_vm0, %v654_v34  ;;  %v655_v42 = vmax.f32 %v591_v35, 0.0  ;;  %v259_v43 = vadd.f32 %v1140_v6, %v188_v36  ;;  %v189_v44 = vmul.f32 %v827_v37, %v1127_v1  ;;  %v958_v45 = vunpack.c.l.bf16 %v1066_v33 }
  0x40   :  { %v592_v46 = vadd.f32 %v528_v38, %v258_v30  ;;  %v529_v47 = vadd.f32 %v1152_v12, %v458_v39  ;;  %v459_v48 = vmul.f32 %v955_v40, %v1135_v4  ;;  %v190_v49 = vmul.f32 %v830_v41, %v1127_v1 }
  0x41   :  { %720 = vst.msk [vmem:[%s1871_s6 + $0xe0] sm:$0xff] %vm691_vm0, %v655_v42  ;;  %v260_v51 = vadd.f32 %v1140_v6, %v189_v44  ;;  %v460_v52 = vmul.f32 %v958_v45, %v1135_v4  ;;  %v831_v53 = vunpack.c.h.bf16 %v1035_v28  ;;  %v959_v54 = vunpack.c.h.bf16 %v1066_v33  ;;  %v1039_v44 = vld [vmem:[%s1866_s1 + $0xa0] sm:$0xff]  }
  0x42   :  { %v656_v56 = vmax.f32 %v592_v46, 0.0  ;;  %v593_v57 = vadd.f32 %v529_v47, %v259_v43  ;;  %v530_v58 = vadd.f32 %v1152_v12, %v459_v48  ;;  %v261_v59 = vadd.f32 %v1140_v6, %v190_v49  ;;  %v1070_v49 = vld [vmem:[%s1865_s0 + $0xa0] sm:$0xff]  }
  0x43   :  { %v531_v60 = vadd.f32 %v1152_v12, %v460_v52  ;;  %v191_v61 = vmul.f32 %v831_v53, %v1127_v1  ;;  %v461_v62 = vmul.f32 %v959_v54, %v1135_v4  ;;  %v834_v63 = vunpack.c.l.bf16 %v1036_v50 }
  0x44   :  { %721 = vst.msk [vmem:[%s1871_s6 + $0xe8] sm:$0xff] %vm691_vm0, %v656_v56  ;;  %v657_v0 = vmax.f32 %v593_v57, 0.0  ;;  %v594_v2 = vadd.f32 %v530_v58, %v260_v51  ;;  %v962_v3 = vunpack.c.l.bf16 %v1067_v55  ;;  %v835_v5 = vunpack.c.h.bf16 %v1036_v50 }
  0x45   :  { %v595_v8 = vadd.f32 %v531_v60, %v261_v59  ;;  %v262_v9 = vadd.f32 %v1140_v6, %v191_v61  ;;  %v532_v10 = vadd.f32 %v1152_v12, %v461_v62  ;;  %v192_v11 = vmul.f32 %v834_v63, %v1127_v1  ;;  %v1040_v62 = vld [vmem:[%s1866_s1 + $0xa8] sm:$0xff]  }
  0x46   :  { %722 = vst.msk [vmem:[%s1871_s6 + $0xf0] sm:$0xff] %vm691_vm0, %v657_v0  ;;  %v658_v14 = vmax.f32 %v594_v2, 0.0  ;;  %v462_v15 = vmul.f32 %v962_v3, %v1135_v4  ;;  %v193_v16 = vmul.f32 %v835_v5, %v1127_v1  ;;  %v963_v17 = vunpack.c.h.bf16 %v1067_v55  ;;  %v1071_v63 = vld [vmem:[%s1865_s0 + $0xa8] sm:$0xff]  }
  0x47   :  { %v659_v18 = vmax.f32 %v595_v8, 0.0  ;;  %v596_v19 = vadd.f32 %v532_v10, %v262_v9  ;;  %v263_v20 = vadd.f32 %v1140_v6, %v192_v11  ;;  %v838_v21 = vunpack.c.l.bf16 %v1037_v7 }
  0x48   :  { %723 = vst.msk [vmem:[%s1871_s6 + $0xf8] sm:$0xff] %vm691_vm0, %v658_v14  ;;  %v533_v23 = vadd.f32 %v1152_v12, %v462_v15  ;;  %v264_v24 = vadd.f32 %v1140_v6, %v193_v16  ;;  %v463_v25 = vmul.f32 %v963_v17, %v1135_v4  ;;  %v966_v26 = vunpack.c.l.bf16 %v1068_v13  ;;  %v1041_v16 = vld [vmem:[%s1866_s1 + $0xb0] sm:$0xff]  }
  0x49   :  { %724 = vst.msk [vmem:[%s1871_s6 + $0x100] sm:$0xff] %vm691_vm0, %v659_v18  ;;  %v660_v28 = vmax.f32 %v596_v19, 0.0  ;;  %v194_v29 = vmul.f32 %v838_v21, %v1127_v1  ;;  %v839_v30 = vunpack.c.h.bf16 %v1037_v7  ;;  %v967_v31 = vunpack.c.h.bf16 %v1068_v13 }
  0x4a   :  { %v597_v32 = vadd.f32 %v533_v23, %v263_v20  ;;  %v534_v33 = vadd.f32 %v1152_v12, %v463_v25  ;;  %v464_v34 = vmul.f32 %v966_v26, %v1135_v4  ;;  %v842_v35 = vunpack.c.l.bf16 %v1038_v22  ;;  %v1072_v25 = vld [vmem:[%s1865_s0 + $0xb0] sm:$0xff]  }
  0x4b   :  { %725 = vst.msk [vmem:[%s1871_s6 + $0x108] sm:$0xff] %vm691_vm0, %v660_v28  ;;  %v265_v36 = vadd.f32 %v1140_v6, %v194_v29  ;;  %v195_v37 = vmul.f32 %v839_v30, %v1127_v1  ;;  %v465_v38 = vmul.f32 %v967_v31, %v1135_v4  ;;  %v970_v39 = vunpack.c.l.bf16 %v1069_v27 }
  0x4c   :  { %v661_v40 = vmax.f32 %v597_v32, 0.0  ;;  %v598_v41 = vadd.f32 %v534_v33, %v264_v24  ;;  %v535_v42 = vadd.f32 %v1152_v12, %v464_v34  ;;  %v196_v43 = vmul.f32 %v842_v35, %v1127_v1 }
  0x4d   :  { %v266_v45 = vadd.f32 %v1140_v6, %v195_v37  ;;  %v536_v46 = vadd.f32 %v1152_v12, %v465_v38  ;;  %v466_v47 = vmul.f32 %v970_v39, %v1135_v4  ;;  %v843_v48 = vunpack.c.h.bf16 %v1038_v22  ;;  %v1042_v38 = vld [vmem:[%s1866_s1 + $0xb8] sm:$0xff]  }
  0x4e   :  { %726 = vst.msk [vmem:[%s1871_s6 + $0x110] sm:$0xff] %vm691_vm0, %v661_v40  ;;  %v662_v50 = vmax.f32 %v598_v41, 0.0  ;;  %v599_v51 = vadd.f32 %v535_v42, %v265_v36  ;;  %v267_v52 = vadd.f32 %v1140_v6, %v196_v43  ;;  %v971_v53 = vunpack.c.h.bf16 %v1069_v27  ;;  %v1073_v43 = vld [vmem:[%s1865_s0 + $0xb8] sm:$0xff]  }
  0x4f   :  { %v600_v54 = vadd.f32 %v536_v46, %v266_v45  ;;  %v537_v55 = vadd.f32 %v1152_v12, %v466_v47  ;;  %v197_v56 = vmul.f32 %v843_v48, %v1127_v1  ;;  %v846_v57 = vunpack.c.l.bf16 %v1039_v44 }
  0x50   :  { %727 = vst.msk [vmem:[%s1871_s6 + $0x118] sm:$0xff] %vm691_vm0, %v662_v50  ;;  %v663_v58 = vmax.f32 %v599_v51, 0.0  ;;  %v467_v59 = vmul.f32 %v971_v53, %v1135_v4  ;;  %v974_v60 = vunpack.c.l.bf16 %v1070_v49  ;;  %v847_v61 = vunpack.c.h.bf16 %v1039_v44 }
  0x51   :  { %v664_v0 = vmax.f32 %v600_v54, 0.0  ;;  %v601_v2 = vadd.f32 %v537_v55, %v267_v52  ;;  %v268_v3 = vadd.f32 %v1140_v6, %v197_v56  ;;  %v198_v5 = vmul.f32 %v846_v57, %v1127_v1  ;;  %v1043_v56 = vld [vmem:[%s1866_s1 + $0xc0] sm:$0xff]  }
  0x52   :  { %728 = vst.msk [vmem:[%s1871_s6 + $0x120] sm:$0xff] %vm691_vm0, %v663_v58  ;;  %v538_v7 = vadd.f32 %v1152_v12, %v467_v59  ;;  %v468_v8 = vmul.f32 %v974_v60, %v1135_v4  ;;  %v199_v9 = vmul.f32 %v847_v61, %v1127_v1  ;;  %v975_v10 = vunpack.c.h.bf16 %v1070_v49  ;;  %v1074_v57 = vld [vmem:[%s1865_s0 + $0xc0] sm:$0xff]  }
  0x53   :  { %729 = vst.msk [vmem:[%s1871_s6 + $0x128] sm:$0xff] %vm691_vm0, %v664_v0  ;;  %v665_v11 = vmax.f32 %v601_v2, 0.0  ;;  %v269_v13 = vadd.f32 %v1140_v6, %v198_v5  ;;  %v850_v14 = vunpack.c.l.bf16 %v1040_v62  ;;  %v978_v15 = vunpack.c.l.bf16 %v1071_v63 }
  0x54   :  { %v602_v17 = vadd.f32 %v538_v7, %v268_v3  ;;  %v539_v18 = vadd.f32 %v1152_v12, %v468_v8  ;;  %v270_v19 = vadd.f32 %v1140_v6, %v199_v9  ;;  %v469_v20 = vmul.f32 %v975_v10, %v1135_v4  ;;  %v1044_v9 = vld [vmem:[%s1866_s1 + $0xc8] sm:$0xff]  }
  0x55   :  { %730 = vst.msk [vmem:[%s1871_s6 + $0x130] sm:$0xff] %vm691_vm0, %v665_v11  ;;  %v200_v21 = vmul.f32 %v850_v14, %v1127_v1  ;;  %v470_v22 = vmul.f32 %v978_v15, %v1135_v4  ;;  %v851_v23 = vunpack.c.h.bf16 %v1040_v62  ;;  %v979_v24 = vunpack.c.h.bf16 %v1071_v63 }
  0x56   :  { %v666_v26 = vmax.f32 %v602_v17, 0.0  ;;  %v603_v27 = vadd.f32 %v539_v18, %v269_v13  ;;  %v540_v28 = vadd.f32 %v1152_v12, %v469_v20  ;;  %v854_v29 = vunpack.c.l.bf16 %v1041_v16 }
  0x57   :  { %v271_v30 = vadd.f32 %v1140_v6, %v200_v21  ;;  %v541_v31 = vadd.f32 %v1152_v12, %v470_v22  ;;  %v201_v32 = vmul.f32 %v851_v23, %v1127_v1  ;;  %v471_v33 = vmul.f32 %v979_v24, %v1135_v4 }
  0x58   :  { %731 = vst.msk [vmem:[%s1871_s6 + $0x138] sm:$0xff] %vm691_vm0, %v666_v26  ;;  %v667_v34 = vmax.f32 %v603_v27, 0.0  ;;  %v604_v35 = vadd.f32 %v540_v28, %v270_v19  ;;  %v202_v36 = vmul.f32 %v854_v29, %v1127_v1  ;;  %v982_v37 = vunpack.c.l.bf16 %v1072_v25  ;;  %v1075_v19 = vld [vmem:[%s1865_s0 + $0xc8] sm:$0xff]  }
  0x59   :  { %v605_v39 = vadd.f32 %v541_v31, %v271_v30  ;;  %v272_v40 = vadd.f32 %v1140_v6, %v201_v32  ;;  %v542_v41 = vadd.f32 %v1152_v12, %v471_v33  ;;  %v855_v42 = vunpack.c.h.bf16 %v1041_v16  ;;  %v1045_v32 = vld [vmem:[%s1866_s1 + $0xd0] sm:$0xff]  }
  0x5a   :  { %732 = vst.msk [vmem:[%s1871_s6 + $0x140] sm:$0xff] %vm691_vm0, %v667_v34  ;;  %v668_v44 = vmax.f32 %v604_v35, 0.0  ;;  %v273_v45 = vadd.f32 %v1140_v6, %v202_v36  ;;  %v472_v46 = vmul.f32 %v982_v37, %v1135_v4  ;;  %v983_v47 = vunpack.c.h.bf16 %v1072_v25  ;;  %v1076_v33 = vld [vmem:[%s1865_s0 + $0xd0] sm:$0xff]  }
  0x5b   :  { %v669_v48 = vmax.f32 %v605_v39, 0.0  ;;  %v606_v49 = vadd.f32 %v542_v41, %v272_v40  ;;  %v203_v50 = vmul.f32 %v855_v42, %v1127_v1  ;;  %v858_v51 = vunpack.c.l.bf16 %v1042_v38  ;;  %v1701_v42 = vld [vmem:[%s1868_s4] ss:$0 sm:$0xff] }
  0x5c   :  { %733 = vst.msk [vmem:[%s1871_s6 + $0x148] sm:$0xff] %vm691_vm0, %v668_v44  ;;  %v543_v52 = vadd.f32 %v1152_v12, %v472_v46  ;;  %v473_v53 = vmul.f32 %v983_v47, %v1135_v4  ;;  %v986_v54 = vunpack.c.l.bf16 %v1073_v43  ;;  %v859_v55 = vunpack.c.h.bf16 %v1042_v38 }
  0x5d   :  { %734 = vst.msk [vmem:[%s1871_s6 + $0x150] sm:$0xff] %vm691_vm0, %v669_v48  ;;  %v670_v58 = vmax.f32 %v606_v49, 0.0  ;;  %v274_v59 = vadd.f32 %v1140_v6, %v203_v50  ;;  %v204_v60 = vmul.f32 %v858_v51, %v1127_v1  ;;  %v987_v61 = vunpack.c.h.bf16 %v1073_v43  ;;  %v1046_v49 = vld [vmem:[%s1866_s1 + $0xd8] sm:$0xff]  }
  0x5e   :  { %v607_v62 = vadd.f32 %v543_v52, %v273_v45  ;;  %v544_v63 = vadd.f32 %v1152_v12, %v473_v53  ;;  %v474_v0 = vmul.f32 %v986_v54, %v1135_v4  ;;  %v205_v2 = vmul.f32 %v859_v55, %v1127_v1  ;;  %v1077_v54 = vld [vmem:[%s1865_s0 + $0xd8] sm:$0xff]  }
  0x5f   :  { %735 = vst.msk [vmem:[%s1871_s6 + $0x158] sm:$0xff] %vm691_vm0, %v670_v58  ;;  %v275_v3 = vadd.f32 %v1140_v6, %v204_v60  ;;  %v475_v5 = vmul.f32 %v987_v61, %v1135_v4  ;;  %v862_v7 = vunpack.c.l.bf16 %v1043_v56  ;;  %v990_v8 = vunpack.c.l.bf16 %v1074_v57 }
  0x60   :  { %v671_v10 = vmax.f32 %v607_v62, 0.0  ;;  %v608_v11 = vadd.f32 %v544_v63, %v274_v59  ;;  %v545_v13 = vadd.f32 %v1152_v12, %v474_v0  ;;  %v276_v14 = vadd.f32 %v1140_v6, %v205_v2  ;;  %v1047_v0 = vld [vmem:[%s1866_s1 + $0xe0] sm:$0xff]  }
  0x61   :  { %v546_v15 = vadd.f32 %v1152_v12, %v475_v5  ;;  %v206_v16 = vmul.f32 %v862_v7, %v1127_v1  ;;  %v476_v17 = vmul.f32 %v990_v8, %v1135_v4  ;;  %v863_v18 = vunpack.c.h.bf16 %v1043_v56 }
  0x62   :  { %736 = vst.msk [vmem:[%s1871_s6 + $0x160] sm:$0xff] %vm691_vm0, %v671_v10  ;;  %v672_v20 = vmax.f32 %v608_v11, 0.0  ;;  %v609_v21 = vadd.f32 %v545_v13, %v275_v3  ;;  %v991_v22 = vunpack.c.h.bf16 %v1074_v57  ;;  %v866_v23 = vunpack.c.l.bf16 %v1044_v9  ;;  %v1732_v57 = vld [vmem:[%s1870_s3] ss:$0 sm:$0xff] }
  0x63   :  { %v610_v24 = vadd.f32 %v546_v15, %v276_v14  ;;  %v277_v25 = vadd.f32 %v1140_v6, %v206_v16  ;;  %v547_v26 = vadd.f32 %v1152_v12, %v476_v17  ;;  %v207_v27 = vmul.f32 %v863_v18, %v1127_v1  ;;  %v1078_v13 = vld [vmem:[%s1865_s0 + $0xe0] sm:$0xff]  }
  0x64   :  { %737 = vst.msk [vmem:[%s1871_s6 + $0x168] sm:$0xff] %vm691_vm0, %v672_v20  ;;  %v673_v28 = vmax.f32 %v609_v21, 0.0  ;;  %v477_v29 = vmul.f32 %v991_v22, %v1135_v4  ;;  %v208_v30 = vmul.f32 %v866_v23, %v1127_v1  ;;  %v994_v31 = vunpack.c.l.bf16 %v1075_v19 }
  0x65   :  { %v674_v34 = vmax.f32 %v610_v24, 0.0  ;;  %v611_v35 = vadd.f32 %v547_v26, %v277_v25  ;;  %v278_v36 = vadd.f32 %v1140_v6, %v207_v27  ;;  %v867_v37 = vunpack.c.h.bf16 %v1044_v9  ;;  %v1048_v26 = vld [vmem:[%s1866_s1 + $0xe8] sm:$0xff]  }
  0x66   :  { %738 = vst.msk [vmem:[%s1871_s6 + $0x170] sm:$0xff] %vm691_vm0, %v673_v28  ;;  %v548_v1 = vadd.f32 %v1152_v12, %v477_v29  ;;  %v279_v38 = vadd.f32 %v1140_v6, %v208_v30  ;;  %v478_v39 = vmul.f32 %v994_v31, %v1135_v4  ;;  %v995_v40 = vunpack.c.h.bf16 %v1075_v19  ;;  %v1708_v4 = vld [vmem:[%s1867_s2] ss:$0 sm:$0xff]  ;;  %v1079_v27 = vld [vmem:[%s1865_s0 + $0xe8] sm:$0xff]  }
  0x67   :  { %739 = vst.msk [vmem:[%s1871_s6 + $0x178] sm:$0xff] %vm691_vm0, %v674_v34  ;;  %v675_v41 = vmax.f32 %v611_v35, 0.0  ;;  %v209_v43 = vmul.f32 %v1701_v42, %v867_v37  ;;  %v870_v44 = vunpack.c.l.bf16 %v1045_v32  ;;  %v998_v45 = vunpack.c.l.bf16 %v1076_v33 }
  0x68   :  { %v612_v46 = vadd.f32 %v548_v1, %v278_v36  ;;  %v549_v6 = vadd.f32 %v1152_v12, %v478_v39  ;;  %v479_v47 = vmul.f32 %v1708_v4, %v995_v40  ;;  %v871_v48 = vunpack.c.h.bf16 %v1045_v32  ;;  %v1721_v12 = vld [vmem:[%s1869_s5] ss:$0 sm:$0xff] }
  0x69   :  { %740 = vst.msk [vmem:[%s1871_s6 + $0x180] sm:$0xff] %vm691_vm0, %v675_v41  ;;  %v280_v50 = vadd.f32 %v1721_v12, %v209_v43  ;;  %v210_v51 = vmul.f32 %v1701_v42, %v870_v44  ;;  %v480_v52 = vmul.f32 %v1708_v4, %v998_v45  ;;  %v999_v53 = vunpack.c.h.bf16 %v1076_v33  ;;  %v1049_v44 = vld [vmem:[%s1866_s1 + $0xf0] sm:$0xff]  }
  0x6a   :  { %v676_v55 = vmax.f32 %v612_v46, 0.0  ;;  %v613_v56 = vadd.f32 %v549_v6, %v279_v38  ;;  %v550_v58 = vadd.f32 %v1732_v57, %v479_v47  ;;  %v211_v59 = vmul.f32 %v1701_v42, %v871_v48  ;;  %v1080_v48 = vld [vmem:[%s1865_s0 + $0xf0] sm:$0xff]  }
  0x6b   :  { %v281_v60 = vadd.f32 %v1721_v12, %v210_v51  ;;  %v551_v61 = vadd.f32 %v1732_v57, %v480_v52  ;;  %v481_v62 = vmul.f32 %v1708_v4, %v999_v53  ;;  %v874_v63 = vunpack.c.l.bf16 %v1046_v49 }
  0x6c   :  { %741 = vst.msk [vmem:[%s1871_s6 + $0x188] sm:$0xff] %vm691_vm0, %v676_v55  ;;  %v677_v2 = vmax.f32 %v613_v56, 0.0  ;;  %v614_v3 = vadd.f32 %v550_v58, %v280_v50  ;;  %v282_v5 = vadd.f32 %v1721_v12, %v211_v59  ;;  %v1002_v7 = vunpack.c.l.bf16 %v1077_v54  ;;  %v1050_v58 = vld [vmem:[%s1866_s1 + $0xf8] sm:$0xff]  }
  0x6d   :  { %v615_v8 = vadd.f32 %v551_v61, %v281_v60  ;;  %v552_v9 = vadd.f32 %v1732_v57, %v481_v62  ;;  %v212_v10 = vmul.f32 %v1701_v42, %v874_v63  ;;  %v875_v11 = vunpack.c.h.bf16 %v1046_v49  ;;  %v1081_v63 = vld [vmem:[%s1865_s0 + $0xf8] sm:$0xff]  }
  0x6e   :  { %742 = vst.msk [vmem:[%s1871_s6 + $0x190] sm:$0xff] %vm691_vm0, %v677_v2  ;;  %v678_v14 = vmax.f32 %v614_v3, 0.0  ;;  %v482_v15 = vmul.f32 %v1708_v4, %v1002_v7  ;;  %v1003_v16 = vunpack.c.h.bf16 %v1077_v54  ;;  %v878_v17 = vunpack.c.l.bf16 %v1047_v0 }
  0x6f   :  { %v679_v18 = vmax.f32 %v615_v8, 0.0  ;;  %v616_v19 = vadd.f32 %v552_v9, %v282_v5  ;;  %v283_v20 = vadd.f32 %v1721_v12, %v212_v10  ;;  %v213_v21 = vmul.f32 %v1701_v42, %v875_v11 }
  0x70   :  { %743 = vst.msk [vmem:[%s1871_s6 + $0x198] sm:$0xff] %vm691_vm0, %v678_v14  ;;  %v553_v22 = vadd.f32 %v1732_v57, %v482_v15  ;;  %v483_v23 = vmul.f32 %v1708_v4, %v1003_v16  ;;  %v214_v24 = vmul.f32 %v1701_v42, %v878_v17  ;;  %v1006_v25 = vunpack.c.l.bf16 %v1078_v13 }
  0x71   :  { %744 = vst.msk [vmem:[%s1871_s6 + $0x1a0] sm:$0xff] %vm691_vm0, %v679_v18  ;;  %v680_v28 = vmax.f32 %v616_v19, 0.0  ;;  %v284_v29 = vadd.f32 %v1721_v12, %v213_v21  ;;  %v879_v30 = vunpack.c.h.bf16 %v1047_v0  ;;  %v1007_v31 = vunpack.c.h.bf16 %v1078_v13 }
  0x72   :  { %v617_v32 = vadd.f32 %v553_v22, %v283_v20  ;;  %v554_v33 = vadd.f32 %v1732_v57, %v483_v23  ;;  %v285_v34 = vadd.f32 %v1721_v12, %v214_v24  ;;  %v484_v35 = vmul.f32 %v1708_v4, %v1006_v25 }
  0x73   :  { %745 = vst.msk [vmem:[%s1871_s6 + $0x1a8] sm:$0xff] %vm691_vm0, %v680_v28  ;;  %v215_v36 = vmul.f32 %v1701_v42, %v879_v30  ;;  %v485_v37 = vmul.f32 %v1708_v4, %v1007_v31  ;;  %v882_v1 = vunpack.c.l.bf16 %v1048_v26  ;;  %v1010_v38 = vunpack.c.l.bf16 %v1079_v27 }
  0x74   :  { %v681_v39 = vmax.f32 %v617_v32, 0.0  ;;  %v618_v40 = vadd.f32 %v554_v33, %v284_v29  ;;  %v555_v41 = vadd.f32 %v1732_v57, %v484_v35  ;;  %v883_v43 = vunpack.c.h.bf16 %v1048_v26 }
  0x75   :  { %v286_v45 = vadd.f32 %v1721_v12, %v215_v36  ;;  %v556_v46 = vadd.f32 %v1732_v57, %v485_v37  ;;  %v216_v6 = vmul.f32 %v1701_v42, %v882_v1  ;;  %v486_v47 = vmul.f32 %v1708_v4, %v1010_v38 }
  0x76   :  { %746 = vst.msk [vmem:[%s1871_s6 + $0x1b0] sm:$0xff] %vm691_vm0, %v681_v39  ;;  %v682_v49 = vmax.f32 %v618_v40, 0.0  ;;  %v619_v50 = vadd.f32 %v555_v41, %v285_v34  ;;  %v217_v51 = vmul.f32 %v1701_v42, %v883_v43  ;;  %v1011_v52 = vunpack.c.h.bf16 %v1079_v27 }
  0x77   :  { %v620_v53 = vadd.f32 %v556_v46, %v286_v45  ;;  %v287_v54 = vadd.f32 %v1721_v12, %v216_v6  ;;  %v557_v55 = vadd.f32 %v1732_v57, %v486_v47  ;;  %v886_v56 = vunpack.c.l.bf16 %v1049_v44 }
  0x78   :  { %747 = vst.msk [vmem:[%s1871_s6 + $0x1b8] sm:$0xff] %vm691_vm0, %v682_v49  ;;  %v683_v59 = vmax.f32 %v619_v50, 0.0  ;;  %v288_v60 = vadd.f32 %v1721_v12, %v217_v51  ;;  %v487_v61 = vmul.f32 %v1708_v4, %v1011_v52  ;;  %v1014_v62 = vunpack.c.l.bf16 %v1080_v48 }
  0x79   :  { %v684_v0 = vmax.f32 %v620_v53, 0.0  ;;  %v621_v2 = vadd.f32 %v557_v55, %v287_v54  ;;  %v218_v3 = vmul.f32 %v1701_v42, %v886_v56  ;;  %v887_v5 = vunpack.c.h.bf16 %v1049_v44 }
  0x7a   :  { %748 = vst.msk [vmem:[%s1871_s6 + $0x1c0] sm:$0xff] %vm691_vm0, %v683_v59  ;;  %v558_v7 = vadd.f32 %v1732_v57, %v487_v61  ;;  %v488_v8 = vmul.f32 %v1708_v4, %v1014_v62  ;;  %v1015_v9 = vunpack.c.h.bf16 %v1080_v48  ;;  %v890_v10 = vunpack.c.l.bf16 %v1050_v58 }
  0x7b   :  { %749 = vst.msk [vmem:[%s1871_s6 + $0x1c8] sm:$0xff] %vm691_vm0, %v684_v0  ;;  %v685_v11 = vmax.f32 %v621_v2, 0.0  ;;  %v289_v13 = vadd.f32 %v1721_v12, %v218_v3  ;;  %v219_v14 = vmul.f32 %v1701_v42, %v887_v5  ;;  %v1018_v15 = vunpack.c.l.bf16 %v1081_v63 }
  0x7c   :  { %v622_v16 = vadd.f32 %v558_v7, %v288_v60  ;;  %v559_v17 = vadd.f32 %v1732_v57, %v488_v8  ;;  %v489_v18 = vmul.f32 %v1708_v4, %v1015_v9  ;;  %v220_v19 = vmul.f32 %v1701_v42, %v890_v10 }
  0x7d   :  { %750 = vst.msk [vmem:[%s1871_s6 + $0x1d0] sm:$0xff] %vm691_vm0, %v685_v11  ;;  %v290_v20 = vadd.f32 %v1721_v12, %v219_v14  ;;  %v490_v21 = vmul.f32 %v1708_v4, %v1018_v15  ;;  %v891_v22 = vunpack.c.h.bf16 %v1050_v58  ;;  %v1019_v23 = vunpack.c.h.bf16 %v1081_v63 }
  0x7e   :  { %v686_v24 = vmax.f32 %v622_v16, 0.0  ;;  %v623_v25 = vadd.f32 %v559_v17, %v289_v13  ;;  %v560_v26 = vadd.f32 %v1732_v57, %v489_v18  ;;  %v291_v27 = vadd.f32 %v1721_v12, %v220_v19 }
  0x7f   :  { %v561_v28 = vadd.f32 %v1732_v57, %v490_v21  ;;  %v221_v29 = vmul.f32 %v1701_v42, %v891_v22  ;;  %v491_v30 = vmul.f32 %v1708_v4, %v1019_v23 }
  0x80   :  { %751 = vst.msk [vmem:[%s1871_s6 + $0x1d8] sm:$0xff] %vm691_vm0, %v686_v24  ;;  %v687_v31 = vmax.f32 %v623_v25, 0.0  ;;  %v624_v32 = vadd.f32 %v560_v26, %v290_v20 }
  0x81   :  { %v625_v33 = vadd.f32 %v561_v28, %v291_v27  ;;  %v292_v34 = vadd.f32 %v1721_v12, %v221_v29  ;;  %v562_v35 = vadd.f32 %v1732_v57, %v491_v30 }
  0x82   :  { %752 = vst.msk [vmem:[%s1871_s6 + $0x1e0] sm:$0xff] %vm691_vm0, %v687_v31  ;;  %v688_v42 = vmax.f32 %v624_v32, 0.0 }
  0x83   :  { %v689_v36 = vmax.f32 %v625_v33, 0.0  ;;  %v626_v4 = vadd.f32 %v562_v35, %v292_v34 }
  0x84   :  { %753 = vst.msk [vmem:[%s1871_s6 + $0x1e8] sm:$0xff] %vm691_vm0, %v688_v42 }
  0x85   :  { %754 = vst.msk [vmem:[%s1871_s6 + $0x1f0] sm:$0xff] %vm691_vm0, %v689_v36  ;;  %v690_v12 = vmax.f32 %v626_v4, 0.0 }
  0x87   :  { %755 = vst.msk [vmem:[%s1871_s6 + $0x1f8] sm:$0xff] %vm691_vm0, %v690_v12 }

</bundles_post_ra>
